<compile_context>
chip_gen: v5e
topology: v5e:2x2
jax: 0.10.0
libtpu: 0.0.40
codegen_flags: <defaults>
</compile_context>

<pallas_src>
import functools

import jax
import jax.numpy as jnp
import numpy as np
from jax.experimental import pallas as pl
from jax.experimental.pallas import tpu as pltpu


if hasattr(pl, "reciprocal"):
    def _recip(x):
        return pl.reciprocal(x, approx=True)          # EUP vrcp (cheap approx)
else:                                                 # older jax fallback
    def _recip(x):
        return 1.0 / x


# ----------------------------------------------------------------------------- small helpers
def _round_up(n, m=8):
    return max(((n + m - 1) // m) * m, m)


def _cmm(wr, wi, xr, xi):
    """Complex matmul (Wr+iWi)@(Xr+iXi), plain 4-matmul form.
    (MXU has slack at these contraction sizes; the Gauss 3-mult trick costs extra
    full-plane VPU adds on the binding VALU slot, so it was dropped.)"""
    rr = jnp.dot(wr, xr, preferred_element_type=jnp.float32)
    ii = jnp.dot(wi, xi, preferred_element_type=jnp.float32)
    ri = jnp.dot(wr, xi, preferred_element_type=jnp.float32)
    ir = jnp.dot(wi, xr, preferred_element_type=jnp.float32)
    return rr - ii, ri + ir


def _bottleneck_body(xr, xi, mask, H, W,
                     pad_r_ref, pad_i_ref, slab_r_ref, slab_i_ref,
                     w1r, w1i, w2r, w2i, w3r, w3i, s1r, s1i, s2r, s2i):
    """conv1x1+relu -> conv3x3(pad=1)+relu -> conv1x1 -> SE gate, for one batch element.
    xr/xi are (Cin_p, H*W) float32 planes; returns the SE-gated (Cout_p, H*W) planes."""
    hw = H * W
    halo = W + 1

    # ---- conv1 (1x1) + ComplexReLU
    h1r, h1i = _cmm(w1r, w1i, xr, xi)
    h1r = jnp.maximum(h1r, 0.0)
    h1i = jnp.maximum(h1i, 0.0)
    c1 = h1r.shape[0]                                  # mid_p (multiple of 8)

    # ---- conv2 (3x3, padding=1) + ComplexReLU, entirely in VMEM (no HBM im2col)
    # Zero ONLY the halo lanes each step (interior is always overwritten; the tap mask zeroes
    # out-of-image reads -- halo zeroing just guards against stale-VMEM NaN * 0 = NaN).
    zhalo = jnp.zeros((c1, halo), jnp.float32)
    pad_r_ref[:, 0:halo] = zhalo
    pad_i_ref[:, 0:halo] = zhalo
    pad_r_ref[:, halo + hw:halo + hw + halo] = zhalo
    pad_i_ref[:, halo + hw:halo + hw + halo] = zhalo
    pad_r_ref[:, halo:halo + hw] = h1r
    pad_i_ref[:, halo:halo + hw] = h1i

    # Build the masked shifted-window slab (9*mid_p, HW) -> one K=9*mid_p complex contraction.
    tap = 0
    for oh in (-1, 0, 1):
        for ow in (-1, 0, 1):
            start = halo + oh * W + ow
            m = mask[tap:tap + 1, :]                                   # (1, hw) validity mask
            slab_r_ref[tap * c1:(tap + 1) * c1, :] = pad_r_ref[:, start:start + hw] * m
            slab_i_ref[tap * c1:(tap + 1) * c1, :] = pad_i_ref[:, start:start + hw] * m
            tap += 1
    h2r, h2i = _cmm(w2r, w2i, slab_r_ref[...], slab_i_ref[...])
    h2r = jnp.maximum(h2r, 0.0)
    h2i = jnp.maximum(h2i, 0.0)

    # ---- conv3 (1x1), no relu
    h3r, h3i = _cmm(w3r, w3i, h2r, h2i)

    # ---- ComplexSELayer: global avg pool -> fc1 -> relu -> fc2 -> sigmoid -> complex gate
    pr = jnp.mean(h3r, axis=1, keepdims=True)                          # (Cout_p, 1)
    pi = jnp.mean(h3i, axis=1, keepdims=True)
    g1r, g1i = _cmm(s1r, s1i, pr, pi)
    g1r = jnp.maximum(g1r, 0.0)
    g1i = jnp.maximum(g1i, 0.0)
    g2r, g2i = _cmm(s2r, s2i, g1r, g1i)
    gr = jax.nn.sigmoid(g2r)                                           # split-wise sigmoid (see header TODO)
    gi = jax.nn.sigmoid(g2i)
    outr = h3r * gr - h3i * gi                                         # complex gate, broadcast over lanes
    outi = h3r * gi + h3i * gr
    return outr, outi


# ----------------------------------------------------------------------------- Kernel A
def _input_kernel(step, dim_p, H, W,
                  xr_ref, xi_ref, mask_ref,
                  w1r, w1i, w2r, w2i, w3r, w3i, s1r, s1i, s2r, s2i,
                  ysr_ref, ysi_ref,
                  pad_r_ref, pad_i_ref, slab_r_ref, slab_i_ref):
    xr = xr_ref[...]                                                   # (dim_p, H*W)
    xi = xi_ref[...]
    br, bi = _bottleneck_body(
        xr, xi, mask_ref[...], H, W,
        pad_r_ref, pad_i_ref, slab_r_ref, slab_i_ref,
        w1r[...], w1i[...], w2r[...], w2i[...], w3r[...], w3i[...],
        s1r[...], s1i[...], s2r[...], s2i[...])

    # velo / theta split (channel-padded layout puts them at 8-aligned sublane offsets)
    vr, vi = br[:dim_p, :], bi[:dim_p, :]
    a, b = br[dim_p:, :], bi[dim_p:, :]                                # theta = a + i*b
    scr, sci = step * vr, step * vi                                    # step * velo (complex)

    # ---- base trig/hyperbolic values, computed once and shared by all four branches (EUP-lean)
    sin_a, cos_a = jnp.sin(a), jnp.cos(a)
    sin_b, cos_b = jnp.sin(b), jnp.cos(b)
    e_a, e_b = jnp.exp(a), jnp.exp(b)
    inv_ea, inv_eb = _recip(e_a), _recip(e_b)
    sinh_a, cosh_a = 0.5 * (e_a - inv_ea), 0.5 * (e_a + inv_ea)
    sinh_b, cosh_b = 0.5 * (e_b - inv_eb), 0.5 * (e_b + inv_eb)

    sech2_a = _recip(2.0 * cosh_a * cosh_a - 1.0)                      # sech(2a) = 1/cosh(2a)
    sech2_b = _recip(2.0 * cosh_b * cosh_b - 1.0)
    tanh2_a = 2.0 * sinh_a * cosh_a * sech2_a                          # tanh(2a) derived (no EUP tanh)
    tanh2_b = 2.0 * sinh_b * cosh_b * sech2_b
    sin2_a, cos2_a = 2.0 * sin_a * cos_a, 2.0 * cos_a * cos_a - 1.0
    sin2_b, cos2_b = 2.0 * sin_b * cos_b, 2.0 * cos_b * cos_b - 1.0

    # stable complex tanh:  tanh(x+iy) = [tanh 2x + i sin 2y sech 2x] / [1 + cos 2y sech 2x]
    inv_d1 = _recip(1.0 + cos2_b * sech2_a)                            # tanh(theta)
    T1_r, T1_i = tanh2_a * inv_d1, sin2_b * sech2_a * inv_d1
    inv_d2 = _recip(1.0 + cos2_a * sech2_b)                            # tanh(i*theta) = tanh(-b + i*a)
    T2_r, T2_i = -tanh2_b * inv_d2, sin2_a * sech2_b * inv_d2

    S_r, S_i = sin_a * cosh_b, cos_a * sinh_b                          # sin(theta)
    C_r, C_i = cos_a * cosh_b, -sin_a * sinh_b                         # cos(theta) = cos(-theta)
    Hh_r, Hh_i = cosh_a * cos_b, sinh_a * sin_b                        # cosh(theta) = cos(+-i*theta)

    def cmul(ar, ai, br_, bi_):
        return ar * br_ - ai * bi_, ar * bi_ + ai * br_

    def cexp(zr, zi):                                                  # exp(z) = e^Re(z)(cos Im + i sin Im)
        m = jnp.exp(zr)
        return m * jnp.cos(zi), m * jnp.sin(zi)

    e1r, e1i = cexp(*cmul(scr, sci, S_r, S_i))                         # exp(step*velo*sin(theta))
    e2r, e2i = cexp(*cmul(scr, sci, Hh_r, Hh_i))                       # exp(step*velo*cos(+-i theta)), y2/y4
    e3r, e3i = cexp(*cmul(scr, sci, C_r, C_i))                         # exp(step*velo*cos(-theta))

    def branch(k, t_r, t_i, er, ei):                                   # (x + t)*e - t, aligned sublane store
        pr_, pi_ = xr + t_r, xi + t_i
        qr, qi = cmul(pr_, pi_, er, ei)
        ysr_ref[k * dim_p:(k + 1) * dim_p, :] = qr - t_r
        ysi_ref[k * dim_p:(k + 1) * dim_p, :] = qi - t_i

    branch(0, T1_r, T1_i, e1r, e1i)                                    # y1
    branch(1, T2_r, T2_i, e2r, e2i)                                    # y2
    branch(2, -T1_r, -T1_i, e3r, e3i)                                  # y3
    branch(3, -T2_r, -T2_i, e2r, e2i)                                  # y4


# ----------------------------------------------------------------------------- Kernel B
def _output_kernel(H, W,
                   ysr_ref, ysi_ref, xr_ref, xi_ref, mask_ref,
                   w1r, w1i, w2r, w2i, w3r, w3i, s1r, s1i, s2r, s2i,
                   yr_ref, yi_ref,
                   pad_r_ref, pad_i_ref, slab_r_ref, slab_i_ref):
    br, bi = _bottleneck_body(
        ysr_ref[...], ysi_ref[...], mask_ref[...], H, W,
        pad_r_ref, pad_i_ref, slab_r_ref, slab_i_ref,
        w1r[...], w1i[...], w2r[...], w2i[...], w3r[...], w3i[...],
        s1r[...], s1i[...], s2r[...], s2i[...])
    yr_ref[...] = xr_ref[...] + br                                     # fused residual add
    yi_ref[...] = xi_ref[...] + bi


# ----------------------------------------------------------------------------- specs & params
_WEIGHT_KEYS = ("w1r", "w1i", "w2r", "w2i", "w3r", "w3i", "se1r", "se1i", "se2r", "se2i")


def _act_spec(c, hw):
    # one image per grid step; channels on sublanes, full spatial extent lane-dense
    return pl.BlockSpec((None, c, hw), lambda b: (b, 0, 0))


def _resident_spec(arr):
    # small weights / masks: full block, constant index -> fetched once, stays VMEM-resident
    return pl.BlockSpec(arr.shape, lambda b: (0, 0))


def _pad_scratch(c1, H, W):
    # zero-halo flat row used for the in-kernel 3x3 shifted-window conv
    return pltpu.VMEM((c1, H * W + 2 * (W + 1)), jnp.float32)


def _slab_scratch(c1, H, W):
    # (9*mid_p, HW) masked shifted-window slab (VMEM-only im2col)
    return pltpu.VMEM((9 * c1, H * W), jnp.float32)


def _default_vmem_limit():
    limit = 48 * 1024 * 1024                                  # safe on v7x's 64 MiB VMEM
    try:
        cap = int(pltpu.get_tpu_info().vmem_capacity_bytes)
        limit = max(limit, min(100 * 1024 * 1024, (cap * 3) // 4))   # ~96 MiB on v5e/v6e
    except Exception:
        pass
    return limit


_VMEM_LIMIT_BYTES = _default_vmem_limit()


def _compiler_params():
    return pltpu.CompilerParams(
        dimension_semantics=("parallel",),                    # megacore: batch split across TCs (v7x)
        vmem_limit_bytes=_VMEM_LIMIT_BYTES)


def make_tap_masks(H, W):
    """(9, H*W) float32: mask[tap, i*W+j] = 1 iff pixel (i+oh, j+ow) is inside the image,
    tap = (oh+1)*3 + (ow+1).  Encodes the padding=1 zeros of the 3x3 conv."""
    i = jnp.arange(H)[:, None]
    j = jnp.arange(W)[None, :]
    rows = []
    for oh in (-1, 0, 1):
        for ow in (-1, 0, 1):
            valid = (i + oh >= 0) & (i + oh < H) & (j + ow >= 0) & (j + ow < W)
            rows.append(valid.astype(jnp.float32).reshape(H * W))
    return jnp.stack(rows, axis=0)


# ----------------------------------------------------------------------------- stage wrappers
def input_stage(xr, xi, mask9, p, step, H, W):
    """Fused input Bottleneck(dim -> 2*dim) + hyperbolic combine -> ys (B, 4*dim_p, H*W)."""
    B, dim_p, hw = xr.shape
    c1 = p["w1r"].shape[0]
    weights = [p[k] for k in _WEIGHT_KEYS]
    kern = functools.partial(_input_kernel, float(step), dim_p, H, W)
    return pl.pallas_call(
        kern,
        grid=(B,),
        out_shape=(jax.ShapeDtypeStruct((B, 4 * dim_p, hw), jnp.float32),
                   jax.ShapeDtypeStruct((B, 4 * dim_p, hw), jnp.float32)),
        in_specs=[_act_spec(dim_p, hw), _act_spec(dim_p, hw), _resident_spec(mask9)]
                 + [_resident_spec(w) for w in weights],
        out_specs=(_act_spec(4 * dim_p, hw), _act_spec(4 * dim_p, hw)),
        scratch_shapes=[_pad_scratch(c1, H, W), _pad_scratch(c1, H, W),
                        _slab_scratch(c1, H, W), _slab_scratch(c1, H, W)],
        compiler_params=_compiler_params(),
    )(xr, xi, mask9, *weights)


def output_stage(ysr, ysi, xr, xi, mask9, p, H, W):
    """Fused output Bottleneck(4*dim -> dim) + residual add -> y (B, dim_p, H*W)."""
    B, c_in, hw = ysr.shape
    dim_p = xr.shape[1]
    c1 = p["w1r"].shape[0]
    weights = [p[k] for k in _WEIGHT_KEYS]
    kern = functools.partial(_output_kernel, H, W)
    return pl.pallas_call(
        kern,
        grid=(B,),
        out_shape=(jax.ShapeDtypeStruct((B, dim_p, hw), jnp.float32),
                   jax.ShapeDtypeStruct((B, dim_p, hw), jnp.float32)),
        in_specs=[_act_spec(c_in, hw), _act_spec(c_in, hw),
                  _act_spec(dim_p, hw), _act_spec(dim_p, hw), _resident_spec(mask9)]
                 + [_resident_spec(w) for w in weights],
        out_specs=(_act_spec(dim_p, hw), _act_spec(dim_p, hw)),
        scratch_shapes=[_pad_scratch(c1, H, W), _pad_scratch(c1, H, W),
                        _slab_scratch(c1, H, W), _slab_scratch(c1, H, W)],
        compiler_params=_compiler_params(),
    )(ysr, ysi, xr, xi, mask9, *weights)


def cmplx_hyper_bottleneck(x, params, step):
    """x: (B, dim, H, W) complex64 -> (B, dim, H, W) complex64 (CmplxHyperBottleneck.forward)."""
    B, dim, H, W = x.shape
    dim_p = _round_up(dim)
    hw = H * W
    xr = jnp.real(x).astype(jnp.float32).reshape(B, dim, hw)
    xi = jnp.imag(x).astype(jnp.float32).reshape(B, dim, hw)
    if dim_p != dim:                                          # pad channels to an 8-sublane multiple
        padc = ((0, 0), (0, dim_p - dim), (0, 0))
        xr = jnp.pad(xr, padc)
        xi = jnp.pad(xi, padc)
    mask9 = make_tap_masks(H, W)

    ysr, ysi = input_stage(xr, xi, mask9, params["input"], step, H, W)       # (B, 4*dim_p, HW)
    yr, yi = output_stage(ysr, ysi, xr, xi, mask9, params["output"], H, W)   # (B, dim_p, HW)
    y = jax.lax.complex(yr[:, :dim, :], yi[:, :dim, :])
    return y.reshape(B, dim, H, W)


# ----------------------------------------------------------------------------- deterministic init
def make_group_map(n_logical, group, group_p):
    """Logical channel c -> padded position (c // group) * group_p + (c % group)."""
    c = np.arange(n_logical)
    return (c // group) * group_p + (c % group)


def _embed(src, shape_p, row_idx, col_idx):
    dst = jnp.zeros(shape_p, jnp.float32)
    r = np.asarray(row_idx)[:, None]
    c = np.asarray(col_idx)[None, :]
    return dst.at[r, c].set(src)


def init_bottleneck_params(key, c_in, c_out, in_map, c_in_p, out_map, c_out_p,
                           reduction=16, scale=0.1):
    """Weights in channel-padded layout (all channel dims multiples of 8), padded entries zero:
      w1:  (mid_p, c_in_p)     1x1 conv; logical rows [0,mid), logical cols at in_map
      w2:  (mid_p, 9*mid_p)    3x3 conv; col = tap*mid_p + cin with tap = kh*3 + kw
                               (from PyTorch (out,in,kh,kw): permute to (out,kh,kw,in) then reshape)
      w3:  (c_out_p, mid_p)    1x1 conv; logical rows at out_map
      se1: (hid_p, c_out_p), se2: (c_out_p, hid_p)   SE FCs (no bias)
    """
    mid = max(c_in // 4, 1)
    mid_p = _round_up(mid)
    hid = c_out // reduction + 1
    hid_p = _round_up(hid)
    ks = jax.random.split(key, 10)

    def rnd(k, shape):
        return scale * jax.random.normal(k, shape, dtype=jnp.float32)

    mid_idx = np.arange(mid)
    hid_idx = np.arange(hid)
    w2_col = np.concatenate([t * mid_p + mid_idx for t in range(9)])

    return dict(
        w1r=_embed(rnd(ks[0], (mid, c_in)), (mid_p, c_in_p), mid_idx, in_map),
        w1i=_embed(rnd(ks[1], (mid, c_in)), (mid_p, c_in_p), mid_idx, in_map),
        w2r=_embed(rnd(ks[2], (mid, 9 * mid)), (mid_p, 9 * mid_p), mid_idx, w2_col),
        w2i=_embed(rnd(ks[3], (mid, 9 * mid)), (mid_p, 9 * mid_p), mid_idx, w2_col),
        w3r=_embed(rnd(ks[4], (c_out, mid)), (c_out_p, mid_p), out_map, mid_idx),
        w3i=_embed(rnd(ks[5], (c_out, mid)), (c_out_p, mid_p), out_map, mid_idx),
        se1r=_embed(rnd(ks[6], (hid, c_out)), (hid_p, c_out_p), hid_idx, out_map),
        se1i=_embed(rnd(ks[7], (hid, c_out)), (hid_p, c_out_p), hid_idx, out_map),
        se2r=_embed(rnd(ks[8], (c_out, hid)), (c_out_p, hid_p), out_map, hid_idx),
        se2i=_embed(rnd(ks[9], (c_out, hid)), (c_out_p, hid_p), out_map, hid_idx),
    )


def init_params(key, dim, reduction=16):
    dim_p = _round_up(dim)
    k_in, k_out = jax.random.split(key, 2)
    x_map = np.arange(dim)                                  # x channels live at [0, dim)
    vt_map = make_group_map(2 * dim, dim, dim_p)            # velo/theta groups, dim_p apart
    ys_map = make_group_map(4 * dim, dim, dim_p)            # 4 branch groups, dim_p apart
    return {
        "input": init_bottleneck_params(k_in, dim, 2 * dim, x_map, dim_p,
                                        vt_map, 2 * dim_p, reduction),     # Bottleneck(dim -> 2*dim)
        "output": init_bottleneck_params(k_out, 4 * dim, dim, ys_map, 4 * dim_p,
                                         x_map, dim_p, reduction),          # Bottleneck(4*dim -> dim)
    }


if __name__ == "__main__":
    B, DIM, H, W = 2, 4, 16, 16
    STEP = 0.5

    key = jax.random.PRNGKey(0)
    k1, k2, kp = jax.random.split(key, 3)
    x = jax.lax.complex(jax.random.normal(k1, (B, DIM, H, W), dtype=jnp.float32),
                        jax.random.normal(k2, (B, DIM, H, W), dtype=jnp.float32))
    params = init_params(kp, DIM, reduction=16)

    fwd = jax.jit(lambda xx, pp: cmplx_hyper_bottleneck(xx, pp, STEP))
    y = fwd(x, params)
    jax.block_until_ready(y)

    assert y.shape == (B, DIM, H, W)
    assert y.dtype == jnp.complex64
    assert bool(jnp.all(jnp.isfinite(jnp.real(y)))) and bool(jnp.all(jnp.isfinite(jnp.imag(y))))
    print("KERNEL_OK")
</pallas_src>

<mosaic_0001>
module attributes {stable_mosaic.version = 11 : i64} {
  func.func @_output_kernel(%arg0: i32, %arg1: memref<1x32x256xf32, #tpu.memory_space<vmem>>, %arg2: memref<1x32x256xf32, #tpu.memory_space<vmem>>, %arg3: memref<1x8x256xf32, #tpu.memory_space<vmem>>, %arg4: memref<1x8x256xf32, #tpu.memory_space<vmem>>, %arg5: memref<9x256xf32, #tpu.memory_space<vmem>>, %arg6: memref<8x32xf32, #tpu.memory_space<vmem>>, %arg7: memref<8x32xf32, #tpu.memory_space<vmem>>, %arg8: memref<8x72xf32, #tpu.memory_space<vmem>>, %arg9: memref<8x72xf32, #tpu.memory_space<vmem>>, %arg10: memref<8x8xf32, #tpu.memory_space<vmem>>, %arg11: memref<8x8xf32, #tpu.memory_space<vmem>>, %arg12: memref<8x8xf32, #tpu.memory_space<vmem>>, %arg13: memref<8x8xf32, #tpu.memory_space<vmem>>, %arg14: memref<8x8xf32, #tpu.memory_space<vmem>>, %arg15: memref<8x8xf32, #tpu.memory_space<vmem>>, %arg16: memref<1x8x256xf32, #tpu.memory_space<vmem>>, %arg17: memref<1x8x256xf32, #tpu.memory_space<vmem>>, %arg18: memref<8x290xf32, #tpu.memory_space<vmem>>, %arg19: memref<8x290xf32, #tpu.memory_space<vmem>>, %arg20: memref<72x256xf32, #tpu.memory_space<vmem>>, %arg21: memref<72x256xf32, #tpu.memory_space<vmem>>) attributes {dimension_semantics = [#tpu.dimension_semantics<parallel>], iteration_bounds = array<i64: 2>, scalar_prefetch = 0 : i64, scratch_operands = 4 : i64, tpu.core_type = #tpu.core_type<tc>, window_params = [{transform_indices = @transform_0, window_bounds = array<i64: 1, 32, 256>}, {transform_indices = @transform_1, window_bounds = array<i64: 1, 32, 256>}, {transform_indices = @transform_2, window_bounds = array<i64: 1, 8, 256>}, {transform_indices = @transform_3, window_bounds = array<i64: 1, 8, 256>}, {pipeline_mode = #tpu.pipeline_mode<synchronous>, transform_indices = @transform_4, window_bounds = array<i64: 9, 256>}, {pipeline_mode = #tpu.pipeline_mode<synchronous>, transform_indices = @transform_5, window_bounds = array<i64: 8, 32>}, {pipeline_mode = #tpu.pipeline_mode<synchronous>, transform_indices = @transform_6, window_bounds = array<i64: 8, 32>}, {pipeline_mode = #tpu.pipeline_mode<synchronous>, transform_indices = @transform_7, window_bounds = array<i64: 8, 72>}, {pipeline_mode = #tpu.pipeline_mode<synchronous>, transform_indices = @transform_8, window_bounds = array<i64: 8, 72>}, {pipeline_mode = #tpu.pipeline_mode<synchronous>, transform_indices = @transform_9, window_bounds = array<i64: 8, 8>}, {pipeline_mode = #tpu.pipeline_mode<synchronous>, transform_indices = @transform_10, window_bounds = array<i64: 8, 8>}, {pipeline_mode = #tpu.pipeline_mode<synchronous>, transform_indices = @transform_11, window_bounds = array<i64: 8, 8>}, {pipeline_mode = #tpu.pipeline_mode<synchronous>, transform_indices = @transform_12, window_bounds = array<i64: 8, 8>}, {pipeline_mode = #tpu.pipeline_mode<synchronous>, transform_indices = @transform_13, window_bounds = array<i64: 8, 8>}, {pipeline_mode = #tpu.pipeline_mode<synchronous>, transform_indices = @transform_14, window_bounds = array<i64: 8, 8>}, {transform_indices = @transform_15, window_bounds = array<i64: 1, 8, 256>}, {transform_indices = @transform_16, window_bounds = array<i64: 1, 8, 256>}]} {
    %c0 = arith.constant 0 : index
    %c0_0 = arith.constant 0 : index
    %c0_1 = arith.constant 0 : index
    %0 = vector.load %arg1[%c0, %c0_0, %c0_1] : memref<1x32x256xf32, #tpu.memory_space<vmem>>, vector<1x32x256xf32>
    %1 = vector.shape_cast %0 : vector<1x32x256xf32> to vector<32x256xf32>
    %c0_2 = arith.constant 0 : index
    %c0_3 = arith.constant 0 : index
    %c0_4 = arith.constant 0 : index
    %2 = vector.load %arg2[%c0_2, %c0_3, %c0_4] : memref<1x32x256xf32, #tpu.memory_space<vmem>>, vector<1x32x256xf32>
    %3 = vector.shape_cast %2 : vector<1x32x256xf32> to vector<32x256xf32>
    %c0_5 = arith.constant 0 : index
    %c0_6 = arith.constant 0 : index
    %4 = vector.load %arg5[%c0_5, %c0_6] : memref<9x256xf32, #tpu.memory_space<vmem>>, vector<9x256xf32>
    %c0_7 = arith.constant 0 : index
    %c0_8 = arith.constant 0 : index
    %5 = vector.load %arg6[%c0_7, %c0_8] : memref<8x32xf32, #tpu.memory_space<vmem>>, vector<8x32xf32>
    %c0_9 = arith.constant 0 : index
    %c0_10 = arith.constant 0 : index
    %6 = vector.load %arg7[%c0_9, %c0_10] : memref<8x32xf32, #tpu.memory_space<vmem>>, vector<8x32xf32>
    %c0_11 = arith.constant 0 : index
    %c0_12 = arith.constant 0 : index
    %7 = vector.load %arg8[%c0_11, %c0_12] : memref<8x72xf32, #tpu.memory_space<vmem>>, vector<8x72xf32>
    %c0_13 = arith.constant 0 : index
    %c0_14 = arith.constant 0 : index
    %8 = vector.load %arg9[%c0_13, %c0_14] : memref<8x72xf32, #tpu.memory_space<vmem>>, vector<8x72xf32>
    %c0_15 = arith.constant 0 : index
    %c0_16 = arith.constant 0 : index
    %9 = vector.load %arg10[%c0_15, %c0_16] : memref<8x8xf32, #tpu.memory_space<vmem>>, vector<8x8xf32>
    %c0_17 = arith.constant 0 : index
    %c0_18 = arith.constant 0 : index
    %10 = vector.load %arg11[%c0_17, %c0_18] : memref<8x8xf32, #tpu.memory_space<vmem>>, vector<8x8xf32>
    %c0_19 = arith.constant 0 : index
    %c0_20 = arith.constant 0 : index
    %11 = vector.load %arg12[%c0_19, %c0_20] : memref<8x8xf32, #tpu.memory_space<vmem>>, vector<8x8xf32>
    %c0_21 = arith.constant 0 : index
    %c0_22 = arith.constant 0 : index
    %12 = vector.load %arg13[%c0_21, %c0_22] : memref<8x8xf32, #tpu.memory_space<vmem>>, vector<8x8xf32>
    %c0_23 = arith.constant 0 : index
    %c0_24 = arith.constant 0 : index
    %13 = vector.load %arg14[%c0_23, %c0_24] : memref<8x8xf32, #tpu.memory_space<vmem>>, vector<8x8xf32>
    %c0_25 = arith.constant 0 : index
    %c0_26 = arith.constant 0 : index
    %14 = vector.load %arg15[%c0_25, %c0_26] : memref<8x8xf32, #tpu.memory_space<vmem>>, vector<8x8xf32>
    %cst = arith.constant dense<0.000000e+00> : vector<8x256xf32>
    %15 = tpu.matmul %5, %1, %cst {dimension_numbers = #tpu.dot_dimension_numbers<[1], [0], [0], [1], [0, 0, 1, 1], [], []>} : vector<8x32xf32>, vector<32x256xf32>, vector<8x256xf32> -> vector<8x256xf32>
    %cst_27 = arith.constant dense<0.000000e+00> : vector<8x256xf32>
    %16 = tpu.matmul %6, %3, %cst_27 {dimension_numbers = #tpu.dot_dimension_numbers<[1], [0], [0], [1], [0, 0, 1, 1], [], []>} : vector<8x32xf32>, vector<32x256xf32>, vector<8x256xf32> -> vector<8x256xf32>
    %cst_28 = arith.constant dense<0.000000e+00> : vector<8x256xf32>
    %17 = tpu.matmul %5, %3, %cst_28 {dimension_numbers = #tpu.dot_dimension_numbers<[1], [0], [0], [1], [0, 0, 1, 1], [], []>} : vector<8x32xf32>, vector<32x256xf32>, vector<8x256xf32> -> vector<8x256xf32>
    %cst_29 = arith.constant dense<0.000000e+00> : vector<8x256xf32>
    %18 = tpu.matmul %6, %1, %cst_29 {dimension_numbers = #tpu.dot_dimension_numbers<[1], [0], [0], [1], [0, 0, 1, 1], [], []>} : vector<8x32xf32>, vector<32x256xf32>, vector<8x256xf32> -> vector<8x256xf32>
    %19 = arith.subf %15, %16 : vector<8x256xf32>
    %20 = arith.addf %17, %18 : vector<8x256xf32>
    %cst_30 = arith.constant 0.000000e+00 : f32
    %21 = vector.broadcast %cst_30 : f32 to vector<8x256xf32>
    %22 = arith.maximumf %19, %21 : vector<8x256xf32>
    %cst_31 = arith.constant 0.000000e+00 : f32
    %23 = vector.broadcast %cst_31 : f32 to vector<8x256xf32>
    %24 = arith.maximumf %20, %23 : vector<8x256xf32>
    %cst_32 = arith.constant 0.000000e+00 : f32
    %25 = vector.broadcast %cst_32 : f32 to vector<8x17xf32>
    %c0_33 = arith.constant 0 : index
    %c0_34 = arith.constant 0 : index
    %26 = vector.load %arg18[%c0_33, %c0_34] : memref<8x290xf32, #tpu.memory_space<vmem>>, vector<8x17xf32>
    tpu.vector_store %arg18[%c0_33, %c0_34], %25 {strides = array<i32>} : memref<8x290xf32, #tpu.memory_space<vmem>>, vector<8x17xf32>,
    %c0_35 = arith.constant 0 : index
    %c0_36 = arith.constant 0 : index
    %27 = vector.load %arg19[%c0_35, %c0_36] : memref<8x290xf32, #tpu.memory_space<vmem>>, vector<8x17xf32>
    tpu.vector_store %arg19[%c0_35, %c0_36], %25 {strides = array<i32>} : memref<8x290xf32, #tpu.memory_space<vmem>>, vector<8x17xf32>,
    %c0_37 = arith.constant 0 : index
    %c273 = arith.constant 273 : index
    %28 = vector.load %arg18[%c0_37, %c273] : memref<8x290xf32, #tpu.memory_space<vmem>>, vector<8x17xf32>
    tpu.vector_store %arg18[%c0_37, %c273], %25 {strides = array<i32>} : memref<8x290xf32, #tpu.memory_space<vmem>>, vector<8x17xf32>,
    %c0_38 = arith.constant 0 : index
    %c273_39 = arith.constant 273 : index
    %29 = vector.load %arg19[%c0_38, %c273_39] : memref<8x290xf32, #tpu.memory_space<vmem>>, vector<8x17xf32>
    tpu.vector_store %arg19[%c0_38, %c273_39], %25 {strides = array<i32>} : memref<8x290xf32, #tpu.memory_space<vmem>>, vector<8x17xf32>,
    %c0_40 = arith.constant 0 : index
    %c17 = arith.constant 17 : index
    %30 = vector.load %arg18[%c0_40, %c17] : memref<8x290xf32, #tpu.memory_space<vmem>>, vector<8x256xf32>
    tpu.vector_store %arg18[%c0_40, %c17], %22 {strides = array<i32>} : memref<8x290xf32, #tpu.memory_space<vmem>>, vector<8x256xf32>,
    %c0_41 = arith.constant 0 : index
    %c17_42 = arith.constant 17 : index
    %31 = vector.load %arg19[%c0_41, %c17_42] : memref<8x290xf32, #tpu.memory_space<vmem>>, vector<8x256xf32>
    tpu.vector_store %arg19[%c0_41, %c17_42], %24 {strides = array<i32>} : memref<8x290xf32, #tpu.memory_space<vmem>>, vector<8x256xf32>,
    %32 = vector.extract_strided_slice %4 {offsets = [0, 0], sizes = [1, 256], strides = [1, 1]} : vector<9x256xf32> to vector<1x256xf32>
    %c0_43 = arith.constant 0 : index
    %c0_44 = arith.constant 0 : index
    %33 = vector.load %arg18[%c0_43, %c0_44] : memref<8x290xf32, #tpu.memory_space<vmem>>, vector<8x256xf32>
    %34 = vector.broadcast %32 : vector<1x256xf32> to vector<8x256xf32>
    %35 = arith.mulf %33, %34 : vector<8x256xf32>
    %c0_45 = arith.constant 0 : index
    %c0_46 = arith.constant 0 : index
    %36 = vector.load %arg20[%c0_45, %c0_46] : memref<72x256xf32, #tpu.memory_space<vmem>>, vector<8x256xf32>
    tpu.vector_store %arg20[%c0_45, %c0_46], %35 {strides = array<i32>} : memref<72x256xf32, #tpu.memory_space<vmem>>, vector<8x256xf32>,
    %c0_47 = arith.constant 0 : index
    %c0_48 = arith.constant 0 : index
    %37 = vector.load %arg19[%c0_47, %c0_48] : memref<8x290xf32, #tpu.memory_space<vmem>>, vector<8x256xf32>
    %38 = vector.broadcast %32 : vector<1x256xf32> to vector<8x256xf32>
    %39 = arith.mulf %37, %38 : vector<8x256xf32>
    %c0_49 = arith.constant 0 : index
    %c0_50 = arith.constant 0 : index
    %40 = vector.load %arg21[%c0_49, %c0_50] : memref<72x256xf32, #tpu.memory_space<vmem>>, vector<8x256xf32>
    tpu.vector_store %arg21[%c0_49, %c0_50], %39 {strides = array<i32>} : memref<72x256xf32, #tpu.memory_space<vmem>>, vector<8x256xf32>,
    %41 = vector.extract_strided_slice %4 {offsets = [1, 0], sizes = [1, 256], strides = [1, 1]} : vector<9x256xf32> to vector<1x256xf32>
    %c0_51 = arith.constant 0 : index
    %c1 = arith.constant 1 : index
    %42 = vector.load %arg18[%c0_51, %c1] : memref<8x290xf32, #tpu.memory_space<vmem>>, vector<8x256xf32>
    %43 = vector.broadcast %41 : vector<1x256xf32> to vector<8x256xf32>
    %44 = arith.mulf %42, %43 : vector<8x256xf32>
    %c8 = arith.constant 8 : index
    %c0_52 = arith.constant 0 : index
    %45 = vector.load %arg20[%c8, %c0_52] : memref<72x256xf32, #tpu.memory_space<vmem>>, vector<8x256xf32>
    tpu.vector_store %arg20[%c8, %c0_52], %44 {strides = array<i32>} : memref<72x256xf32, #tpu.memory_space<vmem>>, vector<8x256xf32>,
    %c0_53 = arith.constant 0 : index
    %c1_54 = arith.constant 1 : index
    %46 = vector.load %arg19[%c0_53, %c1_54] : memref<8x290xf32, #tpu.memory_space<vmem>>, vector<8x256xf32>
    %47 = vector.broadcast %41 : vector<1x256xf32> to vector<8x256xf32>
    %48 = arith.mulf %46, %47 : vector<8x256xf32>
    %c8_55 = arith.constant 8 : index
    %c0_56 = arith.constant 0 : index
    %49 = vector.load %arg21[%c8_55, %c0_56] : memref<72x256xf32, #tpu.memory_space<vmem>>, vector<8x256xf32>
    tpu.vector_store %arg21[%c8_55, %c0_56], %48 {strides = array<i32>} : memref<72x256xf32, #tpu.memory_space<vmem>>, vector<8x256xf32>,
    %50 = vector.extract_strided_slice %4 {offsets = [2, 0], sizes = [1, 256], strides = [1, 1]} : vector<9x256xf32> to vector<1x256xf32>
    %c0_57 = arith.constant 0 : index
    %c2 = arith.constant 2 : index
    %51 = vector.load %arg18[%c0_57, %c2] : memref<8x290xf32, #tpu.memory_space<vmem>>, vector<8x256xf32>
    %52 = vector.broadcast %50 : vector<1x256xf32> to vector<8x256xf32>
    %53 = arith.mulf %51, %52 : vector<8x256xf32>
    %c16 = arith.constant 16 : index
    %c0_58 = arith.constant 0 : index
    %54 = vector.load %arg20[%c16, %c0_58] : memref<72x256xf32, #tpu.memory_space<vmem>>, vector<8x256xf32>
    tpu.vector_store %arg20[%c16, %c0_58], %53 {strides = array<i32>} : memref<72x256xf32, #tpu.memory_space<vmem>>, vector<8x256xf32>,
    %c0_59 = arith.constant 0 : index
    %c2_60 = arith.constant 2 : index
    %55 = vector.load %arg19[%c0_59, %c2_60] : memref<8x290xf32, #tpu.memory_space<vmem>>, vector<8x256xf32>
    %56 = vector.broadcast %50 : vector<1x256xf32> to vector<8x256xf32>
    %57 = arith.mulf %55, %56 : vector<8x256xf32>
    %c16_61 = arith.constant 16 : index
    %c0_62 = arith.constant 0 : index
    %58 = vector.load %arg21[%c16_61, %c0_62] : memref<72x256xf32, #tpu.memory_space<vmem>>, vector<8x256xf32>
    tpu.vector_store %arg21[%c16_61, %c0_62], %57 {strides = array<i32>} : memref<72x256xf32, #tpu.memory_space<vmem>>, vector<8x256xf32>,
    %59 = vector.extract_strided_slice %4 {offsets = [3, 0], sizes = [1, 256], strides = [1, 1]} : vector<9x256xf32> to vector<1x256xf32>
    %c0_63 = arith.constant 0 : index
    %c16_64 = arith.constant 16 : index
    %60 = vector.load %arg18[%c0_63, %c16_64] : memref<8x290xf32, #tpu.memory_space<vmem>>, vector<8x256xf32>
    %61 = vector.broadcast %59 : vector<1x256xf32> to vector<8x256xf32>
    %62 = arith.mulf %60, %61 : vector<8x256xf32>
    %c24 = arith.constant 24 : index
    %c0_65 = arith.constant 0 : index
    %63 = vector.load %arg20[%c24, %c0_65] : memref<72x256xf32, #tpu.memory_space<vmem>>, vector<8x256xf32>
    tpu.vector_store %arg20[%c24, %c0_65], %62 {strides = array<i32>} : memref<72x256xf32, #tpu.memory_space<vmem>>, vector<8x256xf32>,
    %c0_66 = arith.constant 0 : index
    %c16_67 = arith.constant 16 : index
    %64 = vector.load %arg19[%c0_66, %c16_67] : memref<8x290xf32, #tpu.memory_space<vmem>>, vector<8x256xf32>
    %65 = vector.broadcast %59 : vector<1x256xf32> to vector<8x256xf32>
    %66 = arith.mulf %64, %65 : vector<8x256xf32>
    %c24_68 = arith.constant 24 : index
    %c0_69 = arith.constant 0 : index
    %67 = vector.load %arg21[%c24_68, %c0_69] : memref<72x256xf32, #tpu.memory_space<vmem>>, vector<8x256xf32>
    tpu.vector_store %arg21[%c24_68, %c0_69], %66 {strides = array<i32>} : memref<72x256xf32, #tpu.memory_space<vmem>>, vector<8x256xf32>,
    %68 = vector.extract_strided_slice %4 {offsets = [4, 0], sizes = [1, 256], strides = [1, 1]} : vector<9x256xf32> to vector<1x256xf32>
    %c0_70 = arith.constant 0 : index
    %c17_71 = arith.constant 17 : index
    %69 = vector.load %arg18[%c0_70, %c17_71] : memref<8x290xf32, #tpu.memory_space<vmem>>, vector<8x256xf32>
    %70 = vector.broadcast %68 : vector<1x256xf32> to vector<8x256xf32>
    %71 = arith.mulf %69, %70 : vector<8x256xf32>
    %c32 = arith.constant 32 : index
    %c0_72 = arith.constant 0 : index
    %72 = vector.load %arg20[%c32, %c0_72] : memref<72x256xf32, #tpu.memory_space<vmem>>, vector<8x256xf32>
    tpu.vector_store %arg20[%c32, %c0_72], %71 {strides = array<i32>} : memref<72x256xf32, #tpu.memory_space<vmem>>, vector<8x256xf32>,
    %c0_73 = arith.constant 0 : index
    %c17_74 = arith.constant 17 : index
    %73 = vector.load %arg19[%c0_73, %c17_74] : memref<8x290xf32, #tpu.memory_space<vmem>>, vector<8x256xf32>
    %74 = vector.broadcast %68 : vector<1x256xf32> to vector<8x256xf32>
    %75 = arith.mulf %73, %74 : vector<8x256xf32>
    %c32_75 = arith.constant 32 : index
    %c0_76 = arith.constant 0 : index
    %76 = vector.load %arg21[%c32_75, %c0_76] : memref<72x256xf32, #tpu.memory_space<vmem>>, vector<8x256xf32>
    tpu.vector_store %arg21[%c32_75, %c0_76], %75 {strides = array<i32>} : memref<72x256xf32, #tpu.memory_space<vmem>>, vector<8x256xf32>,
    %77 = vector.extract_strided_slice %4 {offsets = [5, 0], sizes = [1, 256], strides = [1, 1]} : vector<9x256xf32> to vector<1x256xf32>
    %c0_77 = arith.constant 0 : index
    %c18 = arith.constant 18 : index
    %78 = vector.load %arg18[%c0_77, %c18] : memref<8x290xf32, #tpu.memory_space<vmem>>, vector<8x256xf32>
    %79 = vector.broadcast %77 : vector<1x256xf32> to vector<8x256xf32>
    %80 = arith.mulf %78, %79 : vector<8x256xf32>
    %c40 = arith.constant 40 : index
    %c0_78 = arith.constant 0 : index
    %81 = vector.load %arg20[%c40, %c0_78] : memref<72x256xf32, #tpu.memory_space<vmem>>, vector<8x256xf32>
    tpu.vector_store %arg20[%c40, %c0_78], %80 {strides = array<i32>} : memref<72x256xf32, #tpu.memory_space<vmem>>, vector<8x256xf32>,
    %c0_79 = arith.constant 0 : index
    %c18_80 = arith.constant 18 : index
    %82 = vector.load %arg19[%c0_79, %c18_80] : memref<8x290xf32, #tpu.memory_space<vmem>>, vector<8x256xf32>
    %83 = vector.broadcast %77 : vector<1x256xf32> to vector<8x256xf32>
    %84 = arith.mulf %82, %83 : vector<8x256xf32>
    %c40_81 = arith.constant 40 : index
    %c0_82 = arith.constant 0 : index
    %85 = vector.load %arg21[%c40_81, %c0_82] : memref<72x256xf32, #tpu.memory_space<vmem>>, vector<8x256xf32>
    tpu.vector_store %arg21[%c40_81, %c0_82], %84 {strides = array<i32>} : memref<72x256xf32, #tpu.memory_space<vmem>>, vector<8x256xf32>,
    %86 = vector.extract_strided_slice %4 {offsets = [6, 0], sizes = [1, 256], strides = [1, 1]} : vector<9x256xf32> to vector<1x256xf32>
    %c0_83 = arith.constant 0 : index
    %c32_84 = arith.constant 32 : index
    %87 = vector.load %arg18[%c0_83, %c32_84] : memref<8x290xf32, #tpu.memory_space<vmem>>, vector<8x256xf32>
    %88 = vector.broadcast %86 : vector<1x256xf32> to vector<8x256xf32>
    %89 = arith.mulf %87, %88 : vector<8x256xf32>
    %c48 = arith.constant 48 : index
    %c0_85 = arith.constant 0 : index
    %90 = vector.load %arg20[%c48, %c0_85] : memref<72x256xf32, #tpu.memory_space<vmem>>, vector<8x256xf32>
    tpu.vector_store %arg20[%c48, %c0_85], %89 {strides = array<i32>} : memref<72x256xf32, #tpu.memory_space<vmem>>, vector<8x256xf32>,
    %c0_86 = arith.constant 0 : index
    %c32_87 = arith.constant 32 : index
    %91 = vector.load %arg19[%c0_86, %c32_87] : memref<8x290xf32, #tpu.memory_space<vmem>>, vector<8x256xf32>
    %92 = vector.broadcast %86 : vector<1x256xf32> to vector<8x256xf32>
    %93 = arith.mulf %91, %92 : vector<8x256xf32>
    %c48_88 = arith.constant 48 : index
    %c0_89 = arith.constant 0 : index
    %94 = vector.load %arg21[%c48_88, %c0_89] : memref<72x256xf32, #tpu.memory_space<vmem>>, vector<8x256xf32>
    tpu.vector_store %arg21[%c48_88, %c0_89], %93 {strides = array<i32>} : memref<72x256xf32, #tpu.memory_space<vmem>>, vector<8x256xf32>,
    %95 = vector.extract_strided_slice %4 {offsets = [7, 0], sizes = [1, 256], strides = [1, 1]} : vector<9x256xf32> to vector<1x256xf32>
    %c0_90 = arith.constant 0 : index
    %c33 = arith.constant 33 : index
    %96 = vector.load %arg18[%c0_90, %c33] : memref<8x290xf32, #tpu.memory_space<vmem>>, vector<8x256xf32>
    %97 = vector.broadcast %95 : vector<1x256xf32> to vector<8x256xf32>
    %98 = arith.mulf %96, %97 : vector<8x256xf32>
    %c56 = arith.constant 56 : index
    %c0_91 = arith.constant 0 : index
    %99 = vector.load %arg20[%c56, %c0_91] : memref<72x256xf32, #tpu.memory_space<vmem>>, vector<8x256xf32>
    tpu.vector_store %arg20[%c56, %c0_91], %98 {strides = array<i32>} : memref<72x256xf32, #tpu.memory_space<vmem>>, vector<8x256xf32>,
    %c0_92 = arith.constant 0 : index
    %c33_93 = arith.constant 33 : index
    %100 = vector.load %arg19[%c0_92, %c33_93] : memref<8x290xf32, #tpu.memory_space<vmem>>, vector<8x256xf32>
    %101 = vector.broadcast %95 : vector<1x256xf32> to vector<8x256xf32>
    %102 = arith.mulf %100, %101 : vector<8x256xf32>
    %c56_94 = arith.constant 56 : index
    %c0_95 = arith.constant 0 : index
    %103 = vector.load %arg21[%c56_94, %c0_95] : memref<72x256xf32, #tpu.memory_space<vmem>>, vector<8x256xf32>
    tpu.vector_store %arg21[%c56_94, %c0_95], %102 {strides = array<i32>} : memref<72x256xf32, #tpu.memory_space<vmem>>, vector<8x256xf32>,
    %104 = vector.extract_strided_slice %4 {offsets = [8, 0], sizes = [1, 256], strides = [1, 1]} : vector<9x256xf32> to vector<1x256xf32>
    %c0_96 = arith.constant 0 : index
    %c34 = arith.constant 34 : index
    %105 = vector.load %arg18[%c0_96, %c34] : memref<8x290xf32, #tpu.memory_space<vmem>>, vector<8x256xf32>
    %106 = vector.broadcast %104 : vector<1x256xf32> to vector<8x256xf32>
    %107 = arith.mulf %105, %106 : vector<8x256xf32>
    %c64 = arith.constant 64 : index
    %c0_97 = arith.constant 0 : index
    %108 = vector.load %arg20[%c64, %c0_97] : memref<72x256xf32, #tpu.memory_space<vmem>>, vector<8x256xf32>
    tpu.vector_store %arg20[%c64, %c0_97], %107 {strides = array<i32>} : memref<72x256xf32, #tpu.memory_space<vmem>>, vector<8x256xf32>,
    %c0_98 = arith.constant 0 : index
    %c34_99 = arith.constant 34 : index
    %109 = vector.load %arg19[%c0_98, %c34_99] : memref<8x290xf32, #tpu.memory_space<vmem>>, vector<8x256xf32>
    %110 = vector.broadcast %104 : vector<1x256xf32> to vector<8x256xf32>
    %111 = arith.mulf %109, %110 : vector<8x256xf32>
    %c64_100 = arith.constant 64 : index
    %c0_101 = arith.constant 0 : index
    %112 = vector.load %arg21[%c64_100, %c0_101] : memref<72x256xf32, #tpu.memory_space<vmem>>, vector<8x256xf32>
    tpu.vector_store %arg21[%c64_100, %c0_101], %111 {strides = array<i32>} : memref<72x256xf32, #tpu.memory_space<vmem>>, vector<8x256xf32>,
    %c0_102 = arith.constant 0 : index
    %c0_103 = arith.constant 0 : index
    %113 = vector.load %arg20[%c0_102, %c0_103] : memref<72x256xf32, #tpu.memory_space<vmem>>, vector<72x256xf32>
    %c0_104 = arith.constant 0 : index
    %c0_105 = arith.constant 0 : index
    %114 = vector.load %arg21[%c0_104, %c0_105] : memref<72x256xf32, #tpu.memory_space<vmem>>, vector<72x256xf32>
    %cst_106 = arith.constant dense<0.000000e+00> : vector<8x256xf32>
    %115 = tpu.matmul %7, %113, %cst_106 {dimension_numbers = #tpu.dot_dimension_numbers<[1], [0], [0], [1], [0, 0, 1, 1], [], []>} : vector<8x72xf32>, vector<72x256xf32>, vector<8x256xf32> -> vector<8x256xf32>
    %cst_107 = arith.constant dense<0.000000e+00> : vector<8x256xf32>
    %116 = tpu.matmul %8, %114, %cst_107 {dimension_numbers = #tpu.dot_dimension_numbers<[1], [0], [0], [1], [0, 0, 1, 1], [], []>} : vector<8x72xf32>, vector<72x256xf32>, vector<8x256xf32> -> vector<8x256xf32>
    %cst_108 = arith.constant dense<0.000000e+00> : vector<8x256xf32>
    %117 = tpu.matmul %7, %114, %cst_108 {dimension_numbers = #tpu.dot_dimension_numbers<[1], [0], [0], [1], [0, 0, 1, 1], [], []>} : vector<8x72xf32>, vector<72x256xf32>, vector<8x256xf32> -> vector<8x256xf32>
    %cst_109 = arith.constant dense<0.000000e+00> : vector<8x256xf32>
    %118 = tpu.matmul %8, %113, %cst_109 {dimension_numbers = #tpu.dot_dimension_numbers<[1], [0], [0], [1], [0, 0, 1, 1], [], []>} : vector<8x72xf32>, vector<72x256xf32>, vector<8x256xf32> -> vector<8x256xf32>
    %119 = arith.subf %115, %116 : vector<8x256xf32>
    %120 = arith.addf %117, %118 : vector<8x256xf32>
    %cst_110 = arith.constant 0.000000e+00 : f32
    %121 = vector.broadcast %cst_110 : f32 to vector<8x256xf32>
    %122 = arith.maximumf %119, %121 : vector<8x256xf32>
    %cst_111 = arith.constant 0.000000e+00 : f32
    %123 = vector.broadcast %cst_111 : f32 to vector<8x256xf32>
    %124 = arith.maximumf %120, %123 : vector<8x256xf32>
    %cst_112 = arith.constant dense<0.000000e+00> : vector<8x256xf32>
    %125 = tpu.matmul %9, %122, %cst_112 {dimension_numbers = #tpu.dot_dimension_numbers<[1], [0], [0], [1], [0, 0, 1, 1], [], []>} : vector<8x8xf32>, vector<8x256xf32>, vector<8x256xf32> -> vector<8x256xf32>
    %cst_113 = arith.constant dense<0.000000e+00> : vector<8x256xf32>
    %126 = tpu.matmul %10, %124, %cst_113 {dimension_numbers = #tpu.dot_dimension_numbers<[1], [0], [0], [1], [0, 0, 1, 1], [], []>} : vector<8x8xf32>, vector<8x256xf32>, vector<8x256xf32> -> vector<8x256xf32>
    %cst_114 = arith.constant dense<0.000000e+00> : vector<8x256xf32>
    %127 = tpu.matmul %9, %124, %cst_114 {dimension_numbers = #tpu.dot_dimension_numbers<[1], [0], [0], [1], [0, 0, 1, 1], [], []>} : vector<8x8xf32>, vector<8x256xf32>, vector<8x256xf32> -> vector<8x256xf32>
    %cst_115 = arith.constant dense<0.000000e+00> : vector<8x256xf32>
    %128 = tpu.matmul %10, %122, %cst_115 {dimension_numbers = #tpu.dot_dimension_numbers<[1], [0], [0], [1], [0, 0, 1, 1], [], []>} : vector<8x8xf32>, vector<8x256xf32>, vector<8x256xf32> -> vector<8x256xf32>
    %129 = arith.subf %125, %126 : vector<8x256xf32>
    %130 = arith.addf %127, %128 : vector<8x256xf32>
    %cst_116 = arith.constant dense<0.000000e+00> : vector<8xf32>
    %131 = vector.multi_reduction <add>, %129, %cst_116 [1] : vector<8x256xf32> to vector<8xf32>
    %132 = vector.shape_cast %131 : vector<8xf32> to vector<8x1xf32>
    %cst_117 = arith.constant 2.560000e+02 : f32
    %133 = vector.broadcast %cst_117 : f32 to vector<8x1xf32>
    %134 = arith.divf %132, %133 : vector<8x1xf32>
    %cst_118 = arith.constant dense<0.000000e+00> : vector<8xf32>
    %135 = vector.multi_reduction <add>, %130, %cst_118 [1] : vector<8x256xf32> to vector<8xf32>
    %136 = vector.shape_cast %135 : vector<8xf32> to vector<8x1xf32>
    %cst_119 = arith.constant 2.560000e+02 : f32
    %137 = vector.broadcast %cst_119 : f32 to vector<8x1xf32>
    %138 = arith.divf %136, %137 : vector<8x1xf32>
    %cst_120 = arith.constant dense<0.000000e+00> : vector<8x1xf32>
    %139 = tpu.matmul %11, %134, %cst_120 {dimension_numbers = #tpu.dot_dimension_numbers<[1], [0], [0], [1], [0, 0, 1, 1], [], []>} : vector<8x8xf32>, vector<8x1xf32>, vector<8x1xf32> -> vector<8x1xf32>
    %cst_121 = arith.constant dense<0.000000e+00> : vector<8x1xf32>
    %140 = tpu.matmul %12, %138, %cst_121 {dimension_numbers = #tpu.dot_dimension_numbers<[1], [0], [0], [1], [0, 0, 1, 1], [], []>} : vector<8x8xf32>, vector<8x1xf32>, vector<8x1xf32> -> vector<8x1xf32>
    %cst_122 = arith.constant dense<0.000000e+00> : vector<8x1xf32>
    %141 = tpu.matmul %11, %138, %cst_122 {dimension_numbers = #tpu.dot_dimension_numbers<[1], [0], [0], [1], [0, 0, 1, 1], [], []>} : vector<8x8xf32>, vector<8x1xf32>, vector<8x1xf32> -> vector<8x1xf32>
    %cst_123 = arith.constant dense<0.000000e+00> : vector<8x1xf32>
    %142 = tpu.matmul %12, %134, %cst_123 {dimension_numbers = #tpu.dot_dimension_numbers<[1], [0], [0], [1], [0, 0, 1, 1], [], []>} : vector<8x8xf32>, vector<8x1xf32>, vector<8x1xf32> -> vector<8x1xf32>
    %143 = arith.subf %139, %140 : vector<8x1xf32>
    %144 = arith.addf %141, %142 : vector<8x1xf32>
    %cst_124 = arith.constant 0.000000e+00 : f32
    %145 = vector.broadcast %cst_124 : f32 to vector<8x1xf32>
    %146 = arith.maximumf %143, %145 : vector<8x1xf32>
    %cst_125 = arith.constant 0.000000e+00 : f32
    %147 = vector.broadcast %cst_125 : f32 to vector<8x1xf32>
    %148 = arith.maximumf %144, %147 : vector<8x1xf32>
    %cst_126 = arith.constant dense<0.000000e+00> : vector<8x1xf32>
    %149 = tpu.matmul %13, %146, %cst_126 {dimension_numbers = #tpu.dot_dimension_numbers<[1], [0], [0], [1], [0, 0, 1, 1], [], []>} : vector<8x8xf32>, vector<8x1xf32>, vector<8x1xf32> -> vector<8x1xf32>
    %cst_127 = arith.constant dense<0.000000e+00> : vector<8x1xf32>
    %150 = tpu.matmul %14, %148, %cst_127 {dimension_numbers = #tpu.dot_dimension_numbers<[1], [0], [0], [1], [0, 0, 1, 1], [], []>} : vector<8x8xf32>, vector<8x1xf32>, vector<8x1xf32> -> vector<8x1xf32>
    %cst_128 = arith.constant dense<0.000000e+00> : vector<8x1xf32>
    %151 = tpu.matmul %13, %148, %cst_128 {dimension_numbers = #tpu.dot_dimension_numbers<[1], [0], [0], [1], [0, 0, 1, 1], [], []>} : vector<8x8xf32>, vector<8x1xf32>, vector<8x1xf32> -> vector<8x1xf32>
    %cst_129 = arith.constant dense<0.000000e+00> : vector<8x1xf32>
    %152 = tpu.matmul %14, %146, %cst_129 {dimension_numbers = #tpu.dot_dimension_numbers<[1], [0], [0], [1], [0, 0, 1, 1], [], []>} : vector<8x8xf32>, vector<8x1xf32>, vector<8x1xf32> -> vector<8x1xf32>
    %153 = arith.subf %149, %150 : vector<8x1xf32>
    %154 = arith.addf %151, %152 : vector<8x1xf32>
    %155 = arith.negf %153 : vector<8x1xf32>
    %156 = math.exp %155 : vector<8x1xf32>
    %cst_130 = arith.constant 1.000000e+00 : f32
    %157 = vector.broadcast %cst_130 : f32 to vector<8x1xf32>
    %158 = arith.addf %157, %156 : vector<8x1xf32>
    %159 = arith.divf %157, %158 : vector<8x1xf32>
    %160 = arith.negf %154 : vector<8x1xf32>
    %161 = math.exp %160 : vector<8x1xf32>
    %cst_131 = arith.constant 1.000000e+00 : f32
    %162 = vector.broadcast %cst_131 : f32 to vector<8x1xf32>
    %163 = arith.addf %162, %161 : vector<8x1xf32>
    %164 = arith.divf %162, %163 : vector<8x1xf32>
    %165 = vector.broadcast %159 : vector<8x1xf32> to vector<8x256xf32>
    %166 = arith.mulf %129, %165 : vector<8x256xf32>
    %167 = vector.broadcast %164 : vector<8x1xf32> to vector<8x256xf32>
    %168 = arith.mulf %130, %167 : vector<8x256xf32>
    %169 = arith.subf %166, %168 : vector<8x256xf32>
    %170 = vector.broadcast %164 : vector<8x1xf32> to vector<8x256xf32>
    %171 = arith.mulf %129, %170 : vector<8x256xf32>
    %172 = vector.broadcast %159 : vector<8x1xf32> to vector<8x256xf32>
    %173 = arith.mulf %130, %172 : vector<8x256xf32>
    %174 = arith.addf %171, %173 : vector<8x256xf32>
    %c0_132 = arith.constant 0 : index
    %c0_133 = arith.constant 0 : index
    %c0_134 = arith.constant 0 : index
    %175 = vector.load %arg3[%c0_132, %c0_133, %c0_134] : memref<1x8x256xf32, #tpu.memory_space<vmem>>, vector<1x8x256xf32>
    %176 = vector.shape_cast %175 : vector<1x8x256xf32> to vector<8x256xf32>
    %177 = arith.addf %176, %169 : vector<8x256xf32>
    %c0_135 = arith.constant 0 : index
    %c0_136 = arith.constant 0 : index
    %c0_137 = arith.constant 0 : index
    %178 = vector.load %arg16[%c0_135, %c0_136, %c0_137] : memref<1x8x256xf32, #tpu.memory_space<vmem>>, vector<1x8x256xf32>
    %179 = vector.shape_cast %178 : vector<1x8x256xf32> to vector<8x256xf32>
    %180 = vector.shape_cast %177 : vector<8x256xf32> to vector<1x8x256xf32>
    tpu.vector_store %arg16[%c0_135, %c0_136, %c0_137], %180 {strides = array<i32>} : memref<1x8x256xf32, #tpu.memory_space<vmem>>, vector<1x8x256xf32>,
    %c0_138 = arith.constant 0 : index
    %c0_139 = arith.constant 0 : index
    %c0_140 = arith.constant 0 : index
    %181 = vector.load %arg4[%c0_138, %c0_139, %c0_140] : memref<1x8x256xf32, #tpu.memory_space<vmem>>, vector<1x8x256xf32>
    %182 = vector.shape_cast %181 : vector<1x8x256xf32> to vector<8x256xf32>
    %183 = arith.addf %182, %174 : vector<8x256xf32>
    %c0_141 = arith.constant 0 : index
    %c0_142 = arith.constant 0 : index
    %c0_143 = arith.constant 0 : index
    %184 = vector.load %arg17[%c0_141, %c0_142, %c0_143] : memref<1x8x256xf32, #tpu.memory_space<vmem>>, vector<1x8x256xf32>
    %185 = vector.shape_cast %184 : vector<1x8x256xf32> to vector<8x256xf32>
    %186 = vector.shape_cast %183 : vector<8x256xf32> to vector<1x8x256xf32>
    tpu.vector_store %arg17[%c0_141, %c0_142, %c0_143], %186 {strides = array<i32>} : memref<1x8x256xf32, #tpu.memory_space<vmem>>, vector<1x8x256xf32>,
    return
  }
  func.func @transform_0(%arg0: i32) -> (i32, i32, i32) {
    %c0_i32 = arith.constant 0 : i32
    %c0_i32_0 = arith.constant 0 : i32
    %c0_i32_1 = arith.constant 0 : i32
    return %arg0, %c0_i32, %c0_i32_0 : i32, i32, i32
  }
  func.func @transform_1(%arg0: i32) -> (i32, i32, i32) {
    %c0_i32 = arith.constant 0 : i32
    %c0_i32_0 = arith.constant 0 : i32
    %c0_i32_1 = arith.constant 0 : i32
    return %arg0, %c0_i32, %c0_i32_0 : i32, i32, i32
  }
  func.func @transform_2(%arg0: i32) -> (i32, i32, i32) {
    %c0_i32 = arith.constant 0 : i32
    %c0_i32_0 = arith.constant 0 : i32
    %c0_i32_1 = arith.constant 0 : i32
    return %arg0, %c0_i32, %c0_i32_0 : i32, i32, i32
  }
  func.func @transform_3(%arg0: i32) -> (i32, i32, i32) {
    %c0_i32 = arith.constant 0 : i32
    %c0_i32_0 = arith.constant 0 : i32
    %c0_i32_1 = arith.constant 0 : i32
    return %arg0, %c0_i32, %c0_i32_0 : i32, i32, i32
  }
  func.func @transform_4(%arg0: i32) -> (i32, i32) {
    %c0_i32 = arith.constant 0 : i32
    %c0_i32_0 = arith.constant 0 : i32
    %c0_i32_1 = arith.constant 0 : i32
    return %c0_i32, %c0_i32_0 : i32, i32
  }
  func.func @transform_5(%arg0: i32) -> (i32, i32) {
    %c0_i32 = arith.constant 0 : i32
    %c0_i32_0 = arith.constant 0 : i32
    %c0_i32_1 = arith.constant 0 : i32
    return %c0_i32, %c0_i32_0 : i32, i32
  }
  func.func @transform_6(%arg0: i32) -> (i32, i32) {
    %c0_i32 = arith.constant 0 : i32
    %c0_i32_0 = arith.constant 0 : i32
    %c0_i32_1 = arith.constant 0 : i32
    return %c0_i32, %c0_i32_0 : i32, i32
  }
  func.func @transform_7(%arg0: i32) -> (i32, i32) {
    %c0_i32 = arith.constant 0 : i32
    %c0_i32_0 = arith.constant 0 : i32
    %c0_i32_1 = arith.constant 0 : i32
    return %c0_i32, %c0_i32_0 : i32, i32
  }
  func.func @transform_8(%arg0: i32) -> (i32, i32) {
    %c0_i32 = arith.constant 0 : i32
    %c0_i32_0 = arith.constant 0 : i32
    %c0_i32_1 = arith.constant 0 : i32
    return %c0_i32, %c0_i32_0 : i32, i32
  }
  func.func @transform_9(%arg0: i32) -> (i32, i32) {
    %c0_i32 = arith.constant 0 : i32
    %c0_i32_0 = arith.constant 0 : i32
    %c0_i32_1 = arith.constant 0 : i32
    return %c0_i32, %c0_i32_0 : i32, i32
  }
  func.func @transform_10(%arg0: i32) -> (i32, i32) {
    %c0_i32 = arith.constant 0 : i32
    %c0_i32_0 = arith.constant 0 : i32
    %c0_i32_1 = arith.constant 0 : i32
    return %c0_i32, %c0_i32_0 : i32, i32
  }
  func.func @transform_11(%arg0: i32) -> (i32, i32) {
    %c0_i32 = arith.constant 0 : i32
    %c0_i32_0 = arith.constant 0 : i32
    %c0_i32_1 = arith.constant 0 : i32
    return %c0_i32, %c0_i32_0 : i32, i32
  }
  func.func @transform_12(%arg0: i32) -> (i32, i32) {
    %c0_i32 = arith.constant 0 : i32
    %c0_i32_0 = arith.constant 0 : i32
    %c0_i32_1 = arith.constant 0 : i32
    return %c0_i32, %c0_i32_0 : i32, i32
  }
  func.func @transform_13(%arg0: i32) -> (i32, i32) {
    %c0_i32 = arith.constant 0 : i32
    %c0_i32_0 = arith.constant 0 : i32
    %c0_i32_1 = arith.constant 0 : i32
    return %c0_i32, %c0_i32_0 : i32, i32
  }
  func.func @transform_14(%arg0: i32) -> (i32, i32) {
    %c0_i32 = arith.constant 0 : i32
    %c0_i32_0 = arith.constant 0 : i32
    %c0_i32_1 = arith.constant 0 : i32
    return %c0_i32, %c0_i32_0 : i32, i32
  }
  func.func @transform_15(%arg0: i32) -> (i32, i32, i32) {
    %c0_i32 = arith.constant 0 : i32
    %c0_i32_0 = arith.constant 0 : i32
    %c0_i32_1 = arith.constant 0 : i32
    return %arg0, %c0_i32, %c0_i32_0 : i32, i32, i32
  }
  func.func @transform_16(%arg0: i32) -> (i32, i32, i32) {
    %c0_i32 = arith.constant 0 : i32
    %c0_i32_0 = arith.constant 0 : i32
    %c0_i32_1 = arith.constant 0 : i32
    return %arg0, %c0_i32, %c0_i32_0 : i32, i32, i32
  }
}

module attributes {stable_mosaic.version = 11 : i64} {
  func.func @_input_kernel(%arg0: i32, %arg1: memref<1x8x256xf32, #tpu.memory_space<vmem>>, %arg2: memref<1x8x256xf32, #tpu.memory_space<vmem>>, %arg3: memref<9x256xf32, #tpu.memory_space<vmem>>, %arg4: memref<8x8xf32, #tpu.memory_space<vmem>>, %arg5: memref<8x8xf32, #tpu.memory_space<vmem>>, %arg6: memref<8x72xf32, #tpu.memory_space<vmem>>, %arg7: memref<8x72xf32, #tpu.memory_space<vmem>>, %arg8: memref<16x8xf32, #tpu.memory_space<vmem>>, %arg9: memref<16x8xf32, #tpu.memory_space<vmem>>, %arg10: memref<8x16xf32, #tpu.memory_space<vmem>>, %arg11: memref<8x16xf32, #tpu.memory_space<vmem>>, %arg12: memref<16x8xf32, #tpu.memory_space<vmem>>, %arg13: memref<16x8xf32, #tpu.memory_space<vmem>>, %arg14: memref<1x32x256xf32, #tpu.memory_space<vmem>>, %arg15: memref<1x32x256xf32, #tpu.memory_space<vmem>>, %arg16: memref<8x290xf32, #tpu.memory_space<vmem>>, %arg17: memref<8x290xf32, #tpu.memory_space<vmem>>, %arg18: memref<72x256xf32, #tpu.memory_space<vmem>>, %arg19: memref<72x256xf32, #tpu.memory_space<vmem>>) attributes {dimension_semantics = [#tpu.dimension_semantics<parallel>], iteration_bounds = array<i64: 2>, scalar_prefetch = 0 : i64, scratch_operands = 4 : i64, tpu.core_type = #tpu.core_type<tc>, window_params = [{transform_indices = @transform_0, window_bounds = array<i64: 1, 8, 256>}, {transform_indices = @transform_1, window_bounds = array<i64: 1, 8, 256>}, {pipeline_mode = #tpu.pipeline_mode<synchronous>, transform_indices = @transform_2, window_bounds = array<i64: 9, 256>}, {pipeline_mode = #tpu.pipeline_mode<synchronous>, transform_indices = @transform_3, window_bounds = array<i64: 8, 8>}, {pipeline_mode = #tpu.pipeline_mode<synchronous>, transform_indices = @transform_4, window_bounds = array<i64: 8, 8>}, {pipeline_mode = #tpu.pipeline_mode<synchronous>, transform_indices = @transform_5, window_bounds = array<i64: 8, 72>}, {pipeline_mode = #tpu.pipeline_mode<synchronous>, transform_indices = @transform_6, window_bounds = array<i64: 8, 72>}, {pipeline_mode = #tpu.pipeline_mode<synchronous>, transform_indices = @transform_7, window_bounds = array<i64: 16, 8>}, {pipeline_mode = #tpu.pipeline_mode<synchronous>, transform_indices = @transform_8, window_bounds = array<i64: 16, 8>}, {pipeline_mode = #tpu.pipeline_mode<synchronous>, transform_indices = @transform_9, window_bounds = array<i64: 8, 16>}, {pipeline_mode = #tpu.pipeline_mode<synchronous>, transform_indices = @transform_10, window_bounds = array<i64: 8, 16>}, {pipeline_mode = #tpu.pipeline_mode<synchronous>, transform_indices = @transform_11, window_bounds = array<i64: 16, 8>}, {pipeline_mode = #tpu.pipeline_mode<synchronous>, transform_indices = @transform_12, window_bounds = array<i64: 16, 8>}, {transform_indices = @transform_13, window_bounds = array<i64: 1, 32, 256>}, {transform_indices = @transform_14, window_bounds = array<i64: 1, 32, 256>}]} {
    %c0 = arith.constant 0 : index
    %c0_0 = arith.constant 0 : index
    %c0_1 = arith.constant 0 : index
    %0 = vector.load %arg1[%c0, %c0_0, %c0_1] : memref<1x8x256xf32, #tpu.memory_space<vmem>>, vector<1x8x256xf32>
    %1 = vector.shape_cast %0 : vector<1x8x256xf32> to vector<8x256xf32>
    %c0_2 = arith.constant 0 : index
    %c0_3 = arith.constant 0 : index
    %c0_4 = arith.constant 0 : index
    %2 = vector.load %arg2[%c0_2, %c0_3, %c0_4] : memref<1x8x256xf32, #tpu.memory_space<vmem>>, vector<1x8x256xf32>
    %3 = vector.shape_cast %2 : vector<1x8x256xf32> to vector<8x256xf32>
    %c0_5 = arith.constant 0 : index
    %c0_6 = arith.constant 0 : index
    %4 = vector.load %arg3[%c0_5, %c0_6] : memref<9x256xf32, #tpu.memory_space<vmem>>, vector<9x256xf32>
    %c0_7 = arith.constant 0 : index
    %c0_8 = arith.constant 0 : index
    %5 = vector.load %arg4[%c0_7, %c0_8] : memref<8x8xf32, #tpu.memory_space<vmem>>, vector<8x8xf32>
    %c0_9 = arith.constant 0 : index
    %c0_10 = arith.constant 0 : index
    %6 = vector.load %arg5[%c0_9, %c0_10] : memref<8x8xf32, #tpu.memory_space<vmem>>, vector<8x8xf32>
    %c0_11 = arith.constant 0 : index
    %c0_12 = arith.constant 0 : index
    %7 = vector.load %arg6[%c0_11, %c0_12] : memref<8x72xf32, #tpu.memory_space<vmem>>, vector<8x72xf32>
    %c0_13 = arith.constant 0 : index
    %c0_14 = arith.constant 0 : index
    %8 = vector.load %arg7[%c0_13, %c0_14] : memref<8x72xf32, #tpu.memory_space<vmem>>, vector<8x72xf32>
    %c0_15 = arith.constant 0 : index
    %c0_16 = arith.constant 0 : index
    %9 = vector.load %arg8[%c0_15, %c0_16] : memref<16x8xf32, #tpu.memory_space<vmem>>, vector<16x8xf32>
    %c0_17 = arith.constant 0 : index
    %c0_18 = arith.constant 0 : index
    %10 = vector.load %arg9[%c0_17, %c0_18] : memref<16x8xf32, #tpu.memory_space<vmem>>, vector<16x8xf32>
    %c0_19 = arith.constant 0 : index
    %c0_20 = arith.constant 0 : index
    %11 = vector.load %arg10[%c0_19, %c0_20] : memref<8x16xf32, #tpu.memory_space<vmem>>, vector<8x16xf32>
    %c0_21 = arith.constant 0 : index
    %c0_22 = arith.constant 0 : index
    %12 = vector.load %arg11[%c0_21, %c0_22] : memref<8x16xf32, #tpu.memory_space<vmem>>, vector<8x16xf32>
    %c0_23 = arith.constant 0 : index
    %c0_24 = arith.constant 0 : index
    %13 = vector.load %arg12[%c0_23, %c0_24] : memref<16x8xf32, #tpu.memory_space<vmem>>, vector<16x8xf32>
    %c0_25 = arith.constant 0 : index
    %c0_26 = arith.constant 0 : index
    %14 = vector.load %arg13[%c0_25, %c0_26] : memref<16x8xf32, #tpu.memory_space<vmem>>, vector<16x8xf32>
    %cst = arith.constant dense<0.000000e+00> : vector<8x256xf32>
    %15 = tpu.matmul %5, %1, %cst {dimension_numbers = #tpu.dot_dimension_numbers<[1], [0], [0], [1], [0, 0, 1, 1], [], []>} : vector<8x8xf32>, vector<8x256xf32>, vector<8x256xf32> -> vector<8x256xf32>
    %cst_27 = arith.constant dense<0.000000e+00> : vector<8x256xf32>
    %16 = tpu.matmul %6, %3, %cst_27 {dimension_numbers = #tpu.dot_dimension_numbers<[1], [0], [0], [1], [0, 0, 1, 1], [], []>} : vector<8x8xf32>, vector<8x256xf32>, vector<8x256xf32> -> vector<8x256xf32>
    %cst_28 = arith.constant dense<0.000000e+00> : vector<8x256xf32>
    %17 = tpu.matmul %5, %3, %cst_28 {dimension_numbers = #tpu.dot_dimension_numbers<[1], [0], [0], [1], [0, 0, 1, 1], [], []>} : vector<8x8xf32>, vector<8x256xf32>, vector<8x256xf32> -> vector<8x256xf32>
    %cst_29 = arith.constant dense<0.000000e+00> : vector<8x256xf32>
    %18 = tpu.matmul %6, %1, %cst_29 {dimension_numbers = #tpu.dot_dimension_numbers<[1], [0], [0], [1], [0, 0, 1, 1], [], []>} : vector<8x8xf32>, vector<8x256xf32>, vector<8x256xf32> -> vector<8x256xf32>
    %19 = arith.subf %15, %16 : vector<8x256xf32>
    %20 = arith.addf %17, %18 : vector<8x256xf32>
    %cst_30 = arith.constant 0.000000e+00 : f32
    %21 = vector.broadcast %cst_30 : f32 to vector<8x256xf32>
    %22 = arith.maximumf %19, %21 : vector<8x256xf32>
    %cst_31 = arith.constant 0.000000e+00 : f32
    %23 = vector.broadcast %cst_31 : f32 to vector<8x256xf32>
    %24 = arith.maximumf %20, %23 : vector<8x256xf32>
    %cst_32 = arith.constant 0.000000e+00 : f32
    %25 = vector.broadcast %cst_32 : f32 to vector<8x17xf32>
    %c0_33 = arith.constant 0 : index
    %c0_34 = arith.constant 0 : index
    %26 = vector.load %arg16[%c0_33, %c0_34] : memref<8x290xf32, #tpu.memory_space<vmem>>, vector<8x17xf32>
    tpu.vector_store %arg16[%c0_33, %c0_34], %25 {strides = array<i32>} : memref<8x290xf32, #tpu.memory_space<vmem>>, vector<8x17xf32>,
    %c0_35 = arith.constant 0 : index
    %c0_36 = arith.constant 0 : index
    %27 = vector.load %arg17[%c0_35, %c0_36] : memref<8x290xf32, #tpu.memory_space<vmem>>, vector<8x17xf32>
    tpu.vector_store %arg17[%c0_35, %c0_36], %25 {strides = array<i32>} : memref<8x290xf32, #tpu.memory_space<vmem>>, vector<8x17xf32>,
    %c0_37 = arith.constant 0 : index
    %c273 = arith.constant 273 : index
    %28 = vector.load %arg16[%c0_37, %c273] : memref<8x290xf32, #tpu.memory_space<vmem>>, vector<8x17xf32>
    tpu.vector_store %arg16[%c0_37, %c273], %25 {strides = array<i32>} : memref<8x290xf32, #tpu.memory_space<vmem>>, vector<8x17xf32>,
    %c0_38 = arith.constant 0 : index
    %c273_39 = arith.constant 273 : index
    %29 = vector.load %arg17[%c0_38, %c273_39] : memref<8x290xf32, #tpu.memory_space<vmem>>, vector<8x17xf32>
    tpu.vector_store %arg17[%c0_38, %c273_39], %25 {strides = array<i32>} : memref<8x290xf32, #tpu.memory_space<vmem>>, vector<8x17xf32>,
    %c0_40 = arith.constant 0 : index
    %c17 = arith.constant 17 : index
    %30 = vector.load %arg16[%c0_40, %c17] : memref<8x290xf32, #tpu.memory_space<vmem>>, vector<8x256xf32>
    tpu.vector_store %arg16[%c0_40, %c17], %22 {strides = array<i32>} : memref<8x290xf32, #tpu.memory_space<vmem>>, vector<8x256xf32>,
    %c0_41 = arith.constant 0 : index
    %c17_42 = arith.constant 17 : index
    %31 = vector.load %arg17[%c0_41, %c17_42] : memref<8x290xf32, #tpu.memory_space<vmem>>, vector<8x256xf32>
    tpu.vector_store %arg17[%c0_41, %c17_42], %24 {strides = array<i32>} : memref<8x290xf32, #tpu.memory_space<vmem>>, vector<8x256xf32>,
    %32 = vector.extract_strided_slice %4 {offsets = [0, 0], sizes = [1, 256], strides = [1, 1]} : vector<9x256xf32> to vector<1x256xf32>
    %c0_43 = arith.constant 0 : index
    %c0_44 = arith.constant 0 : index
    %33 = vector.load %arg16[%c0_43, %c0_44] : memref<8x290xf32, #tpu.memory_space<vmem>>, vector<8x256xf32>
    %34 = vector.broadcast %32 : vector<1x256xf32> to vector<8x256xf32>
    %35 = arith.mulf %33, %34 : vector<8x256xf32>
    %c0_45 = arith.constant 0 : index
    %c0_46 = arith.constant 0 : index
    %36 = vector.load %arg18[%c0_45, %c0_46] : memref<72x256xf32, #tpu.memory_space<vmem>>, vector<8x256xf32>
    tpu.vector_store %arg18[%c0_45, %c0_46], %35 {strides = array<i32>} : memref<72x256xf32, #tpu.memory_space<vmem>>, vector<8x256xf32>,
    %c0_47 = arith.constant 0 : index
    %c0_48 = arith.constant 0 : index
    %37 = vector.load %arg17[%c0_47, %c0_48] : memref<8x290xf32, #tpu.memory_space<vmem>>, vector<8x256xf32>
    %38 = vector.broadcast %32 : vector<1x256xf32> to vector<8x256xf32>
    %39 = arith.mulf %37, %38 : vector<8x256xf32>
    %c0_49 = arith.constant 0 : index
    %c0_50 = arith.constant 0 : index
    %40 = vector.load %arg19[%c0_49, %c0_50] : memref<72x256xf32, #tpu.memory_space<vmem>>, vector<8x256xf32>
    tpu.vector_store %arg19[%c0_49, %c0_50], %39 {strides = array<i32>} : memref<72x256xf32, #tpu.memory_space<vmem>>, vector<8x256xf32>,
    %41 = vector.extract_strided_slice %4 {offsets = [1, 0], sizes = [1, 256], strides = [1, 1]} : vector<9x256xf32> to vector<1x256xf32>
    %c0_51 = arith.constant 0 : index
    %c1 = arith.constant 1 : index
    %42 = vector.load %arg16[%c0_51, %c1] : memref<8x290xf32, #tpu.memory_space<vmem>>, vector<8x256xf32>
    %43 = vector.broadcast %41 : vector<1x256xf32> to vector<8x256xf32>
    %44 = arith.mulf %42, %43 : vector<8x256xf32>
    %c8 = arith.constant 8 : index
    %c0_52 = arith.constant 0 : index
    %45 = vector.load %arg18[%c8, %c0_52] : memref<72x256xf32, #tpu.memory_space<vmem>>, vector<8x256xf32>
    tpu.vector_store %arg18[%c8, %c0_52], %44 {strides = array<i32>} : memref<72x256xf32, #tpu.memory_space<vmem>>, vector<8x256xf32>,
    %c0_53 = arith.constant 0 : index
    %c1_54 = arith.constant 1 : index
    %46 = vector.load %arg17[%c0_53, %c1_54] : memref<8x290xf32, #tpu.memory_space<vmem>>, vector<8x256xf32>
    %47 = vector.broadcast %41 : vector<1x256xf32> to vector<8x256xf32>
    %48 = arith.mulf %46, %47 : vector<8x256xf32>
    %c8_55 = arith.constant 8 : index
    %c0_56 = arith.constant 0 : index
    %49 = vector.load %arg19[%c8_55, %c0_56] : memref<72x256xf32, #tpu.memory_space<vmem>>, vector<8x256xf32>
    tpu.vector_store %arg19[%c8_55, %c0_56], %48 {strides = array<i32>} : memref<72x256xf32, #tpu.memory_space<vmem>>, vector<8x256xf32>,
    %50 = vector.extract_strided_slice %4 {offsets = [2, 0], sizes = [1, 256], strides = [1, 1]} : vector<9x256xf32> to vector<1x256xf32>
    %c0_57 = arith.constant 0 : index
    %c2 = arith.constant 2 : index
    %51 = vector.load %arg16[%c0_57, %c2] : memref<8x290xf32, #tpu.memory_space<vmem>>, vector<8x256xf32>
    %52 = vector.broadcast %50 : vector<1x256xf32> to vector<8x256xf32>
    %53 = arith.mulf %51, %52 : vector<8x256xf32>
    %c16 = arith.constant 16 : index
    %c0_58 = arith.constant 0 : index
    %54 = vector.load %arg18[%c16, %c0_58] : memref<72x256xf32, #tpu.memory_space<vmem>>, vector<8x256xf32>
    tpu.vector_store %arg18[%c16, %c0_58], %53 {strides = array<i32>} : memref<72x256xf32, #tpu.memory_space<vmem>>, vector<8x256xf32>,
    %c0_59 = arith.constant 0 : index
    %c2_60 = arith.constant 2 : index
    %55 = vector.load %arg17[%c0_59, %c2_60] : memref<8x290xf32, #tpu.memory_space<vmem>>, vector<8x256xf32>
    %56 = vector.broadcast %50 : vector<1x256xf32> to vector<8x256xf32>
    %57 = arith.mulf %55, %56 : vector<8x256xf32>
    %c16_61 = arith.constant 16 : index
    %c0_62 = arith.constant 0 : index
    %58 = vector.load %arg19[%c16_61, %c0_62] : memref<72x256xf32, #tpu.memory_space<vmem>>, vector<8x256xf32>
    tpu.vector_store %arg19[%c16_61, %c0_62], %57 {strides = array<i32>} : memref<72x256xf32, #tpu.memory_space<vmem>>, vector<8x256xf32>,
    %59 = vector.extract_strided_slice %4 {offsets = [3, 0], sizes = [1, 256], strides = [1, 1]} : vector<9x256xf32> to vector<1x256xf32>
    %c0_63 = arith.constant 0 : index
    %c16_64 = arith.constant 16 : index
    %60 = vector.load %arg16[%c0_63, %c16_64] : memref<8x290xf32, #tpu.memory_space<vmem>>, vector<8x256xf32>
    %61 = vector.broadcast %59 : vector<1x256xf32> to vector<8x256xf32>
    %62 = arith.mulf %60, %61 : vector<8x256xf32>
    %c24 = arith.constant 24 : index
    %c0_65 = arith.constant 0 : index
    %63 = vector.load %arg18[%c24, %c0_65] : memref<72x256xf32, #tpu.memory_space<vmem>>, vector<8x256xf32>
    tpu.vector_store %arg18[%c24, %c0_65], %62 {strides = array<i32>} : memref<72x256xf32, #tpu.memory_space<vmem>>, vector<8x256xf32>,
    %c0_66 = arith.constant 0 : index
    %c16_67 = arith.constant 16 : index
    %64 = vector.load %arg17[%c0_66, %c16_67] : memref<8x290xf32, #tpu.memory_space<vmem>>, vector<8x256xf32>
    %65 = vector.broadcast %59 : vector<1x256xf32> to vector<8x256xf32>
    %66 = arith.mulf %64, %65 : vector<8x256xf32>
    %c24_68 = arith.constant 24 : index
    %c0_69 = arith.constant 0 : index
    %67 = vector.load %arg19[%c24_68, %c0_69] : memref<72x256xf32, #tpu.memory_space<vmem>>, vector<8x256xf32>
    tpu.vector_store %arg19[%c24_68, %c0_69], %66 {strides = array<i32>} : memref<72x256xf32, #tpu.memory_space<vmem>>, vector<8x256xf32>,
    %68 = vector.extract_strided_slice %4 {offsets = [4, 0], sizes = [1, 256], strides = [1, 1]} : vector<9x256xf32> to vector<1x256xf32>
    %c0_70 = arith.constant 0 : index
    %c17_71 = arith.constant 17 : index
    %69 = vector.load %arg16[%c0_70, %c17_71] : memref<8x290xf32, #tpu.memory_space<vmem>>, vector<8x256xf32>
    %70 = vector.broadcast %68 : vector<1x256xf32> to vector<8x256xf32>
    %71 = arith.mulf %69, %70 : vector<8x256xf32>
    %c32 = arith.constant 32 : index
    %c0_72 = arith.constant 0 : index
    %72 = vector.load %arg18[%c32, %c0_72] : memref<72x256xf32, #tpu.memory_space<vmem>>, vector<8x256xf32>
    tpu.vector_store %arg18[%c32, %c0_72], %71 {strides = array<i32>} : memref<72x256xf32, #tpu.memory_space<vmem>>, vector<8x256xf32>,
    %c0_73 = arith.constant 0 : index
    %c17_74 = arith.constant 17 : index
    %73 = vector.load %arg17[%c0_73, %c17_74] : memref<8x290xf32, #tpu.memory_space<vmem>>, vector<8x256xf32>
    %74 = vector.broadcast %68 : vector<1x256xf32> to vector<8x256xf32>
    %75 = arith.mulf %73, %74 : vector<8x256xf32>
    %c32_75 = arith.constant 32 : index
    %c0_76 = arith.constant 0 : index
    %76 = vector.load %arg19[%c32_75, %c0_76] : memref<72x256xf32, #tpu.memory_space<vmem>>, vector<8x256xf32>
    tpu.vector_store %arg19[%c32_75, %c0_76], %75 {strides = array<i32>} : memref<72x256xf32, #tpu.memory_space<vmem>>, vector<8x256xf32>,
    %77 = vector.extract_strided_slice %4 {offsets = [5, 0], sizes = [1, 256], strides = [1, 1]} : vector<9x256xf32> to vector<1x256xf32>
    %c0_77 = arith.constant 0 : index
    %c18 = arith.constant 18 : index
    %78 = vector.load %arg16[%c0_77, %c18] : memref<8x290xf32, #tpu.memory_space<vmem>>, vector<8x256xf32>
    %79 = vector.broadcast %77 : vector<1x256xf32> to vector<8x256xf32>
    %80 = arith.mulf %78, %79 : vector<8x256xf32>
    %c40 = arith.constant 40 : index
    %c0_78 = arith.constant 0 : index
    %81 = vector.load %arg18[%c40, %c0_78] : memref<72x256xf32, #tpu.memory_space<vmem>>, vector<8x256xf32>
    tpu.vector_store %arg18[%c40, %c0_78], %80 {strides = array<i32>} : memref<72x256xf32, #tpu.memory_space<vmem>>, vector<8x256xf32>,
    %c0_79 = arith.constant 0 : index
    %c18_80 = arith.constant 18 : index
    %82 = vector.load %arg17[%c0_79, %c18_80] : memref<8x290xf32, #tpu.memory_space<vmem>>, vector<8x256xf32>
    %83 = vector.broadcast %77 : vector<1x256xf32> to vector<8x256xf32>
    %84 = arith.mulf %82, %83 : vector<8x256xf32>
    %c40_81 = arith.constant 40 : index
    %c0_82 = arith.constant 0 : index
    %85 = vector.load %arg19[%c40_81, %c0_82] : memref<72x256xf32, #tpu.memory_space<vmem>>, vector<8x256xf32>
    tpu.vector_store %arg19[%c40_81, %c0_82], %84 {strides = array<i32>} : memref<72x256xf32, #tpu.memory_space<vmem>>, vector<8x256xf32>,
    %86 = vector.extract_strided_slice %4 {offsets = [6, 0], sizes = [1, 256], strides = [1, 1]} : vector<9x256xf32> to vector<1x256xf32>
    %c0_83 = arith.constant 0 : index
    %c32_84 = arith.constant 32 : index
    %87 = vector.load %arg16[%c0_83, %c32_84] : memref<8x290xf32, #tpu.memory_space<vmem>>, vector<8x256xf32>
    %88 = vector.broadcast %86 : vector<1x256xf32> to vector<8x256xf32>
    %89 = arith.mulf %87, %88 : vector<8x256xf32>
    %c48 = arith.constant 48 : index
    %c0_85 = arith.constant 0 : index
    %90 = vector.load %arg18[%c48, %c0_85] : memref<72x256xf32, #tpu.memory_space<vmem>>, vector<8x256xf32>
    tpu.vector_store %arg18[%c48, %c0_85], %89 {strides = array<i32>} : memref<72x256xf32, #tpu.memory_space<vmem>>, vector<8x256xf32>,
    %c0_86 = arith.constant 0 : index
    %c32_87 = arith.constant 32 : index
    %91 = vector.load %arg17[%c0_86, %c32_87] : memref<8x290xf32, #tpu.memory_space<vmem>>, vector<8x256xf32>
    %92 = vector.broadcast %86 : vector<1x256xf32> to vector<8x256xf32>
    %93 = arith.mulf %91, %92 : vector<8x256xf32>
    %c48_88 = arith.constant 48 : index
    %c0_89 = arith.constant 0 : index
    %94 = vector.load %arg19[%c48_88, %c0_89] : memref<72x256xf32, #tpu.memory_space<vmem>>, vector<8x256xf32>
    tpu.vector_store %arg19[%c48_88, %c0_89], %93 {strides = array<i32>} : memref<72x256xf32, #tpu.memory_space<vmem>>, vector<8x256xf32>,
    %95 = vector.extract_strided_slice %4 {offsets = [7, 0], sizes = [1, 256], strides = [1, 1]} : vector<9x256xf32> to vector<1x256xf32>
    %c0_90 = arith.constant 0 : index
    %c33 = arith.constant 33 : index
    %96 = vector.load %arg16[%c0_90, %c33] : memref<8x290xf32, #tpu.memory_space<vmem>>, vector<8x256xf32>
    %97 = vector.broadcast %95 : vector<1x256xf32> to vector<8x256xf32>
    %98 = arith.mulf %96, %97 : vector<8x256xf32>
    %c56 = arith.constant 56 : index
    %c0_91 = arith.constant 0 : index
    %99 = vector.load %arg18[%c56, %c0_91] : memref<72x256xf32, #tpu.memory_space<vmem>>, vector<8x256xf32>
    tpu.vector_store %arg18[%c56, %c0_91], %98 {strides = array<i32>} : memref<72x256xf32, #tpu.memory_space<vmem>>, vector<8x256xf32>,
    %c0_92 = arith.constant 0 : index
    %c33_93 = arith.constant 33 : index
    %100 = vector.load %arg17[%c0_92, %c33_93] : memref<8x290xf32, #tpu.memory_space<vmem>>, vector<8x256xf32>
    %101 = vector.broadcast %95 : vector<1x256xf32> to vector<8x256xf32>
    %102 = arith.mulf %100, %101 : vector<8x256xf32>
    %c56_94 = arith.constant 56 : index
    %c0_95 = arith.constant 0 : index
    %103 = vector.load %arg19[%c56_94, %c0_95] : memref<72x256xf32, #tpu.memory_space<vmem>>, vector<8x256xf32>
    tpu.vector_store %arg19[%c56_94, %c0_95], %102 {strides = array<i32>} : memref<72x256xf32, #tpu.memory_space<vmem>>, vector<8x256xf32>,
    %104 = vector.extract_strided_slice %4 {offsets = [8, 0], sizes = [1, 256], strides = [1, 1]} : vector<9x256xf32> to vector<1x256xf32>
    %c0_96 = arith.constant 0 : index
    %c34 = arith.constant 34 : index
    %105 = vector.load %arg16[%c0_96, %c34] : memref<8x290xf32, #tpu.memory_space<vmem>>, vector<8x256xf32>
    %106 = vector.broadcast %104 : vector<1x256xf32> to vector<8x256xf32>
    %107 = arith.mulf %105, %106 : vector<8x256xf32>
    %c64 = arith.constant 64 : index
    %c0_97 = arith.constant 0 : index
    %108 = vector.load %arg18[%c64, %c0_97] : memref<72x256xf32, #tpu.memory_space<vmem>>, vector<8x256xf32>
    tpu.vector_store %arg18[%c64, %c0_97], %107 {strides = array<i32>} : memref<72x256xf32, #tpu.memory_space<vmem>>, vector<8x256xf32>,
    %c0_98 = arith.constant 0 : index
    %c34_99 = arith.constant 34 : index
    %109 = vector.load %arg17[%c0_98, %c34_99] : memref<8x290xf32, #tpu.memory_space<vmem>>, vector<8x256xf32>
    %110 = vector.broadcast %104 : vector<1x256xf32> to vector<8x256xf32>
    %111 = arith.mulf %109, %110 : vector<8x256xf32>
    %c64_100 = arith.constant 64 : index
    %c0_101 = arith.constant 0 : index
    %112 = vector.load %arg19[%c64_100, %c0_101] : memref<72x256xf32, #tpu.memory_space<vmem>>, vector<8x256xf32>
    tpu.vector_store %arg19[%c64_100, %c0_101], %111 {strides = array<i32>} : memref<72x256xf32, #tpu.memory_space<vmem>>, vector<8x256xf32>,
    %c0_102 = arith.constant 0 : index
    %c0_103 = arith.constant 0 : index
    %113 = vector.load %arg18[%c0_102, %c0_103] : memref<72x256xf32, #tpu.memory_space<vmem>>, vector<72x256xf32>
    %c0_104 = arith.constant 0 : index
    %c0_105 = arith.constant 0 : index
    %114 = vector.load %arg19[%c0_104, %c0_105] : memref<72x256xf32, #tpu.memory_space<vmem>>, vector<72x256xf32>
    %cst_106 = arith.constant dense<0.000000e+00> : vector<8x256xf32>
    %115 = tpu.matmul %7, %113, %cst_106 {dimension_numbers = #tpu.dot_dimension_numbers<[1], [0], [0], [1], [0, 0, 1, 1], [], []>} : vector<8x72xf32>, vector<72x256xf32>, vector<8x256xf32> -> vector<8x256xf32>
    %cst_107 = arith.constant dense<0.000000e+00> : vector<8x256xf32>
    %116 = tpu.matmul %8, %114, %cst_107 {dimension_numbers = #tpu.dot_dimension_numbers<[1], [0], [0], [1], [0, 0, 1, 1], [], []>} : vector<8x72xf32>, vector<72x256xf32>, vector<8x256xf32> -> vector<8x256xf32>
    %cst_108 = arith.constant dense<0.000000e+00> : vector<8x256xf32>
    %117 = tpu.matmul %7, %114, %cst_108 {dimension_numbers = #tpu.dot_dimension_numbers<[1], [0], [0], [1], [0, 0, 1, 1], [], []>} : vector<8x72xf32>, vector<72x256xf32>, vector<8x256xf32> -> vector<8x256xf32>
    %cst_109 = arith.constant dense<0.000000e+00> : vector<8x256xf32>
    %118 = tpu.matmul %8, %113, %cst_109 {dimension_numbers = #tpu.dot_dimension_numbers<[1], [0], [0], [1], [0, 0, 1, 1], [], []>} : vector<8x72xf32>, vector<72x256xf32>, vector<8x256xf32> -> vector<8x256xf32>
    %119 = arith.subf %115, %116 : vector<8x256xf32>
    %120 = arith.addf %117, %118 : vector<8x256xf32>
    %cst_110 = arith.constant 0.000000e+00 : f32
    %121 = vector.broadcast %cst_110 : f32 to vector<8x256xf32>
    %122 = arith.maximumf %119, %121 : vector<8x256xf32>
    %cst_111 = arith.constant 0.000000e+00 : f32
    %123 = vector.broadcast %cst_111 : f32 to vector<8x256xf32>
    %124 = arith.maximumf %120, %123 : vector<8x256xf32>
    %cst_112 = arith.constant dense<0.000000e+00> : vector<16x256xf32>
    %125 = tpu.matmul %9, %122, %cst_112 {dimension_numbers = #tpu.dot_dimension_numbers<[1], [0], [0], [1], [0, 0, 1, 1], [], []>} : vector<16x8xf32>, vector<8x256xf32>, vector<16x256xf32> -> vector<16x256xf32>
    %cst_113 = arith.constant dense<0.000000e+00> : vector<16x256xf32>
    %126 = tpu.matmul %10, %124, %cst_113 {dimension_numbers = #tpu.dot_dimension_numbers<[1], [0], [0], [1], [0, 0, 1, 1], [], []>} : vector<16x8xf32>, vector<8x256xf32>, vector<16x256xf32> -> vector<16x256xf32>
    %cst_114 = arith.constant dense<0.000000e+00> : vector<16x256xf32>
    %127 = tpu.matmul %9, %124, %cst_114 {dimension_numbers = #tpu.dot_dimension_numbers<[1], [0], [0], [1], [0, 0, 1, 1], [], []>} : vector<16x8xf32>, vector<8x256xf32>, vector<16x256xf32> -> vector<16x256xf32>
    %cst_115 = arith.constant dense<0.000000e+00> : vector<16x256xf32>
    %128 = tpu.matmul %10, %122, %cst_115 {dimension_numbers = #tpu.dot_dimension_numbers<[1], [0], [0], [1], [0, 0, 1, 1], [], []>} : vector<16x8xf32>, vector<8x256xf32>, vector<16x256xf32> -> vector<16x256xf32>
    %129 = arith.subf %125, %126 : vector<16x256xf32>
    %130 = arith.addf %127, %128 : vector<16x256xf32>
    %cst_116 = arith.constant dense<0.000000e+00> : vector<16xf32>
    %131 = vector.multi_reduction <add>, %129, %cst_116 [1] : vector<16x256xf32> to vector<16xf32>
    %132 = vector.shape_cast %131 : vector<16xf32> to vector<16x1xf32>
    %cst_117 = arith.constant 2.560000e+02 : f32
    %133 = vector.broadcast %cst_117 : f32 to vector<16x1xf32>
    %134 = arith.divf %132, %133 : vector<16x1xf32>
    %cst_118 = arith.constant dense<0.000000e+00> : vector<16xf32>
    %135 = vector.multi_reduction <add>, %130, %cst_118 [1] : vector<16x256xf32> to vector<16xf32>
    %136 = vector.shape_cast %135 : vector<16xf32> to vector<16x1xf32>
    %cst_119 = arith.constant 2.560000e+02 : f32
    %137 = vector.broadcast %cst_119 : f32 to vector<16x1xf32>
    %138 = arith.divf %136, %137 : vector<16x1xf32>
    %cst_120 = arith.constant dense<0.000000e+00> : vector<8x1xf32>
    %139 = tpu.matmul %11, %134, %cst_120 {dimension_numbers = #tpu.dot_dimension_numbers<[1], [0], [0], [1], [0, 0, 1, 1], [], []>} : vector<8x16xf32>, vector<16x1xf32>, vector<8x1xf32> -> vector<8x1xf32>
    %cst_121 = arith.constant dense<0.000000e+00> : vector<8x1xf32>
    %140 = tpu.matmul %12, %138, %cst_121 {dimension_numbers = #tpu.dot_dimension_numbers<[1], [0], [0], [1], [0, 0, 1, 1], [], []>} : vector<8x16xf32>, vector<16x1xf32>, vector<8x1xf32> -> vector<8x1xf32>
    %cst_122 = arith.constant dense<0.000000e+00> : vector<8x1xf32>
    %141 = tpu.matmul %11, %138, %cst_122 {dimension_numbers = #tpu.dot_dimension_numbers<[1], [0], [0], [1], [0, 0, 1, 1], [], []>} : vector<8x16xf32>, vector<16x1xf32>, vector<8x1xf32> -> vector<8x1xf32>
    %cst_123 = arith.constant dense<0.000000e+00> : vector<8x1xf32>
    %142 = tpu.matmul %12, %134, %cst_123 {dimension_numbers = #tpu.dot_dimension_numbers<[1], [0], [0], [1], [0, 0, 1, 1], [], []>} : vector<8x16xf32>, vector<16x1xf32>, vector<8x1xf32> -> vector<8x1xf32>
    %143 = arith.subf %139, %140 : vector<8x1xf32>
    %144 = arith.addf %141, %142 : vector<8x1xf32>
    %cst_124 = arith.constant 0.000000e+00 : f32
    %145 = vector.broadcast %cst_124 : f32 to vector<8x1xf32>
    %146 = arith.maximumf %143, %145 : vector<8x1xf32>
    %cst_125 = arith.constant 0.000000e+00 : f32
    %147 = vector.broadcast %cst_125 : f32 to vector<8x1xf32>
    %148 = arith.maximumf %144, %147 : vector<8x1xf32>
    %cst_126 = arith.constant dense<0.000000e+00> : vector<16x1xf32>
    %149 = tpu.matmul %13, %146, %cst_126 {dimension_numbers = #tpu.dot_dimension_numbers<[1], [0], [0], [1], [0, 0, 1, 1], [], []>} : vector<16x8xf32>, vector<8x1xf32>, vector<16x1xf32> -> vector<16x1xf32>
    %cst_127 = arith.constant dense<0.000000e+00> : vector<16x1xf32>
    %150 = tpu.matmul %14, %148, %cst_127 {dimension_numbers = #tpu.dot_dimension_numbers<[1], [0], [0], [1], [0, 0, 1, 1], [], []>} : vector<16x8xf32>, vector<8x1xf32>, vector<16x1xf32> -> vector<16x1xf32>
    %cst_128 = arith.constant dense<0.000000e+00> : vector<16x1xf32>
    %151 = tpu.matmul %13, %148, %cst_128 {dimension_numbers = #tpu.dot_dimension_numbers<[1], [0], [0], [1], [0, 0, 1, 1], [], []>} : vector<16x8xf32>, vector<8x1xf32>, vector<16x1xf32> -> vector<16x1xf32>
    %cst_129 = arith.constant dense<0.000000e+00> : vector<16x1xf32>
    %152 = tpu.matmul %14, %146, %cst_129 {dimension_numbers = #tpu.dot_dimension_numbers<[1], [0], [0], [1], [0, 0, 1, 1], [], []>} : vector<16x8xf32>, vector<8x1xf32>, vector<16x1xf32> -> vector<16x1xf32>
    %153 = arith.subf %149, %150 : vector<16x1xf32>
    %154 = arith.addf %151, %152 : vector<16x1xf32>
    %155 = arith.negf %153 : vector<16x1xf32>
    %156 = math.exp %155 : vector<16x1xf32>
    %cst_130 = arith.constant 1.000000e+00 : f32
    %157 = vector.broadcast %cst_130 : f32 to vector<16x1xf32>
    %158 = arith.addf %157, %156 : vector<16x1xf32>
    %159 = arith.divf %157, %158 : vector<16x1xf32>
    %160 = arith.negf %154 : vector<16x1xf32>
    %161 = math.exp %160 : vector<16x1xf32>
    %cst_131 = arith.constant 1.000000e+00 : f32
    %162 = vector.broadcast %cst_131 : f32 to vector<16x1xf32>
    %163 = arith.addf %162, %161 : vector<16x1xf32>
    %164 = arith.divf %162, %163 : vector<16x1xf32>
    %165 = vector.broadcast %159 : vector<16x1xf32> to vector<16x256xf32>
    %166 = arith.mulf %129, %165 : vector<16x256xf32>
    %167 = vector.broadcast %164 : vector<16x1xf32> to vector<16x256xf32>
    %168 = arith.mulf %130, %167 : vector<16x256xf32>
    %169 = arith.subf %166, %168 : vector<16x256xf32>
    %170 = vector.broadcast %164 : vector<16x1xf32> to vector<16x256xf32>
    %171 = arith.mulf %129, %170 : vector<16x256xf32>
    %172 = vector.broadcast %159 : vector<16x1xf32> to vector<16x256xf32>
    %173 = arith.mulf %130, %172 : vector<16x256xf32>
    %174 = arith.addf %171, %173 : vector<16x256xf32>
    %175 = vector.extract_strided_slice %169 {offsets = [0, 0], sizes = [8, 256], strides = [1, 1]} : vector<16x256xf32> to vector<8x256xf32>
    %176 = vector.extract_strided_slice %174 {offsets = [0, 0], sizes = [8, 256], strides = [1, 1]} : vector<16x256xf32> to vector<8x256xf32>
    %177 = vector.extract_strided_slice %169 {offsets = [8, 0], sizes = [8, 256], strides = [1, 1]} : vector<16x256xf32> to vector<8x256xf32>
    %178 = vector.extract_strided_slice %174 {offsets = [8, 0], sizes = [8, 256], strides = [1, 1]} : vector<16x256xf32> to vector<8x256xf32>
    %cst_132 = arith.constant 5.000000e-01 : f32
    %179 = vector.broadcast %cst_132 : f32 to vector<8x256xf32>
    %180 = arith.mulf %179, %175 : vector<8x256xf32>
    %cst_133 = arith.constant 5.000000e-01 : f32
    %181 = vector.broadcast %cst_133 : f32 to vector<8x256xf32>
    %182 = arith.mulf %181, %176 : vector<8x256xf32>
    %183 = math.sin %177 : vector<8x256xf32>
    %184 = math.cos %177 : vector<8x256xf32>
    %185 = math.sin %178 : vector<8x256xf32>
    %186 = math.cos %178 : vector<8x256xf32>
    %187 = math.exp %177 : vector<8x256xf32>
    %188 = math.exp %178 : vector<8x256xf32>
    %189 = tpu.reciprocal %187 {approx = true} : vector<8x256xf32> -> vector<8x256xf32>
    %190 = tpu.reciprocal %188 {approx = true} : vector<8x256xf32> -> vector<8x256xf32>
    %191 = arith.subf %187, %189 : vector<8x256xf32>
    %cst_134 = arith.constant 5.000000e-01 : f32
    %192 = vector.broadcast %cst_134 : f32 to vector<8x256xf32>
    %193 = arith.mulf %192, %191 : vector<8x256xf32>
    %194 = arith.addf %187, %189 : vector<8x256xf32>
    %cst_135 = arith.constant 5.000000e-01 : f32
    %195 = vector.broadcast %cst_135 : f32 to vector<8x256xf32>
    %196 = arith.mulf %195, %194 : vector<8x256xf32>
    %197 = arith.subf %188, %190 : vector<8x256xf32>
    %cst_136 = arith.constant 5.000000e-01 : f32
    %198 = vector.broadcast %cst_136 : f32 to vector<8x256xf32>
    %199 = arith.mulf %198, %197 : vector<8x256xf32>
    %200 = arith.addf %188, %190 : vector<8x256xf32>
    %cst_137 = arith.constant 5.000000e-01 : f32
    %201 = vector.broadcast %cst_137 : f32 to vector<8x256xf32>
    %202 = arith.mulf %201, %200 : vector<8x256xf32>
    %cst_138 = arith.constant 2.000000e+00 : f32
    %203 = vector.broadcast %cst_138 : f32 to vector<8x256xf32>
    %204 = arith.mulf %203, %196 : vector<8x256xf32>
    %205 = arith.mulf %204, %196 : vector<8x256xf32>
    %cst_139 = arith.constant 1.000000e+00 : f32
    %206 = vector.broadcast %cst_139 : f32 to vector<8x256xf32>
    %207 = arith.subf %205, %206 : vector<8x256xf32>
    %208 = tpu.reciprocal %207 {approx = true} : vector<8x256xf32> -> vector<8x256xf32>
    %cst_140 = arith.constant 2.000000e+00 : f32
    %209 = vector.broadcast %cst_140 : f32 to vector<8x256xf32>
    %210 = arith.mulf %209, %202 : vector<8x256xf32>
    %211 = arith.mulf %210, %202 : vector<8x256xf32>
    %cst_141 = arith.constant 1.000000e+00 : f32
    %212 = vector.broadcast %cst_141 : f32 to vector<8x256xf32>
    %213 = arith.subf %211, %212 : vector<8x256xf32>
    %214 = tpu.reciprocal %213 {approx = true} : vector<8x256xf32> -> vector<8x256xf32>
    %cst_142 = arith.constant 2.000000e+00 : f32
    %215 = vector.broadcast %cst_142 : f32 to vector<8x256xf32>
    %216 = arith.mulf %215, %193 : vector<8x256xf32>
    %217 = arith.mulf %216, %196 : vector<8x256xf32>
    %218 = arith.mulf %217, %208 : vector<8x256xf32>
    %cst_143 = arith.constant 2.000000e+00 : f32
    %219 = vector.broadcast %cst_143 : f32 to vector<8x256xf32>
    %220 = arith.mulf %219, %199 : vector<8x256xf32>
    %221 = arith.mulf %220, %202 : vector<8x256xf32>
    %222 = arith.mulf %221, %214 : vector<8x256xf32>
    %cst_144 = arith.constant 2.000000e+00 : f32
    %223 = vector.broadcast %cst_144 : f32 to vector<8x256xf32>
    %224 = arith.mulf %223, %183 : vector<8x256xf32>
    %225 = arith.mulf %224, %184 : vector<8x256xf32>
    %cst_145 = arith.constant 2.000000e+00 : f32
    %226 = vector.broadcast %cst_145 : f32 to vector<8x256xf32>
    %227 = arith.mulf %226, %184 : vector<8x256xf32>
    %228 = arith.mulf %227, %184 : vector<8x256xf32>
    %cst_146 = arith.constant 1.000000e+00 : f32
    %229 = vector.broadcast %cst_146 : f32 to vector<8x256xf32>
    %230 = arith.subf %228, %229 : vector<8x256xf32>
    %cst_147 = arith.constant 2.000000e+00 : f32
    %231 = vector.broadcast %cst_147 : f32 to vector<8x256xf32>
    %232 = arith.mulf %231, %185 : vector<8x256xf32>
    %233 = arith.mulf %232, %186 : vector<8x256xf32>
    %cst_148 = arith.constant 2.000000e+00 : f32
    %234 = vector.broadcast %cst_148 : f32 to vector<8x256xf32>
    %235 = arith.mulf %234, %186 : vector<8x256xf32>
    %236 = arith.mulf %235, %186 : vector<8x256xf32>
    %cst_149 = arith.constant 1.000000e+00 : f32
    %237 = vector.broadcast %cst_149 : f32 to vector<8x256xf32>
    %238 = arith.subf %236, %237 : vector<8x256xf32>
    %239 = arith.mulf %238, %208 : vector<8x256xf32>
    %cst_150 = arith.constant 1.000000e+00 : f32
    %240 = vector.broadcast %cst_150 : f32 to vector<8x256xf32>
    %241 = arith.addf %240, %239 : vector<8x256xf32>
    %242 = tpu.reciprocal %241 {approx = true} : vector<8x256xf32> -> vector<8x256xf32>
    %243 = arith.mulf %218, %242 : vector<8x256xf32>
    %244 = arith.mulf %233, %208 : vector<8x256xf32>
    %245 = arith.mulf %244, %242 : vector<8x256xf32>
    %246 = arith.mulf %230, %214 : vector<8x256xf32>
    %cst_151 = arith.constant 1.000000e+00 : f32
    %247 = vector.broadcast %cst_151 : f32 to vector<8x256xf32>
    %248 = arith.addf %247, %246 : vector<8x256xf32>
    %249 = tpu.reciprocal %248 {approx = true} : vector<8x256xf32> -> vector<8x256xf32>
    %cst_152 = arith.constant 0.000000e+00 : f32
    %250 = vector.broadcast %cst_152 : f32 to vector<8x256xf32>
    %251 = arith.subf %250, %222 : vector<8x256xf32>
    %252 = arith.mulf %251, %249 : vector<8x256xf32>
    %253 = arith.mulf %225, %214 : vector<8x256xf32>
    %254 = arith.mulf %253, %249 : vector<8x256xf32>
    %255 = arith.mulf %183, %202 : vector<8x256xf32>
    %256 = arith.mulf %184, %199 : vector<8x256xf32>
    %257 = arith.mulf %184, %202 : vector<8x256xf32>
    %cst_153 = arith.constant 0.000000e+00 : f32
    %258 = vector.broadcast %cst_153 : f32 to vector<8x256xf32>
    %259 = arith.subf %258, %183 : vector<8x256xf32>
    %260 = arith.mulf %259, %199 : vector<8x256xf32>
    %261 = arith.mulf %196, %186 : vector<8x256xf32>
    %262 = arith.mulf %193, %185 : vector<8x256xf32>
    %263 = arith.mulf %180, %255 : vector<8x256xf32>
    %264 = arith.mulf %182, %256 : vector<8x256xf32>
    %265 = arith.subf %263, %264 : vector<8x256xf32>
    %266 = arith.mulf %180, %256 : vector<8x256xf32>
    %267 = arith.mulf %182, %255 : vector<8x256xf32>
    %268 = arith.addf %266, %267 : vector<8x256xf32>
    %269 = math.exp %265 : vector<8x256xf32>
    %270 = math.cos %268 : vector<8x256xf32>
    %271 = arith.mulf %269, %270 : vector<8x256xf32>
    %272 = math.sin %268 : vector<8x256xf32>
    %273 = arith.mulf %269, %272 : vector<8x256xf32>
    %274 = arith.mulf %180, %261 : vector<8x256xf32>
    %275 = arith.mulf %182, %262 : vector<8x256xf32>
    %276 = arith.subf %274, %275 : vector<8x256xf32>
    %277 = arith.mulf %180, %262 : vector<8x256xf32>
    %278 = arith.mulf %182, %261 : vector<8x256xf32>
    %279 = arith.addf %277, %278 : vector<8x256xf32>
    %280 = math.exp %276 : vector<8x256xf32>
    %281 = math.cos %279 : vector<8x256xf32>
    %282 = arith.mulf %280, %281 : vector<8x256xf32>
    %283 = math.sin %279 : vector<8x256xf32>
    %284 = arith.mulf %280, %283 : vector<8x256xf32>
    %285 = arith.mulf %180, %257 : vector<8x256xf32>
    %286 = arith.mulf %182, %260 : vector<8x256xf32>
    %287 = arith.subf %285, %286 : vector<8x256xf32>
    %288 = arith.mulf %180, %260 : vector<8x256xf32>
    %289 = arith.mulf %182, %257 : vector<8x256xf32>
    %290 = arith.addf %288, %289 : vector<8x256xf32>
    %291 = math.exp %287 : vector<8x256xf32>
    %292 = math.cos %290 : vector<8x256xf32>
    %293 = arith.mulf %291, %292 : vector<8x256xf32>
    %294 = math.sin %290 : vector<8x256xf32>
    %295 = arith.mulf %291, %294 : vector<8x256xf32>
    %296 = arith.addf %1, %243 : vector<8x256xf32>
    %297 = arith.addf %3, %245 : vector<8x256xf32>
    %298 = arith.mulf %296, %271 : vector<8x256xf32>
    %299 = arith.mulf %297, %273 : vector<8x256xf32>
    %300 = arith.subf %298, %299 : vector<8x256xf32>
    %301 = arith.mulf %296, %273 : vector<8x256xf32>
    %302 = arith.mulf %297, %271 : vector<8x256xf32>
    %303 = arith.addf %301, %302 : vector<8x256xf32>
    %304 = arith.subf %300, %243 : vector<8x256xf32>
    %c0_154 = arith.constant 0 : index
    %c0_155 = arith.constant 0 : index
    %c0_156 = arith.constant 0 : index
    %305 = vector.load %arg14[%c0_154, %c0_155, %c0_156] : memref<1x32x256xf32, #tpu.memory_space<vmem>>, vector<1x8x256xf32>
    %306 = vector.shape_cast %305 : vector<1x8x256xf32> to vector<8x256xf32>
    %307 = vector.shape_cast %304 : vector<8x256xf32> to vector<1x8x256xf32>
    tpu.vector_store %arg14[%c0_154, %c0_155, %c0_156], %307 {strides = array<i32>} : memref<1x32x256xf32, #tpu.memory_space<vmem>>, vector<1x8x256xf32>,
    %308 = arith.subf %303, %245 : vector<8x256xf32>
    %c0_157 = arith.constant 0 : index
    %c0_158 = arith.constant 0 : index
    %c0_159 = arith.constant 0 : index
    %309 = vector.load %arg15[%c0_157, %c0_158, %c0_159] : memref<1x32x256xf32, #tpu.memory_space<vmem>>, vector<1x8x256xf32>
    %310 = vector.shape_cast %309 : vector<1x8x256xf32> to vector<8x256xf32>
    %311 = vector.shape_cast %308 : vector<8x256xf32> to vector<1x8x256xf32>
    tpu.vector_store %arg15[%c0_157, %c0_158, %c0_159], %311 {strides = array<i32>} : memref<1x32x256xf32, #tpu.memory_space<vmem>>, vector<1x8x256xf32>,
    %312 = arith.addf %1, %252 : vector<8x256xf32>
    %313 = arith.addf %3, %254 : vector<8x256xf32>
    %314 = arith.mulf %312, %282 : vector<8x256xf32>
    %315 = arith.mulf %313, %284 : vector<8x256xf32>
    %316 = arith.subf %314, %315 : vector<8x256xf32>
    %317 = arith.mulf %312, %284 : vector<8x256xf32>
    %318 = arith.mulf %313, %282 : vector<8x256xf32>
    %319 = arith.addf %317, %318 : vector<8x256xf32>
    %320 = arith.subf %316, %252 : vector<8x256xf32>
    %c0_160 = arith.constant 0 : index
    %c8_161 = arith.constant 8 : index
    %c0_162 = arith.constant 0 : index
    %321 = vector.load %arg14[%c0_160, %c8_161, %c0_162] : memref<1x32x256xf32, #tpu.memory_space<vmem>>, vector<1x8x256xf32>
    %322 = vector.shape_cast %321 : vector<1x8x256xf32> to vector<8x256xf32>
    %323 = vector.shape_cast %320 : vector<8x256xf32> to vector<1x8x256xf32>
    tpu.vector_store %arg14[%c0_160, %c8_161, %c0_162], %323 {strides = array<i32>} : memref<1x32x256xf32, #tpu.memory_space<vmem>>, vector<1x8x256xf32>,
    %324 = arith.subf %319, %254 : vector<8x256xf32>
    %c0_163 = arith.constant 0 : index
    %c8_164 = arith.constant 8 : index
    %c0_165 = arith.constant 0 : index
    %325 = vector.load %arg15[%c0_163, %c8_164, %c0_165] : memref<1x32x256xf32, #tpu.memory_space<vmem>>, vector<1x8x256xf32>
    %326 = vector.shape_cast %325 : vector<1x8x256xf32> to vector<8x256xf32>
    %327 = vector.shape_cast %324 : vector<8x256xf32> to vector<1x8x256xf32>
    tpu.vector_store %arg15[%c0_163, %c8_164, %c0_165], %327 {strides = array<i32>} : memref<1x32x256xf32, #tpu.memory_space<vmem>>, vector<1x8x256xf32>,
    %cst_166 = arith.constant 0.000000e+00 : f32
    %328 = vector.broadcast %cst_166 : f32 to vector<8x256xf32>
    %329 = arith.subf %328, %243 : vector<8x256xf32>
    %cst_167 = arith.constant 0.000000e+00 : f32
    %330 = vector.broadcast %cst_167 : f32 to vector<8x256xf32>
    %331 = arith.subf %330, %245 : vector<8x256xf32>
    %332 = arith.addf %1, %329 : vector<8x256xf32>
    %333 = arith.addf %3, %331 : vector<8x256xf32>
    %334 = arith.mulf %332, %293 : vector<8x256xf32>
    %335 = arith.mulf %333, %295 : vector<8x256xf32>
    %336 = arith.subf %334, %335 : vector<8x256xf32>
    %337 = arith.mulf %332, %295 : vector<8x256xf32>
    %338 = arith.mulf %333, %293 : vector<8x256xf32>
    %339 = arith.addf %337, %338 : vector<8x256xf32>
    %340 = arith.subf %336, %329 : vector<8x256xf32>
    %c0_168 = arith.constant 0 : index
    %c16_169 = arith.constant 16 : index
    %c0_170 = arith.constant 0 : index
    %341 = vector.load %arg14[%c0_168, %c16_169, %c0_170] : memref<1x32x256xf32, #tpu.memory_space<vmem>>, vector<1x8x256xf32>
    %342 = vector.shape_cast %341 : vector<1x8x256xf32> to vector<8x256xf32>
    %343 = vector.shape_cast %340 : vector<8x256xf32> to vector<1x8x256xf32>
    tpu.vector_store %arg14[%c0_168, %c16_169, %c0_170], %343 {strides = array<i32>} : memref<1x32x256xf32, #tpu.memory_space<vmem>>, vector<1x8x256xf32>,
    %344 = arith.subf %339, %331 : vector<8x256xf32>
    %c0_171 = arith.constant 0 : index
    %c16_172 = arith.constant 16 : index
    %c0_173 = arith.constant 0 : index
    %345 = vector.load %arg15[%c0_171, %c16_172, %c0_173] : memref<1x32x256xf32, #tpu.memory_space<vmem>>, vector<1x8x256xf32>
    %346 = vector.shape_cast %345 : vector<1x8x256xf32> to vector<8x256xf32>
    %347 = vector.shape_cast %344 : vector<8x256xf32> to vector<1x8x256xf32>
    tpu.vector_store %arg15[%c0_171, %c16_172, %c0_173], %347 {strides = array<i32>} : memref<1x32x256xf32, #tpu.memory_space<vmem>>, vector<1x8x256xf32>,
    %cst_174 = arith.constant 0.000000e+00 : f32
    %348 = vector.broadcast %cst_174 : f32 to vector<8x256xf32>
    %349 = arith.subf %348, %252 : vector<8x256xf32>
    %cst_175 = arith.constant 0.000000e+00 : f32
    %350 = vector.broadcast %cst_175 : f32 to vector<8x256xf32>
    %351 = arith.subf %350, %254 : vector<8x256xf32>
    %352 = arith.addf %1, %349 : vector<8x256xf32>
    %353 = arith.addf %3, %351 : vector<8x256xf32>
    %354 = arith.mulf %352, %282 : vector<8x256xf32>
    %355 = arith.mulf %353, %284 : vector<8x256xf32>
    %356 = arith.subf %354, %355 : vector<8x256xf32>
    %357 = arith.mulf %352, %284 : vector<8x256xf32>
    %358 = arith.mulf %353, %282 : vector<8x256xf32>
    %359 = arith.addf %357, %358 : vector<8x256xf32>
    %360 = arith.subf %356, %349 : vector<8x256xf32>
    %c0_176 = arith.constant 0 : index
    %c24_177 = arith.constant 24 : index
    %c0_178 = arith.constant 0 : index
    %361 = vector.load %arg14[%c0_176, %c24_177, %c0_178] : memref<1x32x256xf32, #tpu.memory_space<vmem>>, vector<1x8x256xf32>
    %362 = vector.shape_cast %361 : vector<1x8x256xf32> to vector<8x256xf32>
    %363 = vector.shape_cast %360 : vector<8x256xf32> to vector<1x8x256xf32>
    tpu.vector_store %arg14[%c0_176, %c24_177, %c0_178], %363 {strides = array<i32>} : memref<1x32x256xf32, #tpu.memory_space<vmem>>, vector<1x8x256xf32>,
    %364 = arith.subf %359, %351 : vector<8x256xf32>
    %c0_179 = arith.constant 0 : index
    %c24_180 = arith.constant 24 : index
    %c0_181 = arith.constant 0 : index
    %365 = vector.load %arg15[%c0_179, %c24_180, %c0_181] : memref<1x32x256xf32, #tpu.memory_space<vmem>>, vector<1x8x256xf32>
    %366 = vector.shape_cast %365 : vector<1x8x256xf32> to vector<8x256xf32>
    %367 = vector.shape_cast %364 : vector<8x256xf32> to vector<1x8x256xf32>
    tpu.vector_store %arg15[%c0_179, %c24_180, %c0_181], %367 {strides = array<i32>} : memref<1x32x256xf32, #tpu.memory_space<vmem>>, vector<1x8x256xf32>,
    return
  }
  func.func @transform_0(%arg0: i32) -> (i32, i32, i32) {
    %c0_i32 = arith.constant 0 : i32
    %c0_i32_0 = arith.constant 0 : i32
    %c0_i32_1 = arith.constant 0 : i32
    return %arg0, %c0_i32, %c0_i32_0 : i32, i32, i32
  }
  func.func @transform_1(%arg0: i32) -> (i32, i32, i32) {
    %c0_i32 = arith.constant 0 : i32
    %c0_i32_0 = arith.constant 0 : i32
    %c0_i32_1 = arith.constant 0 : i32
    return %arg0, %c0_i32, %c0_i32_0 : i32, i32, i32
  }
  func.func @transform_2(%arg0: i32) -> (i32, i32) {
    %c0_i32 = arith.constant 0 : i32
    %c0_i32_0 = arith.constant 0 : i32
    %c0_i32_1 = arith.constant 0 : i32
    return %c0_i32, %c0_i32_0 : i32, i32
  }
  func.func @transform_3(%arg0: i32) -> (i32, i32) {
    %c0_i32 = arith.constant 0 : i32
    %c0_i32_0 = arith.constant 0 : i32
    %c0_i32_1 = arith.constant 0 : i32
    return %c0_i32, %c0_i32_0 : i32, i32
  }
  func.func @transform_4(%arg0: i32) -> (i32, i32) {
    %c0_i32 = arith.constant 0 : i32
    %c0_i32_0 = arith.constant 0 : i32
    %c0_i32_1 = arith.constant 0 : i32
    return %c0_i32, %c0_i32_0 : i32, i32
  }
  func.func @transform_5(%arg0: i32) -> (i32, i32) {
    %c0_i32 = arith.constant 0 : i32
    %c0_i32_0 = arith.constant 0 : i32
    %c0_i32_1 = arith.constant 0 : i32
    return %c0_i32, %c0_i32_0 : i32, i32
  }
  func.func @transform_6(%arg0: i32) -> (i32, i32) {
    %c0_i32 = arith.constant 0 : i32
    %c0_i32_0 = arith.constant 0 : i32
    %c0_i32_1 = arith.constant 0 : i32
    return %c0_i32, %c0_i32_0 : i32, i32
  }
  func.func @transform_7(%arg0: i32) -> (i32, i32) {
    %c0_i32 = arith.constant 0 : i32
    %c0_i32_0 = arith.constant 0 : i32
    %c0_i32_1 = arith.constant 0 : i32
    return %c0_i32, %c0_i32_0 : i32, i32
  }
  func.func @transform_8(%arg0: i32) -> (i32, i32) {
    %c0_i32 = arith.constant 0 : i32
    %c0_i32_0 = arith.constant 0 : i32
    %c0_i32_1 = arith.constant 0 : i32
    return %c0_i32, %c0_i32_0 : i32, i32
  }
  func.func @transform_9(%arg0: i32) -> (i32, i32) {
    %c0_i32 = arith.constant 0 : i32
    %c0_i32_0 = arith.constant 0 : i32
    %c0_i32_1 = arith.constant 0 : i32
    return %c0_i32, %c0_i32_0 : i32, i32
  }
  func.func @transform_10(%arg0: i32) -> (i32, i32) {
    %c0_i32 = arith.constant 0 : i32
    %c0_i32_0 = arith.constant 0 : i32
    %c0_i32_1 = arith.constant 0 : i32
    return %c0_i32, %c0_i32_0 : i32, i32
  }
  func.func @transform_11(%arg0: i32) -> (i32, i32) {
    %c0_i32 = arith.constant 0 : i32
    %c0_i32_0 = arith.constant 0 : i32
    %c0_i32_1 = arith.constant 0 : i32
    return %c0_i32, %c0_i32_0 : i32, i32
  }
  func.func @transform_12(%arg0: i32) -> (i32, i32) {
    %c0_i32 = arith.constant 0 : i32
    %c0_i32_0 = arith.constant 0 : i32
    %c0_i32_1 = arith.constant 0 : i32
    return %c0_i32, %c0_i32_0 : i32, i32
  }
  func.func @transform_13(%arg0: i32) -> (i32, i32, i32) {
    %c0_i32 = arith.constant 0 : i32
    %c0_i32_0 = arith.constant 0 : i32
    %c0_i32_1 = arith.constant 0 : i32
    return %arg0, %c0_i32, %c0_i32_0 : i32, i32, i32
  }
  func.func @transform_14(%arg0: i32) -> (i32, i32, i32) {
    %c0_i32 = arith.constant 0 : i32
    %c0_i32_0 = arith.constant 0 : i32
    %c0_i32_1 = arith.constant 0 : i32
    return %arg0, %c0_i32, %c0_i32_0 : i32, i32, i32
  }
}

</mosaic_0001>

<bundles_post_ra>
// kernel: custom-call.1
= control target key start
LH: loop header
LB: loop body
LE: loop exit
PB: predicated region body
PF: predicated region fallthrough
CT: control target
= control target key end

     0   :  { %s56_s0 = inlined_call_operand.hbm [shape: c64[2,4,16,16], index: 0, kind: input, shape index: {}]   ;;  %s57_s1 = inlined_call_operand.vmem [shape: f32[2,4,16,16], index: 1, kind: output, shape index: {}]  }
   0x1   :  { %s2_s8 = scalar_lea.hbm %s56_s0, 128 }
   0x2   :  { %3 = vsyncpa [#allocation0], 0  ;;  %s5_s9 = sshll.u32 %s2_s8, 4  ;;  %s7_s12 = sshll.u32 %s57_s1, 4  ;;  %s6_s9 = int_to_ptr.hbm [resolvable:$true] %s5_s9  ;;  %s8_s12 = int_to_ptr.vmem [resolvable:$true] %s7_s12 }
   0x3   :  { %10 = dma.hbm_to_vmem [thread:$0]  %s6_s9, 2048, %s8_s12, [#allocation0] }
   0x4   :  { %38 = dma.done.wait [#allocation0], 2048  }
   0x5   :  { %39 = vsyncadd [#allocation0], 4294965248 }
   0x6   :  { %13 = vsyncpa [#allocation0], 1 }

// kernel: custom-call
= control target key start
LH: loop header
LB: loop body
LE: loop exit
PB: predicated region body
PF: predicated region fallthrough
CT: control target
= control target key end

     0   :  { %2 = vsyncpa [#allocation0], 0  ;;  %s55_s0 = inlined_call_operand.hbm [shape: c64[2,4,16,16], index: 0, kind: input, shape index: {}]   ;;  %s56_s1 = inlined_call_operand.vmem [shape: f32[2,4,16,16], index: 1, kind: output, shape index: {}]  }
   0x1   :  { %s4_s8 = sshll.u32 %s55_s0, 4  ;;  %s6_s11 = sshll.u32 %s56_s1, 4  ;;  %s5_s8 = int_to_ptr.hbm [resolvable:$true] %s4_s8  ;;  %s7_s11 = int_to_ptr.vmem [resolvable:$true] %s6_s11 }
   0x2   :  { %9 = dma.hbm_to_vmem [thread:$0]  %s5_s8, 2048, %s7_s11, [#allocation0] }
   0x3   :  { %37 = dma.done.wait [#allocation0], 2048  }
   0x4   :  { %38 = vsyncadd [#allocation0], 4294965248 }
   0x5   :  { %12 = vsyncpa [#allocation0], 1 }

// kernel: custom-call.2
= control target key start
LH: loop header
LB: loop body
LE: loop exit
PB: predicated region body
PF: predicated region fallthrough
CT: control target
= control target key end

     0   :  { %s105_s0 = inlined_call_operand.vmem [shape: f32[2,4,16,16], index: 0, kind: input, shape index: {}]   ;;  %s106_s1 = inlined_call_operand.vmem [shape: f32[2,4,16,16], index: 1, kind: input, shape index: {}]   ;;  %s107_s2 = inlined_call_operand.hbm [shape: c64[2,4,16,16], index: 2, kind: output, shape index: {}]  }
   0x1   :  { %s3_s11 = scalar_lea.hbm %s107_s2, 128 }
   0x2   :  { %4 = vsyncpa [#allocation0], 0  ;;  %s6_s14 = sshll.u32 %s105_s0, 4  ;;  %s8_s17 = sshll.u32 %s107_s2, 4  ;;  %s7_s14 = int_to_ptr.vmem [resolvable:$true] %s6_s14  ;;  %s9_s17 = int_to_ptr.hbm [resolvable:$true] %s8_s17 }
   0x3   :  { %11 = dma.vmem_to_hbm [thread:$0]  %s7_s14, 2048, %s9_s17, [#allocation0] }
   0x4   :  { %74 = dma.done.wait [#allocation0], 2048  }
   0x5   :  { %75 = vsyncadd [#allocation0], 4294965248 }
   0x6   :  { %14 = vsyncpa [#allocation0], 1 }
   0x7   :  { %15 = vsyncpa [#allocation1], 0  ;;  %s17_s20 = sshll.u32 %s106_s1, 4  ;;  %s19_s21 = sshll.u32 %s3_s11, 4  ;;  %s18_s20 = int_to_ptr.vmem [resolvable:$true] %s17_s20  ;;  %s20_s21 = int_to_ptr.hbm [resolvable:$true] %s19_s21 }
   0x8   :  { %22 = dma.vmem_to_hbm [thread:$0]  %s18_s20, 2048, %s20_s21, [#allocation1] }
   0x9   :  { %76 = dma.done.wait [#allocation1], 2048  }
   0xa   :  { %77 = vsyncadd [#allocation1], 4294965248 }
   0xb   :  { %25 = vsyncpa [#allocation1], 1 }

// kernel: _lambda_.3
= control target key start
LH: loop header
LB: loop body
LE: loop exit
PB: predicated region body
PF: predicated region fallthrough
CT: control target
= control target key end

     0   :  { %s2388_s21 = smov 0   ;;  %s2896_s0 = inlined_call_operand.vmem [shape: f32[2,32,256], index: 0, kind: input, shape index: {}]   ;;  %s2897_s1 = inlined_call_operand.vmem [shape: f32[2,32,256], index: 1, kind: input, shape index: {}]   ;;  %s2898_s2 = inlined_call_operand.vmem [shape: f32[2,8,256], index: 2, kind: input, shape index: {}]   ;;  %s2899_s3 = inlined_call_operand.vmem [shape: f32[2,8,256], index: 3, kind: input, shape index: {}]   ;;  %s2900_s4 = inlined_call_operand.vmem [shape: f32[9,256], index: 4, kind: input, shape index: {}]   ;;  %s2901_s5 = inlined_call_operand.vmem [shape: f32[8,32], index: 5, kind: input, shape index: {}]   ;;  %s2902_s6 = inlined_call_operand.vmem [shape: f32[8,32], index: 6, kind: input, shape index: {}]   ;;  %s2903_s7 = inlined_call_operand.vmem [shape: f32[8,72], index: 7, kind: input, shape index: {}]   ;;  %s2904_s8 = inlined_call_operand.vmem [shape: f32[8,72], index: 8, kind: input, shape index: {}]   ;;  %s2905_s9 = inlined_call_operand.vmem [shape: f32[8,8], index: 9, kind: input, shape index: {}]   ;;  %s2906_s10 = inlined_call_operand.vmem [shape: f32[8,8], index: 10, kind: input, shape index: {}]   ;;  %s2907_s11 = inlined_call_operand.vmem [shape: f32[8,8], index: 11, kind: input, shape index: {}]   ;;  %s2908_s12 = inlined_call_operand.vmem [shape: f32[8,8], index: 12, kind: input, shape index: {}]   ;;  %s2909_s13 = inlined_call_operand.vmem [shape: f32[8,8], index: 13, kind: input, shape index: {}]   ;;  %s2910_s14 = inlined_call_operand.vmem [shape: f32[8,8], index: 14, kind: input, shape index: {}]   ;;  %s2911_s15 = inlined_call_operand.vmem [shape: f32[2,8,256], index: 15, kind: output, shape index: {0}]   ;;  %s2912_s16 = inlined_call_operand.vmem [shape: f32[2,8,256], index: 16, kind: output, shape index: {1}]  }
   0x1   :  { %2913 = sst [smem:[#allocation6_spill]] %s2896_s0 }
   0x2 LB: > { %s2056_s22 = sadd.s32 4294967295, %s2282_s21   ;;  %p2060_p0 = scmp.ge.s32.totalorder %s2282_s21, 1  ;;  %s2282_s21 = sphi %s2388_s21, %s27_s21  }
   0x3   : > { %p495_p1 = scmp.lt.s32.totalorder %s2282_s21, 3 }
   0x5   : > { %p496_p2 = pnand %p2060_p0, %p495_p1 }
   0x6   : > { %p565_p3 = scmp.lt.s32.totalorder (!%p496_p2), %s2056_s22, 1  ;;  %s2284_s27 = smov (!%p496_p2), 33  }
   0x7   : > { %499 = sbr.rel (%p496_p2) target bundleno = 1321 (0x529), region = 80  ;;  %s2914_s23 = sld [smem:[#allocation6_spill]] (!%p496_p2) }
   0x8   : > { %s2285_s25 = smov (!%p496_p2), 34   ;;  %s2286_s17 = smov (!%p496_p2), 18  }
   0x9   : > { %s2288_s19 = smov (!%p496_p2), 17   ;;  %s2289_s20 = smov (!%p496_p2), 2  }
   0xa   : > { %s2294_s26 = smov (!%p496_p2), 95   ;;  %s2296_s28 = smov (!%p496_p2), 96  }
   0xb   : > { %s2297_s29 = smov (!%p496_p2), 111   ;;  %s2299_s0 = smov (!%p496_p2), 126  }
   0xc   : > { %v2399_v0 = vld [vmem:[%s2900_s4 + $0x8] sm:$0xff]  ;;  %v2405_v2 = vld [vmem:[%s2900_s4] sm:$0xff]  ;;  %s2916_s22 = smov (!%p565_p3, %s2056_s22), 1  ;;  %v2264_v4 = vld [vmem:[%s2900_s4 + $0x10] ss:$0 sm:$0xff]  ;;  %vm625_vm0 = vcmask 261120  }
   0xd   : > { %v1183_v1 = vperm.slane %v2399_v0, 7  ;;  %v1182_v3 = vperm.slane %v2405_v2, 7  ;;  %s2109_s30 = sshll.u32 %s2916_s22, 6  ;;  %1242 = vrot.lane.b32.xlu2 %v2264_v4, %s2285_s25  ;;  %v616_v17 = vld [vmem:[%s2902_s6] sm:$0xff]  ;;  %v1071_v23 = vperm.slane %v2405_v2, 5  ;;  %v1128_v24 = vperm.slane %v2399_v0, 6 }
   0xe   : > { %s2417_s18 = scalar_lea.vmem %s2897_s1, %s2109_s30  ;;  %s2422_s24 = scalar_lea.vmem %s2914_s23, %s2109_s30  ;;  %v615_v19 = vld [vmem:[%s2901_s5] sm:$0xff]  ;;  %v2265_v25 = vld [vmem:[%s2900_s4 + $0x18] ss:$0 sm:$0xff]  ;;  %v1017_v26 = vperm.slane %v2399_v0, 4  ;;  %v1016_v27 = vperm.slane %v2405_v2, 4  ;;  %v904_v28 = vperm.slane %v2405_v2, 2 }
   0xf   : > { %1188 = vrot.lane.b32.xlu1 %v1183_v1, %s2284_s27  ;;  %1186 = vrot.lane.b32.xlu0 %v1182_v3, %s2284_s27  ;;  %v609_v5 = vld [vmem:[%s2417_s18 + $0x30] sm:$0xff]  ;;  %v607_v6 = vld [vmem:[%s2417_s18 + $0x20] sm:$0xff]  ;;  %v961_v29 = vperm.slane %v2399_v0, 3  ;;  %s2290_s23 = smov 16   ;;  %v1127_v30 = vperm.slane %v2405_v2, 6  ;;  %v1072_v31 = vperm.slane %v2399_v0, 5 }
  0x10   : > { %684 = vmatpush.msra.mxu2 %v609_v5  ;;  %v601_v7 = vld [vmem:[%s2422_s24 + $0x30] sm:$0xff]  ;;  %v599_v8 = vld [vmem:[%s2422_s24 + $0x20] sm:$0xff]  ;;  %v610_v10 = vld [vmem:[%s2417_s18 + $0x38] sm:$0xff]  ;;  %v960_v32 = vperm.slane %v2405_v2, 3  ;;  %v905_v34 = vperm.slane %v2399_v0, 2  ;;  %v849_v50 = vperm.slane %v2399_v0, 1 }
  0x11   : > { %v605_v9 = vld [vmem:[%s2417_s18 + $0x10] sm:$0xff]  ;;  %641 = vmatpush.msra.mxu0 %v601_v7  ;;  %v608_v11 = vld [vmem:[%s2417_s18 + $0x28] sm:$0xff]  ;;  %704 = vmatpush.msra.mxu3 %v610_v10  ;;  %v602_v13 = vld [vmem:[%s2422_s24 + $0x38] sm:$0xff]  ;;  %v848_v51 = vperm.slane %v2405_v2, 1  ;;  %vm798_vm1 = vcmask 138240   ;;  %v2292_v52 = vmov 0.0  }
  0x12   : > { %685 = vmatpush.msra.mxu2 %v607_v6  ;;  %v597_v12 = vld [vmem:[%s2422_s24 + $0x10] sm:$0xff]  ;;  %v603_v14 = vld [vmem:[%s2417_s18] sm:$0xff]  ;;  %v606_v15 = vld [vmem:[%s2417_s18 + $0x18] sm:$0xff]  ;;  %661 = vmatpush.msra.mxu1 %v602_v13  ;;  %799 = vst.msk [vmem:[#allocation2] sm:$0xff] %vm798_vm1, %v2292_v52  ;;  %vm801_vm2 = vcmask 277640   ;;  %vm814_vm3 = vcmask 1047688  }
  0x13   : > { %642 = vmatpush.msra.mxu0 %v599_v8  ;;  %v600_v16 = vld [vmem:[%s2422_s24 + $0x28] sm:$0xff]  ;;  %705 = vmatpush.msra.mxu3 %v608_v11  ;;  %v595_v18 = vld [vmem:[%s2422_s24] sm:$0xff]  ;;  %v598_v21 = vld [vmem:[%s2422_s24 + $0x18] sm:$0xff]  ;;  %800 = vst.msk [vmem:[#allocation3] sm:$0xff] %vm798_vm1, %v2292_v52  ;;  %vm912_vm4 = vcmask 15360   ;;  %vm1246_vm5 = vcmask 277504  }
  0x14   : > { %686 = vmatpush.msra.mxu2 %v605_v9  ;;  %662 = vmatpush.msra.mxu1 %v600_v16  ;;  %v604_v20 = vld [vmem:[%s2417_s18 + $0x8] sm:$0xff]  ;;  %s2287_s18 = smov 32   ;;  %802 = vst.msk [vmem:[#allocation2 + $0x10] sm:$0xff] %vm801_vm2, %v2292_v52  ;;  %vm1190_vm6 = vcmask 269312   ;;  %vm968_vm7 = vcmask 130048   ;;  %vm1079_vm8 = vcmask 146432  }
  0x15   : > { %643 = vmatpush.msra.mxu0 %v597_v12  ;;  %706 = vmatpush.msra.mxu3 %v606_v15  ;;  %v596_v22 = vld [vmem:[%s2422_s24 + $0x8] sm:$0xff]  ;;  %s2291_s24 = smov 1   ;;  %803 = vst.msk [vmem:[#allocation3 + $0x10] sm:$0xff] %vm801_vm2, %v2292_v52  ;;  %s2295_s27 = smov 110   ;;  %vm856_vm9 = vcmask 7168   ;;  %vm1263_vm10 = vcmask 769024  }
  0x16   : > { %687 = vmatpush.msra.mxu2 %v603_v14  ;;  %663 = vmatpush.msra.mxu1 %v598_v21  ;;  %s2298_s30 = smov 112   ;;  %vm1207_vm11 = vcmask 777216   ;;  %vm1151_vm12 = vcmask 785408   ;;  %vm1096_vm13 = vcmask 900096   ;;  %vm1040_vm14 = vcmask 908288  }
  0x17   : > { %2075 = vmatmul.msk.f32.vlgmr.msra.gmra.mxu2 %vm625_vm0, %v616_v17  ;;  %644 = vmatpush.msra.mxu0 %v595_v18  ;;  %vm985_vm15 = vcmask 916480   ;;  %vm1327_vm2 = vcmask 588800  }
  0x18   : > { %766 = vmatpush.msrb.mxu2 %v609_v5  ;;  %2073 = vmatmul.msk.f32.vlgmr.msra.gmra.mxu0 %vm625_vm0, %v615_v19 }
  0x19   : > { %707 = vmatpush.msra.mxu3 %v604_v20  ;;  %724 = vmatpush.msrb.mxu0 %v601_v7 }
  0x1a   : > { %767 = vmatpush.msrb.mxu2 %v607_v6  ;;  %2076 = vmatmul.msk.f32.vlgmr.msra.gmra.mxu3 %vm625_vm0, %v616_v17 }
  0x1b   : > { %725 = vmatpush.msrb.mxu0 %v599_v8  ;;  %786 = vmatpush.msrb.mxu3 %v610_v10 }
  0x1c   : > { %768 = vmatpush.msrb.mxu2 %v605_v9  ;;  %664 = vmatpush.msra.mxu1 %v596_v22 }
  0x1d   : > { %726 = vmatpush.msrb.mxu0 %v597_v12  ;;  %787 = vmatpush.msrb.mxu3 %v608_v11 }
  0x1e   : > { %769 = vmatpush.msrb.mxu2 %v603_v14  ;;  %2074 = vmatmul.msk.f32.vlgmr.msra.gmra.mxu1 %vm625_vm0, %v615_v19 }
  0x1f   : > { %2079 = vmatmul.msk.f32.vlgmr.msrb.gmra.mxu2 %vm625_vm0, %v615_v19  ;;  %727 = vmatpush.msrb.mxu0 %v595_v18 }
  0x20   : > { %788 = vmatpush.msrb.mxu3 %v606_v15  ;;  %2077 = vmatmul.msk.f32.vlgmr.msrb.gmra.mxu0 %vm625_vm0, %v616_v17 }
  0x21   : > { %744 = vmatpush.msrb.mxu1 %v602_v13  ;;  %1075 = vrot.lane.b32.xlu1 %v1071_v23, %s2286_s17 }
  0x22   : > { %789 = vmatpush.msrb.mxu3 %v604_v20  ;;  %1133 = vrot.lane.b32.xlu0 %v1128_v24, %s2287_s18 }
  0x23   : > { %2080 = vmatmul.msk.f32.vlgmr.msrb.gmra.mxu3 %vm625_vm0, %v615_v19  ;;  %745 = vmatpush.msrb.mxu1 %v600_v16 }
  0x24   : > { %1244 = vrot.lane.b32.xlu2 %v2265_v25, %s2285_s25  ;;  %s2293_s25 = smov 94  }
  0x25   : > { %746 = vmatpush.msrb.mxu1 %v598_v21 }
  0x27   : > { %747 = vmatpush.msrb.mxu1 %v596_v22 }
  0x28   : > { %2078 = vmatmul.msk.f32.vlgmr.msrb.gmra.mxu1 %vm625_vm0, %v616_v17 }
  0x29   : > { %1022 = vrot.lane.b32.xlu1 %v1017_v26, %s2288_s19 }
  0x2a   : > { %1020 = vrot.lane.b32.xlu0 %v1016_v27, %s2288_s19 }
  0x2c   : > { %1131 = vrot.lane.b32.xlu2 %v1127_v30, %s2287_s18 }
  0x31   : > { %908 = vrot.lane.b32.xlu1 %v904_v28, %s2289_s20 }
  0x32   : > { %966 = vrot.lane.b32.xlu0 %v961_v29, %s2290_s23 }
  0x34   : > { %1077 = vrot.lane.b32.xlu2 %v1072_v31, %s2286_s17  ;;  %s2300_s17 = smov 127  }
  0x3c   : > { %964 = vrot.lane.b32.xlu2 %v960_v32, %s2290_s23  ;;  %s2111_s23 = sshll.u32 %s2916_s22, 4 }
  0x44   : > { %910 = vrot.lane.b32.xlu2 %v905_v34, %s2289_s20 }
  0x67   : > { %v2479_v53 = vpop.permute.xlu2 %1242 }
  0x7e   : > { %v1245_v55 = vpop.permute.xlu2 %1244 }
  0x7f   : > { %v1247_v11 = vsel %vm1246_vm5, %v2479_v53, %v1245_v55 }
  0x81   : > { %v1189_v54 = vpop.permute.xlu1 %1188  ;;  %v2481_v56 = vpop.permute.xlu0 %1186 }
  0x82   : > { %v1191_v20 = vsel %vm1190_vm6, %v2481_v56, %v1189_v54 }
  0x86   : > { %v2485_v58 = vpop.permute.xlu2 %1131 }
  0x8e   : > { %v2491_v61 = vpop.permute.xlu2 %1077 }
  0x93   : > { %v2483_v57 = vpop.permute.xlu1 %1075 }
  0x94   : > { %v2487_v59 = vpop.permute.xlu0 %1133 }
  0x95   : > { %v646_v33 = vpop.f32.mrf.mxu0 }
  0x96   : > { %v2497_v1 = vpop.permute.xlu2 %964 }
  0x9a   : > { %v689_v35 = vpop.f32.mrf.mxu2 }
  0x9b   : > { %v752_v36 = vsub.f32 %v646_v33, %v689_v35  ;;  %v666_v38 = vpop.f32.mrf.mxu1  ;;  %v2489_v60 = vpop.permute.xlu1 %1022 }
  0x9c   : > { %v2493_v62 = vpop.permute.xlu0 %1020 }
  0x9d   : > { %v794_v37 = vmax.f32 %v752_v36, 0.0  ;;  %v709_v39 = vpop.f32.mrf.mxu3  ;;  %v729_v41 = vpop.f32.mrf.mxu0 }
  0x9e   : > { %v753_v40 = vsub.f32 %v666_v38, %v709_v39  ;;  %v2501_v5 = vpop.permute.xlu2 %910  ;;  %v1135_v39 = vsel %vm625_vm0, %v2485_v58, %v2487_v59  ;;  %vm929_vm0 = vcmask 1031168  }
  0x9f   : > { %806 = vrot.lane.b32.xlu1 %v794_v37, %s2288_s19 }
  0xa0   : > { %v795_v43 = vmax.f32 %v753_v40, 0.0 }
  0xa2   : > { %v771_v42 = vpop.f32.mrf.mxu2 }
  0xa3   : > { %v772_v44 = vadd.f32 %v771_v42, %v729_v41  ;;  %v2495_v63 = vpop.permute.xlu1 %908 }
  0xa4   : > { %v2499_v3 = vpop.permute.xlu0 %966  ;;  %v2509_v9 = vsel %vm912_vm4, %v2495_v63, %v2501_v5 }
  0xa5   : > { %v796_v45 = vmax.f32 %v772_v44, 0.0  ;;  %v749_v46 = vpop.f32.mrf.mxu1  ;;  %v969_v31 = vsel %vm968_vm7, %v2497_v1, %v2499_v3 }
  0xa6   : > { %v791_v47 = vpop.f32.mrf.mxu3 }
  0xa7   : > { %808 = vrot.lane.b32.xlu1 %v795_v43, %s2288_s19  ;;  %820 = vrot.lane.b32.xlu0 %v796_v45, %s2288_s19  ;;  %v792_v48 = vadd.f32 %v791_v47, %v749_v46  ;;  %v1080_v47 = vsel %vm1079_vm8, %v2483_v57, %v2491_v61 }
  0xa9   : > { %v797_v49 = vmax.f32 %v792_v48, 0.0 }
  0xaf   : > { %854 = vrot.lane.b32.xlu1 %v849_v50, %s2291_s24  ;;  %822 = vrot.lane.b32.xlu0 %v797_v49, %s2288_s19  ;;  %s594_s19 = scalar_lea.vmem %s2912_s16, %s2111_s23 }
  0xb7   : > { %852 = vrot.lane.b32.xlu0 %v848_v51, %s2291_s24 }
 0x111   : > { %v807_v4 = vpop.permute.xlu1 %806 }
 0x112   : > { %815 = vst.msk [vmem:[#allocation2] sm:$0xff] %vm814_vm3, %v807_v4 }
 0x119   : > { %v809_v6 = vpop.permute.xlu1 %808  ;;  %v821_v7 = vpop.permute.xlu0 %820  ;;  %v2525_v18 = vld [vmem:[#allocation2] sm:$0xff] }
 0x11a   : > { %v2504_v8 = vsel %vm798_vm1, %v807_v4, %v809_v6  ;;  %817 = vst.msk [vmem:[#allocation2 + $0x10] sm:$0xff] %vm798_vm1, %v809_v6  ;;  %v1251_v23 = vmul.f32 %v2479_v53, %v2525_v18  ;;  %v1195_v26 = vmul.f32 %v2481_v56, %v2525_v18  ;;  %v1084_v42 = vmul.f32 %v2483_v57, %v2525_v18 }
 0x11b   : > { %828 = vst.msk [vmem:[#allocation3] sm:$0xff] %vm814_vm3, %v821_v7  ;;  %v2513_v10 = vmul.f32 %v2509_v9, %v2504_v8  ;;  %v1252_v15 = vmul.f32 %v1247_v11, %v2504_v8  ;;  %v1196_v25 = vmul.f32 %v1191_v20, %v2504_v8  ;;  %v2553_v34 = vmul.f32 %v969_v31, %v2504_v8 }
 0x11c   : > { %v1140_v43 = vmul.f32 %v1135_v39, %v2504_v8  ;;  %v1028_v52 = vmul.f32 %v2493_v62, %v2525_v18  ;;  %vm1500_vm3 = vcmask 64512  }
 0x121   : > { %v2516_v12 = vld [vmem:[#allocation2 + $0x10] sm:$0xff]  ;;  %v823_v13 = vpop.permute.xlu0 %822 }
 0x122   : > { %v2519_v14 = vsel %vm798_vm1, %v821_v7, %v823_v13  ;;  %830 = vst.msk [vmem:[#allocation3 + $0x10] sm:$0xff] %vm798_vm1, %v823_v13  ;;  %v1253_v16 = vmul.f32 %v1245_v55, %v2516_v12  ;;  %v1197_v19 = vmul.f32 %v1189_v54, %v2516_v12  ;;  %v2533_v22 = vmul.f32 %v2499_v3, %v2516_v12  ;;  %v2548_v33 = vld [vmem:[#allocation3] sm:$0xff] }
 0x123   : > { %v2544_v30 = vmul.f32 %v2501_v5, %v2516_v12  ;;  %v1141_v36 = vmul.f32 %v2487_v59, %v2516_v12  ;;  %v1273_v40 = vmul.f32 %v2479_v53, %v2548_v33  ;;  %v1274_v41 = vmul.f32 %v1247_v11, %v2519_v14 }
 0x124   : > { %v2142_v17 = vpack.i.bf16 %v1253_v16, %v1252_v15  ;;  %v2147_v29 = vpack.i.bf16 %v1197_v19, %v1196_v25  ;;  %v2247_v38 = vpack.i.bf16 %v2533_v22, %v2553_v34  ;;  %v1106_v50 = vmul.f32 %v2483_v57, %v2548_v33 }
 0x125   : > { %v2252_v37 = vpack.i.bf16 %v2544_v30, %v2513_v10  ;;  %v2152_v45 = vpack.i.bf16 %v1141_v36, %v1140_v43  ;;  %v2192_v46 = vpack.i.bf16 %v1274_v41, %v1273_v40  ;;  %v1107_v51 = vmul.f32 %v1080_v47, %v2519_v14 }
 0x126   : > { %2143 = vrot.lane.b32.xlu1 %v2142_v17, %s2293_s25  ;;  %v1139_v53 = vmul.f32 %v2485_v58, %v2525_v18  ;;  %v1024_v57 = vsel %vm798_vm1, %v2493_v62, %v2489_v60  ;;  %v1217_v6 = vmul.f32 %v2481_v56, %v2548_v33  ;;  %v1218_v7 = vmul.f32 %v1191_v20, %v2519_v14 }
 0x127   : > { %v2222_v4 = vpack.i.bf16 %v1107_v51, %v1106_v50  ;;  %v1050_v11 = vmul.f32 %v2493_v62, %v2548_v33  ;;  %v1051_v13 = vmul.f32 %v1024_v57, %v2519_v14  ;;  %v973_v15 = vmul.f32 %v2497_v1, %v2525_v18 }
 0x128   : > { %v2197_v17 = vpack.i.bf16 %v1218_v7, %v1217_v6  ;;  %v1086_v62 = vmul.f32 %v2491_v61, %v2516_v12  ;;  %v996_v20 = vmul.f32 %v969_v31, %v2519_v14  ;;  %vm873_vm1 = vcmask 1039360  }
 0x129   : > { %v2529_v21 = vld [vmem:[#allocation3 + $0x10] sm:$0xff]  ;;  %v2227_v19 = vpack.i.bf16 %v1051_v13, %v1050_v11  ;;  %v853_v31 = vpop.permute.xlu0 %852 }
 0x12a   : > { %v1275_v24 = vmul.f32 %v2529_v21, %v1245_v55  ;;  %v1219_v27 = vmul.f32 %v2529_v21, %v1189_v54  ;;  %v1108_v35 = vmul.f32 %v2529_v21, %v2491_v61  ;;  %v1052_v48 = vmul.f32 %v2529_v21, %v2489_v60 }
 0x12b   : > { %v1163_v49 = vmul.f32 %v2529_v21, %v2487_v59  ;;  %v997_v59 = vmul.f32 %v2529_v21, %v2499_v3  ;;  %v941_v56 = vmul.f32 %v2529_v21, %v2501_v5  ;;  %v995_v3 = vmul.f32 %v2497_v1, %v2548_v33 }
 0x12c   : > { %v2157_v28 = vpack.i.bf16 %v1251_v23, %v1275_v24  ;;  %v2162_v32 = vpack.i.bf16 %v1195_v26, %v1219_v27  ;;  %v2172_v44 = vpack.i.bf16 %v1084_v42, %v1108_v35  ;;  %v2177_v54 = vpack.i.bf16 %v1028_v52, %v1052_v48  ;;  %v855_v35 = vpop.permute.xlu1 %854 }
 0x12d   : > { %v2167_v55 = vpack.i.bf16 %v1139_v53, %v1163_v49  ;;  %v2182_v16 = vpack.i.bf16 %v973_v15, %v997_v59  ;;  %v917_v23 = vmul.f32 %v2495_v63, %v2525_v18  ;;  %v1085_v24 = vmul.f32 %v1080_v47, %v2504_v8 }
 0x12e   : > { %2158 = vrot.lane.b32.xlu0 %v2157_v28, %s2293_s25  ;;  %2148 = vrot.lane.b32.xlu1 %v2147_v29, %s2294_s26  ;;  %v2232_v27 = vpack.i.bf16 %v996_v20, %v995_v3  ;;  %v1161_v61 = vmul.f32 %v2485_v58, %v2548_v33  ;;  %v1162_v1 = vmul.f32 %v1135_v39, %v2519_v14 }
 0x12f   : > { %2163 = vrot.lane.b32.xlu2 %v2162_v32, %s2294_s26  ;;  %v2187_v25 = vpack.i.bf16 %v917_v23, %v941_v56  ;;  %v2202_v26 = vpack.i.bf16 %v1086_v62, %v1085_v24  ;;  %v1030_v5 = vmul.f32 %v2489_v60, %v2516_v12  ;;  %v939_v28 = vmul.f32 %v2495_v63, %v2548_v33 }
 0x130   : > { %v940_v29 = vmul.f32 %v2509_v9, %v2519_v14  ;;  %v1029_v32 = vmul.f32 %v1024_v57, %v2504_v8  ;;  %v2207_v36 = vpack.i.bf16 %v1162_v1, %v1161_v61  ;;  %v857_v41 = vsel %vm856_vm9, %v853_v31, %v855_v35 }
 0x131   : > { %v861_v60 = vmul.f32 %v853_v31, %v2525_v18  ;;  %v862_v63 = vmul.f32 %v857_v41, %v2504_v8  ;;  %v885_v9 = vmul.f32 %v2529_v21, %v855_v35  ;;  %v883_v39 = vmul.f32 %v2548_v33, %v853_v31 }
 0x132   : > { %v2217_v40 = vpack.i.bf16 %v1030_v5, %v1029_v32  ;;  %v2237_v58 = vpack.i.bf16 %v940_v29, %v939_v28  ;;  %v884_v42 = vmul.f32 %v857_v41, %v2519_v14  ;;  %v863_v43 = vmul.f32 %v855_v35, %v2516_v12 }
 0x136   : > { %2173 = vrot.lane.b32.xlu0 %v2172_v44, %s2295_s27  ;;  %2153 = vrot.lane.b32.xlu1 %v2152_v45, %s2296_s28  ;;  %v2212_v44 = vpack.i.bf16 %v861_v60, %v885_v9  ;;  %v2257_v45 = vpack.i.bf16 %v863_v43, %v862_v63 }
 0x137   : > { %2193 = vrot.lane.b32.xlu2 %v2192_v46, %s2293_s25  ;;  %v2242_v46 = vpack.i.bf16 %v884_v42, %v883_v39 }
 0x13e   : > { %2178 = vrot.lane.b32.xlu0 %v2177_v54, %s2297_s29  ;;  %2168 = vrot.lane.b32.xlu1 %v2167_v55, %s2296_s28 }
 0x13f   : > { %2223 = vrot.lane.b32.xlu2 %v2222_v4, %s2295_s27 }
 0x146   : > { %2183 = vrot.lane.b32.xlu0 %v2182_v16, %s2298_s30  ;;  %2198 = vrot.lane.b32.xlu1 %v2197_v17, %s2294_s26  ;;  %s579_s26 = scalar_lea.vmem %s2898_s2, %s2111_s23 }
 0x147   : > { %2228 = vrot.lane.b32.xlu2 %v2227_v19, %s2297_s29 }
 0x14e   : > { %2188 = vrot.lane.b32.xlu0 %v2187_v25, %s2299_s0  ;;  %2203 = vrot.lane.b32.xlu1 %v2202_v26, %s2295_s27 }
 0x14f   : > { %2233 = vrot.lane.b32.xlu2 %v2232_v27, %s2298_s30 }
 0x156   : > { %2208 = vrot.lane.b32.xlu0 %v2207_v36, %s2296_s28  ;;  %2218 = vrot.lane.b32.xlu1 %v2217_v40, %s2297_s29  ;;  %s584_s29 = scalar_lea.vmem %s2899_s3, %s2111_s23 }
 0x157   : > { %2238 = vrot.lane.b32.xlu2 %v2237_v58, %s2299_s0 }
 0x15e   : > { %2213 = vrot.lane.b32.xlu0 %v2212_v44, %s2300_s17  ;;  %2258 = vrot.lane.b32.xlu1 %v2257_v45, %s2300_s17 }
 0x15f   : > { %2243 = vrot.lane.b32.xlu2 %v2242_v46, %s2300_s17 }
 0x166   : > { %2253 = vrot.lane.b32.xlu0 %v2252_v37, %s2299_s0  ;;  %s589_s0 = scalar_lea.vmem %s2911_s15, %s2111_s23 }
 0x167   : > { %2248 = vrot.lane.b32.xlu2 %v2247_v38, %s2298_s30 }
 0x189   : > { %v2164_v21 = vpop.permute.xlu2 %2163 }
 0x18a   : > { %v2166_v4 = vunpack.i.h.bf16 %v2164_v21  ;;  %v2165_v26 = vunpack.i.l.bf16 %v2164_v21 }
 0x191   : > { %v2194_v47 = vpop.permute.xlu2 %2193 }
 0x192   : > { %v2196_v12 = vunpack.i.h.bf16 %v2194_v47  ;;  %v2195_v48 = vunpack.i.l.bf16 %v2194_v47 }
 0x194   : > { %v2649_v49 = vsel %vm1263_vm10, %v2195_v48, %v2196_v12 }
 0x195   : > { %1381 = vmatpush.msra.mxu2 %v2649_v49 }
 0x198   : > { %v2144_v50 = vpop.permute.xlu1 %2143 }
 0x199   : > { %v2652_v51 = vpop.permute.xlu2 %2223  ;;  %v2146_v10 = vunpack.i.h.bf16 %v2144_v50  ;;  %v2145_v30 = vunpack.i.l.bf16 %v2144_v50 }
 0x19a   : > { %v2226_v58 = vunpack.i.h.bf16 %v2652_v51  ;;  %v2225_v60 = vunpack.i.l.bf16 %v2652_v51 }
 0x19b   : > { %v2655_v37 = vsel %vm1263_vm10, %v2145_v30, %v2146_v10 }
 0x19c   : > { %1358 = vmatpush.msra.mxu1 %v2655_v37 }
 0x1a0   : > { %v2159_v22 = vpop.permute.xlu0 %2158  ;;  %v2149_v34 = vpop.permute.xlu1 %2148 }
 0x1a1   : > { %v2658_v38 = vpop.permute.xlu2 %2228  ;;  %v2161_v52 = vunpack.i.h.bf16 %v2159_v22  ;;  %v2160_v53 = vunpack.i.l.bf16 %v2159_v22  ;;  %v2151_v54 = vunpack.i.h.bf16 %v2149_v34  ;;  %v2150_v55 = vunpack.i.l.bf16 %v2149_v34 }
 0x1a2   : > { %v2231_v9 = vunpack.i.h.bf16 %v2658_v38  ;;  %v2230_v48 = vunpack.i.l.bf16 %v2658_v38 }
 0x1a3   : > { %v2661_v57 = vsel %vm1263_vm10, %v2161_v52, %v2145_v30  ;;  %v2664_v59 = vsel %vm1263_vm10, %v2196_v12, %v2160_v53  ;;  %v2667_v6 = vsel %vm1207_vm11, %v2150_v55, %v2151_v54  ;;  %v2673_v7 = vsel %vm1207_vm11, %v2166_v4, %v2150_v55 }
 0x1a4   : > { %1338 = vmatpush.msra.mxu0 %v2661_v57  ;;  %1401 = vmatpush.msra.mxu3 %v2664_v59  ;;  %v2743_v4 = vsel %vm1096_vm13, %v2225_v60, %v2226_v58 }
 0x1a5   : > { %1359 = vmatpush.msra.mxu1 %v2667_v6 }
 0x1a6   : > { %1339 = vmatpush.msra.mxu0 %v2673_v7 }
 0x1a8   : > { %v2676_v11 = vpop.permute.xlu0 %2173  ;;  %v2154_v13 = vpop.permute.xlu1 %2153 }
 0x1a9   : > { %v2678_v15 = vpop.permute.xlu2 %2233  ;;  %v2156_v16 = vunpack.i.h.bf16 %v2154_v13  ;;  %v2155_v17 = vunpack.i.l.bf16 %v2154_v13  ;;  %v2176_v32 = vunpack.i.h.bf16 %v2676_v11  ;;  %v2175_v39 = vunpack.i.l.bf16 %v2676_v11 }
 0x1aa   : > { %v2236_v53 = vunpack.i.h.bf16 %v2678_v15  ;;  %v2235_v38 = vunpack.i.l.bf16 %v2678_v15 }
 0x1ab   : > { %v2681_v19 = vsel %vm1151_vm12, %v2155_v17, %v2156_v16  ;;  %v2746_v11 = vsel %vm1096_vm13, %v2226_v58, %v2175_v39  ;;  %v2757_v16 = vsel %vm1040_vm14, %v2230_v48, %v2231_v9  ;;  %v2781_v39 = vld [vmem:[%s2904_s8] sm:$0xff] }
 0x1ac   : > { %1360 = vmatpush.msra.mxu1 %v2681_v19 }
 0x1b0   : > { %v2684_v56 = vpop.permute.xlu0 %2178  ;;  %v2169_v62 = vpop.permute.xlu1 %2168 }
 0x1b1   : > { %v2171_v3 = vunpack.i.h.bf16 %v2169_v62  ;;  %v2686_v20 = vpop.permute.xlu2 %2238  ;;  %v2181_v42 = vunpack.i.h.bf16 %v2684_v56  ;;  %v2170_v43 = vunpack.i.l.bf16 %v2169_v62  ;;  %v2180_v50 = vunpack.i.l.bf16 %v2684_v56 }
 0x1b2   : > { %v2240_v56 = vunpack.i.l.bf16 %v2686_v20 }
 0x1b3   : > { %v2689_v23 = vsel %vm1151_vm12, %v2171_v3, %v2155_v17  ;;  %v2241_v17 = vunpack.i.h.bf16 %v2686_v20  ;;  %v1063_v3 = vsel %vm1040_vm14, %v2231_v9, %v2180_v50 }
 0x1b4   : > { %1340 = vmatpush.msra.mxu0 %v2689_v23 }
 0x1b8   : > { %v2692_v24 = vpop.permute.xlu0 %2183  ;;  %v2199_v25 = vpop.permute.xlu1 %2198 }
 0x1b9   : > { %v2201_v27 = vunpack.i.h.bf16 %v2199_v25  ;;  %v2200_v61 = vunpack.i.l.bf16 %v2199_v25  ;;  %v2702_v28 = vpop.permute.xlu2 %2243  ;;  %v2186_v54 = vunpack.i.h.bf16 %v2692_v24  ;;  %v2185_v55 = vunpack.i.l.bf16 %v2692_v24 }
 0x1ba   : > { %v1007_v25 = vsel %vm985_vm15, %v2235_v38, %v2236_v53 }
 0x1bb   : > { %v2695_v1 = vsel %vm1207_vm11, %v2200_v61, %v2201_v27  ;;  %v2698_v5 = vsel %vm1207_vm11, %v2201_v27, %v2165_v26  ;;  %v2246_v26 = vunpack.i.h.bf16 %v2702_v28  ;;  %v2245_v27 = vunpack.i.l.bf16 %v2702_v28 }
 0x1bc   : > { %1382 = vmatpush.msra.mxu2 %v2695_v1  ;;  %1402 = vmatpush.msra.mxu3 %v2698_v5  ;;  %v1008_v61 = vsel %vm985_vm15, %v2236_v53, %v2185_v55 }
 0x1bd   : > { %v895_v58 = vsel %vm873_vm1, %v2245_v27, %v2246_v26 }
 0x1c0   : > { %v2704_v29 = vpop.permute.xlu0 %2188  ;;  %v2204_v31 = vpop.permute.xlu1 %2203 }
 0x1c1   : > { %v2206_v35 = vunpack.i.h.bf16 %v2204_v31  ;;  %v2205_v36 = vunpack.i.l.bf16 %v2204_v31  ;;  %v2249_v63 = vpop.permute.xlu2 %2248  ;;  %v2190_v62 = vunpack.i.l.bf16 %v2704_v29  ;;  %v951_v31 = vsel %vm929_vm0, %v2240_v56, %v2241_v17 }
 0x1c2   : > { %v2251_v51 = vunpack.i.h.bf16 %v2249_v63  ;;  %v2250_v10 = vunpack.i.l.bf16 %v2249_v63 }
 0x1c3   : > { %v2708_v40 = vsel %vm1096_vm13, %v2176_v32, %v2205_v36  ;;  %v2711_v41 = vsel %vm1096_vm13, %v2205_v36, %v2206_v35  ;;  %v952_v32 = vsel %vm929_vm0, %v2241_v17, %v2190_v62  ;;  %v833_v35 = vperm.slane %v2405_v2, 0 }
 0x1c4   : > { %1341 = vmatpush.msra.mxu0 %v2708_v40  ;;  %1361 = vmatpush.msra.mxu1 %v2711_v41  ;;  %v2751_v13 = vsel %vm985_vm15, %v2186_v54, %v2250_v10  ;;  %v2754_v15 = vsel %vm985_vm15, %v2250_v10, %v2251_v51  ;;  %v834_v36 = vperm.slane %v2399_v0, 0  ;;  %v2191_v2 = vunpack.i.h.bf16 %v2704_v29 }
 0x1c5   : > { %v841_v63 = vmul.f32 %v2548_v33, %v833_v35  ;;  %v2301_v62 = vmov 256.0  }
 0x1c6   : > { %v842_v9 = vmul.f32 %v834_v36, %v2519_v14  ;;  %2266 = vrcp.f32 %v2301_v62 }
 0x1c8   : > { %v2209_v44 = vpop.permute.xlu0 %2208  ;;  %v2219_v45 = vpop.permute.xlu1 %2218 }
 0x1c9   : > { %v2211_v46 = vunpack.i.h.bf16 %v2209_v44  ;;  %v2210_v21 = vunpack.i.l.bf16 %v2209_v44  ;;  %v2221_v47 = vunpack.i.h.bf16 %v2219_v45  ;;  %v2220_v12 = vunpack.i.l.bf16 %v2219_v45 }
 0x1cb   : > { %v2723_v30 = vsel %vm1151_vm12, %v2210_v21, %v2211_v46  ;;  %v2726_v22 = vsel %vm1151_vm12, %v2211_v46, %v2170_v43  ;;  %v2729_v34 = vsel %vm1040_vm14, %v2181_v42, %v2220_v12  ;;  %v2732_v52 = vsel %vm1040_vm14, %v2220_v12, %v2221_v47 }
 0x1cc   : > { %1383 = vmatpush.msra.mxu2 %v2723_v30  ;;  %1403 = vmatpush.msra.mxu3 %v2726_v22 }
 0x1cd   : > { %1342 = vmatpush.msra.mxu0 %v2729_v34  ;;  %1362 = vmatpush.msra.mxu1 %v2732_v52 }
 0x1ce   : > { %1384 = vmatpush.msra.mxu2 %v2743_v4  ;;  %1404 = vmatpush.msra.mxu3 %v2746_v11 }
 0x1cf   : > { %1343 = vmatpush.msra.mxu0 %v2751_v13  ;;  %1363 = vmatpush.msra.mxu1 %v2754_v15 }
 0x1d0   : > { %v2214_v24 = vpop.permute.xlu0 %2213  ;;  %1385 = vmatpush.msra.mxu2 %v2757_v16  ;;  %1405 = vmatpush.msra.mxu3 %v1063_v3  ;;  %v2259_v60 = vpop.permute.xlu1 %2258 }
 0x1d1   : > { %v2215_v20 = vunpack.i.l.bf16 %v2214_v24  ;;  %v2216_v0 = vunpack.i.h.bf16 %v2214_v24  ;;  %v2261_v43 = vunpack.i.h.bf16 %v2259_v60  ;;  %v2260_v44 = vunpack.i.l.bf16 %v2259_v60 }
 0x1d2   : > { %1386 = vmatpush.msra.mxu2 %v1007_v25  ;;  %1406 = vmatpush.msra.mxu3 %v1008_v61 }
 0x1d3   : > { %v896_v28 = vsel %vm873_vm1, %v2246_v26, %v2215_v20 }
 0x1d4   : > { %1387 = vmatpush.msra.mxu2 %v951_v31  ;;  %1407 = vmatpush.msra.mxu3 %v952_v32 }
 0x1d6   : > { %1388 = vmatpush.msra.mxu2 %v895_v58  ;;  %1408 = vmatpush.msra.mxu3 %v896_v28 }
 0x1d8   : > { %v2254_v42 = vpop.permute.xlu0 %2253  ;;  %1389 = vmatpush.msra.mxu2 %v841_v63  ;;  %1409 = vmatpush.msra.mxu3 %v842_v9 }
 0x1d9   : > { %v2256_v45 = vunpack.i.h.bf16 %v2254_v42  ;;  %v2255_v46 = vunpack.i.l.bf16 %v2254_v42  ;;  %2083 = vmatmul.msk.f32.vlgmr.msra.gmra.mxu2 %vm1327_vm2, %v2781_v39  ;;  %2084 = vmatmul.msk.f32.vlgmr.msra.gmra.mxu3 %vm1327_vm2, %v2781_v39 }
 0x1da   : > { %1463 = vmatpush.msrb.mxu2 %v2649_v49  ;;  %1483 = vmatpush.msrb.mxu3 %v2664_v59  ;;  %v874_v49 = vsel %vm873_vm1, %v2216_v0, %v2260_v44  ;;  %v875_v59 = vsel %vm873_vm1, %v2260_v44, %v2261_v43 }
 0x1db   : > { %v930_v14 = vsel %vm929_vm0, %v2191_v2, %v2255_v46  ;;  %v931_v33 = vsel %vm929_vm0, %v2255_v46, %v2256_v45  ;;  %v624_v2 = vld [vmem:[%s2910_s14] sm:$0xff]  ;;  %v2302_v45 = vmov 0  }
 0x1dc   : > { %1464 = vmatpush.msrb.mxu2 %v2695_v1  ;;  %1484 = vmatpush.msrb.mxu3 %v2698_v5  ;;  %v835_v1 = vmul.f32 %v2525_v18, %v833_v35  ;;  %v836_v5 = vmul.f32 %v834_v36, %v2504_v8  ;;  %v617_v8 = vld [vmem:[%s2903_s7] sm:$0xff] }
 0x1dd   : > { %1344 = vmatpush.msra.mxu0 %v930_v14  ;;  %1364 = vmatpush.msra.mxu1 %v931_v33  ;;  %v621_v35 = vld [vmem:[%s2907_s11] sm:$0xff] }
 0x1de   : > { %1465 = vmatpush.msrb.mxu2 %v2723_v30  ;;  %1485 = vmatpush.msrb.mxu3 %v2726_v22  ;;  %v620_v30 = vld [vmem:[%s2906_s10] sm:$0xff] }
 0x1df   : > { %1345 = vmatpush.msra.mxu0 %v874_v49  ;;  %1365 = vmatpush.msra.mxu1 %v875_v59 }
 0x1e0   : > { %1466 = vmatpush.msrb.mxu2 %v2743_v4  ;;  %1486 = vmatpush.msrb.mxu3 %v2746_v11 }
 0x1e1   : > { %1346 = vmatpush.msra.mxu0 %v835_v1  ;;  %1366 = vmatpush.msra.mxu1 %v836_v5 }
 0x1e2   : > { %1467 = vmatpush.msrb.mxu2 %v2757_v16  ;;  %1487 = vmatpush.msrb.mxu3 %v1063_v3  ;;  %v2267_v3 = vpop.eup %2266 }
 0x1e3   : > { %1421 = vmatpush.msrb.mxu0 %v2661_v57  ;;  %1441 = vmatpush.msrb.mxu1 %v2655_v37  ;;  %v1673_v24 = vmul.f32 256.0, %v2267_v3  ;;  %vm1677_vm4 = vweird.f32 %v2267_v3 }
 0x1e4   : > { %1468 = vmatpush.msrb.mxu2 %v1007_v25  ;;  %1488 = vmatpush.msrb.mxu3 %v1008_v61 }
 0x1e5   : > { %1422 = vmatpush.msrb.mxu0 %v2673_v7  ;;  %1442 = vmatpush.msrb.mxu1 %v2667_v6  ;;  %v1674_v25 = vsub.f32 1.0, %v1673_v24 }
 0x1e6   : > { %1469 = vmatpush.msrb.mxu2 %v951_v31  ;;  %1489 = vmatpush.msrb.mxu3 %v952_v32  ;;  %v622_v32 = vld [vmem:[%s2908_s12] sm:$0xff] }
 0x1e7   : > { %1423 = vmatpush.msrb.mxu0 %v2689_v23  ;;  %1443 = vmatpush.msrb.mxu1 %v2681_v19  ;;  %v1675_v26 = vmul.f32 %v2267_v3, %v1674_v25 }
 0x1e8   : > { %1470 = vmatpush.msrb.mxu2 %v895_v58  ;;  %1490 = vmatpush.msrb.mxu3 %v896_v28 }
 0x1e9   : > { %1424 = vmatpush.msrb.mxu0 %v2708_v40  ;;  %1444 = vmatpush.msrb.mxu1 %v2711_v41  ;;  %v619_v40 = vld [vmem:[%s2905_s9] sm:$0xff]  ;;  %v1676_v27 = vadd.f32 %v2267_v3, %v1675_v26 }
 0x1ea   : > { %2081 = vmatmul.msk.f32.vlgmr.msra.gmra.mxu0 %vm1327_vm2, %v617_v8  ;;  %2082 = vmatmul.msk.f32.vlgmr.msra.gmra.mxu1 %vm1327_vm2, %v617_v8 }
 0x1eb   : > { %1425 = vmatpush.msrb.mxu0 %v2729_v34  ;;  %1445 = vmatpush.msrb.mxu1 %v2732_v52  ;;  %v1678_v20 = vsel %vm1677_vm4, %v2267_v3, %v1676_v27 }
 0x1ec   : > { %1471 = vmatpush.msrb.mxu2 %v841_v63  ;;  %1491 = vmatpush.msrb.mxu3 %v842_v9 }
 0x1ed   : > { %1426 = vmatpush.msrb.mxu0 %v2751_v13  ;;  %1446 = vmatpush.msrb.mxu1 %v2754_v15 }
 0x1ee   : > { %2087 = vmatmul.msk.f32.vlgmr.msrb.gmra.mxu2 %vm1327_vm2, %v617_v8  ;;  %2088 = vmatmul.msk.f32.vlgmr.msrb.gmra.mxu3 %vm1327_vm2, %v617_v8 }
 0x1ef   : > { %1427 = vmatpush.msrb.mxu0 %v930_v14  ;;  %1447 = vmatpush.msrb.mxu1 %v931_v33 }
 0x1f0   : > { %2262 = vset.pattern.permute.xlu1 %v2302_v45  ;;  %2263 = vset.pattern.permute.xlu0 %v2302_v45 }
 0x1f1   : > { %1428 = vmatpush.msrb.mxu0 %v874_v49  ;;  %1448 = vmatpush.msrb.mxu1 %v875_v59 }
 0x1f3   : > { %1429 = vmatpush.msrb.mxu0 %v835_v1  ;;  %1449 = vmatpush.msrb.mxu1 %v836_v5 }
 0x1f4   : > { %2085 = vmatmul.msk.f32.vlgmr.msrb.gmra.mxu0 %vm1327_vm2, %v2781_v39  ;;  %2086 = vmatmul.msk.f32.vlgmr.msrb.gmra.mxu1 %vm1327_vm2, %v2781_v39  ;;  %v623_v39 = vld [vmem:[%s2909_s13] sm:$0xff] }
 0x25c   : > { %v1391_v18 = vpop.f32.mrf.mxu2  ;;  %v1411_v37 = vpop.f32.mrf.mxu3 }
 0x267   : > { %v1348_v57 = vpop.f32.mrf.mxu0  ;;  %v1368_v6 = vpop.f32.mrf.mxu1 }
 0x268   : > { %v1454_v7 = vsub.f32 %v1348_v57, %v1391_v18  ;;  %v1455_v19 = vsub.f32 %v1368_v6, %v1411_v37 }
 0x26a   : > { %v1496_v23 = vmax.f32 %v1454_v7, 0.0  ;;  %v1497_v29 = vmax.f32 %v1455_v19, 0.0 }
 0x26c   : > { %1519 = vmatpush.msra.mxu0 %v1496_v23  ;;  %1539 = vmatpush.msra.mxu1 %v1497_v29 }
 0x26d   : > { %2089 = vmatmul.msk.f32.vlgmr.msra.gmra.mxu0 %vm1500_vm3, %v619_v40  ;;  %2090 = vmatmul.msk.f32.vlgmr.msra.gmra.mxu1 %vm1500_vm3, %v619_v40 }
 0x26e   : > { %1602 = vmatpush.msrb.mxu0 %v1496_v23  ;;  %1622 = vmatpush.msrb.mxu1 %v1497_v29 }
 0x271   : > { %v1431_v41 = vpop.f32.mrf.mxu0  ;;  %v1451_v21 = vpop.f32.mrf.mxu1 }
 0x272   : > { %v1473_v47 = vpop.f32.mrf.mxu2  ;;  %v1493_v12 = vpop.f32.mrf.mxu3 }
 0x273   : > { %v1474_v48 = vadd.f32 %v1473_v47, %v1431_v41  ;;  %v1494_v50 = vadd.f32 %v1493_v12, %v1451_v21 }
 0x275   : > { %v1498_v51 = vmax.f32 %v1474_v48, 0.0  ;;  %v1499_v10 = vmax.f32 %v1494_v50, 0.0  ;;  %2093 = vmatmul.msk.f32.vlgmr.msrb.gmra.mxu0 %vm1500_vm3, %v620_v30  ;;  %2094 = vmatmul.msk.f32.vlgmr.msrb.gmra.mxu1 %vm1500_vm3, %v620_v30 }
 0x277   : > { %1562 = vmatpush.msra.mxu2 %v1498_v51  ;;  %1582 = vmatpush.msra.mxu3 %v1499_v10 }
 0x278   : > { %2091 = vmatmul.msk.f32.vlgmr.msra.gmra.mxu2 %vm1500_vm3, %v620_v30  ;;  %2092 = vmatmul.msk.f32.vlgmr.msra.gmra.mxu3 %vm1500_vm3, %v620_v30 }
 0x279   : > { %1644 = vmatpush.msrb.mxu2 %v1498_v51  ;;  %1664 = vmatpush.msrb.mxu3 %v1499_v10 }
 0x280   : > { %2095 = vmatmul.msk.f32.vlgmr.msrb.gmra.mxu2 %vm1500_vm3, %v619_v40  ;;  %2096 = vmatmul.msk.f32.vlgmr.msrb.gmra.mxu3 %vm1500_vm3, %v619_v40 }
 0x2ea   : > { %v1521_v22 = vpop.f32.mrf.mxu0  ;;  %v1541_v34 = vpop.f32.mrf.mxu1 }
 0x2f2   : > { %v1604_v4 = vpop.f32.mrf.mxu0  ;;  %v1624_v11 = vpop.f32.mrf.mxu1 }
 0x2fb   : > { %v1564_v52 = vpop.f32.mrf.mxu2  ;;  %v1584_v53 = vpop.f32.mrf.mxu3 }
 0x2fc   : > { %v2840_v38 = vsub.f32 %v1521_v22, %v1564_v52  ;;  %v2842_v54 = vsub.f32 %v1541_v34, %v1584_v53 }
 0x2fe   : > { %v1669_v55 = vadd.f32 %v2842_v54, %v2840_v38 }
 0x300   : > { %1670 = vadd.xlane.f32.xlu2 %v1669_v55 }
 0x303   : > { %v1646_v13 = vpop.f32.mrf.mxu2  ;;  %v1666_v15 = vpop.f32.mrf.mxu3 }
 0x304   : > { %v2846_v16 = vadd.f32 %v1646_v13, %v1604_v4  ;;  %v2848_v17 = vadd.f32 %v1666_v15, %v1624_v11 }
 0x306   : > { %v1680_v56 = vadd.f32 %v2848_v17, %v2846_v16 }
 0x308   : > { %1681 = vadd.xlane.f32.xlu0 %v1680_v56 }
 0x373   : > { %v1671_v61 = vpop.xlane.xlu2 %1670 }
 0x374   : > { %v1679_v31 = vmul.f32 %v1678_v20, %v1671_v61  ;;  %v1921_v61 = vld [vmem:[%s579_s26 + $0x8] sm:$0xff] }
 0x376   : > { %1702 = vmatpush.msra.mxu0 %v1679_v31  ;;  %1745 = vmatpush.msra.mxu2 %v1679_v31  ;;  %v1926_v31 = vld [vmem:[%s584_s29] sm:$0xff] }
 0x377   : > { %2099 = vmatmul.msk.f32.vlgmr.msra.gmra.mxu2 %vm1500_vm3, %v622_v32  ;;  %2097 = vmatmul.msk.f32.vlgmr.msra.gmra.mxu0 %vm1500_vm3, %v621_v35 }
 0x37b   : > { %v1682_v36 = vpop.xlane.xlu0 %1681 }
 0x37c   : > { %v1683_v58 = vmul.f32 %v1682_v36, %v1678_v20  ;;  %v1920_v20 = vld [vmem:[%s579_s26] sm:$0xff] }
 0x37e   : > { %1725 = vmatpush.msra.mxu1 %v1683_v58  ;;  %1766 = vmatpush.msra.mxu3 %v1683_v58 }
 0x37f   : > { %2100 = vmatmul.msk.f32.vlgmr.msra.gmra.mxu3 %vm1500_vm3, %v621_v35  ;;  %2098 = vmatmul.msk.f32.vlgmr.msra.gmra.mxu1 %vm1500_vm3, %v622_v32  ;;  %v1927_v32 = vld [vmem:[%s584_s29 + $0x8] sm:$0xff] }
 0x3f4   : > { %v1704_v28 = vpop.f32.mrf.mxu0 }
 0x3fa   : > { %v1747_v0 = vpop.f32.mrf.mxu2 }
 0x3fc   : > { %v1727_v60 = vpop.f32.mrf.mxu1 }
 0x3fd   : > { %v1750_v63 = vsub.f32 %v1704_v28, %v1727_v60 }
 0x3ff   : > { %v1771_v9 = vmax.f32 %v1750_v63, 0.0 }
 0x401   : > { %1791 = vmatpush.msrb.mxu0 %v1771_v9  ;;  %1834 = vmatpush.msrb.mxu2 %v1771_v9 }
 0x402   : > { %v1768_v42 = vpop.f32.mrf.mxu3  ;;  %2101 = vmatmul.msk.f32.vlgmr.msrb.gmra.mxu0 %vm1500_vm3, %v623_v39  ;;  %2103 = vmatmul.msk.f32.vlgmr.msrb.gmra.mxu2 %vm1500_vm3, %v624_v2 }
 0x403   : > { %v1769_v43 = vadd.f32 %v1768_v42, %v1747_v0 }
 0x405   : > { %v1772_v44 = vmax.f32 %v1769_v43, 0.0 }
 0x407   : > { %1814 = vmatpush.msrb.mxu1 %v1772_v44  ;;  %1855 = vmatpush.msrb.mxu3 %v1772_v44 }
 0x408   : > { %2102 = vmatmul.msk.f32.vlgmr.msrb.gmra.mxu1 %vm1500_vm3, %v624_v2  ;;  %2104 = vmatmul.msk.f32.vlgmr.msrb.gmra.mxu3 %vm1500_vm3, %v623_v39 }
 0x47f   : > { %v1793_v46 = vpop.f32.mrf.mxu0 }
 0x485   : > { %v1816_v14 = vpop.f32.mrf.mxu1  ;;  %v1836_v59 = vpop.f32.mrf.mxu2 }
 0x486   : > { %v1839_v33 = vsub.f32 %v1793_v46, %v1816_v14 }
 0x488   : > { %v2105_v49 = vmul.f32 -1.442695, %v1839_v33 }
 0x48a   : > { %2268 = vpow2.f32 %v2105_v49 }
 0x48b   : > { %v1857_v1 = vpop.f32.mrf.mxu3 }
 0x48c   : > { %v1858_v5 = vadd.f32 %v1857_v1, %v1836_v59 }
 0x48e   : > { %v2106_v8 = vmul.f32 -1.442695, %v1858_v5 }
 0x490   : > { %v2269_v18 = vpop.eup %2268  ;;  %2270 = vpow2.f32 %v2106_v8 }
 0x491   : > { %v1863_v37 = vadd.f32 1.0, %v2269_v18 }
 0x493   : > { %2272 = vrcp.f32 %v1863_v37  ;;  %v1875_v29 = vand.u32 2147483648, %v1863_v37  ;;  %v1873_v41 = vand.u32 2147483647, %v1863_v37  ;;  %vm1869_vm6 = vweird.f32 %v1863_v37 }
 0x495   : > { %v1876_v48 = vor.u32 1.1754944e-38, %v1875_v29  ;;  %vm1874_vm8 = vcmp.eq.f32.partialorder %v1873_v41, 8.507059e+37 }
 0x496   : > { %v2271_v57 = vpop.eup %2270 }
 0x497   : > { %v1882_v6 = vadd.f32 1.0, %v2271_v57 }
 0x499   : > { %v2273_v7 = vpop.eup %2272  ;;  %2274 = vrcp.f32 %v1882_v6  ;;  %v1894_v22 = vand.u32 2147483648, %v1882_v6  ;;  %vm1888_vm10 = vweird.f32 %v1882_v6  ;;  %v1892_v52 = vand.u32 2147483647, %v1882_v6 }
 0x49a   : > { %v1865_v19 = vmul.f32 %v2273_v7, %v1863_v37  ;;  %vm1870_vm5 = vweird.f32 %v2273_v7 }
 0x49b   : > { %vm1871_vm7 = vmor %vm1869_vm6, %vm1870_vm5  ;;  %v1895_v55 = vor.u32 1.1754944e-38, %v1894_v22  ;;  %vm1893_vm12 = vcmp.eq.f32.partialorder %v1892_v52, 8.507059e+37 }
 0x49c   : > { %v1866_v23 = vsub.f32 1.0, %v1865_v19 }
 0x49e   : > { %v1867_v40 = vmul.f32 %v2273_v7, %v1866_v23 }
 0x49f   : > { %v2275_v21 = vpop.eup %2274 }
 0x4a0   : > { %v1868_v47 = vadd.f32 %v2273_v7, %v1867_v40  ;;  %v1884_v12 = vmul.f32 %v2275_v21, %v1882_v6  ;;  %vm1889_vm9 = vweird.f32 %v2275_v21 }
 0x4a1   : > { %vm1890_vm11 = vmor %vm1888_vm10, %vm1889_vm9 }
 0x4a2   : > { %v1872_v50 = vsel %vm1871_vm7, %v2273_v7, %v1868_v47  ;;  %v1885_v51 = vsub.f32 1.0, %v1884_v12 }
 0x4a3   : > { %v1877_v10 = vsel %vm1874_vm8, %v1876_v48, %v1872_v50 }
 0x4a4   : > { %1900 = vperm.xlu1 %2262, %v1877_v10   ;;  %v1886_v30 = vmul.f32 %v2275_v21, %v1885_v51 }
 0x4a6   : > { %v1887_v34 = vadd.f32 %v2275_v21, %v1886_v30 }
 0x4a8   : > { %v1891_v53 = vsel %vm1890_vm11, %v2275_v21, %v1887_v34 }
 0x4a9   : > { %v1896_v4 = vsel %vm1893_vm12, %v1895_v55, %v1891_v53 }
 0x4ac   : > { %1907 = vperm.xlu1 %2262, %v1896_v4  }
 0x516   : > { %v1901_v11 = vpop.permute.xlu1 %1900 }
 0x517   : > { %v1903_v13 = vmul.f32 %v1901_v11, %v2840_v38  ;;  %v1904_v15 = vmul.f32 %v1901_v11, %v2842_v54  ;;  %v1916_v56 = vmul.f32 %v1901_v11, %v2846_v16  ;;  %v1917_v62 = vmul.f32 %v1901_v11, %v2848_v17 }
 0x51e   : > { %v1908_v3 = vpop.permute.xlu1 %1907 }
 0x51f   : > { %v1910_v24 = vmul.f32 %v1908_v3, %v2846_v16  ;;  %v1911_v25 = vmul.f32 %v1908_v3, %v2848_v17  ;;  %v1914_v26 = vmul.f32 %v1908_v3, %v2840_v38  ;;  %v1915_v27 = vmul.f32 %v1908_v3, %v2842_v54 }
 0x521   : > { %v1912_v35 = vsub.f32 %v1903_v13, %v1910_v24  ;;  %v1913_v36 = vsub.f32 %v1904_v15, %v1911_v25  ;;  %v1918_v58 = vadd.f32 %v1916_v56, %v1914_v26  ;;  %v1919_v28 = vadd.f32 %v1917_v62, %v1915_v27 }
 0x523   : > { %v1922_v60 = vadd.f32 %v1920_v20, %v1912_v35  ;;  %v1923_v16 = vadd.f32 %v1921_v61, %v1913_v36  ;;  %v1928_v63 = vadd.f32 %v1926_v31, %v1918_v58  ;;  %v1929_v38 = vadd.f32 %v1927_v32, %v1919_v28 }
 0x525   : > { %1924 = vst [vmem:[%s589_s0] sm:$0xff] %v1922_v60 }
 0x526   : > { %1925 = vst [vmem:[%s589_s0 + $0x8] sm:$0xff] %v1923_v16 }
 0x527   : > { %1930 = vst [vmem:[%s594_s19] sm:$0xff] %v1928_v63 }
 0x528   : > { %1931 = vst [vmem:[%s594_s19 + $0x8] sm:$0xff] %v1929_v38 }
 0x529 PF: > { %s27_s21 = sadd.s32 1, %s2282_s21  }
 0x52a   : > { %p24_p4 = scmp.ge.s32.totalorder %s27_s21, 4  }
 0x52c   :  { %26 = sbr.rel (!%p24_p4) target bundleno = 2 (0x2), region = 131 }

// kernel: _lambda_.2
= control target key start
LH: loop header
LB: loop body
LE: loop exit
PB: predicated region body
PF: predicated region fallthrough
CT: control target
= control target key end

     0   :  { %s5878_s29 = smov 0   ;;  %s8299_s0 = inlined_call_operand.vmem [shape: f32[2,8,256], index: 0, kind: input, shape index: {}]   ;;  %s8300_s1 = inlined_call_operand.vmem [shape: f32[2,8,256], index: 1, kind: input, shape index: {}]   ;;  %s8301_s2 = inlined_call_operand.vmem [shape: f32[9,256], index: 2, kind: input, shape index: {}]   ;;  %s8302_s3 = inlined_call_operand.vmem [shape: f32[8,8], index: 3, kind: input, shape index: {}]   ;;  %s8303_s4 = inlined_call_operand.vmem [shape: f32[8,8], index: 4, kind: input, shape index: {}]   ;;  %s8304_s5 = inlined_call_operand.vmem [shape: f32[8,72], index: 5, kind: input, shape index: {}]   ;;  %s8305_s6 = inlined_call_operand.vmem [shape: f32[8,72], index: 6, kind: input, shape index: {}]   ;;  %s8306_s7 = inlined_call_operand.vmem [shape: f32[16,8], index: 7, kind: input, shape index: {}]   ;;  %s8307_s8 = inlined_call_operand.vmem [shape: f32[16,8], index: 8, kind: input, shape index: {}]   ;;  %s8308_s9 = inlined_call_operand.vmem [shape: f32[8,16], index: 9, kind: input, shape index: {}]   ;;  %s8309_s10 = inlined_call_operand.vmem [shape: f32[8,16], index: 10, kind: input, shape index: {}]   ;;  %s8310_s11 = inlined_call_operand.vmem [shape: f32[16,8], index: 11, kind: input, shape index: {}]   ;;  %s8311_s12 = inlined_call_operand.vmem [shape: f32[16,8], index: 12, kind: input, shape index: {}]   ;;  %s8312_s13 = inlined_call_operand.vmem [shape: f32[2,32,256], index: 13, kind: output, shape index: {0}]   ;;  %s8313_s14 = inlined_call_operand.vmem [shape: f32[2,32,256], index: 14, kind: output, shape index: {1}]  }
   0x1 LB: > { %s5411_s30 = sadd.s32 4294967295, %s5776_s29   ;;  %p5415_p0 = scmp.ge.s32.totalorder %s5776_s29, 1  ;;  %s5776_s29 = sphi %s5878_s29, %s25_s29  }
   0x2   : > { %p425_p1 = scmp.lt.s32.totalorder %s5776_s29, 3 }
   0x4   : > { %p426_p2 = pnand %p5415_p0, %p425_p1 }
   0x6   : > { %429 = sbr.rel (%p426_p2) target bundleno = 1823 (0x71f), region = 72 }
   0xb   : > { %p481_p3 = scmp.lt.s32.totalorder %s5411_s30, 1  ;;  %v5889_v0 = vld [vmem:[%s8301_s2 + $0x8] sm:$0xff]  ;;  %v5895_v2 = vld [vmem:[%s8301_s2] sm:$0xff]  ;;  %s5778_s19 = smov 33   ;;  %v5702_v4 = vld [vmem:[%s8301_s2 + $0x10] ss:$0 sm:$0xff] }
   0xc   : > { %v1082_v1 = vperm.slane %v5889_v0, 7  ;;  %v1081_v3 = vperm.slane %v5895_v2, 7  ;;  %v510_v5 = vld [vmem:[%s8303_s4] sm:$0xff]  ;;  %vm523_vm0 = vcmask 64512   ;;  %s5779_s28 = smov 34   ;;  %v969_v11 = vperm.slane %v5895_v2, 5 }
   0xd   : > { %s8456_s30 = smov (!%p481_p3, %s5411_s30), 1  ;;  %1141 = vrot.lane.b32.xlu2 %v5702_v4, %s5779_s28  ;;  %v509_v7 = vld [vmem:[%s8302_s3] sm:$0xff]  ;;  %v1026_v12 = vperm.slane %v5889_v0, 6  ;;  %v5703_v13 = vld [vmem:[%s8301_s2 + $0x18] ss:$0 sm:$0xff]  ;;  %s5781_s23 = smov 32  }
   0xe   : > { %1087 = vrot.lane.b32.xlu1 %v1082_v1, %s5778_s19  ;;  %s5542_s22 = sshll.u32 %s8456_s30, 4  ;;  %1085 = vrot.lane.b32.xlu0 %v1081_v3, %s5778_s19  ;;  %v915_v14 = vperm.slane %v5889_v0, 4  ;;  %v914_v15 = vperm.slane %v5895_v2, 4  ;;  %s5782_s24 = smov 17   ;;  %v802_v16 = vperm.slane %v5895_v2, 2  ;;  %v859_v17 = vperm.slane %v5889_v0, 3 }
   0xf   : > { %s5907_s25 = scalar_lea.vmem %s8300_s1, %s5542_s22  ;;  %s5916_s17 = scalar_lea.vmem %s8299_s0, %s5542_s22  ;;  %v1025_v18 = vperm.slane %v5895_v2, 6  ;;  %v970_v19 = vperm.slane %v5889_v0, 5  ;;  %v858_v20 = vperm.slane %v5895_v2, 3  ;;  %v803_v22 = vperm.slane %v5889_v0, 2 }
  0x10   : > { %v503_v6 = vld [vmem:[%s5907_s25] sm:$0xff]  ;;  %v504_v8 = vld [vmem:[%s5907_s25 + $0x8] sm:$0xff]  ;;  %s5780_s22 = smov 18   ;;  %s5783_s26 = smov 2   ;;  %v747_v38 = vperm.slane %v5889_v0, 1  ;;  %v746_v39 = vperm.slane %v5895_v2, 1 }
  0x11   : > { %585 = vmatpush.msra.mxu2 %v503_v6  ;;  %v501_v9 = vld [vmem:[%s5916_s17] sm:$0xff]  ;;  %605 = vmatpush.msra.mxu3 %v504_v8  ;;  %v502_v10 = vld [vmem:[%s5916_s17 + $0x8] sm:$0xff]  ;;  %s5784_s27 = smov 16   ;;  %vm696_vm1 = vcmask 138240   ;;  %v5786_v40 = vmov 0.0   ;;  %vm699_vm2 = vcmask 277640  }
  0x12   : > { %5426 = vmatmul.msk.f32.vlgmr.msra.gmra.mxu2 %vm523_vm0, %v510_v5  ;;  %542 = vmatpush.msra.mxu0 %v501_v9  ;;  %697 = vst.msk [vmem:[#allocation2] sm:$0xff] %vm696_vm1, %v5786_v40  ;;  %vm712_vm3 = vcmask 1047688   ;;  %vm810_vm4 = vcmask 15360   ;;  %vm1145_vm5 = vcmask 277504   ;;  %vm1089_vm6 = vcmask 269312   ;;  %s5787_s15 = smov 94  }
  0x13   : > { %5424 = vmatmul.msk.f32.vlgmr.msra.gmra.mxu0 %vm523_vm0, %v509_v7  ;;  %667 = vmatpush.msrb.mxu2 %v503_v6  ;;  %698 = vst.msk [vmem:[#allocation3] sm:$0xff] %vm696_vm1, %v5786_v40  ;;  %vm866_vm7 = vcmask 130048   ;;  %vm1033_vm8 = vcmask 261120   ;;  %s5788_s16 = smov 95   ;;  %vm977_vm9 = vcmask 146432   ;;  %s5789_s18 = smov 110  }
  0x14   : > { %5427 = vmatmul.msk.f32.vlgmr.msra.gmra.mxu3 %vm523_vm0, %v510_v5  ;;  %562 = vmatpush.msra.mxu1 %v502_v10  ;;  %700 = vst.msk [vmem:[#allocation2 + $0x10] sm:$0xff] %vm699_vm2, %v5786_v40  ;;  %s5790_s19 = smov 96   ;;  %s5791_s20 = smov 111   ;;  %vm754_vm10 = vcmask 7168   ;;  %vm1162_vm11 = vcmask 769024   ;;  %vm1106_vm12 = vcmask 777216  }
  0x15   : > { %625 = vmatpush.msrb.mxu0 %v501_v9  ;;  %5425 = vmatmul.msk.f32.vlgmr.msra.gmra.mxu1 %vm523_vm0, %v509_v7  ;;  %701 = vst.msk [vmem:[#allocation3 + $0x10] sm:$0xff] %vm699_vm2, %v5786_v40  ;;  %s5792_s21 = smov 112   ;;  %vm1050_vm13 = vcmask 785408   ;;  %vm994_vm14 = vcmask 900096   ;;  %vm938_vm15 = vcmask 908288   ;;  %vm827_vm2 = vcmask 1031168  }
  0x16   : > { %687 = vmatpush.msrb.mxu3 %v504_v8  ;;  %645 = vmatpush.msrb.mxu1 %v502_v10 }
  0x17   : > { %973 = vrot.lane.b32.xlu1 %v969_v11, %s5780_s22  ;;  %1031 = vrot.lane.b32.xlu0 %v1026_v12, %s5781_s23 }
  0x18   : > { %1143 = vrot.lane.b32.xlu2 %v5703_v13, %s5779_s28  ;;  %s5785_s28 = smov 1  }
  0x1a   : > { %5430 = vmatmul.msk.f32.vlgmr.msrb.gmra.mxu2 %vm523_vm0, %v509_v7 }
  0x1b   : > { %5428 = vmatmul.msk.f32.vlgmr.msrb.gmra.mxu0 %vm523_vm0, %v510_v5 }
  0x1c   : > { %5431 = vmatmul.msk.f32.vlgmr.msrb.gmra.mxu3 %vm523_vm0, %v509_v7 }
  0x1d   : > { %5429 = vmatmul.msk.f32.vlgmr.msrb.gmra.mxu1 %vm523_vm0, %v510_v5 }
  0x1f   : > { %920 = vrot.lane.b32.xlu1 %v915_v14, %s5782_s24  ;;  %918 = vrot.lane.b32.xlu0 %v914_v15, %s5782_s24 }
  0x20   : > { %1029 = vrot.lane.b32.xlu2 %v1025_v18, %s5781_s23  ;;  %s5794_s23 = smov 127  }
  0x27   : > { %806 = vrot.lane.b32.xlu1 %v802_v16, %s5783_s26  ;;  %864 = vrot.lane.b32.xlu0 %v859_v17, %s5784_s27 }
  0x28   : > { %975 = vrot.lane.b32.xlu2 %v970_v19, %s5780_s22  ;;  %s5793_s22 = smov 126  }
  0x30   : > { %862 = vrot.lane.b32.xlu2 %v858_v20, %s5784_s27 }
  0x38   : > { %808 = vrot.lane.b32.xlu2 %v803_v22, %s5783_s26 }
  0x67   : > { %v5955_v41 = vpop.permute.xlu2 %1141 }
  0x72   : > { %v1144_v43 = vpop.permute.xlu2 %1143 }
  0x73   : > { %v1146_v61 = vsel %vm1145_vm5, %v5955_v41, %v1144_v43 }
  0x7a   : > { %v5961_v46 = vpop.permute.xlu2 %1029 }
  0x80   : > { %v1088_v42 = vpop.permute.xlu1 %1087  ;;  %v5957_v44 = vpop.permute.xlu0 %1085 }
  0x81   : > { %v1090_v8 = vsel %vm1089_vm6, %v5957_v44, %v1088_v42 }
  0x82   : > { %v5967_v49 = vpop.permute.xlu2 %975 }
  0x89   : > { %v5959_v45 = vpop.permute.xlu1 %973  ;;  %v5963_v47 = vpop.permute.xlu0 %1031 }
  0x8a   : > { %v5973_v52 = vpop.permute.xlu2 %862 }
  0x90   : > { %v544_v21 = vpop.f32.mrf.mxu0 }
  0x91   : > { %v5965_v48 = vpop.permute.xlu1 %920  ;;  %v5969_v50 = vpop.permute.xlu0 %918 }
  0x92   : > { %v564_v24 = vpop.f32.mrf.mxu1  ;;  %v5977_v55 = vpop.permute.xlu2 %808 }
  0x95   : > { %v587_v23 = vpop.f32.mrf.mxu2 }
  0x96   : > { %v650_v25 = vsub.f32 %v544_v21, %v587_v23 }
  0x97   : > { %v607_v26 = vpop.f32.mrf.mxu3 }
  0x98   : > { %v692_v27 = vmax.f32 %v650_v25, 0.0  ;;  %v651_v28 = vsub.f32 %v564_v24, %v607_v26  ;;  %v627_v29 = vpop.f32.mrf.mxu0 }
  0x99   : > { %v5971_v51 = vpop.permute.xlu1 %806  ;;  %v5975_v53 = vpop.permute.xlu0 %864 }
  0x9a   : > { %704 = vrot.lane.b32.xlu1 %v692_v27, %s5782_s24  ;;  %v693_v31 = vmax.f32 %v651_v28, 0.0  ;;  %v647_v33 = vpop.f32.mrf.mxu1  ;;  %v5985_v59 = vsel %vm810_vm4, %v5971_v51, %v5977_v55  ;;  %v867_v19 = vsel %vm866_vm7, %v5973_v52, %v5975_v53  ;;  %v1034_v27 = vsel %vm1033_vm8, %v5961_v46, %v5963_v47 }
  0x9b   : > { %vm1226_vm4 = vcmask 588800  }
  0x9d   : > { %v669_v30 = vpop.f32.mrf.mxu2 }
  0x9e   : > { %v670_v32 = vadd.f32 %v669_v30, %v627_v29 }
  0x9f   : > { %v689_v34 = vpop.f32.mrf.mxu3 }
  0xa0   : > { %v694_v35 = vmax.f32 %v670_v32, 0.0  ;;  %v690_v36 = vadd.f32 %v689_v34, %v647_v33 }
  0xa2   : > { %706 = vrot.lane.b32.xlu1 %v693_v31, %s5782_s24  ;;  %718 = vrot.lane.b32.xlu0 %v694_v35, %s5782_s24  ;;  %v695_v37 = vmax.f32 %v690_v36, 0.0  ;;  %v978_v35 = vsel %vm977_vm9, %v5959_v45, %v5967_v49 }
  0xaa   : > { %752 = vrot.lane.b32.xlu1 %v747_v38, %s5785_s28  ;;  %720 = vrot.lane.b32.xlu0 %v695_v37, %s5782_s24 }
  0xb2   : > { %750 = vrot.lane.b32.xlu0 %v746_v39, %s5785_s28 }
 0x10c   : > { %v705_v54 = vpop.permute.xlu1 %704 }
 0x10d   : > { %713 = vst.msk [vmem:[#allocation2] sm:$0xff] %vm712_vm3, %v705_v54 }
 0x114   : > { %v707_v56 = vpop.permute.xlu1 %706  ;;  %v719_v57 = vpop.permute.xlu0 %718  ;;  %v6001_v6 = vld [vmem:[#allocation2] sm:$0xff] }
 0x115   : > { %v5980_v58 = vsel %vm696_vm1, %v705_v54, %v707_v56  ;;  %715 = vst.msk [vmem:[#allocation2 + $0x10] sm:$0xff] %vm696_vm1, %v707_v56  ;;  %v1150_v11 = vmul.f32 %v5955_v41, %v6001_v6  ;;  %v1094_v14 = vmul.f32 %v5957_v44, %v6001_v6  ;;  %v982_v30 = vmul.f32 %v5959_v45, %v6001_v6 }
 0x116   : > { %726 = vst.msk [vmem:[#allocation3] sm:$0xff] %vm712_vm3, %v719_v57  ;;  %v5989_v60 = vmul.f32 %v5985_v59, %v5980_v58  ;;  %v1151_v3 = vmul.f32 %v1146_v61, %v5980_v58  ;;  %v1095_v13 = vmul.f32 %v1090_v8, %v5980_v58  ;;  %v6030_v22 = vmul.f32 %v867_v19, %v5980_v58 }
 0x117   : > { %v1039_v31 = vmul.f32 %v1034_v27, %v5980_v58  ;;  %v926_v40 = vmul.f32 %v5969_v50, %v6001_v6  ;;  %vm771_vm3 = vcmask 1039360  }
 0x11c   : > { %v5992_v62 = vld [vmem:[#allocation2 + $0x10] sm:$0xff]  ;;  %v721_v63 = vpop.permute.xlu0 %720 }
 0x11d   : > { %v5995_v1 = vsel %vm696_vm1, %v719_v57, %v721_v63  ;;  %728 = vst.msk [vmem:[#allocation3 + $0x10] sm:$0xff] %vm696_vm1, %v721_v63  ;;  %v1152_v4 = vmul.f32 %v1144_v43, %v5992_v62  ;;  %v1096_v7 = vmul.f32 %v1088_v42, %v5992_v62  ;;  %v6009_v10 = vmul.f32 %v5975_v53, %v5992_v62  ;;  %v6025_v21 = vld [vmem:[#allocation3] sm:$0xff] }
 0x11e   : > { %v6020_v18 = vmul.f32 %v5977_v55, %v5992_v62  ;;  %v1040_v24 = vmul.f32 %v5963_v47, %v5992_v62  ;;  %v1172_v28 = vmul.f32 %v5955_v41, %v6025_v21  ;;  %v1173_v29 = vmul.f32 %v1146_v61, %v5995_v1 }
 0x11f   : > { %v5579_v5 = vpack.i.bf16 %v1152_v4, %v1151_v3  ;;  %v5584_v17 = vpack.i.bf16 %v1096_v7, %v1095_v13  ;;  %v5684_v26 = vpack.i.bf16 %v6009_v10, %v6030_v22  ;;  %v1004_v38 = vmul.f32 %v5959_v45, %v6025_v21 }
 0x120   : > { %v5689_v25 = vpack.i.bf16 %v6020_v18, %v5989_v60  ;;  %v5589_v33 = vpack.i.bf16 %v1040_v24, %v1039_v31  ;;  %v5629_v34 = vpack.i.bf16 %v1173_v29, %v1172_v28  ;;  %v1005_v39 = vmul.f32 %v978_v35, %v5995_v1 }
 0x121   : > { %5580 = vrot.lane.b32.xlu1 %v5579_v5, %s5787_s15  ;;  %v1038_v41 = vmul.f32 %v5961_v46, %v6001_v6  ;;  %v922_v45 = vsel %vm696_vm1, %v5969_v50, %v5965_v48  ;;  %v1116_v56 = vmul.f32 %v5957_v44, %v6025_v21  ;;  %v1117_v57 = vmul.f32 %v1090_v8, %v5995_v1 }
 0x122   : > { %v5659_v54 = vpack.i.bf16 %v1005_v39, %v1004_v38  ;;  %v948_v61 = vmul.f32 %v5969_v50, %v6025_v21  ;;  %v949_v63 = vmul.f32 %v922_v45, %v5995_v1  ;;  %v871_v3 = vmul.f32 %v5973_v52, %v6001_v6 }
 0x123   : > { %v5634_v5 = vpack.i.bf16 %v1117_v57, %v1116_v56  ;;  %v984_v50 = vmul.f32 %v5967_v49, %v5992_v62  ;;  %v894_v8 = vmul.f32 %v867_v19, %v5995_v1  ;;  %vm883_vm1 = vcmask 916480  }
 0x124   : > { %v6005_v9 = vld [vmem:[#allocation3 + $0x10] sm:$0xff]  ;;  %v5664_v7 = vpack.i.bf16 %v949_v63, %v948_v61  ;;  %v751_v19 = vpop.permute.xlu0 %750 }
 0x125   : > { %v1174_v12 = vmul.f32 %v6005_v9, %v1144_v43  ;;  %v1118_v15 = vmul.f32 %v6005_v9, %v1088_v42  ;;  %v1006_v23 = vmul.f32 %v6005_v9, %v5967_v49  ;;  %v950_v36 = vmul.f32 %v6005_v9, %v5965_v48 }
 0x126   : > { %v1062_v37 = vmul.f32 %v6005_v9, %v5963_v47  ;;  %v895_v47 = vmul.f32 %v6005_v9, %v5975_v53  ;;  %v839_v44 = vmul.f32 %v6005_v9, %v5977_v55  ;;  %v893_v53 = vmul.f32 %v5973_v52, %v6025_v21 }
 0x127   : > { %v5594_v16 = vpack.i.bf16 %v1150_v11, %v1174_v12  ;;  %v5599_v20 = vpack.i.bf16 %v1094_v14, %v1118_v15  ;;  %v5609_v32 = vpack.i.bf16 %v982_v30, %v1006_v23  ;;  %v5614_v42 = vpack.i.bf16 %v926_v40, %v950_v36  ;;  %v753_v23 = vpop.permute.xlu1 %752 }
 0x128   : > { %v5604_v43 = vpack.i.bf16 %v1038_v41, %v1062_v37  ;;  %v5619_v4 = vpack.i.bf16 %v871_v3, %v895_v47  ;;  %v815_v11 = vmul.f32 %v5971_v51, %v6001_v6  ;;  %v983_v12 = vmul.f32 %v978_v35, %v5980_v58 }
 0x129   : > { %5595 = vrot.lane.b32.xlu0 %v5594_v16, %s5787_s15  ;;  %5585 = vrot.lane.b32.xlu1 %v5584_v17, %s5788_s16  ;;  %v5669_v15 = vpack.i.bf16 %v894_v8, %v893_v53  ;;  %v1060_v49 = vmul.f32 %v5961_v46, %v6025_v21  ;;  %v1061_v52 = vmul.f32 %v1034_v27, %v5995_v1 }
 0x12a   : > { %5600 = vrot.lane.b32.xlu2 %v5599_v20, %s5788_s16  ;;  %v5624_v13 = vpack.i.bf16 %v815_v11, %v839_v44  ;;  %v5639_v14 = vpack.i.bf16 %v984_v50, %v983_v12  ;;  %v928_v55 = vmul.f32 %v5965_v48, %v5992_v62  ;;  %v837_v16 = vmul.f32 %v5971_v51, %v6025_v21 }
 0x12b   : > { %v838_v17 = vmul.f32 %v5985_v59, %v5995_v1  ;;  %v927_v20 = vmul.f32 %v922_v45, %v5980_v58  ;;  %v5644_v24 = vpack.i.bf16 %v1061_v52, %v1060_v49  ;;  %v755_v29 = vsel %vm754_vm10, %v751_v19, %v753_v23 }
 0x12c   : > { %v759_v48 = vmul.f32 %v751_v19, %v6001_v6  ;;  %v760_v51 = vmul.f32 %v755_v29, %v5980_v58  ;;  %v783_v59 = vmul.f32 %v6005_v9, %v753_v23  ;;  %v781_v27 = vmul.f32 %v6025_v21, %v751_v19 }
 0x12d   : > { %v5654_v28 = vpack.i.bf16 %v928_v55, %v927_v20  ;;  %v5674_v46 = vpack.i.bf16 %v838_v17, %v837_v16  ;;  %v782_v30 = vmul.f32 %v755_v29, %v5995_v1  ;;  %v761_v31 = vmul.f32 %v753_v23, %v5992_v62 }
 0x131   : > { %5610 = vrot.lane.b32.xlu0 %v5609_v32, %s5789_s18  ;;  %5590 = vrot.lane.b32.xlu1 %v5589_v33, %s5790_s19  ;;  %v5649_v32 = vpack.i.bf16 %v759_v48, %v783_v59  ;;  %v5694_v33 = vpack.i.bf16 %v761_v31, %v760_v51 }
 0x132   : > { %5630 = vrot.lane.b32.xlu2 %v5629_v34, %s5787_s15  ;;  %v5679_v34 = vpack.i.bf16 %v782_v30, %v781_v27 }
 0x139   : > { %5615 = vrot.lane.b32.xlu0 %v5614_v42, %s5791_s20  ;;  %5605 = vrot.lane.b32.xlu1 %v5604_v43, %s5790_s19 }
 0x13a   : > { %5660 = vrot.lane.b32.xlu2 %v5659_v54, %s5789_s18 }
 0x141   : > { %5620 = vrot.lane.b32.xlu0 %v5619_v4, %s5792_s21  ;;  %5635 = vrot.lane.b32.xlu1 %v5634_v5, %s5788_s16 }
 0x142   : > { %5665 = vrot.lane.b32.xlu2 %v5664_v7, %s5791_s20 }
 0x149   : > { %5625 = vrot.lane.b32.xlu0 %v5624_v13, %s5793_s22  ;;  %5640 = vrot.lane.b32.xlu1 %v5639_v14, %s5789_s18 }
 0x14a   : > { %5670 = vrot.lane.b32.xlu2 %v5669_v15, %s5792_s21 }
 0x151   : > { %5645 = vrot.lane.b32.xlu0 %v5644_v24, %s5790_s19  ;;  %5655 = vrot.lane.b32.xlu1 %v5654_v28, %s5791_s20 }
 0x152   : > { %5675 = vrot.lane.b32.xlu2 %v5674_v46, %s5793_s22 }
 0x159   : > { %5650 = vrot.lane.b32.xlu0 %v5649_v32, %s5794_s23  ;;  %5695 = vrot.lane.b32.xlu1 %v5694_v33, %s5794_s23 }
 0x15a   : > { %5680 = vrot.lane.b32.xlu2 %v5679_v34, %s5794_s23 }
 0x161   : > { %5690 = vrot.lane.b32.xlu0 %v5689_v25, %s5793_s22 }
 0x162   : > { %5685 = vrot.lane.b32.xlu2 %v5684_v26, %s5792_s21 }
 0x184   : > { %v5601_v9 = vpop.permute.xlu2 %5600 }
 0x185   : > { %v5603_v54 = vunpack.i.h.bf16 %v5601_v9  ;;  %v5602_v14 = vunpack.i.l.bf16 %v5601_v9 }
 0x18c   : > { %v5631_v35 = vpop.permute.xlu2 %5630 }
 0x18d   : > { %v5633_v62 = vunpack.i.h.bf16 %v5631_v35  ;;  %v5632_v36 = vunpack.i.l.bf16 %v5631_v35 }
 0x18f   : > { %v6125_v37 = vsel %vm1162_vm11, %v5632_v36, %v5633_v62 }
 0x190   : > { %1280 = vmatpush.msra.mxu2 %v6125_v37 }
 0x193   : > { %v5581_v38 = vpop.permute.xlu1 %5580 }
 0x194   : > { %v6128_v39 = vpop.permute.xlu2 %5660  ;;  %v5583_v60 = vunpack.i.h.bf16 %v5581_v38  ;;  %v5582_v18 = vunpack.i.l.bf16 %v5581_v38 }
 0x195   : > { %v5663_v46 = vunpack.i.h.bf16 %v6128_v39  ;;  %v5662_v48 = vunpack.i.l.bf16 %v6128_v39 }
 0x196   : > { %v6131_v25 = vsel %vm1162_vm11, %v5582_v18, %v5583_v60 }
 0x197   : > { %1257 = vmatpush.msra.mxu1 %v6131_v25 }
 0x19b   : > { %v5596_v10 = vpop.permute.xlu0 %5595  ;;  %v5586_v22 = vpop.permute.xlu1 %5585 }
 0x19c   : > { %v6134_v26 = vpop.permute.xlu2 %5665  ;;  %v5598_v40 = vunpack.i.h.bf16 %v5596_v10  ;;  %v5597_v41 = vunpack.i.l.bf16 %v5596_v10  ;;  %v5588_v42 = vunpack.i.h.bf16 %v5586_v22  ;;  %v5587_v43 = vunpack.i.l.bf16 %v5586_v22 }
 0x19d   : > { %v5668_v59 = vunpack.i.h.bf16 %v6134_v26  ;;  %v5667_v36 = vunpack.i.l.bf16 %v6134_v26 }
 0x19e   : > { %v6137_v45 = vsel %vm1162_vm11, %v5598_v40, %v5582_v18  ;;  %v6140_v47 = vsel %vm1162_vm11, %v5633_v62, %v5597_v41  ;;  %v6143_v56 = vsel %vm1106_vm12, %v5587_v43, %v5588_v42  ;;  %v6149_v57 = vsel %vm1106_vm12, %v5603_v54, %v5587_v43 }
 0x19f   : > { %1237 = vmatpush.msra.mxu0 %v6137_v45  ;;  %1300 = vmatpush.msra.mxu3 %v6140_v47  ;;  %v6219_v54 = vsel %vm994_vm14, %v5662_v48, %v5663_v46 }
 0x1a0   : > { %1258 = vmatpush.msra.mxu1 %v6143_v56 }
 0x1a1   : > { %1238 = vmatpush.msra.mxu0 %v6149_v57 }
 0x1a3   : > { %v6152_v61 = vpop.permute.xlu0 %5610  ;;  %v5591_v63 = vpop.permute.xlu1 %5590 }
 0x1a4   : > { %v6154_v3 = vpop.permute.xlu2 %5670  ;;  %v5593_v4 = vunpack.i.h.bf16 %v5591_v63  ;;  %v5592_v5 = vunpack.i.l.bf16 %v5591_v63  ;;  %v5613_v20 = vunpack.i.h.bf16 %v6152_v61  ;;  %v5612_v27 = vunpack.i.l.bf16 %v6152_v61 }
 0x1a5   : > { %v5673_v41 = vunpack.i.h.bf16 %v6154_v3  ;;  %v5672_v26 = vunpack.i.l.bf16 %v6154_v3 }
 0x1a6   : > { %v6157_v7 = vsel %vm1050_vm13, %v5592_v5, %v5593_v4  ;;  %v6222_v61 = vsel %vm994_vm14, %v5663_v46, %v5612_v27  ;;  %v6233_v4 = vsel %vm938_vm15, %v5667_v36, %v5668_v59  ;;  %v6257_v27 = vld [vmem:[%s8305_s6] sm:$0xff] }
 0x1a7   : > { %1259 = vmatpush.msra.mxu1 %v6157_v7 }
 0x1ab   : > { %v6160_v44 = vpop.permute.xlu0 %5615  ;;  %v5606_v50 = vpop.permute.xlu1 %5605 }
 0x1ac   : > { %v5608_v53 = vunpack.i.h.bf16 %v5606_v50  ;;  %v6162_v8 = vpop.permute.xlu2 %5675  ;;  %v5618_v30 = vunpack.i.h.bf16 %v6160_v44  ;;  %v5607_v31 = vunpack.i.l.bf16 %v5606_v50  ;;  %v5617_v38 = vunpack.i.l.bf16 %v6160_v44 }
 0x1ad   : > { %v5677_v44 = vunpack.i.l.bf16 %v6162_v8 }
 0x1ae   : > { %v6165_v11 = vsel %vm1050_vm13, %v5608_v53, %v5592_v5  ;;  %v5678_v5 = vunpack.i.h.bf16 %v6162_v8  ;;  %v961_v53 = vsel %vm938_vm15, %v5668_v59, %v5617_v38 }
 0x1af   : > { %1239 = vmatpush.msra.mxu0 %v6165_v11 }
 0x1b3   : > { %v6168_v12 = vpop.permute.xlu0 %5620  ;;  %v5636_v13 = vpop.permute.xlu1 %5635 }
 0x1b4   : > { %v5638_v15 = vunpack.i.h.bf16 %v5636_v13  ;;  %v5637_v49 = vunpack.i.l.bf16 %v5636_v13  ;;  %v6178_v16 = vpop.permute.xlu2 %5680  ;;  %v5623_v42 = vunpack.i.h.bf16 %v6168_v12  ;;  %v5622_v43 = vunpack.i.l.bf16 %v6168_v12 }
 0x1b5   : > { %v905_v13 = vsel %vm883_vm1, %v5672_v26, %v5673_v41 }
 0x1b6   : > { %v6171_v52 = vsel %vm1106_vm12, %v5637_v49, %v5638_v15  ;;  %v6174_v55 = vsel %vm1106_vm12, %v5638_v15, %v5602_v14  ;;  %v5683_v14 = vunpack.i.h.bf16 %v6178_v16  ;;  %v5682_v15 = vunpack.i.l.bf16 %v6178_v16 }
 0x1b7   : > { %1281 = vmatpush.msra.mxu2 %v6171_v52  ;;  %1301 = vmatpush.msra.mxu3 %v6174_v55  ;;  %v906_v49 = vsel %vm883_vm1, %v5673_v41, %v5622_v43 }
 0x1b8   : > { %v793_v46 = vsel %vm771_vm3, %v5682_v15, %v5683_v14 }
 0x1bb   : > { %v6180_v17 = vpop.permute.xlu0 %5625  ;;  %v5641_v19 = vpop.permute.xlu1 %5640 }
 0x1bc   : > { %v5643_v23 = vunpack.i.h.bf16 %v5641_v19  ;;  %v5642_v24 = vunpack.i.l.bf16 %v5641_v19  ;;  %v5686_v51 = vpop.permute.xlu2 %5685  ;;  %v5627_v50 = vunpack.i.l.bf16 %v6180_v17  ;;  %v849_v19 = vsel %vm827_vm2, %v5677_v44, %v5678_v5 }
 0x1bd   : > { %v5688_v39 = vunpack.i.h.bf16 %v5686_v51  ;;  %v5687_v60 = vunpack.i.l.bf16 %v5686_v51 }
 0x1be   : > { %v6184_v28 = vsel %vm994_vm14, %v5613_v20, %v5642_v24  ;;  %v6187_v29 = vsel %vm994_vm14, %v5642_v24, %v5643_v23  ;;  %v850_v20 = vsel %vm827_vm2, %v5678_v5, %v5627_v50  ;;  %v731_v23 = vperm.slane %v5895_v2, 0 }
 0x1bf   : > { %1240 = vmatpush.msra.mxu0 %v6184_v28  ;;  %1260 = vmatpush.msra.mxu1 %v6187_v29  ;;  %v6227_v63 = vsel %vm883_vm1, %v5623_v42, %v5687_v60  ;;  %v6230_v3 = vsel %vm883_vm1, %v5687_v60, %v5688_v39  ;;  %v732_v24 = vperm.slane %v5889_v0, 0  ;;  %v5628_v2 = vunpack.i.h.bf16 %v6180_v17  ;;  %v514_v39 = vld [vmem:[%s8306_s7 + $0x8] sm:$0xff] }
 0x1c0   : > { %v739_v51 = vmul.f32 %v6025_v21, %v731_v23 }
 0x1c1   : > { %v740_v59 = vmul.f32 %v732_v24, %v5995_v1 }
 0x1c3   : > { %v5646_v32 = vpop.permute.xlu0 %5645  ;;  %v5656_v33 = vpop.permute.xlu1 %5655 }
 0x1c4   : > { %v5648_v34 = vunpack.i.h.bf16 %v5646_v32  ;;  %v5647_v9 = vunpack.i.l.bf16 %v5646_v32  ;;  %v5658_v35 = vunpack.i.h.bf16 %v5656_v33  ;;  %v5657_v62 = vunpack.i.l.bf16 %v5656_v33 }
 0x1c6   : > { %v6199_v18 = vsel %vm1050_vm13, %v5647_v9, %v5648_v34  ;;  %v6202_v10 = vsel %vm1050_vm13, %v5648_v34, %v5607_v31  ;;  %v6205_v22 = vsel %vm938_vm15, %v5618_v30, %v5657_v62  ;;  %v6208_v40 = vsel %vm938_vm15, %v5657_v62, %v5658_v35 }
 0x1c7   : > { %1282 = vmatpush.msra.mxu2 %v6199_v18  ;;  %1302 = vmatpush.msra.mxu3 %v6202_v10 }
 0x1c8   : > { %1241 = vmatpush.msra.mxu0 %v6205_v22  ;;  %1261 = vmatpush.msra.mxu1 %v6208_v40 }
 0x1c9   : > { %1283 = vmatpush.msra.mxu2 %v6219_v54  ;;  %1303 = vmatpush.msra.mxu3 %v6222_v61 }
 0x1ca   : > { %1242 = vmatpush.msra.mxu0 %v6227_v63  ;;  %1262 = vmatpush.msra.mxu1 %v6230_v3 }
 0x1cb   : > { %v5651_v12 = vpop.permute.xlu0 %5650  ;;  %1284 = vmatpush.msra.mxu2 %v6233_v4  ;;  %1304 = vmatpush.msra.mxu3 %v961_v53  ;;  %v5696_v48 = vpop.permute.xlu1 %5695 }
 0x1cc   : > { %v5652_v8 = vunpack.i.l.bf16 %v5651_v12  ;;  %v5653_v0 = vunpack.i.h.bf16 %v5651_v12  ;;  %v5698_v31 = vunpack.i.h.bf16 %v5696_v48  ;;  %v5697_v32 = vunpack.i.l.bf16 %v5696_v48 }
 0x1cd   : > { %1285 = vmatpush.msra.mxu2 %v905_v13  ;;  %1305 = vmatpush.msra.mxu3 %v906_v49 }
 0x1ce   : > { %v794_v16 = vsel %vm771_vm3, %v5683_v14, %v5652_v8 }
 0x1cf   : > { %1286 = vmatpush.msra.mxu2 %v849_v19  ;;  %1306 = vmatpush.msra.mxu3 %v850_v20 }
 0x1d1   : > { %1287 = vmatpush.msra.mxu2 %v793_v46  ;;  %1307 = vmatpush.msra.mxu3 %v794_v16 }
 0x1d3   : > { %v5691_v30 = vpop.permute.xlu0 %5690  ;;  %1288 = vmatpush.msra.mxu2 %v739_v51  ;;  %1308 = vmatpush.msra.mxu3 %v740_v59 }
 0x1d4   : > { %v5693_v33 = vunpack.i.h.bf16 %v5691_v30  ;;  %v5692_v34 = vunpack.i.l.bf16 %v5691_v30  ;;  %5434 = vmatmul.msk.f32.vlgmr.msra.gmra.mxu2 %vm1226_vm4, %v6257_v27  ;;  %5435 = vmatmul.msk.f32.vlgmr.msra.gmra.mxu3 %vm1226_vm4, %v6257_v27 }
 0x1d5   : > { %1362 = vmatpush.msrb.mxu2 %v6125_v37  ;;  %1382 = vmatpush.msrb.mxu3 %v6140_v47  ;;  %v772_v37 = vsel %vm771_vm3, %v5653_v0, %v5697_v32  ;;  %v773_v47 = vsel %vm771_vm3, %v5697_v32, %v5698_v31 }
 0x1d6   : > { %v828_v1 = vsel %vm827_vm2, %v5628_v2, %v5692_v34  ;;  %v829_v21 = vsel %vm827_vm2, %v5692_v34, %v5693_v33 }
 0x1d7   : > { %1363 = vmatpush.msrb.mxu2 %v6171_v52  ;;  %1383 = vmatpush.msrb.mxu3 %v6174_v55  ;;  %v733_v52 = vmul.f32 %v6001_v6, %v731_v23  ;;  %v734_v55 = vmul.f32 %v732_v24, %v5980_v58  ;;  %v511_v58 = vld [vmem:[%s8304_s5] sm:$0xff] }
 0x1d8   : > { %1243 = vmatpush.msra.mxu0 %v828_v1  ;;  %1263 = vmatpush.msra.mxu1 %v829_v21 }
 0x1d9   : > { %1364 = vmatpush.msrb.mxu2 %v6199_v18  ;;  %1384 = vmatpush.msrb.mxu3 %v6202_v10  ;;  %v515_v10 = vld [vmem:[%s8307_s8] sm:$0xff] }
 0x1da   : > { %1244 = vmatpush.msra.mxu0 %v772_v37  ;;  %1264 = vmatpush.msra.mxu1 %v773_v47 }
 0x1db   : > { %1365 = vmatpush.msrb.mxu2 %v6219_v54  ;;  %1385 = vmatpush.msrb.mxu3 %v6222_v61 }
 0x1dc   : > { %1245 = vmatpush.msra.mxu0 %v733_v52  ;;  %1265 = vmatpush.msra.mxu1 %v734_v55 }
 0x1dd   : > { %1366 = vmatpush.msrb.mxu2 %v6233_v4  ;;  %1386 = vmatpush.msrb.mxu3 %v961_v53 }
 0x1de   : > { %1320 = vmatpush.msrb.mxu0 %v6137_v45  ;;  %1340 = vmatpush.msrb.mxu1 %v6131_v25 }
 0x1df   : > { %1367 = vmatpush.msrb.mxu2 %v905_v13  ;;  %1387 = vmatpush.msrb.mxu3 %v906_v49 }
 0x1e0   : > { %1321 = vmatpush.msrb.mxu0 %v6149_v57  ;;  %1341 = vmatpush.msrb.mxu1 %v6143_v56 }
 0x1e1   : > { %1368 = vmatpush.msrb.mxu2 %v849_v19  ;;  %1388 = vmatpush.msrb.mxu3 %v850_v20 }
 0x1e2   : > { %1322 = vmatpush.msrb.mxu0 %v6165_v11  ;;  %1342 = vmatpush.msrb.mxu1 %v6157_v7 }
 0x1e3   : > { %1369 = vmatpush.msrb.mxu2 %v793_v46  ;;  %1389 = vmatpush.msrb.mxu3 %v794_v16 }
 0x1e4   : > { %1323 = vmatpush.msrb.mxu0 %v6184_v28  ;;  %1343 = vmatpush.msrb.mxu1 %v6187_v29  ;;  %v513_v28 = vld [vmem:[%s8306_s7] sm:$0xff] }
 0x1e5   : > { %5432 = vmatmul.msk.f32.vlgmr.msra.gmra.mxu0 %vm1226_vm4, %v511_v58  ;;  %5433 = vmatmul.msk.f32.vlgmr.msra.gmra.mxu1 %vm1226_vm4, %v511_v58 }
 0x1e6   : > { %1324 = vmatpush.msrb.mxu0 %v6205_v22  ;;  %1344 = vmatpush.msrb.mxu1 %v6208_v40  ;;  %v516_v22 = vld [vmem:[%s8307_s8 + $0x8] sm:$0xff] }
 0x1e7   : > { %1370 = vmatpush.msrb.mxu2 %v739_v51  ;;  %1390 = vmatpush.msrb.mxu3 %v740_v59  ;;  %v5795_v59 = vmov 256.0  }
 0x1e8   : > { %1325 = vmatpush.msrb.mxu0 %v6227_v63  ;;  %1345 = vmatpush.msrb.mxu1 %v6230_v3  ;;  %5704 = vrcp.f32 %v5795_v59 }
 0x1e9   : > { %5438 = vmatmul.msk.f32.vlgmr.msrb.gmra.mxu2 %vm1226_vm4, %v511_v58  ;;  %5439 = vmatmul.msk.f32.vlgmr.msrb.gmra.mxu3 %vm1226_vm4, %v511_v58 }
 0x1ea   : > { %1326 = vmatpush.msrb.mxu0 %v828_v1  ;;  %1346 = vmatpush.msrb.mxu1 %v829_v21 }
 0x1ec   : > { %1327 = vmatpush.msrb.mxu0 %v772_v37  ;;  %1347 = vmatpush.msrb.mxu1 %v773_v47  ;;  %v518_v37 = vld [vmem:[%s8309_s10] sm:$0xff] }
 0x1ed   : > { %v517_v47 = vld [vmem:[%s8308_s9] sm:$0xff] }
 0x1ee   : > { %1328 = vmatpush.msrb.mxu0 %v733_v52  ;;  %1348 = vmatpush.msrb.mxu1 %v734_v55 }
 0x1ef   : > { %5436 = vmatmul.msk.f32.vlgmr.msrb.gmra.mxu0 %vm1226_vm4, %v6257_v27  ;;  %5437 = vmatmul.msk.f32.vlgmr.msrb.gmra.mxu1 %vm1226_vm4, %v6257_v27  ;;  %v5705_v27 = vpop.eup %5704 }
 0x1f0   : > { %v1606_v2 = vmul.f32 256.0, %v5705_v27  ;;  %vm1610_vm5 = vweird.f32 %v5705_v27 }
 0x1f2   : > { %v1607_v0 = vsub.f32 1.0, %v1606_v2 }
 0x1f4   : > { %v1608_v30 = vmul.f32 %v5705_v27, %v1607_v0 }
 0x1f6   : > { %v1609_v31 = vadd.f32 %v5705_v27, %v1608_v30 }
 0x1f8   : > { %v1611_v32 = vsel %vm1610_vm5, %v5705_v27, %v1609_v31 }
 0x257   : > { %v1290_v6 = vpop.f32.mrf.mxu2  ;;  %v1310_v25 = vpop.f32.mrf.mxu3 }
 0x262   : > { %v1247_v45 = vpop.f32.mrf.mxu0  ;;  %v1267_v56 = vpop.f32.mrf.mxu1 }
 0x263   : > { %v1353_v57 = vsub.f32 %v1247_v45, %v1290_v6  ;;  %v1354_v7 = vsub.f32 %v1267_v56, %v1310_v25 }
 0x265   : > { %v1395_v11 = vmax.f32 %v1353_v57, 0.0  ;;  %v1396_v17 = vmax.f32 %v1354_v7, 0.0  ;;  %v519_v7 = vld [vmem:[%s8310_s11] sm:$0xff] }
 0x267   : > { %1420 = vmatpush.msra.mxu0 %v1395_v11  ;;  %1443 = vmatpush.msra.mxu1 %v1396_v17 }
 0x268   : > { %5440 = vmatmul.msk.f32.vlgmr.msra.gmra.mxu0 %vm523_vm0, %v513_v28  ;;  %5442 = vmatmul.msk.f32.vlgmr.msra.gmra.mxu1 %vm523_vm0, %v513_v28 }
 0x269   : > { %1518 = vmatpush.msrb.mxu0 %v1395_v11  ;;  %1541 = vmatpush.msrb.mxu1 %v1396_v17  ;;  %v521_v11 = vld [vmem:[%s8311_s12] sm:$0xff] }
 0x26c   : > { %v1330_v29 = vpop.f32.mrf.mxu0  ;;  %v1350_v9 = vpop.f32.mrf.mxu1 }
 0x26d   : > { %v1372_v35 = vpop.f32.mrf.mxu2  ;;  %v1392_v62 = vpop.f32.mrf.mxu3 }
 0x26e   : > { %v1373_v36 = vadd.f32 %v1372_v35, %v1330_v29  ;;  %v1393_v38 = vadd.f32 %v1392_v62, %v1350_v9  ;;  %v520_v35 = vld [vmem:[%s8310_s11 + $0x8] sm:$0xff] }
 0x26f   : > { %v522_v62 = vld [vmem:[%s8311_s12 + $0x8] sm:$0xff] }
 0x270   : > { %v1397_v60 = vmax.f32 %v1373_v36, 0.0  ;;  %v1398_v18 = vmax.f32 %v1393_v38, 0.0  ;;  %5441 = vmatmul.msk.f32.gmra.mxu0 %vm523_vm0, %v514_v39  ;;  %5443 = vmatmul.msk.f32.gmra.mxu1 %vm523_vm0, %v514_v39  ;;  %v8314_v38 = vmov 0  }
 0x271   : > { %5701 = vset.pattern.permute.xlu1 %v8314_v38  ;;  %5699 = vset.pattern.permute.xlu2 %v8314_v38 }
 0x272   : > { %1472 = vmatpush.msra.mxu2 %v1397_v60  ;;  %1495 = vmatpush.msra.mxu3 %v1398_v18 }
 0x273   : > { %5444 = vmatmul.msk.f32.vlgmr.msra.gmra.mxu2 %vm523_vm0, %v515_v10  ;;  %5446 = vmatmul.msk.f32.vlgmr.msra.gmra.mxu3 %vm523_vm0, %v515_v10 }
 0x274   : > { %1568 = vmatpush.msrb.mxu2 %v1397_v60  ;;  %1591 = vmatpush.msrb.mxu3 %v1398_v18 }
 0x275   : > { %5700 = vset.pattern.permute.xlu0 %v8314_v38 }
 0x278   : > { %5448 = vmatmul.msk.f32.vlgmr.msrb.gmra.mxu0 %vm523_vm0, %v515_v10  ;;  %5450 = vmatmul.msk.f32.vlgmr.msrb.gmra.mxu1 %vm523_vm0, %v515_v10 }
 0x27b   : > { %5445 = vmatmul.msk.f32.gmra.mxu2 %vm523_vm0, %v516_v22  ;;  %5447 = vmatmul.msk.f32.gmra.mxu3 %vm523_vm0, %v516_v22 }
 0x280   : > { %5449 = vmatmul.msk.f32.gmra.mxu0 %vm523_vm0, %v516_v22  ;;  %5451 = vmatmul.msk.f32.gmra.mxu1 %vm523_vm0, %v516_v22 }
 0x283   : > { %5452 = vmatmul.msk.f32.vlgmr.msrb.gmra.mxu2 %vm523_vm0, %v513_v28  ;;  %5454 = vmatmul.msk.f32.vlgmr.msrb.gmra.mxu3 %vm523_vm0, %v513_v28 }
 0x28b   : > { %5453 = vmatmul.msk.f32.gmra.mxu2 %vm523_vm0, %v514_v39  ;;  %5455 = vmatmul.msk.f32.gmra.mxu3 %vm523_vm0, %v514_v39 }
 0x2e5   : > { %v1422_v40 = vpop.f32.mrf.mxu0  ;;  %v1445_v41 = vpop.f32.mrf.mxu1 }
 0x2ed   : > { %v1425_v61 = vpop.f32.mrf.mxu0  ;;  %v1448_v63 = vpop.f32.mrf.mxu1 }
 0x2f5   : > { %v1520_v12 = vpop.f32.mrf.mxu0  ;;  %v1543_v13 = vpop.f32.mrf.mxu1 }
 0x2f6   : > { %v1474_v26 = vpop.f32.mrf.mxu2  ;;  %v1497_v42 = vpop.f32.mrf.mxu3 }
 0x2f7   : > { %v6330_v43 = vsub.f32 %v1422_v40, %v1474_v26  ;;  %v6332_v54 = vsub.f32 %v1445_v41, %v1497_v42 }
 0x2f9   : > { %v1599_v3 = vadd.f32 %v6332_v54, %v6330_v43 }
 0x2fb   : > { %1600 = vadd.xlane.f32.xlu1 %v1599_v3 }
 0x2fd   : > { %v1523_v20 = vpop.f32.mrf.mxu0  ;;  %v1546_v23 = vpop.f32.mrf.mxu1 }
 0x2fe   : > { %v1477_v4 = vpop.f32.mrf.mxu2  ;;  %v1500_v5 = vpop.f32.mrf.mxu3 }
 0x2ff   : > { %v6336_v44 = vsub.f32 %v1425_v61, %v1477_v4  ;;  %v6338_v50 = vsub.f32 %v1448_v63, %v1500_v5 }
 0x301   : > { %v1602_v53 = vadd.f32 %v6338_v50, %v6336_v44 }
 0x303   : > { %1603 = vadd.xlane.f32.xlu2 %v1602_v53 }
 0x306   : > { %v1570_v14 = vpop.f32.mrf.mxu2  ;;  %v1593_v15 = vpop.f32.mrf.mxu3 }
 0x307   : > { %v6342_v8 = vadd.f32 %v1570_v14, %v1520_v12  ;;  %v6344_v49 = vadd.f32 %v1593_v15, %v1543_v13 }
 0x309   : > { %v1614_v19 = vadd.f32 %v6344_v49, %v6342_v8 }
 0x30b   : > { %1615 = vadd.xlane.f32.xlu2 %v1614_v19 }
 0x30e   : > { %v1573_v24 = vpop.f32.mrf.mxu2  ;;  %v1596_v46 = vpop.f32.mrf.mxu3 }
 0x30f   : > { %v6348_v16 = vadd.f32 %v1573_v24, %v1523_v20  ;;  %v6350_v48 = vadd.f32 %v1596_v46, %v1546_v23 }
 0x311   : > { %v1617_v51 = vadd.f32 %v6350_v48, %v6348_v16 }
 0x313   : > { %1618 = vadd.xlane.f32.xlu0 %v1617_v51 }
 0x36e   : > { %v1601_v33 = vpop.xlane.xlu1 %1600 }
 0x36f   : > { %v1612_v21 = vmul.f32 %v1611_v32, %v1601_v33 }
 0x376   : > { %v1604_v34 = vpop.xlane.xlu2 %1603 }
 0x377   : > { %v1613_v1 = vmul.f32 %v1611_v32, %v1604_v34 }
 0x379   : > { %1639 = vmatpush.msra.mxu0 %v1613_v1  ;;  %1682 = vmatpush.msra.mxu2 %v1613_v1 }
 0x37b   : > { %1640 = vmatpush.msra.mxu0 %v1612_v21  ;;  %1683 = vmatpush.msra.mxu2 %v1612_v21 }
 0x37c   : > { %5458 = vmatmul.msk.f32.vlgmr.msra.gmra.mxu2 %vm866_vm7, %v518_v37  ;;  %5456 = vmatmul.msk.f32.vlgmr.msra.gmra.mxu0 %vm866_vm7, %v517_v47 }
 0x37e   : > { %v1616_v52 = vpop.xlane.xlu2 %1615 }
 0x37f   : > { %v1620_v6 = vmul.f32 %v1616_v52, %v1611_v32 }
 0x386   : > { %v1619_v55 = vpop.xlane.xlu0 %1618 }
 0x387   : > { %v1621_v58 = vmul.f32 %v1619_v55, %v1611_v32 }
 0x389   : > { %1662 = vmatpush.msra.mxu1 %v1621_v58  ;;  %1703 = vmatpush.msra.mxu3 %v1621_v58 }
 0x38b   : > { %1663 = vmatpush.msra.mxu1 %v1620_v6  ;;  %1704 = vmatpush.msra.mxu3 %v1620_v6 }
 0x38c   : > { %5459 = vmatmul.msk.f32.vlgmr.msra.gmra.mxu3 %vm866_vm7, %v517_v47  ;;  %5457 = vmatmul.msk.f32.vlgmr.msra.gmra.mxu1 %vm866_vm7, %v518_v37 }
 0x3f9   : > { %v1642_v25 = vpop.f32.mrf.mxu0 }
 0x3ff   : > { %v1685_v17 = vpop.f32.mrf.mxu2 }
 0x409   : > { %v1665_v45 = vpop.f32.mrf.mxu1 }
 0x40a   : > { %v1688_v56 = vsub.f32 %v1642_v25, %v1665_v45 }
 0x40c   : > { %v1709_v57 = vmax.f32 %v1688_v56, 0.0 }
 0x40e   : > { %1732 = vmatpush.msrb.mxu0 %v1709_v57  ;;  %1784 = vmatpush.msrb.mxu2 %v1709_v57 }
 0x40f   : > { %v1706_v28 = vpop.f32.mrf.mxu3  ;;  %5460 = vmatmul.msk.f32.vlgmr.msrb.gmra.mxu0 %vm523_vm0, %v519_v7  ;;  %5464 = vmatmul.msk.f32.vlgmr.msrb.gmra.mxu2 %vm523_vm0, %v521_v11 }
 0x410   : > { %v1707_v29 = vadd.f32 %v1706_v28, %v1685_v17 }
 0x412   : > { %v1710_v9 = vmax.f32 %v1707_v29, 0.0 }
 0x414   : > { %1761 = vmatpush.msrb.mxu1 %v1710_v9  ;;  %1809 = vmatpush.msrb.mxu3 %v1710_v9 }
 0x415   : > { %5462 = vmatmul.msk.f32.vlgmr.msrb.gmra.mxu1 %vm523_vm0, %v521_v11  ;;  %5466 = vmatmul.msk.f32.vlgmr.msrb.gmra.mxu3 %vm523_vm0, %v519_v7 }
 0x417   : > { %5461 = vmatmul.msk.f32.gmra.mxu0 %vm523_vm0, %v520_v35  ;;  %5465 = vmatmul.msk.f32.gmra.mxu2 %vm523_vm0, %v522_v62 }
 0x41d   : > { %5463 = vmatmul.msk.f32.gmra.mxu1 %vm523_vm0, %v522_v62  ;;  %5467 = vmatmul.msk.f32.gmra.mxu3 %vm523_vm0, %v520_v35 }
 0x48c   : > { %v1734_v36 = vpop.f32.mrf.mxu0 }
 0x492   : > { %v1763_v39 = vpop.f32.mrf.mxu1  ;;  %v1786_v18 = vpop.f32.mrf.mxu2 }
 0x493   : > { %v1792_v60 = vsub.f32 %v1734_v36, %v1763_v39 }
 0x494   : > { %v1737_v40 = vpop.f32.mrf.mxu0 }
 0x495   : > { %v5468_v10 = vmul.f32 -1.442695, %v1792_v60 }
 0x497   : > { %5706 = vpow2.f32 %v5468_v10 }
 0x498   : > { %v1811_v22 = vpop.f32.mrf.mxu3 }
 0x499   : > { %v1812_v41 = vadd.f32 %v1811_v22, %v1786_v18 }
 0x49a   : > { %v1766_v26 = vpop.f32.mrf.mxu1  ;;  %v1789_v5 = vpop.f32.mrf.mxu2 }
 0x49b   : > { %v5470_v42 = vmul.f32 -1.442695, %v1812_v41  ;;  %v1793_v61 = vsub.f32 %v1737_v40, %v1766_v26 }
 0x49d   : > { %v5707_v63 = vpop.eup %5706  ;;  %5708 = vpow2.f32 %v5470_v42  ;;  %v5469_v3 = vmul.f32 -1.442695, %v1793_v61 }
 0x49e   : > { %v1823_v4 = vadd.f32 1.0, %v5707_v63 }
 0x49f   : > { %5710 = vpow2.f32 %v5469_v3 }
 0x4a0   : > { %5712 = vrcp.f32 %v1823_v4  ;;  %v1814_v53 = vpop.f32.mrf.mxu3  ;;  %v1836_v46 = vand.u32 2147483648, %v1823_v4  ;;  %vm1830_vm0 = vweird.f32 %v1823_v4  ;;  %v1834_v59 = vand.u32 2147483647, %v1823_v4 }
 0x4a1   : > { %v1815_v12 = vadd.f32 %v1814_v53, %v1789_v5 }
 0x4a2   : > { %v1837_v31 = vor.u32 1.1754944e-38, %v1836_v46  ;;  %vm1835_vm8 = vcmp.eq.f32.partialorder %v1834_v59, 8.507059e+37 }
 0x4a3   : > { %v5709_v13 = vpop.eup %5708  ;;  %v5471_v14 = vmul.f32 -1.442695, %v1815_v12 }
 0x4a4   : > { %v6387_v15 = vadd.f32 1.0, %v5709_v13 }
 0x4a5   : > { %v5711_v19 = vpop.eup %5710  ;;  %5714 = vpow2.f32 %v5471_v14 }
 0x4a6   : > { %v5713_v20 = vpop.eup %5712  ;;  %5716 = vrcp.f32 %v6387_v15  ;;  %v1824_v23 = vadd.f32 1.0, %v5711_v19  ;;  %vm1868_vm15 = vweird.f32 %v6387_v15  ;;  %v1874_v36 = vand.u32 2147483648, %v6387_v15 }
 0x4a7   : > { %v1826_v24 = vmul.f32 %v5713_v20, %v1823_v4  ;;  %vm1831_vm6 = vweird.f32 %v5713_v20  ;;  %v1872_v60 = vand.u32 2147483647, %v6387_v15 }
 0x4a8   : > { %5718 = vrcp.f32 %v1824_v23  ;;  %vm1832_vm7 = vmor %vm1830_vm0, %vm1831_vm6  ;;  %vm1845_vm9 = vweird.f32 %v1824_v23  ;;  %v1851_v47 = vand.u32 2147483648, %v1824_v23  ;;  %v1849_v55 = vand.u32 2147483647, %v1824_v23 }
 0x4a9   : > { %v1827_v51 = vsub.f32 1.0, %v1826_v24  ;;  %v1875_v41 = vor.u32 1.1754944e-38, %v1874_v36  ;;  %vm1873_vm5 = vcmp.eq.f32.partialorder %v1872_v60, 8.507059e+37 }
 0x4aa   : > { %v1852_v45 = vor.u32 1.1754944e-38, %v1851_v47  ;;  %vm1850_vm12 = vcmp.eq.f32.partialorder %v1849_v55, 8.507059e+37 }
 0x4ab   : > { %v5715_v27 = vpop.eup %5714  ;;  %v1828_v2 = vmul.f32 %v5713_v20, %v1827_v51 }
 0x4ac   : > { %v5717_v0 = vpop.eup %5716  ;;  %v1862_v30 = vadd.f32 1.0, %v5715_v27 }
 0x4ad   : > { %v1829_v32 = vadd.f32 %v5713_v20, %v1828_v2  ;;  %v1864_v33 = vmul.f32 %v5717_v0, %v6387_v15  ;;  %vm1869_vm13 = vweird.f32 %v5717_v0 }
 0x4ae   : > { %v5719_v34 = vpop.eup %5718  ;;  %5720 = vrcp.f32 %v1862_v30  ;;  %v1889_v29 = vand.u32 2147483648, %v1862_v30  ;;  %v1887_v35 = vand.u32 2147483647, %v1862_v30  ;;  %vm1883_vm1 = vweird.f32 %v1862_v30  ;;  %vm1870_vm2 = vmor %vm1868_vm15, %vm1869_vm13 }
 0x4af   : > { %v1833_v1 = vsel %vm1832_vm7, %v5713_v20, %v1829_v32  ;;  %v1841_v21 = vmul.f32 %v5719_v34, %v1824_v23  ;;  %vm1846_vm10 = vweird.f32 %v5719_v34  ;;  %v1865_v58 = vsub.f32 1.0, %v1864_v33 }
 0x4b0   : > { %v1838_v37 = vsel %vm1835_vm8, %v1837_v31, %v1833_v1  ;;  %vm1847_vm11 = vmor %vm1845_vm9, %vm1846_vm10  ;;  %v1890_v18 = vor.u32 1.1754944e-38, %v1889_v29  ;;  %vm1888_vm4 = vcmp.eq.f32.partialorder %v1887_v35, 8.507059e+37  ;;  %v8321_v35 = vmov 2102212464  }
 0x4b1   : > { %1895 = vperm.xlu1 %5701, %v1838_v37   ;;  %v1842_v52 = vsub.f32 1.0, %v1841_v21  ;;  %v1866_v7 = vmul.f32 %v5717_v0, %v1865_v58 }
 0x4b3   : > { %v1843_v6 = vmul.f32 %v5719_v34, %v1842_v52  ;;  %v1867_v62 = vadd.f32 %v5717_v0, %v1866_v7 }
 0x4b4   : > { %v5721_v25 = vpop.eup %5720 }
 0x4b5   : > { %v1844_v56 = vadd.f32 %v5719_v34, %v1843_v6  ;;  %v1879_v57 = vmul.f32 %v5721_v25, %v1862_v30  ;;  %vm1884_vm14 = vweird.f32 %v5721_v25  ;;  %v1871_v22 = vsel %vm1870_vm2, %v5717_v0, %v1867_v62 }
 0x4b6   : > { %vm1885_vm3 = vmor %vm1883_vm1, %vm1884_vm14  ;;  %v1876_v26 = vsel %vm1873_vm5, %v1875_v41, %v1871_v22 }
 0x4b7   : > { %v1848_v11 = vsel %vm1847_vm11, %v5719_v34, %v1844_v56  ;;  %v1880_v17 = vsub.f32 1.0, %v1879_v57  ;;  %v8319_v57 = vmov 2475754826  }
 0x4b8   : > { %v1853_v28 = vsel %vm1850_vm12, %v1852_v45, %v1848_v11  ;;  %v8327_v45 = vmov 683565275  }
 0x4b9   : > { %1900 = vperm.xlu2 %5699, %v1853_v28   ;;  %v1881_v9 = vmul.f32 %v5721_v25, %v1880_v17  ;;  %v8317_v28 = vmov 2131351028  }
 0x4bb   : > { %v1882_v39 = vadd.f32 %v5721_v25, %v1881_v9 }
 0x4bd   : > { %v1886_v10 = vsel %vm1885_vm3, %v5721_v25, %v1882_v39  ;;  %v8325_v39 = vmov 920167782  }
 0x4be   : > { %v1891_v40 = vsel %vm1888_vm4, %v1890_v18, %v1886_v10  ;;  %v8323_v10 = vmov 1326507024  }
 0x4bf   : > { %1914 = vperm.xlu0 %5700, %v1891_v40  }
 0x4c1   : > { %1909 = vperm.xlu2 %5699, %v1876_v26  }
 0x513   : > { %v6394_v42 = vpop.permute.xlu2 %1900 }
 0x514   : > { %v1905_v61 = vmul.f32 %v6394_v42, %v6336_v44  ;;  %v1906_v3 = vmul.f32 %v6394_v42, %v6338_v50  ;;  %v1931_v12 = vmul.f32 %v6394_v42, %v6348_v16 }
 0x531   : > { %v6398_v63 = vpop.permute.xlu0 %1914 }
 0x532   : > { %v1919_v4 = vmul.f32 %v6398_v63, %v6348_v16  ;;  %v1920_v5 = vmul.f32 %v6398_v63, %v6350_v48  ;;  %v1927_v53 = vmul.f32 %v6398_v63, %v6336_v44 }
 0x534   : > { %v6410_v13 = vsub.f32 %v1905_v61, %v1919_v4  ;;  %v6412_v14 = vsub.f32 %v1906_v3, %v1920_v5  ;;  %v6414_v15 = vadd.f32 %v1931_v12, %v1927_v53 }
 0x536   : > { %v1941_v19 = vand.u32 2147483647, %v6410_v13  ;;  %v1944_v20 = vand.u32 2139095040, %v6410_v13  ;;  %v2096_v23 = vand.u32 2147483647, %v6412_v14  ;;  %v2099_v24 = vand.u32 2139095040, %v6412_v14 }
 0x537   : > { %v2562_v2 = vand.u32 2139095040, %v6414_v15 }
 0x538   : > { %v1945_v46 = vshrl.u32 %v1944_v20, 23  ;;  %v1948_v44 = vand.u32 8388607, %v1941_v19  ;;  %v2100_v51 = vshrl.u32 %v2099_v24, 23  ;;  %v2103_v16 = vand.u32 8388607, %v2096_v23 }
 0x539   : > { %v2563_v34 = vshrl.u32 %v2562_v2, 23 }
 0x53a   : > { %v5472_v59 = vadd.s32 4294967169, %v1945_v46  ;;  %v1949_v27 = vor.u32 8388608, %v1948_v44  ;;  %v5475_v0 = vadd.s32 4294967169, %v2100_v51  ;;  %v2104_v31 = vor.u32 8388608, %v2103_v16 }
 0x53b   : > { %v6434_v6 = vadd.s32 4294967169, %v2563_v34 }
 0x53c   : > { %v1951_v30 = vadd.s32 1, %v5472_v59  ;;  %v2106_v32 = vadd.s32 1, %v5475_v0  ;;  %v6425_v33 = vshll.u32 %v1949_v27, 8  ;;  %v6427_v47 = vshll.u32 %v2104_v31, 8 }
 0x53e   : > { %vm1952_vm0 = vcmp.gt.s32.totalorder %v1951_v30, 0  ;;  %vm2107_vm6 = vcmp.gt.s32.totalorder %v2106_v32, 0  ;;  %v6430_v55 = vand.u32 65535, %v6425_v33  ;;  %v1991_v11 = vshrl.u32 %v6425_v33, 16 }
 0x53f   : > { %v1953_v1 = vsel %vm1952_vm0, %v1951_v30, 0  ;;  %v2108_v37 = vsel %vm2107_vm6, %v2106_v32, 0 }
 0x540   : > { %v1955_v21 = vand.u32 31, %v1953_v1  ;;  %v6432_v58 = vand.u32 31, %v2108_v37  ;;  %v6436_v25 = vshrl.u32 %v1953_v1, 5 }
 0x542   : > { %v1956_v52 = vsub.s32 32, %v1955_v21  ;;  %v1958_v56 = vshll.u32 %v8327_v45, %v1955_v21  ;;  %v1961_v7 = vshll.u32 %v8319_v57, %v1955_v21  ;;  %v1964_v9 = vshll.u32 %v8317_v28, %v1955_v21 }
 0x543   : > { %v1967_v36 = vshll.u32 %v8321_v35, %v1955_v21  ;;  %v1970_v18 = vshll.u32 %v8325_v39, %v1955_v21  ;;  %v6450_v61 = vsub.s32 32, %v6432_v58  ;;  %vm1973_vm7 = vcmp.lt.s32.totalorder %v6436_v25, 1 }
 0x544   : > { %v1959_v17 = vshrl.u32 %v8319_v57, %v1956_v52  ;;  %v1962_v29 = vshrl.u32 %v8317_v28, %v1956_v52  ;;  %v1965_v62 = vshrl.u32 %v8321_v35, %v1956_v52  ;;  %v1968_v60 = vshrl.u32 %v8325_v39, %v1956_v52 }
 0x545   : > { %v1971_v22 = vshrl.u32 %v8323_v10, %v1956_v52  ;;  %vm1974_vm8 = vcmp.lt.s32.totalorder %v6436_v25, 2  ;;  %v1957_v5 = vshrl.u32 %v8327_v45, %v1956_v52  ;;  %vm1976_vm9 = vcmp.lt.s32.totalorder %v6436_v25, 4 }
 0x546   : > { %v1960_v40 = vor.u32 %v1959_v17, %v1958_v56  ;;  %v1963_v41 = vor.u32 %v1962_v29, %v1961_v7  ;;  %v1966_v26 = vor.u32 %v1965_v62, %v1964_v9  ;;  %v1969_v3 = vor.u32 %v1968_v60, %v1967_v36 }
 0x547   : > { %v1972_v4 = vor.u32 %v1971_v22, %v1970_v18  ;;  %vm1975_vm10 = vcmp.lt.s32.totalorder %v6436_v25, 3  ;;  %v2113_v46 = vshll.u32 %v8327_v45, %v6432_v58  ;;  %v2114_v59 = vshrl.u32 %v8319_v57, %v6450_v61 }
 0x548   : > { %v1981_v53 = vsel %vm1973_vm7, %v1960_v40, %v1963_v41  ;;  %v1985_v12 = vsel %vm1973_vm7, %v1963_v41, %v1966_v26  ;;  %v1982_v20 = vsel %vm1976_vm9, %v1969_v3, 920167782  ;;  %v1978_v44 = vsel %vm1976_vm9, %v1966_v26, 2102212464 }
 0x549   : > { %v1986_v24 = vsel %vm1976_vm9, %v1972_v4, 1326507024  ;;  %v1983_v51 = vsel %vm1975_vm10, %v1966_v26, %v1982_v20  ;;  %v2116_v0 = vshll.u32 %v8319_v57, %v6432_v58  ;;  %v2117_v30 = vshrl.u32 %v8317_v28, %v6450_v61 }
 0x54a   : > { %v1987_v16 = vsel %vm1975_vm10, %v1969_v3, %v1986_v24  ;;  %v1984_v27 = vsel %vm1974_vm8, %v1981_v53, %v1983_v51  ;;  %v1977_v21 = vsel %vm1973_vm7, %v1957_v5, %v1960_v40  ;;  %v1979_v52 = vsel %vm1975_vm10, %v1963_v41, %v1978_v44 }
 0x54b   : > { %v1988_v2 = vsel %vm1974_vm8, %v1985_v12, %v1987_v16  ;;  %v2014_v34 = vand.u32 65535, %v1984_v27  ;;  %v2015_v1 = vshrl.u32 %v1984_v27, 16  ;;  %v6481_v56 = vshrl.u32 %v2108_v37, 5 }
 0x54c   : > { %v1992_v31 = vand.u32 65535, %v1988_v2  ;;  %v1993_v32 = vshrl.u32 %v1988_v2, 16  ;;  %v6483_v7 = vor.u32 %v2114_v59, %v2113_v46  ;;  %v6486_v9 = vor.u32 %v2117_v30, %v2116_v0 }
 0x54d   : > { %v2120_v62 = vshrl.u32 %v8321_v35, %v6450_v61  ;;  %v2017_v60 = vmul.u32 %v2015_v1, %v6430_v55  ;;  %v2018_v18 = vmul.u32 %v2014_v34, %v1991_v11  ;;  %v2119_v22 = vshll.u32 %v8317_v28, %v6432_v58 }
 0x54e   : > { %v1995_v17 = vmul.u32 %v1993_v32, %v6430_v55  ;;  %v1996_v29 = vmul.u32 %v1992_v31, %v1991_v11  ;;  %v1994_v36 = vmul.u32 %v1992_v31, %v6430_v55  ;;  %v1997_v37 = vmul.u32 %v1993_v32, %v1991_v11 }
 0x54f   : > { %v2016_v41 = vmul.u32 %v2014_v34, %v6430_v55  ;;  %v2019_v26 = vmul.u32 %v2015_v1, %v1991_v11  ;;  %v2020_v53 = vshll.u32 %v2017_v60, 16  ;;  %v2022_v20 = vshll.u32 %v2018_v18, 16 }
 0x550   : > { %v1998_v40 = vshll.u32 %v1995_v17, 16  ;;  %v1999_v3 = vshrl.u32 %v1995_v17, 16  ;;  %v2000_v4 = vshll.u32 %v1996_v29, 16  ;;  %v2001_v5 = vshrl.u32 %v1996_v29, 16 }
 0x551   : > { %v6495_v24 = vor.u32 %v2120_v62, %v2119_v22  ;;  %vm2024_vm12 = vc.u32 %v2016_v41, %v2020_v53  ;;  %v2026_v44 = vadd.s32 %v2020_v53, %v2016_v41  ;;  %v2123_v51 = vshrl.u32 %v8325_v39, %v6450_v61 }
 0x552   : > { %vm2002_vm11 = vc.u32 %v1994_v36, %v1998_v40  ;;  %v2004_v12 = vadd.s32 %v1998_v40, %v1994_v36  ;;  %v2025_v55 = vsel %vm2024_vm12, 1, %v8314_v38  ;;  %v2122_v11 = vshll.u32 %v8321_v35, %v6432_v58 }
 0x553   : > { %v2003_v46 = vsel %vm2002_vm11, 1, %v8314_v38  ;;  %v2027_v27 = vadd.s32 %v2025_v55, %v2019_v26  ;;  %vm2028_vm14 = vc.u32 %v2026_v44, %v2022_v20  ;;  %v2125_v2 = vshll.u32 %v8325_v39, %v6432_v58 }
 0x554   : > { %v2005_v16 = vadd.s32 %v2003_v46, %v1997_v37  ;;  %vm2006_vm13 = vc.u32 %v2004_v12, %v2000_v4  ;;  %v2029_v30 = vsel %vm2028_vm14, 1, %v8314_v38  ;;  %v2124_v31 = vor.u32 %v2123_v51, %v2122_v11 }
 0x555   : > { %v2007_v59 = vsel %vm2006_vm13, 1, %v8314_v38  ;;  %v2126_v32 = vshrl.u32 %v8323_v10, %v6450_v61  ;;  %v2021_v34 = vshrl.u32 %v2017_v60, 16  ;;  %v2023_v1 = vshrl.u32 %v2018_v18, 16 }
 0x556   : > { %v2009_v0 = vadd.s32 %v2007_v59, %v2005_v16  ;;  %v6509_v17 = vadd.s32 %v2026_v44, %v2022_v20  ;;  %v2031_v29 = vadd.s32 %v2029_v30, %v2027_v27  ;;  %vm2128_vm15 = vcmp.lt.s32.totalorder %v6481_v56, 1 }
 0x557   : > { %v2127_v36 = vor.u32 %v2126_v32, %v2125_v2  ;;  %vm2131_vm1 = vcmp.lt.s32.totalorder %v6481_v56, 4  ;;  %vm2130_vm2 = vcmp.lt.s32.totalorder %v6481_v56, 3  ;;  %v2136_v58 = vsel %vm2128_vm15, %v6483_v7, %v6486_v9 }
 0x558   : > { %v2010_v62 = vadd.s32 %v2009_v0, %v1999_v3  ;;  %v2032_v22 = vadd.s32 %v2031_v29, %v2021_v34  ;;  %v2137_v60 = vsel %vm2131_vm1, %v2124_v31, 920167782  ;;  %vm2129_vm3 = vcmp.lt.s32.totalorder %v6481_v56, 2 }
 0x559   : > { %v2138_v37 = vsel %vm2130_vm2, %v6495_v24, %v2137_v60  ;;  %v2140_v40 = vsel %vm2128_vm15, %v6486_v9, %v6495_v24  ;;  %v1980_v41 = vsel %vm1974_vm8, %v1977_v21, %v1979_v52  ;;  %v2141_v4 = vsel %vm2131_vm1, %v2127_v36, 1326507024 }
 0x55a   : > { %v6520_v18 = vadd.s32 %v2010_v62, %v2001_v5  ;;  %v2033_v26 = vadd.s32 %v2032_v22, %v2023_v1  ;;  %v2139_v3 = vsel %vm2129_vm3, %v2136_v58, %v2138_v37  ;;  %v2142_v5 = vsel %vm2130_vm2, %v2124_v31, %v2141_v4 }
 0x55b   : > { %v2145_v53 = vand.u32 65535, %v6427_v47  ;;  %v2169_v12 = vand.u32 65535, %v2139_v3  ;;  %v2143_v25 = vsel %vm2129_vm3, %v2140_v40, %v2142_v5  ;;  %v2146_v21 = vshrl.u32 %v6427_v47, 16 }
 0x55c   : > { %vm2036_vm4 = vc.u32 %v6520_v18, %v6509_v17  ;;  %v2037_v20 = vadd.s32 1, %v2033_v26  ;;  %v2170_v52 = vshrl.u32 %v2139_v3, 16  ;;  %v2034_v46 = vmul.u32 %v6425_v33, %v1980_v41 }
 0x55d   : > { %v2147_v44 = vand.u32 65535, %v2143_v25  ;;  %v2148_v51 = vshrl.u32 %v2143_v25, 16  ;;  %v2173_v11 = vmul.u32 %v2169_v12, %v2146_v21  ;;  %v2559_v0 = vand.u32 2147483647, %v6414_v15 }
 0x55e   : > { %v2038_v16 = vsel %vm2036_vm4, %v2037_v20, %v2033_v26  ;;  %v2172_v55 = vmul.u32 %v2170_v52, %v2145_v53  ;;  %v2171_v30 = vmul.u32 %v2169_v12, %v2145_v53  ;;  %v2174_v31 = vmul.u32 %v2170_v52, %v2146_v21 }
 0x55f   : > { %v2039_v59 = vadd.s32 %v2038_v16, %v2034_v46  ;;  %v2150_v27 = vmul.u32 %v2148_v51, %v2145_v53  ;;  %v2151_v2 = vmul.u32 %v2147_v44, %v2146_v21  ;;  %v2569_v34 = vadd.s32 1, %v6434_v6 }
 0x560   : > { %v2175_v32 = vshll.u32 %v2172_v55, 16  ;;  %v2149_v29 = vmul.u32 %v2147_v44, %v2145_v53  ;;  %v2152_v62 = vmul.u32 %v2148_v51, %v2146_v21  ;;  %v2177_v22 = vshll.u32 %v2173_v11, 16 }
 0x561   : > { %v2040_v1 = vadd.s32 536870912, %v2039_v59  ;;  %v2153_v36 = vshll.u32 %v2150_v27, 16  ;;  %v2155_v33 = vshll.u32 %v2151_v2, 16  ;;  %vm2570_vm7 = vcmp.gt.s32.totalorder %v2569_v34, 0 }
 0x562   : > { %vm2179_vm5 = vc.u32 %v2171_v30, %v2175_v32  ;;  %v2181_v58 = vadd.s32 %v2175_v32, %v2171_v30  ;;  %v2133_v3 = vsel %vm2131_vm1, %v6495_v24, 2102212464  ;;  %v2112_v5 = vshrl.u32 %v8327_v45, %v6450_v61 }
 0x563   : > { %v6547_v60 = vshrl.u32 %v2040_v1, 30  ;;  %vm2157_vm0 = vc.u32 %v2149_v29, %v2153_v36  ;;  %v2159_v37 = vadd.s32 %v2153_v36, %v2149_v29  ;;  %v2180_v40 = vsel %vm2179_vm5, 1, %v8314_v38 }
 0x564   : > { %v2158_v41 = vsel %vm2157_vm0, 1, %v8314_v38  ;;  %v2182_v26 = vadd.s32 %v2180_v40, %v2174_v31  ;;  %vm2183_vm6 = vc.u32 %v2181_v58, %v2177_v22  ;;  %v2154_v53 = vshrl.u32 %v2150_v27, 16 }
 0x565   : > { %v2042_v6 = vshll.u32 %v6547_v60, 30  ;;  %v2160_v4 = vadd.s32 %v2158_v41, %v2152_v62  ;;  %vm2161_vm8 = vc.u32 %v2159_v37, %v2155_v33  ;;  %v2184_v20 = vsel %vm2183_vm6, 1, %v8314_v38 }
 0x566   : > { %v2162_v12 = vsel %vm2161_vm8, 1, %v8314_v38  ;;  %v2186_v52 = vadd.s32 %v2184_v20, %v2182_v26  ;;  %v2571_v46 = vsel %vm2570_vm7, %v2569_v34, 0  ;;  %v2132_v44 = vsel %vm2128_vm15, %v2112_v5, %v6483_v7 }
 0x567   : > { %v2043_v25 = vsub.s32 %v2039_v59, %v2042_v6  ;;  %v2164_v21 = vadd.s32 %v2162_v12, %v2160_v4  ;;  %v2134_v24 = vsel %vm2130_vm2, %v6486_v9, %v2133_v3  ;;  %v2176_v51 = vshrl.u32 %v2172_v55, 16 }
 0x568   : > { %v2156_v16 = vshrl.u32 %v2151_v2, 16  ;;  %v2178_v30 = vshrl.u32 %v2173_v11, 16  ;;  %v2573_v32 = vand.u32 31, %v2571_v46  ;;  %v2566_v34 = vand.u32 8388607, %v2559_v0 }
 0x569   : > { %vm2044_vm9 = vcmp.lt.s32.totalorder %v2043_v25, 0  ;;  %v2045_v61 = vsub.s32 0, %v2043_v25  ;;  %v2165_v27 = vadd.s32 %v2164_v21, %v2154_v53  ;;  %v2187_v31 = vadd.s32 %v2186_v52, %v2176_v51 }
 0x56a   : > { %v2135_v7 = vsel %vm2129_vm3, %v2132_v44, %v2134_v24  ;;  %v6571_v62 = vadd.s32 %v2181_v58, %v2177_v22  ;;  %v6575_v2 = vsub.s32 32, %v2573_v32  ;;  %v2035_v33 = vadd.s32 %v6509_v17, %v6520_v18 }
 0x56b   : > { %v2046_v59 = vsel %vm2044_vm9, %v2045_v61, %v2043_v25  ;;  %v6565_v1 = vadd.s32 %v2165_v27, %v2156_v16  ;;  %v2188_v9 = vadd.s32 %v2187_v31, %v2178_v30  ;;  %v2189_v36 = vmul.u32 %v6427_v47, %v2135_v7 }
 0x56c   : > { %v2047_v29 = vclz %v2046_v59  ;;  %v2567_v40 = vor.u32 8388608, %v2566_v34  ;;  %v6580_v22 = vshrl.u32 %v2571_v46, 5  ;;  %v2576_v58 = vshll.u32 %v8327_v45, %v2573_v32 }
 0x56d   : > { %vm2191_vm10 = vc.u32 %v6565_v1, %v6571_v62  ;;  %v2192_v11 = vadd.s32 1, %v2188_v9  ;;  %v2577_v3 = vshrl.u32 %v8319_v57, %v6575_v2  ;;  %v2580_v47 = vshrl.u32 %v8317_v28, %v6575_v2 }
 0x56e   : > { %v5473_v55 = vadd.s32 4294967294, %v2047_v29  ;;  %v2583_v17 = vshrl.u32 %v8321_v35, %v6575_v2  ;;  %v2585_v18 = vshll.u32 %v8321_v35, %v2573_v32  ;;  %v2586_v5 = vshrl.u32 %v8325_v39, %v6575_v2 }
 0x56f   : > { %v2193_v37 = vsel %vm2191_vm10, %v2192_v11, %v2188_v9  ;;  %v2589_v21 = vshrl.u32 %v8323_v10, %v6575_v2  ;;  %v2579_v46 = vshll.u32 %v8319_v57, %v2573_v32  ;;  %v2582_v44 = vshll.u32 %v8317_v28, %v2573_v32 }
 0x570   : > { %vm5474_vm11 = vcmp.lt.s32.totalorder %v5473_v55, 0  ;;  %v2194_v41 = vadd.s32 %v2193_v37, %v2189_v36  ;;  %v2587_v24 = vor.u32 %v2586_v5, %v2585_v18  ;;  %v6598_v16 = vor.u32 %v2577_v3, %v2576_v58 }
 0x571   : > { %v2050_v56 = vsel %vm5474_vm11, 0, %v5473_v55  ;;  %v2588_v27 = vshll.u32 %v8325_v39, %v2573_v32  ;;  %v6602_v30 = vor.u32 %v2580_v47, %v2579_v46  ;;  %v6604_v31 = vor.u32 %v2583_v17, %v2582_v44 }
 0x572   : > { %v2051_v26 = vsub.s32 32, %v2050_v56  ;;  %v2055_v6 = vsub.s32 4294967266, %v2050_v56  ;;  %v2195_v4 = vadd.s32 536870912, %v2194_v41  ;;  %v2052_v53 = vshll.u32 %v2043_v25, %v2050_v56 }
 0x573   : > { %vm2594_vm12 = vcmp.lt.s32.totalorder %v6580_v22, 4  ;;  %v2590_v34 = vor.u32 %v2589_v21, %v2588_v27  ;;  %v6609_v9 = vshll.u32 %v2567_v40, 8  ;;  %vm2591_vm13 = vcmp.lt.s32.totalorder %v6580_v22, 1 }
 0x574   : > { %v2053_v12 = vshrl.u32 %v2035_v33, %v2051_v26  ;;  %v2056_v20 = vadd.s32 127, %v2055_v6  ;;  %v6594_v52 = vshrl.u32 %v2195_v4, 30  ;;  %v2600_v29 = vsel %vm2594_vm12, %v2587_v24, 920167782 }
 0x575   : > { %vm2593_vm14 = vcmp.lt.s32.totalorder %v6580_v22, 3  ;;  %v2599_v36 = vsel %vm2591_vm13, %v6598_v16, %v6602_v30  ;;  %v2603_v40 = vsel %vm2591_vm13, %v6602_v30, %v6604_v31  ;;  %v2604_v56 = vsel %vm2594_vm12, %v2590_v34, 1326507024 }
 0x576   : > { %v2054_v51 = vor.u32 %v2053_v12, %v2052_v53  ;;  %v2057_v61 = vshll.u32 %v2056_v20, 23  ;;  %v2197_v25 = vshll.u32 %v6594_v52, 30  ;;  %v2601_v33 = vsel %vm2593_vm14, %v6604_v31, %v2600_v29 }
 0x577   : > { %vm2592_vm1 = vcmp.lt.s32.totalorder %v6580_v22, 2  ;;  %v2605_v3 = vsel %vm2593_vm14, %v2587_v24, %v2604_v56  ;;  %vm6633_vm2 = vcmp.le.f32.partialorder %v1941_v19, 0.7853982  ;;  %vm1943_vm3 = vcmp.lt.s32.totalorder %v6410_v13, 0 }
 0x578   : > { %v2058_v59 = vor.u32 4788187, %v2057_v61  ;;  %v2198_v7 = vsub.s32 %v2194_v41, %v2197_v25  ;;  %v2061_v11 = vcvt.s32.f32 %v2054_v51  ;;  %v2602_v6 = vsel %vm2592_vm1, %v2599_v36, %v2601_v33 }
 0x579   : > { %v2606_v4 = vsel %vm2592_vm1, %v2603_v40, %v2605_v3  ;;  %v2608_v17 = vand.u32 65535, %v6609_v9  ;;  %v2609_v20 = vshrl.u32 %v6609_v9, 16  ;;  %v2633_v21 = vshrl.u32 %v2602_v6, 16 }
 0x57a   : > { %v2059_v55 = vand.u32 2147483647, %v2058_v59  ;;  %vm2199_vm15 = vcmp.lt.s32.totalorder %v2198_v7, 0  ;;  %v2200_v32 = vsub.s32 0, %v2198_v7  ;;  %v2610_v53 = vand.u32 65535, %v2606_v4 }
 0x57b   : > { %v2611_v12 = vshrl.u32 %v2606_v4, 16  ;;  %v1932_v24 = vmul.f32 %v6394_v42, %v6350_v48  ;;  %v1928_v51 = vmul.f32 %v6398_v63, %v6338_v50  ;;  %v2190_v25 = vadd.s32 %v6571_v62, %v6565_v1 }
 0x57c   : > { %v2062_v37 = vmul.f32 %v2061_v11, %v2059_v55  ;;  %v2201_v41 = vsel %vm2199_vm15, %v2200_v32, %v2198_v7  ;;  %v2614_v27 = vmul.u32 %v2610_v53, %v2609_v20  ;;  %v2612_v34 = vmul.u32 %v2610_v53, %v2608_v17 }
 0x57d   : > { %v2202_v26 = vclz %v2201_v41  ;;  %v2613_v44 = vmul.u32 %v2611_v12, %v2608_v17  ;;  %v2632_v29 = vand.u32 65535, %v2602_v6  ;;  %v2615_v11 = vmul.u32 %v2611_v12, %v2609_v20 }
 0x57e   : > { %v2063_v58 = vxor.u32 2147483648, %v2062_v37  ;;  %v2635_v36 = vmul.u32 %v2633_v21, %v2608_v17  ;;  %v2618_v50 = vshll.u32 %v2614_v27, 16  ;;  %v6661_v56 = vadd.f32 %v1932_v24, %v1928_v51 }
 0x57f   : > { %v5476_v5 = vadd.s32 4294967294, %v2202_v26  ;;  %v2616_v32 = vshll.u32 %v2613_v44, 16  ;;  %v2636_v41 = vmul.u32 %v2632_v29, %v2609_v20  ;;  %vm2098_vm6 = vcmp.lt.s32.totalorder %v6412_v14, 0 }
 0x580   : > { %v2064_v18 = vsel %vm1943_vm3, %v2063_v58, %v2062_v37  ;;  %v2638_v6 = vshll.u32 %v2635_v36, 16  ;;  %v2575_v12 = vshrl.u32 %v8327_v45, %v6575_v2  ;;  %vm6674_vm8 = vcmp.le.f32.partialorder %v2096_v23, 0.7853982 }
 0x581   : > { %v6646_v19 = vsel %vm6633_vm2, %v6410_v13, %v2064_v18  ;;  %vm5477_vm4 = vcmp.lt.s32.totalorder %v5476_v5, 0  ;;  %vm2620_vm5 = vc.u32 %v2612_v34, %v2616_v32  ;;  %v2622_v63 = vadd.s32 %v2616_v32, %v2612_v34 }
 0x582   : > { %v6651_v46 = vmul.f32 %v6646_v19, %v6646_v19  ;;  %v2205_v61 = vsel %vm5477_vm4, 0, %v5476_v5  ;;  %v2621_v62 = vsel %vm2620_vm5, 1, %v8314_v38  ;;  %v2634_v18 = vmul.u32 %v2632_v29, %v2608_v17 }
 0x583   : > { %v2206_v59 = vsub.s32 32, %v2205_v61  ;;  %v2210_v55 = vsub.s32 4294967266, %v2205_v61  ;;  %v2207_v48 = vshll.u32 %v2198_v7, %v2205_v61  ;;  %v2623_v26 = vadd.s32 %v2621_v62, %v2615_v11 }
 0x584   : > { %v2070_v33 = vmul.f32 -0.001358992, %v6651_v46  ;;  %v2077_v37 = vmul.f32 -0.00019511016, %v6651_v46  ;;  %vm2624_vm0 = vc.u32 %v2622_v63, %v2618_v50  ;;  %v2065_v5 = vsub.s32 4, %v6547_v60 }
 0x585   : > { %v2208_v42 = vshrl.u32 %v2190_v25, %v2206_v59  ;;  %v2211_v40 = vadd.s32 127, %v2210_v55  ;;  %v2625_v7 = vsel %vm2624_vm0, 1, %v8314_v38  ;;  %v2617_v61 = vshrl.u32 %v2613_v44, 16 }
 0x586   : > { %v2071_v3 = vadd.f32 0.041655596, %v2070_v33  ;;  %v2078_v4 = vadd.f32 0.008332121, %v2077_v37  ;;  %v2627_v24 = vadd.s32 %v2625_v7, %v2623_v26  ;;  %v2637_v25 = vmul.u32 %v2633_v21, %v2609_v20 }
 0x587   : > { %v2209_v1 = vor.u32 %v2208_v42, %v2207_v48  ;;  %v2212_v58 = vshll.u32 %v2211_v40, 23  ;;  %vm2642_vm7 = vc.u32 %v2634_v18, %v2638_v6  ;;  %v2640_v34 = vshll.u32 %v2636_v41, 16 }
 0x588   : > { %v2643_v55 = vsel %vm2642_vm7, 1, %v8314_v38  ;;  %v2644_v11 = vadd.s32 %v2638_v6, %v2634_v18  ;;  %v2072_v32 = vmul.f32 %v2071_v3, %v6651_v46  ;;  %v2079_v17 = vmul.f32 %v2078_v4, %v6651_v46 }
 0x589   : > { %v2213_v53 = vor.u32 4788187, %v2212_v58  ;;  %v2216_v51 = vcvt.s32.f32 %v2209_v1  ;;  %v2628_v29 = vadd.s32 %v2627_v24, %v2617_v61  ;;  %v2645_v33 = vadd.s32 %v2643_v55, %v2637_v25 }
 0x58a   : > { %v2596_v20 = vsel %vm2594_vm12, %v6604_v31, 2102212464  ;;  %vm2646_vm9 = vc.u32 %v2644_v11, %v2640_v34  ;;  %v2066_v21 = vsel %vm1943_vm3, %v2065_v5, %v6547_v60  ;;  %v2595_v37 = vsel %vm2591_vm13, %v2575_v12, %v6598_v16 }
 0x58b   : > { %v2214_v59 = vand.u32 2147483647, %v2213_v53  ;;  %v2619_v48 = vshrl.u32 %v2614_v27, 16  ;;  %v2647_v23 = vsel %vm2646_vm9, 1, %v8314_v38  ;;  %v2220_v40 = vsub.s32 4, %v6594_v52 }
 0x58c   : > { %v2639_v50 = vshrl.u32 %v2635_v36, 16  ;;  %v2649_v63 = vadd.s32 %v2647_v23, %v2645_v33  ;;  %v2073_v1 = vadd.f32 -0.4999988, %v2072_v32  ;;  %v2080_v62 = vadd.f32 -0.16666654, %v2079_v17 }
 0x58d   : > { %v2217_v44 = vmul.f32 %v2216_v51, %v2214_v59  ;;  %v2597_v31 = vsel %vm2593_vm14, %v6602_v30, %v2596_v20  ;;  %v2629_v58 = vadd.s32 %v2628_v29, %v2619_v48  ;;  %v2641_v26 = vshrl.u32 %v2636_v41, 16 }
 0x58e   : > { %v2650_v16 = vadd.s32 %v2649_v63, %v2639_v50  ;;  %v2717_v27 = vand.u32 2139095040, %v6661_v56  ;;  %v2648_v36 = vadd.s32 %v2644_v11, %v2640_v34  ;;  %v2068_v3 = vsel %vm6633_vm2, 0, %v2066_v21 }
 0x58f   : > { %v2218_v42 = vxor.u32 2147483648, %v2217_v44  ;;  %v2598_v30 = vsel %vm2592_vm1, %v2595_v37, %v2597_v31  ;;  %v2714_v7 = vand.u32 2147483647, %v6661_v56  ;;  %v2221_v41 = vsel %vm2098_vm6, %v2220_v40, %v6594_v52 }
 0x590   : > { %v2651_v4 = vadd.s32 %v2650_v16, %v2641_v26  ;;  %vm2654_vm10 = vc.u32 %v2629_v58, %v2648_v36  ;;  %v2718_v5 = vshrl.u32 %v2717_v27, 23  ;;  %v2074_v53 = vmul.f32 %v2073_v1, %v6651_v46 }
 0x591   : > { %v2219_v60 = vsel %vm2098_vm6, %v2218_v42, %v2217_v44  ;;  %v2081_v47 = vmul.f32 %v2080_v62, %v6651_v46  ;;  %v2085_v22 = vadd.s32 3, %v2068_v3  ;;  %v2652_v24 = vmul.u32 %v6609_v9, %v2598_v30 }
 0x592   : > { %v6698_v6 = vsel %vm6674_vm8, %v6412_v14, %v2219_v60  ;;  %v2655_v12 = vadd.s32 1, %v2651_v4  ;;  %v5487_v51 = vadd.s32 4294967169, %v2718_v5  ;;  %v2223_v61 = vsel %vm6674_vm8, 0, %v2221_v41 }
 0x593   : > { %v6710_v18 = vmul.f32 %v6698_v6, %v6698_v6  ;;  %v2721_v52 = vand.u32 8388607, %v2714_v7  ;;  %v6721_v32 = vadd.f32 1.0, %v2074_v53  ;;  %v2082_v46 = vadd.f32 1.0, %v2081_v47 }
 0x594   : > { %v2656_v25 = vsel %vm2654_vm10, %v2655_v12, %v2651_v4  ;;  %v2724_v11 = vadd.s32 1, %v5487_v51  ;;  %v6723_v17 = vand.u32 3, %v2085_v22  ;;  %v2240_v29 = vadd.s32 3, %v2223_v61 }
 0x595   : > { %v2225_v59 = vmul.f32 -0.001358992, %v6710_v18  ;;  %v2232_v34 = vmul.f32 -0.00019511016, %v6710_v18  ;;  %v2657_v55 = vadd.s32 %v2656_v25, %v2652_v24  ;;  %v2722_v33 = vor.u32 8388608, %v2721_v52 }
 0x596   : > { %vm2725_vm11 = vcmp.gt.s32.totalorder %v2724_v11, 0  ;;  %v6728_v48 = vmul.f32 %v2082_v46, %v6646_v19  ;;  %v2092_v23 = vxor.u32 2147483648, %v6721_v32  ;;  %v3177_v42 = vmul.f32 1.442695, %v6410_v13 }
 0x597   : > { %v2658_v9 = vadd.s32 536870912, %v2657_v55  ;;  %v2726_v2 = vsel %vm2725_vm11, %v2724_v11, 0  ;;  %v2226_v44 = vadd.f32 0.041655596, %v2225_v59  ;;  %v2233_v20 = vadd.f32 0.008332121, %v2232_v34 }
 0x598   : > { %v2728_v37 = vand.u32 31, %v2726_v2  ;;  %vm2091_vm12 = vcmp.eq.s32.totalorder %v6723_v17, 2  ;;  %v6733_v40 = vand.u32 3, %v2068_v3  ;;  %v3179_v63 = vmul.f32 1.442695, %v6412_v14 }
 0x599   : > { %v6725_v21 = vshrl.u32 %v2658_v9, 30  ;;  %v6737_v1 = vand.u32 3, %v2240_v29  ;;  %v6739_v62 = vand.u32 3, %v2223_v61  ;;  %v6743_v19 = vshll.u32 %v2722_v33, 8 }
 0x59a   : > { %v6741_v31 = vsub.s32 32, %v2728_v37  ;;  %v2227_v60 = vmul.f32 %v2226_v44, %v6710_v18  ;;  %v2234_v26 = vmul.f32 %v2233_v20, %v6710_v18  ;;  %v2653_v16 = vadd.s32 %v2648_v36, %v2629_v58 }
 0x59b   : > { %v2660_v50 = vshll.u32 %v6725_v21, 30  ;;  %v2089_v3 = vxor.u32 2147483648, %v6728_v48  ;;  %v6753_v30 = vsel %vm2091_vm12, %v2092_v23, %v6728_v48  ;;  %5722 = vpow2.f32 %v3177_v42 }
 0x59c   : > { %v3181_v4 = vmul.f32 1.442695, %v6414_v15  ;;  %5724 = vpow2.f32 %v3179_v63  ;;  %v3183_v5 = vmul.f32 1.442695, %v6661_v56  ;;  %v2732_v58 = vshrl.u32 %v8319_v57, %v6741_v31 }
 0x59d   : > { %v6747_v27 = vsub.s32 %v2657_v55, %v2660_v50  ;;  %v2735_v36 = vshrl.u32 %v8317_v28, %v6741_v31  ;;  %v6764_v53 = vand.u32 65535, %v6743_v19  ;;  %v6767_v47 = vshrl.u32 %v6743_v19, 16 }
 0x59e   : > { %v2228_v12 = vadd.f32 -0.4999988, %v2227_v60  ;;  %v2235_v22 = vadd.f32 -0.16666654, %v2234_v26  ;;  %v2738_v51 = vshrl.u32 %v8321_v35, %v6741_v31  ;;  %v2731_v25 = vshll.u32 %v8327_v45, %v2728_v37 }
 0x59f   : > { %vm2662_vm13 = vcmp.lt.s32.totalorder %v6747_v27, 0  ;;  %v2663_v41 = vsub.s32 0, %v6747_v27  ;;  %v2734_v52 = vshll.u32 %v8319_v57, %v2728_v37  ;;  %v2741_v59 = vshrl.u32 %v8325_v39, %v6741_v31 }
 0x5a0   : > { %v6776_v34 = vshrl.u32 %v2726_v2, 5  ;;  %v2737_v55 = vshll.u32 %v8317_v28, %v2728_v37  ;;  %v2740_v11 = vshll.u32 %v8321_v35, %v2728_v37  ;;  %5726 = vpow2.f32 %v3181_v4 }
 0x5a1   : > { %v2664_v24 = vsel %vm2662_vm13, %v2663_v41, %v6747_v27  ;;  %v6780_v46 = vpop.eup %5722  ;;  %v2733_v29 = vor.u32 %v2732_v58, %v2731_v25  ;;  %v2736_v33 = vor.u32 %v2735_v36, %v2734_v52  ;;  %5728 = vpow2.f32 %v3183_v5 }
 0x5a2   : > { %v2665_v61 = vclz %v2664_v24  ;;  %v6782_v44 = vpop.eup %5724  ;;  %v2739_v20 = vor.u32 %v2738_v51, %v2737_v55  ;;  %v2742_v42 = vor.u32 %v2741_v59, %v2740_v11  ;;  %v2743_v50 = vshll.u32 %v8325_v39, %v2728_v37 }
 0x5a3   : > { %v2744_v2 = vshrl.u32 %v8323_v10, %v6741_v31  ;;  %v6788_v63 = vmul.f32 %v2228_v12, %v6710_v18  ;;  %v2236_v60 = vmul.f32 %v2235_v22, %v6710_v18  ;;  %vm2561_vm14 = vcmp.lt.s32.totalorder %v6414_v15, 0 }
 0x5a4   : > { %v5485_v9 = vadd.s32 4294967294, %v2665_v61  ;;  %v2683_v26 = vsub.s32 4, %v6725_v21  ;;  %vm2746_vm1 = vcmp.lt.s32.totalorder %v6776_v34, 1  ;;  %vm2747_vm2 = vcmp.lt.s32.totalorder %v6776_v34, 2 }
 0x5a5   : > { %v2745_v41 = vor.u32 %v2744_v2, %v2743_v50  ;;  %vm2748_vm3 = vcmp.lt.s32.totalorder %v6776_v34, 3  ;;  %vm2749_vm4 = vcmp.lt.s32.totalorder %v6776_v34, 4  ;;  %v2754_v12 = vsel %vm2746_vm1, %v2733_v29, %v2736_v33 }
 0x5a6   : > { %vm5486_vm15 = vcmp.lt.s32.totalorder %v5485_v9, 0  ;;  %v6797_v58 = vpop.eup %5726  ;;  %v2751_v36 = vsel %vm2749_vm4, %v2739_v20, 2102212464  ;;  %v2755_v22 = vsel %vm2749_vm4, %v2742_v42, 920167782  ;;  %v2758_v52 = vsel %vm2746_vm1, %v2736_v33, %v2739_v20 }
 0x5a7   : > { %v2668_v4 = vsel %vm5486_vm15, 0, %v5485_v9  ;;  %v6802_v24 = vpop.eup %5728  ;;  %v2756_v25 = vsel %vm2748_vm3, %v2739_v20, %v2755_v22  ;;  %v6808_v59 = vadd.f32 1.0, %v2236_v60  ;;  %v2759_v11 = vsel %vm2749_vm4, %v2745_v41, 1326507024 }
 0x5a8   : > { %v2669_v37 = vsub.s32 32, %v2668_v4  ;;  %v2673_v5 = vsub.s32 4294967266, %v2668_v4  ;;  %v2670_v18 = vshll.u32 %v6747_v27, %v2668_v4  ;;  %v2730_v27 = vshrl.u32 %v8327_v45, %v6741_v31 }
 0x5a9   : > { %v2757_v55 = vsel %vm2747_vm2, %v2754_v12, %v2756_v25  ;;  %v2752_v20 = vsel %vm2748_vm3, %v2736_v33, %v2751_v36  ;;  %vm6824_vm5 = vcmp.le.f32.partialorder %v2559_v0, 0.7853982  ;;  %5730 = vrcp.f32 %v6780_v46 }
 0x5aa   : > { %v2671_v51 = vshrl.u32 %v2653_v16, %v2669_v37  ;;  %v2674_v61 = vadd.s32 127, %v2673_v5  ;;  %v2760_v16 = vsel %vm2748_vm3, %v2742_v42, %v2759_v11  ;;  %v2787_v2 = vand.u32 65535, %v2757_v55 }
 0x5ab   : > { %v2750_v4 = vsel %vm2746_vm1, %v2730_v27, %v2733_v29  ;;  %v2761_v60 = vsel %vm2747_vm2, %v2758_v52, %v2760_v16  ;;  %v2788_v31 = vshrl.u32 %v2757_v55, 16  ;;  %v6832_v29 = vsel %vm2561_vm14, %v2683_v26, %v6725_v21 }
 0x5ac   : > { %v2672_v9 = vor.u32 %v2671_v51, %v2670_v18  ;;  %v2675_v50 = vshll.u32 %v2674_v61, 23  ;;  %v2765_v5 = vand.u32 65535, %v2761_v60  ;;  %v2766_v42 = vshrl.u32 %v2761_v60, 16 }
 0x5ad   : > { %v2790_v33 = vmul.u32 %v2788_v31, %v6764_v53  ;;  %v2791_v18 = vmul.u32 %v2787_v2, %v6767_v47  ;;  %5732 = vrcp.f32 %v6782_v44  ;;  %v6841_v51 = vsel %vm2747_vm2, %v2750_v4, %v2752_v20 }
 0x5ae   : > { %v2676_v37 = vor.u32 4788187, %v2675_v50  ;;  %v2679_v36 = vcvt.s32.f32 %v2672_v9  ;;  %v2768_v12 = vmul.u32 %v2766_v42, %v6764_v53  ;;  %v2769_v22 = vmul.u32 %v2765_v5, %v6767_v47 }
 0x5af   : > { %v2789_v61 = vmul.u32 %v2787_v2, %v6764_v53  ;;  %v2792_v21 = vmul.u32 %v2788_v31, %v6767_v47  ;;  %v2793_v26 = vshll.u32 %v2790_v33, 16  ;;  %v2767_v52 = vmul.u32 %v2765_v5, %v6764_v53  ;;  %v5731_v16 = vpop.eup %5730 }
 0x5b0   : > { %v2677_v0 = vand.u32 2147483647, %v2676_v37  ;;  %v2770_v27 = vmul.u32 %v2766_v42, %v6767_v47  ;;  %v2771_v55 = vshll.u32 %v2768_v12, 16  ;;  %v2773_v11 = vshll.u32 %v2769_v22, 16 }
 0x5b1   : > { %v2795_v9 = vshll.u32 %v2791_v18, 16  ;;  %vm2797_vm0 = vc.u32 %v2789_v61, %v2793_v26  ;;  %v2799_v50 = vadd.s32 %v2793_v26, %v2789_v61  ;;  %v2794_v31 = vshrl.u32 %v2790_v33, 16 }
 0x5b2   : > { %v2680_v25 = vmul.f32 %v2679_v36, %v2677_v0  ;;  %vm2775_vm6 = vc.u32 %v2767_v52, %v2771_v55  ;;  %v2777_v34 = vadd.s32 %v2771_v55, %v2767_v52  ;;  %v2798_v4 = vsel %vm2797_vm0, 1, %v8314_v38 }
 0x5b3   : > { %v5733_v2 = vpop.eup %5732  ;;  %v2776_v20 = vsel %vm2775_vm6, 1, %v8314_v38  ;;  %v2800_v37 = vadd.s32 %v2798_v4, %v2792_v21  ;;  %vm2801_vm7 = vc.u32 %v2799_v50, %v2795_v9  ;;  %v2772_v0 = vshrl.u32 %v2768_v12, 16 }
 0x5b4   : > { %v2681_v60 = vxor.u32 2147483648, %v2680_v25  ;;  %v2778_v47 = vadd.s32 %v2776_v20, %v2770_v27  ;;  %vm2779_vm8 = vc.u32 %v2777_v34, %v2773_v11  ;;  %v2802_v5 = vsel %vm2801_vm7, 1, %v8314_v38 }
 0x5b5   : > { %v2780_v36 = vsel %vm2779_vm8, 1, %v8314_v38  ;;  %v2804_v61 = vadd.s32 %v2802_v5, %v2800_v37  ;;  %v2774_v21 = vshrl.u32 %v2769_v22, 16  ;;  %5734 = vrcp.f32 %v6797_v58 }
 0x5b6   : > { %v2682_v53 = vsel %vm2561_vm14, %v2681_v60, %v2680_v25  ;;  %v2782_v26 = vadd.s32 %v2780_v36, %v2778_v47  ;;  %v2796_v25 = vshrl.u32 %v2791_v18, 16  ;;  %v3189_v27 = vsub.f32 %v6780_v46, %v5731_v16 }
 0x5b7   : > { %v6855_v42 = vsel %vm6824_vm5, %v6414_v15, %v2682_v53  ;;  %v2805_v52 = vadd.s32 %v2804_v61, %v2794_v31  ;;  %v3190_v55 = vsub.f32 %v6782_v44, %v5733_v2  ;;  %5736 = vrcp.f32 %v6802_v24 }
 0x5b8   : > { %v6860_v33 = vmul.f32 %v6855_v42, %v6855_v42  ;;  %v2783_v60 = vadd.s32 %v2782_v26, %v2772_v0  ;;  %v6868_v34 = vadd.s32 %v2799_v50, %v2795_v9  ;;  %v6870_v22 = vmul.f32 0.5, %v3189_v27 }
 0x5b9   : > { %v2806_v4 = vadd.s32 %v2805_v52, %v2796_v25  ;;  %v3193_v18 = vadd.f32 %v5731_v16, %v6780_v46  ;;  %v3194_v53 = vadd.f32 %v5733_v2, %v6782_v44  ;;  %v6876_v5 = vmul.f32 0.5, %v3190_v55 }
 0x5ba   : > { %v2688_v11 = vmul.f32 -0.001358992, %v6860_v33  ;;  %v2695_v12 = vmul.f32 -0.00019511016, %v6860_v33  ;;  %v6873_v37 = vadd.s32 %v2783_v60, %v2774_v21  ;;  %v3221_v0 = vmul.f32 2.0, %v6870_v22 }
 0x5bb   : > { %v2810_v47 = vadd.s32 1, %v2806_v4  ;;  %v6878_v36 = vmul.f32 0.5, %v3193_v18  ;;  %v2807_v46 = vmul.u32 %v6743_v19, %v6841_v51  ;;  %v5735_v16 = vpop.eup %5734  ;;  %vm2400_vm10 = vcmp.eq.s32.totalorder %v6733_v40, 2 }
 0x5bc   : > { %v2689_v20 = vadd.f32 0.041655596, %v2688_v11  ;;  %v2696_v31 = vadd.f32 0.008332121, %v2695_v12  ;;  %vm2809_vm9 = vc.u32 %v6873_v37, %v6868_v34  ;;  %v6888_v2 = vmul.f32 0.5, %v3194_v53 }
 0x5bd   : > { %v2811_v44 = vsel %vm2809_vm9, %v2810_v47, %v2806_v4  ;;  %v3205_v61 = vmul.f32 2.0, %v6878_v36  ;;  %v6892_v21 = vmul.f32 %v3221_v0, %v6878_v36  ;;  %v5737_v26 = vpop.eup %5736  ;;  %v6895_v25 = vadd.f32 1.0, %v6788_v63 }
 0x5be   : > { %v2690_v9 = vmul.f32 %v2689_v20, %v6860_v33  ;;  %v2697_v50 = vmul.f32 %v2696_v31, %v6860_v33  ;;  %v6900_v19 = vsel %vm6824_vm5, 0, %v6832_v29  ;;  %v2812_v52 = vadd.s32 %v2811_v44, %v2807_v46 }
 0x5bf   : > { %vm2088_vm11 = vcmp.eq.s32.totalorder %v6723_v17, 0  ;;  %v3201_v27 = vadd.f32 %v5735_v16, %v6797_v58  ;;  %v3202_v55 = vadd.f32 %v5737_v26, %v6802_v24  ;;  %v3206_v11 = vmul.f32 2.0, %v6888_v2 }
 0x5c0   : > { %v2698_v51 = vadd.f32 -0.16666654, %v2697_v50  ;;  %v3222_v12 = vmul.f32 2.0, %v6876_v5  ;;  %v2691_v60 = vadd.f32 -0.4999988, %v2690_v9  ;;  %v2813_v4 = vadd.s32 536870912, %v2812_v52 }
 0x5c1   : > { %v3197_v41 = vsub.f32 %v6797_v58, %v5735_v16  ;;  %v2238_v29 = vmul.f32 %v6808_v59, %v6698_v6  ;;  %vm2397_vm12 = vcmp.eq.s32.totalorder %v6733_v40, 0  ;;  %v6912_v18 = vmul.f32 0.5, %v3201_v27 }
 0x5c2   : > { %v2699_v63 = vmul.f32 %v2698_v51, %v6860_v33  ;;  %v6914_v20 = vmul.f32 0.5, %v3202_v55  ;;  %v3207_v31 = vmul.f32 %v3205_v61, %v6878_v36  ;;  %vm2087_vm13 = vcmp.lt.s32.totalorder %v6723_v17, 2 }
 0x5c3   : > { %vm2243_vm14 = vcmp.eq.s32.totalorder %v6737_v1, 0  ;;  %vm2246_vm15 = vcmp.eq.s32.totalorder %v6737_v1, 2  ;;  %v2703_v58 = vadd.s32 3, %v6900_v19  ;;  %v6921_v47 = vshrl.u32 %v2813_v4, 30 }
 0x5c4   : > { %v2700_v53 = vadd.f32 1.0, %v2699_v63  ;;  %v3208_v6 = vmul.f32 %v3206_v11, %v6888_v2  ;;  %vm2551_vm1 = vcmp.eq.s32.totalorder %v6739_v62, 0  ;;  %vm2554_vm2 = vcmp.eq.s32.totalorder %v6739_v62, 2 }
 0x5c5   : > { %v5496_v59 = vadd.f32 -1.0, %v3207_v31  ;;  %v3213_v0 = vmul.f32 2.0, %v6912_v18  ;;  %v3214_v9 = vmul.f32 2.0, %v6914_v20  ;;  %v3224_v50 = vmul.f32 %v3222_v12, %v6888_v2 }
 0x5c6   : > { %v2692_v46 = vmul.f32 %v2691_v60, %v6860_v33  ;;  %v2815_v16 = vshll.u32 %v6921_v47, 30  ;;  %v3198_v44 = vsub.f32 %v6802_v24, %v5737_v26  ;;  %v6932_v61 = vmul.f32 0.5, %v3197_v41 }
 0x5c7   : > { %vm2242_vm3 = vcmp.lt.s32.totalorder %v6737_v1, 2  ;;  %v5497_v51 = vadd.f32 -1.0, %v3208_v6  ;;  %5738 = vrcp.f32 %v5496_v59  ;;  %v3215_v27 = vmul.f32 %v3213_v0, %v6912_v18 }
 0x5c8   : > { %v3216_v55 = vmul.f32 %v3214_v9, %v6914_v20  ;;  %v2247_v11 = vxor.u32 2147483648, %v6895_v25  ;;  %v2402_v33 = vsel %vm2400_vm10, %v2092_v23, %v6728_v48  ;;  %v6944_v24 = vmul.f32 %v2700_v53, %v6855_v42 }
 0x5c9   : > { %v6946_v26 = vsub.s32 %v2812_v52, %v2815_v16  ;;  %v2244_v12 = vxor.u32 2147483648, %v2238_v29  ;;  %5740 = vrcp.f32 %v5497_v51  ;;  %v5498_v60 = vadd.f32 -1.0, %v3215_v27 }
 0x5ca   : > { %v5499_v63 = vadd.f32 -1.0, %v3216_v55  ;;  %v2090_v4 = vsel %vm2088_vm11, %v6721_v32, %v2089_v3  ;;  %v6953_v41 = vadd.f32 1.0, %v2692_v46  ;;  %vm2084_vm5 = vweird.f32 %v6410_v13 }
 0x5cb   : > { %vm2817_vm4 = vcmp.lt.s32.totalorder %v6946_v26, 0  ;;  %v2818_v23 = vsub.s32 0, %v6946_v26  ;;  %vm2239_vm0 = vweird.f32 %v6412_v14  ;;  %vm2396_vm6 = vcmp.lt.s32.totalorder %v6733_v40, 2 }
 0x5cc   : > { %vm2550_vm7 = vcmp.lt.s32.totalorder %v6739_v62, 2  ;;  %v2704_v42 = vand.u32 3, %v2703_v58  ;;  %v6961_v52 = vmul.f32 0.5, %v3198_v44  ;;  %5742 = vrcp.f32 %v5498_v60 }
 0x5cd   : > { %v3227_v31 = vmul.f32 2.0, %v6932_v61  ;;  %v2399_v53 = vsel %vm2397_vm12, %v6721_v32, %v2089_v3  ;;  %v2707_v6 = vxor.u32 2147483648, %v6944_v24  ;;  %v2819_v59 = vsel %vm2817_vm4, %v2818_v23, %v6946_v26  ;;  %v6971_v0 = vpop.eup %5738 }
 0x5ce   : > { %5744 = vrcp.f32 %v5499_v63  ;;  %v2094_v58 = vsel %vm2087_vm13, %v2090_v4, %v6753_v30  ;;  %v2245_v9 = vsel %vm2243_vm14, %v6895_v25, %v2244_v12  ;;  %v2248_v48 = vsel %vm2246_vm15, %v2247_v11, %v2238_v29 }
 0x5cf   : > { %vm2702_vm8 = vweird.f32 %v6414_v15  ;;  %v2820_v32 = vclz %v2819_v59  ;;  %v2553_v3 = vsel %vm2551_vm1, %v6895_v25, %v2244_v12  ;;  %v2556_v46 = vsel %vm2554_vm2, %v2247_v11, %v2238_v29  ;;  %v6992_v16 = vpop.eup %5740 }
 0x5d0   : > { %v2710_v17 = vxor.u32 2147483648, %v6953_v41  ;;  %v6990_v30 = vmul.f32 %v6971_v0, %v6892_v21  ;;  %vm2706_vm9 = vcmp.eq.s32.totalorder %v2704_v42, 0  ;;  %v3228_v51 = vmul.f32 2.0, %v6961_v52 }
 0x5d1   : > { %v5488_v44 = vadd.s32 4294967294, %v2820_v32  ;;  %v3229_v27 = vmul.f32 %v3227_v31, %v6912_v18  ;;  %v2249_v25 = vsel %vm2242_vm3, %v2245_v9, %v2248_v48  ;;  %vm2705_vm10 = vcmp.lt.s32.totalorder %v2704_v42, 2 }
 0x5d2   : > { %v2708_v29 = vsel %vm2706_vm9, %v6953_v41, %v2707_v6  ;;  %v7000_v55 = vmul.f32 %v6992_v16, %v3224_v50  ;;  %v7002_v11 = vpop.eup %5742  ;;  %vm2709_vm11 = vcmp.eq.s32.totalorder %v2704_v42, 2  ;;  %v3013_v21 = vand.u32 3, %v6900_v19 }
 0x5d3   : > { %vm5489_vm12 = vcmp.lt.s32.totalorder %v5488_v44, 0  ;;  %v3230_v12 = vmul.f32 %v3228_v51, %v6914_v20  ;;  %v2711_v63 = vsel %vm2709_vm11, %v2710_v17, %v6944_v24  ;;  %v2808_v1 = vadd.s32 %v6868_v34, %v6873_v37 }
 0x5d4   : > { %v7006_v60 = vpop.eup %5744  ;;  %v2823_v4 = vsel %vm5489_vm12, 0, %v5488_v44  ;;  %v7012_v23 = vmul.f32 %v7002_v11, %v3229_v27  ;;  %v2712_v50 = vsel %vm2705_vm10, %v2708_v29, %v2711_v63  ;;  %v7019_v19 = vsel %vm2084_vm5, nan, %v2094_v58 }
 0x5d5   : > { %v2824_v31 = vsub.s32 32, %v2823_v4  ;;  %v2828_v59 = vsub.s32 4294967266, %v2823_v4  ;;  %v7015_v42 = vmul.f32 %v7006_v60, %v3230_v12  ;;  %v7023_v9 = vsel %vm2239_vm0, nan, %v2249_v25  ;;  %v1910_v12 = vpop.permute.xlu2 %1909 }
 0x5d6   : > { %v2403_v34 = vsel %vm2396_vm6, %v2399_v53, %v2402_v33  ;;  %v2557_v37 = vsel %vm2550_vm7, %v2553_v3, %v2556_v46  ;;  %v2825_v48 = vshll.u32 %v6946_v26, %v2823_v4  ;;  %vm3018_vm13 = vcmp.eq.s32.totalorder %v3013_v21, 2 }
 0x5d7   : > { %v2826_v32 = vshrl.u32 %v2808_v1, %v2824_v31  ;;  %v2829_v44 = vadd.s32 127, %v2828_v59  ;;  %v7032_v51 = vsel %vm2702_vm8, nan, %v2712_v50  ;;  %vm3014_vm14 = vcmp.lt.s32.totalorder %v3013_v21, 2  ;;  %v1896_v1 = vpop.permute.xlu1 %1895 }
 0x5d8   : > { %vm3015_vm15 = vcmp.eq.s32.totalorder %v3013_v21, 0  ;;  %v3020_v58 = vsel %vm3018_vm13, %v2710_v17, %v6944_v24  ;;  %v3233_v62 = vmul.f32 2.0, %v7019_v19  ;;  %v7039_v33 = vsel %vm2084_vm5, nan, %v2403_v34 }
 0x5d9   : > { %v2827_v27 = vor.u32 %v2826_v32, %v2825_v48  ;;  %v2830_v25 = vshll.u32 %v2829_v44, 23  ;;  %v3017_v40 = vsel %vm3015_vm15, %v6953_v41, %v2707_v6  ;;  %v3234_v53 = vmul.f32 2.0, %v7023_v9 }
 0x5da   : > { %v3021_v26 = vsel %vm3014_vm14, %v3017_v40, %v3020_v58  ;;  %v7044_v3 = vsel %vm2239_vm0, nan, %v2557_v37  ;;  %v3235_v41 = vmul.f32 %v3233_v62, %v7039_v33  ;;  %v3243_v13 = vmul.f32 2.0, %v7032_v51 }
 0x5db   : > { %v2831_v46 = vor.u32 4788187, %v2830_v25  ;;  %v7048_v24 = vsel %vm2702_vm8, nan, %v3021_v26  ;;  %v3236_v6 = vmul.f32 %v3234_v53, %v7044_v3  ;;  %v2834_v29 = vcvt.s32.f32 %v2827_v27 }
 0x5dc   : > { %v3247_v21 = vmul.f32 2.0, %v7048_v24  ;;  %v2838_v14 = vsub.s32 4, %v6921_v47  ;;  %v3245_v63 = vmul.f32 %v3243_v13, %v7048_v24  ;;  %v3237_v15 = vmul.f32 2.0, %v7039_v33 }
 0x5dd   : > { %v2832_v17 = vand.u32 2147483647, %v2831_v46  ;;  %v3238_v31 = vmul.f32 2.0, %v7044_v3  ;;  %v1917_v59 = vmul.f32 %v1910_v12, %v6342_v8  ;;  %vm2716_vm1 = vcmp.lt.s32.totalorder %v6661_v56, 0 }
 0x5de   : > { %v3249_v50 = vmul.f32 %v3247_v21, %v7048_v24  ;;  %v1903_v48 = vmul.f32 %v1896_v1, %v6330_v43  ;;  %v1904_v32 = vmul.f32 %v1896_v1, %v6332_v54  ;;  %v1929_v44 = vmul.f32 %v1896_v1, %v6342_v8 }
 0x5df   : > { %v2835_v4 = vmul.f32 %v2834_v29, %v2832_v17  ;;  %v2839_v58 = vsel %vm2716_vm1, %v2838_v14, %v6921_v47  ;;  %vm2715_vm2 = vcmp.le.f32.partialorder %v2714_v7, 0.7853982  ;;  %v3239_v25 = vmul.f32 %v3237_v15, %v7039_v33 }
 0x5e0   : > { %v5502_v37 = vadd.f32 -1.0, %v3249_v50  ;;  %v1918_v62 = vmul.f32 %v1910_v12, %v6344_v49  ;;  %v1925_v26 = vmul.f32 %v1910_v12, %v6330_v43  ;;  %v3240_v46 = vmul.f32 %v3238_v31, %v7044_v3 }
 0x5e1   : > { %v2836_v34 = vxor.u32 2147483648, %v2835_v4  ;;  %v1930_v8 = vmul.f32 %v1896_v1, %v6344_v49  ;;  %v2841_v13 = vsel %vm2715_vm2, 0, %v2839_v58  ;;  %v1926_v7 = vmul.f32 %v1910_v12, %v6332_v54 }
 0x5e2   : > { %v3253_v40 = vmul.f32 %v6971_v0, %v5502_v37  ;;  %v1921_v29 = vsub.f32 %v1903_v48, %v1917_v59  ;;  %v1922_v21 = vsub.f32 %v1904_v32, %v1918_v62  ;;  %v1933_v14 = vadd.f32 %v1929_v44, %v1925_v26 }
 0x5e3   : > { %v2837_v27 = vsel %vm2716_vm1, %v2836_v34, %v2835_v4  ;;  %v5500_v50 = vadd.f32 -1.0, %v3239_v25  ;;  %v2858_v34 = vadd.s32 3, %v2841_v13  ;;  %v5501_v43 = vadd.f32 -1.0, %v3240_v46 }
 0x5e4   : > { %v2840_v53 = vsel %vm2715_vm2, %v6661_v56, %v2837_v27  ;;  %v3255_v17 = vadd.f32 1.0, %v3253_v40  ;;  %v1934_v37 = vadd.f32 %v1930_v8, %v1926_v7  ;;  %v7075_v31 = vmul.f32 0.5, %v1921_v29 }
 0x5e5   : > { %v2842_v47 = vmul.f32 %v2840_v53, %v2840_v53  ;;  %v7077_v49 = vmul.f32 0.5, %v1922_v21  ;;  %v7079_v1 = vmul.f32 0.5, %v1933_v14  ;;  %v3167_v58 = vand.u32 3, %v2841_v13 }
 0x5e6   : > { %5746 = vrcp.f32 %v3255_v17  ;;  %8372 = vst [vmem:[#allocation6_spill] sm:$0xff] %v7075_v31  ;;  %v3261_v59 = vmul.f32 %v6971_v0, %v3245_v63  ;;  %v3265_v48 = vmul.f32 %v7002_v11, %v5500_v50  ;;  %v2859_v32 = vand.u32 3, %v2858_v34 }
 0x5e7   : > { %v2843_v4 = vmul.f32 -0.001358992, %v2842_v47  ;;  %v2850_v15 = vmul.f32 -0.00019511016, %v2842_v47  ;;  %8373 = vst [vmem:[#allocation7_spill] sm:$0xff] %v7077_v49  ;;  %v3266_v44 = vmul.f32 %v7006_v60, %v5501_v43  ;;  %v3275_v25 = vmul.f32 %v7002_v11, %v3235_v41 }
 0x5e8   : > { %8374 = vst [vmem:[#allocation8_spill] sm:$0xff] %v7079_v1  ;;  %v3276_v40 = vmul.f32 %v7006_v60, %v3236_v6  ;;  %v3267_v8 = vadd.f32 1.0, %v3265_v48  ;;  %v3279_v13 = vmul.f32 %v6912_v18, %v7019_v19  ;;  %v3280_v17 = vmul.f32 %v6914_v20, %v7023_v9 }
 0x5e9   : > { %v2844_v27 = vadd.f32 0.041655596, %v2843_v4  ;;  %v2851_v38 = vadd.f32 0.008332121, %v2850_v15  ;;  %v3268_v63 = vadd.f32 1.0, %v3266_v44  ;;  %v3281_v60 = vmul.f32 %v6932_v61, %v7039_v33 }
 0x5ea   : > { %5748 = vrcp.f32 %v3267_v8  ;;  %v7097_v41 = vmul.f32 0.5, %v1934_v37  ;;  %vm3168_vm3 = vcmp.lt.s32.totalorder %v3167_v58, 2  ;;  %vm3169_vm4 = vcmp.eq.s32.totalorder %v3167_v58, 0 }
 0x5eb   : > { %v2845_v54 = vmul.f32 %v2844_v27, %v2842_v47  ;;  %v2852_v12 = vmul.f32 %v2851_v38, %v2842_v47  ;;  %5750 = vrcp.f32 %v3268_v63  ;;  %vm3172_vm5 = vcmp.eq.s32.totalorder %v3167_v58, 2 }
 0x5ec   : > { %v5747_v62 = vpop.eup %5746  ;;  %8377 = vst [vmem:[#allocation11_spill] sm:$0xff] %v7097_v41  ;;  %vm2860_vm0 = vcmp.lt.s32.totalorder %v2859_v32, 2  ;;  %vm2861_vm6 = vcmp.eq.s32.totalorder %v2859_v32, 0  ;;  %v7102_v21 = vmul.f32 %v3279_v13, %v7075_v31  ;;  %vm2864_vm7 = vcmp.eq.s32.totalorder %v2859_v32, 2 }
 0x5ed   : > { %v2846_v26 = vadd.f32 -0.4999988, %v2845_v54  ;;  %v2853_v46 = vadd.f32 -0.16666654, %v2852_v12  ;;  %v7089_v38 = vmul.f32 %v5747_v62, %v6990_v30  ;;  %v7091_v0 = vmul.f32 %v5747_v62, %v3261_v59 }
 0x5ee   : > { %v3282_v30 = vmul.f32 %v6961_v52, %v7044_v3  ;;  %v7108_v15 = vmul.f32 %v3281_v60, %v7079_v1  ;;  %v3271_v50 = vsub.f32 0.0, %v7012_v23  ;;  %v3299_v43 = vmul.f32 %v3281_v60, %v7075_v31 }
 0x5ef   : > { %8375 = vst [vmem:[#allocation9_spill] sm:$0xff] %v7089_v38  ;;  %v2847_v7 = vmul.f32 %v2846_v26, %v2842_v47  ;;  %v2854_v11 = vmul.f32 %v2853_v46, %v2842_v47  ;;  %v7105_v47 = vmul.f32 %v3280_v17, %v7077_v49  ;;  %v3301_v37 = vmul.f32 %v3279_v13, %v7079_v1 }
 0x5f0   : > { %8376 = vst [vmem:[#allocation10_spill] sm:$0xff] %v7091_v0  ;;  %v7112_v34 = vmul.f32 %v3282_v30, %v7097_v41  ;;  %v5749_v27 = vpop.eup %5748  ;;  %v3272_v59 = vsub.f32 0.0, %v7015_v42  ;;  %vm2857_vm8 = vweird.f32 %v6661_v56 }
 0x5f1   : > { %v2848_v6 = vadd.f32 1.0, %v2847_v7  ;;  %v2855_v29 = vadd.f32 1.0, %v2854_v11  ;;  %v5751_v48 = vpop.eup %5750  ;;  %v7120_v62 = vmul.f32 %v5749_v27, %v3271_v50  ;;  %v7122_v23 = vmul.f32 %v5749_v27, %v3275_v25 }
 0x5f2   : > { %v7128_v13 = vmul.f32 %v5751_v48, %v3272_v59  ;;  %v7130_v42 = vmul.f32 %v5751_v48, %v3276_v40  ;;  %v7135_v11 = vadd.f32 %v3301_v37, %v3299_v43  ;;  %v7148_v50 = vmul.f32 %v6870_v22, %v7032_v51 }
 0x5f3   : > { %v2856_v14 = vmul.f32 %v2855_v29, %v2840_v53  ;;  %v2865_v4 = vxor.u32 2147483648, %v2848_v6  ;;  %8378 = vst [vmem:[#allocation12_spill] sm:$0xff] %v7120_v62  ;;  %v3300_v27 = vmul.f32 %v3282_v30, %v7077_v49 }
 0x5f4   : > { %8379 = vst [vmem:[#allocation13_spill] sm:$0xff] %v7122_v23  ;;  %v8316_v40 = vand.u32 2147483647, %v7135_v11  ;;  %v3312_v56 = vand.u32 2139095040, %v7135_v11  ;;  %v7169_v48 = vmul.f32 %v7148_v50, %v7079_v1 }
 0x5f5   : > { %v2862_v54 = vxor.u32 2147483648, %v2856_v14  ;;  %v2866_v12 = vsel %vm2864_vm7, %v2865_v4, %v2856_v14  ;;  %v3174_v44 = vsel %vm3172_vm5, %v2865_v4, %v2856_v14  ;;  %8380 = vst [vmem:[#allocation14_spill] sm:$0xff] %v7128_v13  ;;  %v7139_v4 = vmul.f32 %v6878_v36, %v7048_v24 }
 0x5f6   : > { %8381 = vst [vmem:[#allocation15_spill] sm:$0xff] %v7130_v42  ;;  %v3313_v37 = vshrl.u32 %v3312_v56, 23  ;;  %v3316_v36 = vand.u32 8388607, %v8316_v40 }
 0x5f7   : > { %v2863_v46 = vsel %vm2861_vm6, %v2848_v6, %v2862_v54  ;;  %v3171_v8 = vsel %vm3169_vm4, %v2848_v6, %v2862_v54  ;;  %v3302_v54 = vmul.f32 %v3280_v17, %v7097_v41  ;;  %v7160_v22 = vmul.f32 %v7139_v4, %v7075_v31 }
 0x5f8   : > { %v2867_v63 = vsel %vm2860_vm0, %v2863_v46, %v2866_v12  ;;  %v3175_v7 = vsel %vm3168_vm3, %v3171_v8, %v3174_v44  ;;  %v5504_v12 = vadd.s32 4294967169, %v3313_v37  ;;  %v3317_v59 = vor.u32 8388608, %v3316_v36 }
 0x5f9   : > { %v2868_v25 = vsel %vm2857_vm8, nan, %v2867_v63  ;;  %v3176_v60 = vsel %vm2857_vm8, nan, %v3175_v7  ;;  %v7179_v63 = vadd.f32 %v3302_v54, %v3300_v27 }
 0x5fa   : > { %v3244_v29 = vmul.f32 2.0, %v2868_v25  ;;  %v3248_v14 = vmul.f32 2.0, %v3176_v60  ;;  %v7142_v6 = vmul.f32 %v6888_v2, %v3176_v60  ;;  %v7151_v43 = vmul.f32 %v6876_v5, %v2868_v25 }
 0x5fb   : > { %v3319_v17 = vadd.s32 1, %v5504_v12  ;;  %v3466_v36 = vand.u32 2139095040, %v7179_v63 }
 0x5fc   : > { %v3246_v32 = vmul.f32 %v3244_v29, %v3176_v60  ;;  %v3250_v58 = vmul.f32 %v3248_v14, %v3176_v60  ;;  %v7164_v5 = vmul.f32 %v7142_v6, %v7077_v49  ;;  %v7173_v30 = vmul.f32 %v7151_v43, %v7097_v41 }
 0x5fd   : > { %vm3320_vm9 = vcmp.gt.s32.totalorder %v3319_v17, 0 }
 0x5fe   : > { %v5503_v24 = vadd.f32 -1.0, %v3250_v58  ;;  %v3262_v2 = vmul.f32 %v6992_v16, %v3246_v32  ;;  %8382 = vst [vmem:[#allocation16_spill] sm:$0xff] %v7164_v5  ;;  %v3321_v7 = vsel %vm3320_vm9, %v3319_v17, 0 }
 0x5ff   : > { %8383 = vst [vmem:[#allocation17_spill] sm:$0xff] %v7173_v30  ;;  %v3323_v25 = vand.u32 31, %v3321_v7  ;;  %v3322_v60 = vshrl.u32 %v3321_v7, 5 }
 0x600   : > { %v3254_v51 = vmul.f32 %v6992_v16, %v5503_v24  ;;  %v7181_v16 = vshll.u32 %v3317_v59, 8 }
 0x601   : > { %v3324_v29 = vsub.s32 32, %v3323_v25  ;;  %v3326_v32 = vshll.u32 %v8327_v45, %v3323_v25  ;;  %v3329_v58 = vshll.u32 %v8319_v57, %v3323_v25  ;;  %v3332_v37 = vshll.u32 %v8317_v28, %v3323_v25 }
 0x602   : > { %v3256_v44 = vadd.f32 1.0, %v3254_v51  ;;  %v3358_v14 = vand.u32 65535, %v7181_v16  ;;  %v3335_v12 = vshll.u32 %v8321_v35, %v3323_v25  ;;  %v3338_v17 = vshll.u32 %v8325_v39, %v3323_v25 }
 0x603   : > { %v3327_v24 = vshrl.u32 %v8319_v57, %v3324_v29  ;;  %v3330_v27 = vshrl.u32 %v8317_v28, %v3324_v29  ;;  %v3333_v54 = vshrl.u32 %v8321_v35, %v3324_v29  ;;  %v3336_v51 = vshrl.u32 %v8325_v39, %v3324_v29 }
 0x604   : > { %5752 = vrcp.f32 %v3256_v44  ;;  %v3339_v44 = vshrl.u32 %v8323_v10, %v3324_v29  ;;  %vm3341_vm10 = vcmp.lt.s32.totalorder %v3322_v60, 1  ;;  %v3467_v57 = vshrl.u32 %v3466_v36, 23 }
 0x605   : > { %v3328_v46 = vor.u32 %v3327_v24, %v3326_v32  ;;  %v3331_v26 = vor.u32 %v3330_v27, %v3329_v58  ;;  %v3334_v53 = vor.u32 %v3333_v54, %v3332_v37  ;;  %v3337_v40 = vor.u32 %v3336_v51, %v3335_v12 }
 0x606   : > { %v3340_v28 = vor.u32 %v3339_v44, %v3338_v17  ;;  %vm3342_vm11 = vcmp.lt.s32.totalorder %v3322_v60, 2  ;;  %vm3344_vm12 = vcmp.lt.s32.totalorder %v3322_v60, 4  ;;  %v3359_v25 = vshrl.u32 %v7181_v16, 16 }
 0x607   : > { %v3349_v35 = vsel %vm3341_vm10, %v3328_v46, %v3331_v26  ;;  %vm3343_vm13 = vcmp.lt.s32.totalorder %v3322_v60, 3  ;;  %v3350_v10 = vsel %vm3344_vm12, %v3337_v40, 920167782  ;;  %v3353_v39 = vsel %vm3341_vm10, %v3331_v26, %v3334_v53 }
 0x608   : > { %v3346_v56 = vsel %vm3344_vm12, %v3334_v53, 2102212464  ;;  %v5507_v58 = vadd.s32 4294967169, %v3467_v57  ;;  %v3325_v37 = vshrl.u32 %v8327_v45, %v3324_v29  ;;  %v8386_v27 = vand.u32 2147483647, %v7179_v63 }
 0x60a   : > { %v5753_v59 = vpop.eup %5752  ;;  %v3470_v54 = vand.u32 8388607, %v8386_v27  ;;  %v3473_v57 = vadd.s32 1, %v5507_v58 }
 0x60b   : > { %v7197_v7 = vmul.f32 %v5753_v59, %v7000_v55  ;;  %v7199_v8 = vmul.f32 %v5753_v59, %v3262_v2  ;;  %v3354_v55 = vsel %vm3344_vm12, %v3340_v28, 1326507024  ;;  %v3351_v2 = vsel %vm3343_vm13, %v3334_v53, %v3350_v10 }
 0x60c   : > { %v3355_v32 = vsel %vm3343_vm13, %v3337_v40, %v3354_v55  ;;  %v3352_v36 = vsel %vm3342_vm11, %v3349_v35, %v3351_v2  ;;  %v3345_v28 = vsel %vm3341_vm10, %v3325_v37, %v3328_v46  ;;  %v3347_v10 = vsel %vm3343_vm13, %v3331_v26, %v3346_v56 }
 0x60d   : > { %8384 = vst [vmem:[#allocation18_spill] sm:$0xff] %v7197_v7  ;;  %v3356_v24 = vsel %vm3342_vm11, %v3353_v39, %v3355_v32  ;;  %v3382_v51 = vand.u32 65535, %v3352_v36  ;;  %v3383_v17 = vshrl.u32 %v3352_v36, 16  ;;  %v3471_v55 = vor.u32 8388608, %v3470_v54 }
 0x60e   : > { %8385 = vst [vmem:[#allocation19_spill] sm:$0xff] %v7199_v8  ;;  %v3360_v12 = vand.u32 65535, %v3356_v24  ;;  %v3361_v59 = vshrl.u32 %v3356_v24, 16  ;;  %v7214_v35 = vsel %vm3342_vm11, %v3345_v28, %v3347_v10  ;;  %vm3474_vm15 = vcmp.gt.s32.totalorder %v3473_v57, 0 }
 0x60f   : > { %v3385_v44 = vmul.u32 %v3383_v17, %v3358_v14  ;;  %v3386_v29 = vmul.u32 %v3382_v51, %v3359_v25  ;;  %v3384_v24 = vmul.u32 %v3382_v51, %v3358_v14  ;;  %v3387_v45 = vmul.u32 %v3383_v17, %v3359_v25 }
 0x610   : > { %v3363_v53 = vmul.u32 %v3361_v59, %v3358_v14  ;;  %v3364_v40 = vmul.u32 %v3360_v12, %v3359_v25  ;;  %v3362_v39 = vmul.u32 %v3360_v12, %v3358_v14  ;;  %v3365_v2 = vmul.u32 %v3361_v59, %v3359_v25 }
 0x611   : > { %v3388_v36 = vshll.u32 %v3385_v44, 16  ;;  %v3390_v37 = vshll.u32 %v3386_v29, 16  ;;  %v8387_v26 = vmov 0   ;;  %v3475_v42 = vsel %vm3474_vm15, %v3473_v57, 0 }
 0x612   : > { %v3366_v32 = vshll.u32 %v3363_v53, 16  ;;  %v3368_v27 = vshll.u32 %v3364_v40, 16  ;;  %v7218_v12 = vshll.u32 %v3471_v55, 8  ;;  %v3367_v59 = vshrl.u32 %v3363_v53, 16 }
 0x613   : > { %vm3392_vm1 = vc.u32 %v3384_v24, %v3388_v36  ;;  %v3394_v58 = vadd.s32 %v3388_v36, %v3384_v24  ;;  %v3369_v51 = vshrl.u32 %v3364_v40, 16  ;;  %v3477_v10 = vand.u32 31, %v3475_v42 }
 0x614   : > { %vm3370_vm14 = vc.u32 %v3362_v39, %v3366_v32  ;;  %v3372_v46 = vadd.s32 %v3366_v32, %v3362_v39  ;;  %v3393_v60 = vsel %vm3392_vm1, 1, %v8387_v26  ;;  %v3389_v39 = vshrl.u32 %v3385_v44, 16 }
 0x615   : > { %v3371_v56 = vsel %vm3370_vm14, 1, %v8387_v26  ;;  %v3395_v25 = vadd.s32 %v3393_v60, %v3387_v45  ;;  %vm3396_vm3 = vc.u32 %v3394_v58, %v3390_v37  ;;  %v3391_v32 = vshrl.u32 %v3386_v29, 16 }
 0x616   : > { %v3373_v54 = vadd.s32 %v3371_v56, %v3365_v2  ;;  %vm3374_vm2 = vc.u32 %v3372_v46, %v3368_v27  ;;  %v3397_v28 = vsel %vm3396_vm3, 1, %v8387_v26  ;;  %v7222_v57 = vshrl.u32 %v3475_v42, 5 }
 0x617   : > { %v3375_v14 = vsel %vm3374_vm2, 1, %v8387_v26  ;;  %v3399_v24 = vadd.s32 %v3397_v28, %v3395_v25  ;;  %v7224_v27 = vadd.s32 %v3394_v58, %v3390_v37  ;;  %v7226_v55 = vsub.s32 32, %v3477_v10 }
 0x618   : > { %v3377_v17 = vadd.s32 %v3375_v14, %v3373_v54  ;;  %v8388_v53 = vmov 683565275   ;;  %v8389_v45 = vmov 2475754826   ;;  %v8390_v40 = vmov 2131351028  }
 0x619   : > { %v3480_v36 = vshll.u32 %v8388_v53, %v3477_v10  ;;  %v3400_v46 = vadd.s32 %v3399_v24, %v3389_v39  ;;  %v3483_v56 = vshll.u32 %v8389_v45, %v3477_v10  ;;  %v3486_v54 = vshll.u32 %v8390_v40, %v3477_v10 }
 0x61a   : > { %v3378_v2 = vadd.s32 %v3377_v17, %v3367_v59  ;;  %v8391_v60 = vmov 2102212464   ;;  %v3481_v42 = vshrl.u32 %v8389_v45, %v7226_v55  ;;  %v3484_v44 = vshrl.u32 %v8390_v40, %v7226_v55 }
 0x61b   : > { %v3489_v14 = vshll.u32 %v8391_v60, %v3477_v10  ;;  %v8392_v29 = vmov 920167782   ;;  %v3401_v58 = vadd.s32 %v3400_v46, %v3391_v32  ;;  %v3487_v59 = vshrl.u32 %v8391_v60, %v7226_v55 }
 0x61c   : > { %v7232_v23 = vadd.s32 %v3378_v2, %v3369_v51  ;;  %v3492_v37 = vshll.u32 %v8392_v29, %v3477_v10  ;;  %v3490_v25 = vshrl.u32 %v8392_v29, %v7226_v55  ;;  %v8393_v17 = vmov 1326507024  }
 0x61d   : > { %v3493_v28 = vshrl.u32 %v8393_v17, %v7226_v55  ;;  %v7247_v51 = vor.u32 %v3481_v42, %v3480_v36  ;;  %v7249_v39 = vor.u32 %v3484_v44, %v3483_v56  ;;  %vm3495_vm5 = vcmp.lt.s32.totalorder %v7222_v57, 1 }
 0x61e   : > { %vm3404_vm4 = vc.u32 %v7232_v23, %v7224_v27  ;;  %v3405_v10 = vadd.s32 1, %v3401_v58  ;;  %v3488_v32 = vor.u32 %v3487_v59, %v3486_v54  ;;  %v3491_v24 = vor.u32 %v3490_v25, %v3489_v14 }
 0x61f   : > { %v3494_v2 = vor.u32 %v3493_v28, %v3492_v37  ;;  %v3402_v46 = vmul.u32 %v7181_v16, %v7214_v35  ;;  %vm3498_vm0 = vcmp.lt.s32.totalorder %v7222_v57, 4  ;;  %v3503_v13 = vsel %vm3495_vm5, %v7247_v51, %v7249_v39 }
 0x620   : > { %v3406_v36 = vsel %vm3404_vm4, %v3405_v10, %v3401_v58  ;;  %vm3497_vm6 = vcmp.lt.s32.totalorder %v7222_v57, 3  ;;  %v3504_v56 = vsel %vm3498_vm0, %v3491_v24, 920167782  ;;  %v3507_v54 = vsel %vm3495_vm5, %v7249_v39, %v3488_v32 }
 0x621   : > { %v3407_v14 = vadd.s32 %v3406_v36, %v3402_v46  ;;  %vm3496_vm7 = vcmp.lt.s32.totalorder %v7222_v57, 2  ;;  %v3505_v16 = vsel %vm3497_vm6, %v3488_v32, %v3504_v56  ;;  %v3508_v35 = vsel %vm3498_vm0, %v3494_v2, 1326507024 }
 0x622   : > { %v3506_v42 = vsel %vm3496_vm7, %v3503_v13, %v3505_v16  ;;  %v3509_v44 = vsel %vm3497_vm6, %v3491_v24, %v3508_v35  ;;  %v3512_v37 = vand.u32 65535, %v7218_v12  ;;  %v3937_v58 = vmul.f32 %v7148_v50, %v7075_v31 }
 0x623   : > { %v3408_v59 = vadd.s32 536870912, %v3407_v14  ;;  %v3510_v25 = vsel %vm3496_vm7, %v3507_v54, %v3509_v44  ;;  %v3536_v28 = vand.u32 65535, %v3506_v42  ;;  %v3537_v10 = vshrl.u32 %v3506_v42, 16 }
 0x624   : > { %v3513_v46 = vshrl.u32 %v7218_v12, 16  ;;  %v3514_v2 = vand.u32 65535, %v3510_v25  ;;  %v3515_v36 = vshrl.u32 %v3510_v25, 16  ;;  %v3939_v13 = vmul.f32 %v7139_v4, %v7079_v1 }
 0x625   : > { %v7282_v56 = vshrl.u32 %v3408_v59, 30  ;;  %v3539_v24 = vmul.u32 %v3537_v10, %v3512_v37  ;;  %v3538_v25 = vmul.u32 %v3536_v28, %v3512_v37 }
 0x626   : > { %v3517_v16 = vmul.u32 %v3515_v36, %v3512_v37  ;;  %v3518_v35 = vmul.u32 %v3514_v2, %v3513_v46  ;;  %v3540_v62 = vmul.u32 %v3536_v28, %v3513_v46  ;;  %v3516_v0 = vmul.u32 %v3514_v2, %v3512_v37 }
 0x627   : > { %v3410_v50 = vshll.u32 %v7282_v56, 30  ;;  %v3542_v8 = vshll.u32 %v3539_v24, 16  ;;  %v7285_v44 = vadd.f32 %v3939_v13, %v3937_v58  ;;  %v3519_v7 = vmul.u32 %v3515_v36, %v3513_v46 }
 0x628   : > { %v3520_v54 = vshll.u32 %v3517_v16, 16  ;;  %v3541_v38 = vmul.u32 %v3537_v10, %v3513_v46  ;;  %v3522_v30 = vshll.u32 %v3518_v35, 16  ;;  %v3544_v59 = vshll.u32 %v3540_v62, 16 }
 0x629   : > { %8394 = vst [vmem:[#allocation20_spill] sm:$0xff] %v7285_v44  ;;  %v7287_v42 = vsub.s32 %v3407_v14, %v3410_v50  ;;  %vm3546_vm10 = vc.u32 %v3538_v25, %v3542_v8  ;;  %v3548_v14 = vadd.s32 %v3542_v8, %v3538_v25  ;;  %v3500_v37 = vsel %vm3498_vm0, %v3488_v32, 2102212464 }
 0x62a   : > { %vm3524_vm8 = vc.u32 %v3516_v0, %v3520_v54  ;;  %v3526_v4 = vadd.s32 %v3520_v54, %v3516_v0  ;;  %v3547_v58 = vsel %vm3546_vm10, 1, %v8387_v26  ;;  %v3521_v46 = vshrl.u32 %v3517_v16, 16 }
 0x62b   : > { %vm3412_vm9 = vcmp.lt.s32.totalorder %v7287_v42, 0  ;;  %v3413_v5 = vsub.s32 0, %v7287_v42  ;;  %v3525_v1 = vsel %vm3524_vm8, 1, %v8387_v26  ;;  %v3549_v28 = vadd.s32 %v3547_v58, %v3541_v38 }
 0x62c   : > { %v3527_v2 = vadd.s32 %v3525_v1, %v3519_v7  ;;  %vm3528_vm11 = vc.u32 %v3526_v4, %v3522_v30  ;;  %vm3550_vm12 = vc.u32 %v3548_v14, %v3544_v59  ;;  %v3479_v50 = vshrl.u32 %v8388_v53, %v7226_v55 }
 0x62d   : > { %v3414_v36 = vsel %vm3412_vm9, %v3413_v5, %v7287_v42  ;;  %v3529_v0 = vsel %vm3528_vm11, 1, %v8387_v26  ;;  %v3523_v1 = vshrl.u32 %v3518_v35, 16  ;;  %v3551_v30 = vsel %vm3550_vm12, 1, %v8387_v26 }
 0x62e   : > { %v3415_v10 = vclz %v3414_v36  ;;  %v3531_v13 = vadd.s32 %v3529_v0, %v3527_v2  ;;  %v3950_v8 = vand.u32 2139095040, %v7285_v44  ;;  %v3543_v54 = vshrl.u32 %v3539_v24, 16 }
 0x62f   : > { %v3553_v25 = vadd.s32 %v3551_v30, %v3549_v28  ;;  %v3499_v38 = vsel %vm3495_vm5, %v3479_v50, %v7247_v51  ;;  %v3501_v32 = vsel %vm3497_vm6, %v7249_v39, %v3500_v37  ;;  %v3545_v35 = vshrl.u32 %v3540_v62, 16 }
 0x630   : > { %v5505_v7 = vadd.s32 4294967294, %v3415_v10  ;;  %v3532_v5 = vadd.s32 %v3531_v13, %v3521_v46  ;;  %v3951_v16 = vshrl.u32 %v3950_v8, 23  ;;  %v7309_v2 = vadd.s32 %v3548_v14, %v3544_v59 }
 0x631   : > { %v3554_v4 = vadd.s32 %v3553_v25, %v3543_v54  ;;  %v3502_v24 = vsel %vm3496_vm7, %v3499_v38, %v3501_v32  ;;  %v8341_v50 = vand.u32 2147483647, %v7285_v44  ;;  %vm3311_vm6 = vcmp.lt.s32.totalorder %v7135_v11, 0 }
 0x632   : > { %vm5506_vm13 = vcmp.lt.s32.totalorder %v5505_v7, 0  ;;  %v7307_v55 = vadd.s32 %v3532_v5, %v3523_v1  ;;  %v5516_v51 = vadd.s32 4294967169, %v3951_v16  ;;  %v3556_v39 = vmul.u32 %v7218_v12, %v3502_v24 }
 0x633   : > { %v3555_v58 = vadd.s32 %v3554_v4, %v3545_v35  ;;  %v3418_v36 = vsel %vm5506_vm13, 0, %v5505_v7  ;;  %v3403_v5 = vadd.s32 %v7224_v27, %v7232_v23  ;;  %v3954_v54 = vand.u32 8388607, %v8341_v50 }
 0x634   : > { %vm3558_vm14 = vc.u32 %v7307_v55, %v7309_v2  ;;  %v3957_v37 = vadd.s32 1, %v5516_v51  ;;  %v3423_v28 = vsub.s32 4294967266, %v3418_v36  ;;  %v3419_v8 = vsub.s32 32, %v3418_v36 }
 0x635   : > { %v3559_v0 = vadd.s32 1, %v3555_v58  ;;  %v3420_v25 = vshll.u32 %v7287_v42, %v3418_v36 }
 0x636   : > { %vm3958_vm15 = vcmp.gt.s32.totalorder %v3957_v37, 0  ;;  %v3424_v13 = vadd.s32 127, %v3423_v28  ;;  %v3421_v16 = vshrl.u32 %v3403_v5, %v3419_v8  ;;  %v3955_v8 = vor.u32 8388608, %v3954_v54 }
 0x637   : > { %v3560_v10 = vsel %vm3558_vm14, %v3559_v0, %v3555_v58  ;;  %v3959_v62 = vsel %vm3958_vm15, %v3957_v37, 0  ;;  %vm3465_vm15 = vcmp.lt.s32.totalorder %v7179_v63, 0 }
 0x638   : > { %v3561_v46 = vadd.s32 %v3560_v10, %v3556_v39  ;;  %v3961_v14 = vand.u32 31, %v3959_v62  ;;  %v3425_v7 = vshll.u32 %v3424_v13, 23  ;;  %v7343_v51 = vshrl.u32 %v3959_v62, 5 }
 0x63a   : > { %v3562_v59 = vadd.s32 536870912, %v3561_v46  ;;  %v7320_v30 = vsub.s32 32, %v3961_v14  ;;  %v3426_v35 = vor.u32 4788187, %v3425_v7  ;;  %v3973_v24 = vshll.u32 %v8391_v60, %v3961_v14 }
 0x63b   : > { %v3964_v0 = vshll.u32 %v8388_v53, %v3961_v14  ;;  %v3967_v39 = vshll.u32 %v8389_v45, %v3961_v14  ;;  %v3970_v37 = vshll.u32 %v8390_v40, %v3961_v14  ;;  %v3976_v10 = vshll.u32 %v8392_v29, %v3961_v14 }
 0x63c   : > { %v7316_v57 = vshrl.u32 %v3562_v59, 30  ;;  %v3974_v32 = vshrl.u32 %v8392_v29, %v7320_v30  ;;  %v3965_v4 = vshrl.u32 %v8389_v45, %v7320_v30  ;;  %v3968_v23 = vshrl.u32 %v8390_v40, %v7320_v30 }
 0x63d   : > { %v3971_v42 = vshrl.u32 %v8391_v60, %v7320_v30  ;;  %v3977_v58 = vshrl.u32 %v8393_v17, %v7320_v30  ;;  %v3427_v5 = vand.u32 2147483647, %v3426_v35  ;;  %vm3982_vm3 = vcmp.lt.s32.totalorder %v7343_v51, 4 }
 0x63e   : > { %8395 = vst [vmem:[#allocation21_spill] sm:$0xff] %v7316_v57  ;;  %v3564_v1 = vshll.u32 %v7316_v57, 30  ;;  %v3975_v28 = vor.u32 %v3974_v32, %v3973_v24  ;;  %v7349_v13 = vor.u32 %v3965_v4, %v3964_v0  ;;  %v3940_v14 = vmul.f32 %v7142_v6, %v7097_v41 }
 0x63f   : > { %v7353_v7 = vor.u32 %v3971_v42, %v3970_v37  ;;  %v3978_v62 = vor.u32 %v3977_v58, %v3976_v10  ;;  %vm3979_vm4 = vcmp.lt.s32.totalorder %v7343_v51, 1  ;;  %vm3981_vm5 = vcmp.lt.s32.totalorder %v7343_v51, 3 }
 0x640   : > { %v7322_v12 = vsub.s32 %v3561_v46, %v3564_v1  ;;  %v3422_v46 = vor.u32 %v3421_v16, %v3420_v25  ;;  %v7351_v1 = vor.u32 %v3968_v23, %v3967_v39  ;;  %v3988_v25 = vsel %vm3982_vm3, %v3975_v28, 920167782 }
 0x641   : > { %v3992_v35 = vsel %vm3982_vm3, %v3978_v62, 1326507024  ;;  %v7377_v4 = vshll.u32 %v3955_v8, 8  ;;  %vm3980_vm0 = vcmp.lt.s32.totalorder %v7343_v51, 2  ;;  %v8403_v51 = vsub.f32 %v7160_v22, %v7169_v48 }
 0x642   : > { %vm3566_vm1 = vcmp.lt.s32.totalorder %v7322_v12, 0  ;;  %v3567_v38 = vsub.s32 0, %v7322_v12  ;;  %v3429_v32 = vcvt.s32.f32 %v3422_v46  ;;  %v3987_v16 = vsel %vm3979_vm4, %v7349_v13, %v7351_v1 }
 0x643   : > { %v3991_v6 = vsel %vm3979_vm4, %v7351_v1, %v7353_v7  ;;  %v3993_v24 = vsel %vm3981_vm5, %v3975_v28, %v3992_v35  ;;  %v3996_v0 = vand.u32 65535, %v7377_v4  ;;  %v3997_v46 = vshrl.u32 %v7377_v4, 16 }
 0x644   : > { %v3568_v27 = vsel %vm3566_vm1, %v3567_v38, %v7322_v12  ;;  %v3938_v38 = vmul.f32 %v7151_v43, %v7077_v49  ;;  %v3989_v43 = vsel %vm3981_vm5, %v7353_v7, %v3988_v25  ;;  %v3430_v23 = vmul.f32 %v3429_v32, %v3427_v5 }
 0x645   : > { %v3569_v36 = vclz %v3568_v27  ;;  %v3990_v42 = vsel %vm3980_vm0, %v3987_v16, %v3989_v43  ;;  %v3994_v58 = vsel %vm3980_vm0, %v3991_v6, %v3993_v24  ;;  %v7392_v5 = vmul.f32 %v6912_v18, %v7039_v33 }
 0x646   : > { %v3998_v39 = vand.u32 65535, %v3994_v58  ;;  %v3999_v37 = vshrl.u32 %v3994_v58, 16  ;;  %v3431_v10 = vxor.u32 2147483648, %v3430_v23  ;;  %v4020_v25 = vand.u32 65535, %v3990_v42 }
 0x647   : > { %v5508_v59 = vadd.s32 4294967294, %v3569_v36  ;;  %v7386_v36 = vadd.f32 %v3940_v14, %v3938_v38  ;;  %8397 = vst [vmem:[#allocation23_spill] sm:$0xff] %v7392_v5  ;;  %v8398_v6 = vand.u32 2147483647, %v7135_v11 }
 0x648   : > { %v4001_v62 = vmul.u32 %v3999_v37, %v3996_v0  ;;  %v4002_v28 = vmul.u32 %v3998_v39, %v3997_v46  ;;  %v4000_v14 = vmul.u32 %v3998_v39, %v3996_v0  ;;  %v3432_v18 = vsel %vm3311_vm6, %v3431_v10, %v3430_v23 }
 0x649   : > { %vm5509_vm2 = vcmp.lt.s32.totalorder %v5508_v59, 0  ;;  %8396 = vst [vmem:[#allocation22_spill] sm:$0xff] %v7386_v36  ;;  %v4104_v16 = vand.u32 2139095040, %v7386_v36  ;;  %vm7399_vm7 = vcmp.le.f32.partialorder %v8398_v6, 0.7853982  ;;  %v4003_v24 = vmul.u32 %v3999_v37, %v3997_v46 }
 0x64a   : > { %v3572_v54 = vsel %vm5509_vm2, 0, %v5508_v59  ;;  %v4021_v59 = vshrl.u32 %v3990_v42, 16  ;;  %v4004_v32 = vshll.u32 %v4001_v62, 16  ;;  %v4006_v58 = vshll.u32 %v4002_v28, 16 }
 0x64b   : > { %v3577_v27 = vsub.s32 4294967266, %v3572_v54  ;;  %v3573_v38 = vsub.s32 32, %v3572_v54  ;;  %v4024_v43 = vmul.u32 %v4020_v25, %v3997_v46  ;;  %v7411_v6 = vsel %vm7399_vm7, %v7135_v11, %v3432_v18 }
 0x64c   : > { %v4023_v33 = vmul.u32 %v4021_v59, %v3996_v0  ;;  %vm4008_vm8 = vc.u32 %v4000_v14, %v4004_v32  ;;  %v4010_v50 = vadd.s32 %v4004_v32, %v4000_v14  ;;  %v4105_v23 = vshrl.u32 %v4104_v16, 23 }
 0x64d   : > { %v3578_v8 = vadd.s32 127, %v3577_v27  ;;  %v3557_v27 = vadd.s32 %v7309_v2, %v7307_v55  ;;  %v4009_v39 = vsel %vm4008_vm8, 1, %v8387_v26  ;;  %v3574_v10 = vshll.u32 %v7322_v12, %v3572_v54 }
 0x64e   : > { %v4011_v57 = vadd.s32 %v4009_v39, %v4003_v24  ;;  %vm4012_vm9 = vc.u32 %v4010_v50, %v4006_v58  ;;  %v4022_v55 = vmul.u32 %v4020_v25, %v3996_v0  ;;  %v4026_v2 = vshll.u32 %v4023_v33, 16 }
 0x64f   : > { %v3579_v42 = vshll.u32 %v3578_v8, 23  ;;  %v3575_v44 = vshrl.u32 %v3557_v27, %v3573_v38  ;;  %v4005_v8 = vshrl.u32 %v4001_v62, 16  ;;  %v4013_v49 = vsel %vm4012_vm9, 1, %v8387_v26 }
 0x650   : > { %v4025_v41 = vmul.u32 %v4021_v59, %v3997_v46  ;;  %v4015_v14 = vadd.s32 %v4013_v49, %v4011_v57  ;;  %v4028_v32 = vshll.u32 %v4024_v43, 16  ;;  %vm4030_vm10 = vc.u32 %v4022_v55, %v4026_v2 }
 0x651   : > { %v3580_v37 = vor.u32 4788187, %v3579_v42  ;;  %v4032_v5 = vadd.s32 %v4026_v2, %v4022_v55  ;;  %v3576_v31 = vor.u32 %v3575_v44, %v3574_v10  ;;  %v3963_v38 = vshrl.u32 %v8388_v53, %v7320_v30 }
 0x652   : > { %v4031_v16 = vsel %vm4030_vm10, 1, %v8387_v26  ;;  %v5519_v18 = vadd.s32 4294967169, %v4105_v23  ;;  %v3984_v50 = vsel %vm3982_vm3, %v7353_v7, 2102212464  ;;  %v4016_v12 = vadd.s32 %v4015_v14, %v4005_v8 }
 0x653   : > { %v4033_v54 = vadd.s32 %v4031_v16, %v4025_v41  ;;  %vm4034_vm11 = vc.u32 %v4032_v5, %v4028_v32  ;;  %v7423_v49 = vmul.f32 %v7411_v6, %v7411_v6  ;;  %v3581_v57 = vand.u32 2147483647, %v3580_v37 }
 0x654   : > { %v4007_v0 = vshrl.u32 %v4002_v28, 16  ;;  %v4035_v44 = vsel %vm4034_vm11, 1, %v8387_v26  ;;  %v3286_v30 = vsub.f32 0.0, %v7023_v9  ;;  %v4027_v46 = vshrl.u32 %v4023_v33, 16 }
 0x655   : > { %v4037_v59 = vadd.s32 %v4035_v44, %v4033_v54  ;;  %v4111_v62 = vadd.s32 1, %v5519_v18  ;;  %v3583_v25 = vcvt.s32.f32 %v3576_v31  ;;  %v3983_v7 = vsel %vm3979_vm4, %v3963_v38, %v7349_v13 }
 0x656   : > { %v3985_v41 = vsel %vm3981_vm5, %v7351_v1, %v3984_v50  ;;  %v7433_v27 = vadd.s32 %v4016_v12, %v4007_v0  ;;  %v3433_v28 = vsub.s32 4, %v7282_v56  ;;  %v4029_v42 = vshrl.u32 %v4024_v43, 16 }
 0x657   : > { %v4038_v24 = vadd.s32 %v4037_v59, %v4027_v46  ;;  %vm4112_vm12 = vcmp.gt.s32.totalorder %v4111_v62, 0  ;;  %v3438_v9 = vmul.f32 -0.001358992, %v7423_v49  ;;  %v3584_v33 = vmul.f32 %v3583_v25, %v3581_v57 }
 0x658   : > { %v7437_v58 = vadd.s32 %v4032_v5, %v4028_v32  ;;  %v4113_v31 = vsel %vm4112_vm12, %v4111_v62, 0  ;;  %v8401_v13 = vsub.f32 %v7102_v21, %v7108_v15  ;;  %v3986_v1 = vsel %vm3980_vm0, %v3983_v7, %v3985_v41 }
 0x659   : > { %v4039_v23 = vadd.s32 %v4038_v24, %v4029_v42  ;;  %v4115_v10 = vand.u32 31, %v4113_v31  ;;  %v8402_v43 = vsub.f32 %v7105_v47, %v7112_v34  ;;  %v3445_v2 = vmul.f32 -0.00019511016, %v7423_v49 }
 0x65a   : > { %v3305_v39 = vmul.f32 1.442695, %v8401_v13  ;;  %vm4042_vm13 = vc.u32 %v7433_v27, %v7437_v58  ;;  %v8353_v5 = vand.u32 2147483647, %v7386_v36  ;;  %v7453_v21 = vmul.f32 %v6914_v20, %v7044_v3 }
 0x65b   : > { %v3307_v55 = vmul.f32 1.442695, %v8402_v43  ;;  %v3434_v15 = vsel %vm3311_vm6, %v3433_v28, %v7282_v56  ;;  %v3943_v47 = vmul.f32 1.442695, %v8403_v51  ;;  %v4043_v34 = vadd.s32 1, %v4039_v23 }
 0x65c   : > { %v3439_v37 = vadd.f32 0.041655596, %v3438_v9  ;;  %v3585_v8 = vxor.u32 2147483648, %v3584_v33  ;;  %v4040_v14 = vmul.u32 %v7377_v4, %v3986_v1  ;;  %v7462_v32 = vsub.s32 32, %v4115_v10 }
 0x65d   : > { %v8404_v38 = vsub.f32 0.0, %v7019_v19  ;;  %v7470_v3 = vmul.f32 %v3286_v30, %v6961_v52  ;;  %5754 = vpow2.f32 %v3305_v39  ;;  %v4044_v56 = vsel %vm4042_vm13, %v4043_v34, %v4039_v23  ;;  %v8411_v34 = vld [vmem:[#allocation6_spill] sm:$0xff] }
 0x65e   : > { %5756 = vpow2.f32 %v3307_v55  ;;  %v3446_v22 = vadd.f32 0.008332121, %v3445_v2  ;;  %v4045_v48 = vadd.s32 %v4044_v56, %v4040_v14  ;;  %v4108_v16 = vand.u32 8388607, %v8353_v5  ;;  %v8414_v14 = vld [vmem:[#allocation8_spill] sm:$0xff] }
 0x65f   : > { %v7467_v20 = vmul.f32 %v8404_v38, %v6932_v61  ;;  %v7476_v4 = vsel %vm7399_vm7, 0, %v3434_v15  ;;  %v8405_v18 = vand.u32 2147483647, %v7179_v63  ;;  %5758 = vpow2.f32 %v3943_v47 }
 0x660   : > { %v3440_v52 = vmul.f32 %v3439_v37, %v7423_v49  ;;  %v3586_v19 = vsel %vm3465_vm15, %v3585_v8, %v3584_v33  ;;  %v4046_v50 = vadd.s32 536870912, %v4045_v48  ;;  %v4119_v35 = vshrl.u32 %v8389_v45, %v7462_v32  ;;  %v8412_v37 = vld [vmem:[#allocation23_spill] sm:$0xff] }
 0x661   : > { %vm7480_vm14 = vcmp.le.f32.partialorder %v8405_v18, 0.7853982  ;;  %v4122_v12 = vshrl.u32 %v8390_v40, %v7462_v32  ;;  %v4125_v54 = vshrl.u32 %v8391_v60, %v7462_v32  ;;  %v4128_v57 = vshrl.u32 %v8392_v29, %v7462_v32 }
 0x662   : > { %v4131_v0 = vshrl.u32 %v8393_v17, %v7462_v32  ;;  %v3447_v44 = vmul.f32 %v3446_v22, %v7423_v49  ;;  %v7499_v30 = vshrl.u32 %v4046_v50, 30  ;;  %v4109_v46 = vor.u32 8388608, %v4108_v16 }
 0x663   : > { %v4118_v59 = vshll.u32 %v8388_v53, %v4115_v10  ;;  %v7502_v62 = vpop.eup %5754  ;;  %v4121_v25 = vshll.u32 %v8389_v45, %v4115_v10  ;;  %v4124_v7 = vshll.u32 %v8390_v40, %v4115_v10  ;;  %v4127_v41 = vshll.u32 %v8391_v60, %v4115_v10 }
 0x664   : > { %8408 = vst [vmem:[#allocation24_spill] sm:$0xff] %v7499_v30  ;;  %v4130_v28 = vshll.u32 %v8392_v29, %v4115_v10  ;;  %v7508_v42 = vpop.eup %5756  ;;  %v7513_v24 = vsel %vm7480_vm14, %v7179_v63, %v3586_v19  ;;  %v4048_v9 = vshll.u32 %v7499_v30, 30  ;;  %v7516_v33 = vshrl.u32 %v4113_v31, 5 }
 0x665   : > { %8409 = vst [vmem:[#allocation25_spill] sm:$0xff] %v7508_v42  ;;  %v7518_v13 = vor.u32 %v4119_v35, %v4118_v59  ;;  %v7520_v39 = vpop.eup %5758  ;;  %v7522_v1 = vor.u32 %v4122_v12, %v4121_v25  ;;  %v7524_v23 = vor.u32 %v4125_v54, %v4124_v7  ;;  %v4129_v10 = vor.u32 %v4128_v57, %v4127_v41  ;;  %v8416_v54 = vld [vmem:[#allocation11_spill] sm:$0xff] }
 0x666   : > { %8410 = vst [vmem:[#allocation26_spill] sm:$0xff] %v7520_v39  ;;  %v4132_v43 = vor.u32 %v4131_v0, %v4130_v28  ;;  %v3441_v55 = vadd.f32 -0.4999988, %v3440_v52  ;;  %v3763_v2 = vadd.s32 3, %v7476_v4  ;;  %v7527_v15 = vsub.s32 %v4045_v48, %v4048_v9 }
 0x667   : > { %v7529_v51 = vshll.u32 %v4109_v46, 8  ;;  %v3448_v47 = vadd.f32 -0.16666654, %v3447_v44  ;;  %v7533_v31 = vmul.f32 %v7513_v24, %v7513_v24  ;;  %v7537_v8 = vmul.f32 %v8412_v37, %v8411_v34  ;;  %v8418_v46 = vld [vmem:[#allocation7_spill] sm:$0xff] }
 0x668   : > { %v7541_v38 = vmul.f32 %v7467_v20, %v8414_v14  ;;  %vm4050_vm1 = vcmp.lt.s32.totalorder %v7527_v15, 0  ;;  %v4051_v56 = vsub.s32 0, %v7527_v15  ;;  %vm4133_vm2 = vcmp.lt.s32.totalorder %v7516_v33, 1 }
 0x669   : > { %8413 = vst [vmem:[#allocation6_spill] sm:$0xff] %v7537_v8  ;;  %vm4136_vm3 = vcmp.lt.s32.totalorder %v7516_v33, 4  ;;  %v4141_v22 = vsel %vm4133_vm2, %v7518_v13, %v7522_v1  ;;  %v4145_v16 = vsel %vm4133_vm2, %v7522_v1, %v7524_v23  ;;  %vm4134_vm4 = vcmp.lt.s32.totalorder %v7516_v33, 2 }
 0x66a   : > { %8415 = vst [vmem:[#allocation23_spill] sm:$0xff] %v7541_v38  ;;  %v4142_v48 = vsel %vm4136_vm3, %v4129_v10, 920167782  ;;  %v4146_v18 = vsel %vm4136_vm3, %v4132_v43, 1326507024  ;;  %v4052_v52 = vsel %vm4050_vm1, %v4051_v56, %v7527_v15  ;;  %vm4135_vm5 = vcmp.lt.s32.totalorder %v7516_v33, 3 }
 0x66b   : > { %v4150_v19 = vand.u32 65535, %v7529_v51  ;;  %v4053_v50 = vclz %v4052_v52  ;;  %v4143_v35 = vsel %vm4135_vm5, %v7524_v23, %v4142_v48  ;;  %v4147_v12 = vsel %vm4135_vm5, %v4129_v10, %v4146_v18  ;;  %v8420_v48 = vld [vmem:[#allocation16_spill] sm:$0xff] }
 0x66c   : > { %v7570_v57 = vmul.f32 %v7470_v3, %v8416_v54  ;;  %v4144_v0 = vsel %vm4134_vm4, %v4141_v22, %v4143_v35  ;;  %v4148_v44 = vsel %vm4134_vm4, %v4145_v16, %v4147_v12  ;;  %v7578_v59 = vmul.f32 %v7453_v21, %v8418_v46  ;;  %v8421_v16 = vld [vmem:[#allocation17_spill] sm:$0xff] }
 0x66d   : > { %v5517_v7 = vadd.s32 4294967294, %v4053_v50  ;;  %v4151_v41 = vshrl.u32 %v7529_v51, 16  ;;  %v4152_v28 = vand.u32 65535, %v4148_v44  ;;  %v4153_v9 = vshrl.u32 %v4148_v44, 16 }
 0x66e   : > { %8417 = vst [vmem:[#allocation8_spill] sm:$0xff] %v7570_v57  ;;  %v3449_v10 = vmul.f32 %v3448_v47, %v7423_v49  ;;  %v3592_v43 = vmul.f32 -0.001358992, %v7533_v31  ;;  %v4175_v56 = vshrl.u32 %v4144_v0, 16  ;;  %v8422_v18 = vsub.f32 %v8420_v48, %v8421_v16 }
 0x66f   : > { %8419 = vst [vmem:[#allocation11_spill] sm:$0xff] %v7578_v59  ;;  %vm5518_vm0 = vcmp.lt.s32.totalorder %v5517_v7, 0  ;;  %v4155_v35 = vmul.u32 %v4153_v9, %v4150_v19  ;;  %v4156_v50 = vmul.u32 %v4152_v28, %v4151_v41  ;;  %v7593_v12 = vand.u32 3, %v7476_v4 }
 0x670   : > { %v7590_v52 = vmul.f32 1.442695, %v8422_v18  ;;  %v7595_v44 = vsel %vm5518_vm0, 0, %v5517_v7  ;;  %v4174_v47 = vand.u32 65535, %v4144_v0  ;;  %v4177_v25 = vmul.u32 %v4175_v56, %v4150_v19 }
 0x671   : > { %v3599_v5 = vmul.f32 -0.00019511016, %v7533_v31  ;;  %v4061_v39 = vsub.s32 4294967266, %v7595_v44  ;;  %v4154_v22 = vmul.u32 %v4152_v28, %v4150_v19  ;;  %v4158_v57 = vshll.u32 %v4155_v35, 16 }
 0x672   : > { %v3442_v48 = vmul.f32 %v3441_v55, %v7423_v49  ;;  %v3450_v16 = vadd.f32 1.0, %v3449_v10  ;;  %v3593_v18 = vadd.f32 0.041655596, %v3592_v43  ;;  %v7600_v59 = vand.u32 3, %v3763_v2 }
 0x673   : > { %v4157_v42 = vmul.u32 %v4153_v9, %v4151_v41  ;;  %v4160_v38 = vshll.u32 %v4156_v50, 16  ;;  %vm4162_vm6 = vc.u32 %v4154_v22, %v4158_v57  ;;  %v4164_v4 = vadd.s32 %v4158_v57, %v4154_v22 }
 0x674   : > { %v4163_v7 = vsel %vm4162_vm6, 1, %v8387_v26  ;;  %v4176_v0 = vmul.u32 %v4174_v47, %v4150_v19  ;;  %v4178_v8 = vmul.u32 %v4174_v47, %v4151_v41  ;;  %v4180_v36 = vshll.u32 %v4177_v25, 16 }
 0x675   : > { %v3600_v30 = vadd.f32 0.008332121, %v3599_v5  ;;  %v4062_v17 = vadd.s32 127, %v4061_v39  ;;  %v4165_v29 = vadd.s32 %v4163_v7, %v4157_v42  ;;  %vm4166_vm7 = vc.u32 %v4164_v4, %v4160_v38 }
 0x676   : > { %v4167_v28 = vsel %vm4166_vm7, 1, %v8387_v26  ;;  %v4179_v49 = vmul.u32 %v4175_v56, %v4151_v41  ;;  %vm4184_vm8 = vc.u32 %v4176_v0, %v4180_v36  ;;  %v4575_v55 = vmul.f32 %v7467_v20, %v8411_v34 }
 0x677   : > { %v4057_v2 = vsub.s32 32, %v7595_v44  ;;  %v4159_v9 = vshrl.u32 %v4155_v35, 16  ;;  %v4169_v57 = vadd.s32 %v4167_v28, %v4165_v29  ;;  %v4185_v10 = vsel %vm4184_vm8, 1, %v8387_v26 }
 0x678   : > { %v4182_v19 = vshll.u32 %v4178_v8, 16  ;;  %v4186_v43 = vadd.s32 %v4180_v36, %v4176_v0  ;;  %v4187_v22 = vadd.s32 %v4185_v10, %v4179_v49  ;;  %v4577_v5 = vmul.f32 %v8412_v37, %v8414_v14 }
 0x679   : > { %v7611_v42 = vmul.f32 %v3450_v16, %v7411_v6  ;;  %v4041_v39 = vadd.s32 %v7437_v58, %v7433_v27  ;;  %v4063_v38 = vshll.u32 %v4062_v17, 23  ;;  %v4170_v20 = vadd.s32 %v4169_v57, %v4159_v9 }
 0x67a   : > { %v4117_v34 = vshrl.u32 %v8388_v53, %v7462_v32  ;;  %v4138_v29 = vsel %vm4136_vm3, %v7524_v23, 2102212464  ;;  %vm4188_vm9 = vc.u32 %v4186_v43, %v4182_v19  ;;  %v7620_v36 = vadd.f32 %v4577_v5, %v4575_v55 }
 0x67b   : > { %v3601_v37 = vmul.f32 %v3600_v30, %v7533_v31  ;;  %v4059_v14 = vshrl.u32 %v4041_v39, %v4057_v2  ;;  %v4161_v6 = vshrl.u32 %v4156_v50, 16  ;;  %v4189_v41 = vsel %vm4188_vm9, 1, %v8387_v26  ;;  %v8423_v50 = vld [vmem:[#allocation21_spill] sm:$0xff] }
 0x67c   : > { %v3594_v27 = vmul.f32 %v3593_v18, %v7533_v31  ;;  %v4137_v17 = vsel %vm4133_vm2, %v4117_v34, %v7518_v13  ;;  %v4181_v58 = vshrl.u32 %v4177_v25, 16  ;;  %v4191_v32 = vadd.s32 %v4189_v41, %v4187_v22 }
 0x67d   : > { %v4058_v23 = vshll.u32 %v7527_v15, %v7595_v44  ;;  %v4064_v56 = vor.u32 4788187, %v4063_v38  ;;  %v4139_v30 = vsel %vm4135_vm5, %v7522_v1, %v4138_v29  ;;  %v7633_v35 = vadd.s32 %v4170_v20, %v4161_v6 }
 0x67e   : > { %v3587_v47 = vsub.s32 4, %v8423_v50  ;;  %v4183_v16 = vshrl.u32 %v4178_v8, 16  ;;  %v4192_v18 = vadd.s32 %v4191_v32, %v4181_v58  ;;  %v4588_v4 = vand.u32 2139095040, %v7620_v36 }
 0x67f   : > { %v3443_v7 = vadd.f32 1.0, %v3442_v48  ;;  %vm3454_vm10 = vcmp.lt.s32.totalorder %v7593_v12, 2  ;;  %v3602_v13 = vadd.f32 -0.16666654, %v3601_v37  ;;  %v4060_v25 = vor.u32 %v4059_v14, %v4058_v23 }
 0x680   : > { %v7638_v0 = vadd.s32 %v4186_v43, %v4182_v19  ;;  %v3595_v15 = vadd.f32 -0.4999988, %v3594_v27  ;;  %v4140_v44 = vsel %vm4134_vm4, %v4137_v17, %v4139_v30  ;;  %v4193_v1 = vadd.s32 %v4192_v18, %v4183_v16 }
 0x681   : > { %v4589_v28 = vshrl.u32 %v4588_v4, 23  ;;  %vm3455_vm11 = vcmp.eq.s32.totalorder %v7593_v12, 0  ;;  %v3456_v8 = vxor.u32 2147483648, %v7611_v42  ;;  %v4065_v49 = vand.u32 2147483647, %v4064_v56 }
 0x682   : > { %vm4196_vm12 = vc.u32 %v7633_v35, %v7638_v0  ;;  %vm3452_vm13 = vweird.f32 %v7135_v11  ;;  %vm3458_vm1 = vcmp.eq.s32.totalorder %v7593_v12, 2  ;;  %v3588_v48 = vsel %vm3465_vm15, %v3587_v47, %v8423_v50  ;;  %v8424_v47 = vld [vmem:[#allocation20_spill] sm:$0xff] }
 0x683   : > { %v4197_v33 = vadd.s32 1, %v4193_v1  ;;  %v5528_v55 = vadd.s32 4294967169, %v4589_v28  ;;  %v3459_v2 = vxor.u32 2147483648, %v3443_v7  ;;  %v3603_v9 = vmul.f32 %v3602_v13, %v7533_v31 }
 0x684   : > { %v4067_v57 = vcvt.s32.f32 %v4060_v25  ;;  %v4194_v10 = vmul.u32 %v7529_v51, %v4140_v44  ;;  %v3596_v19 = vmul.f32 %v3595_v15, %v7533_v31  ;;  %vm3765_vm2 = vcmp.lt.s32.totalorder %v7600_v59, 2 }
 0x685   : > { %v4198_v43 = vsel %vm4196_vm12, %v4197_v33, %v4193_v1  ;;  %v4595_v22 = vadd.s32 1, %v5528_v55  ;;  %v3457_v5 = vsel %vm3455_vm11, %v3443_v7, %v3456_v8  ;;  %vm3766_vm3 = vcmp.eq.s32.totalorder %v7600_v59, 0 }
 0x686   : > { %v4068_v39 = vmul.f32 %v4067_v57, %v4065_v49  ;;  %v4199_v38 = vadd.s32 %v4198_v43, %v4194_v10  ;;  %v3590_v20 = vsel %vm7480_vm14, 0, %v3588_v48  ;;  %v3768_v34 = vsel %vm3766_vm3, %v3443_v7, %v3456_v8 }
 0x687   : > { %vm3769_vm15 = vcmp.eq.s32.totalorder %v7600_v59, 2  ;;  %vm4596_vm4 = vcmp.gt.s32.totalorder %v4595_v22, 0  ;;  %v3460_v51 = vsel %vm3458_vm1, %v3459_v2, %v7611_v42  ;;  %v3604_v31 = vadd.f32 1.0, %v3603_v9 }
 0x688   : > { %v4200_v29 = vadd.s32 536870912, %v4199_v38  ;;  %v4597_v37 = vsel %vm4596_vm4, %v4595_v22, 0  ;;  %v3461_v14 = vsel %vm3454_vm10, %v3457_v5, %v3460_v51  ;;  %v7666_v6 = vadd.f32 1.0, %v3596_v19 }
 0x689   : > { %v3771_v41 = vsel %vm3769_vm15, %v3459_v2, %v7611_v42  ;;  %v4599_v61 = vand.u32 31, %v4597_v37  ;;  %v4069_v17 = vxor.u32 2147483648, %v4068_v39  ;;  %v4576_v32 = vmul.f32 %v7470_v3, %v8418_v46 }
 0x68a   : > { %v3772_v27 = vsel %vm3765_vm2, %v3768_v34, %v3771_v41  ;;  %v7671_v58 = vshrl.u32 %v4200_v29, 30  ;;  %v7675_v23 = vand.u32 3, %v3590_v20  ;;  %v3918_v56 = vadd.s32 3, %v3590_v20  ;;  %v8430_v29 = vld [vmem:[#allocation24_spill] sm:$0xff] }
 0x68b   : > { %5760 = vpow2.f32 %v7590_v52  ;;  %v4585_v12 = vand.u32 2147483647, %v7620_v36  ;;  %v3462_v42 = vsel %vm3452_vm13, nan, %v3461_v14  ;;  %v7682_v30 = vmul.f32 %v3604_v31, %v7513_v24 }
 0x68c   : > { %v4202_v59 = vshll.u32 %v7671_v58, 30  ;;  %v4578_v50 = vmul.f32 %v7453_v21, %v8416_v54  ;;  %v3613_v3 = vxor.u32 2147483648, %v7666_v6  ;;  %v3773_v46 = vsel %vm3452_vm13, nan, %v3772_v27 }
 0x68d   : > { %vm3949_vm14 = vcmp.lt.s32.totalorder %v8424_v47, 0  ;;  %v7691_v52 = vsub.s32 32, %v4599_v61  ;;  %v8425_v16 = vand.u32 2147483647, %v8424_v47  ;;  %vm3612_vm0 = vcmp.eq.s32.totalorder %v7675_v23, 2 }
 0x68e   : > { %v4070_v24 = vsel %vm3949_vm14, %v4069_v17, %v4068_v39  ;;  %v4203_v4 = vsub.s32 %v4199_v38, %v4202_v59  ;;  %v7701_v21 = vadd.f32 %v4578_v50, %v4576_v32  ;;  %v7705_v11 = vmul.f32 %v7502_v62, %v3462_v42 }
 0x68f   : > { %vm7695_vm5 = vcmp.le.f32.partialorder %v8425_v16, 0.7853982  ;;  %v7707_v54 = vand.u32 3, %v3918_v56  ;;  %v4592_v7 = vand.u32 8388607, %v4585_v12  ;;  %v3610_v13 = vxor.u32 2147483648, %v7682_v30 }
 0x690   : > { %v7713_v25 = vmul.f32 %v7502_v62, %v3773_v46  ;;  %vm4204_vm6 = vcmp.lt.s32.totalorder %v4203_v4, 0  ;;  %v4205_v15 = vsub.s32 0, %v4203_v4  ;;  %v7720_v1 = vsel %vm3612_vm0, %v3613_v3, %v7682_v30 }
 0x691   : > { %v7715_v44 = vpop.eup %5760  ;;  %v7725_v28 = vsel %vm7695_vm5, %v8424_v47, %v4070_v24  ;;  %v4603_v8 = vshrl.u32 %v8389_v45, %v7691_v52  ;;  %v4606_v62 = vshrl.u32 %v8390_v40, %v7691_v52  ;;  %v4609_v48 = vshrl.u32 %v8391_v60, %v7691_v52 }
 0x692   : > { %v4206_v49 = vsel %vm4204_vm6, %v4205_v15, %v4203_v4  ;;  %v8428_v33 = vmov 920167782   ;;  %v4742_v2 = vand.u32 2139095040, %v7701_v21  ;;  %v4593_v57 = vor.u32 8388608, %v4592_v7 }
 0x693   : > { %v4612_v55 = vshrl.u32 %v8428_v33, %v7691_v52  ;;  %v4207_v9 = vclz %v4206_v49  ;;  %v4602_v10 = vshll.u32 %v8388_v53, %v4599_v61  ;;  %v4605_v19 = vshll.u32 %v8389_v45, %v4599_v61 }
 0x694   : > { %v7738_v43 = vshrl.u32 %v4597_v37, 5  ;;  %v4608_v22 = vshll.u32 %v8390_v40, %v4599_v61  ;;  %v4611_v5 = vshll.u32 %v8391_v60, %v4599_v61  ;;  %v8429_v39 = vmov 1326507024  }
 0x695   : > { %v4615_v38 = vshrl.u32 %v8429_v39, %v7691_v52  ;;  %v5520_v20 = vadd.s32 4294967294, %v4207_v9  ;;  %v7744_v34 = vor.u32 %v4603_v8, %v4602_v10  ;;  %v7746_v51 = vor.u32 %v4606_v62, %v4605_v19 }
 0x696   : > { %v4614_v31 = vshll.u32 %v8428_v33, %v4599_v61  ;;  %v4071_v14 = vsub.s32 4, %v8430_v29  ;;  %v4195_v37 = vadd.s32 %v7638_v0, %v7633_v35  ;;  %v7752_v41 = vor.u32 %v4609_v48, %v4608_v22 }
 0x697   : > { %v4613_v27 = vor.u32 %v4612_v55, %v4611_v5  ;;  %v7756_v17 = vmul.f32 %v7725_v28, %v7725_v28  ;;  %vm5521_vm7 = vcmp.lt.s32.totalorder %v5520_v20, 0  ;;  %v4743_v56 = vshrl.u32 %v4742_v2, 23 }
 0x698   : > { %v4616_v32 = vor.u32 %v4615_v38, %v4614_v31  ;;  %v4210_v42 = vsel %vm5521_vm7, 0, %v5520_v20  ;;  %vm4617_vm8 = vcmp.lt.s32.totalorder %v7738_v43, 1  ;;  %vm4618_vm9 = vcmp.lt.s32.totalorder %v7738_v43, 2 }
 0x699   : > { %v7760_v61 = vshll.u32 %v4593_v57, 8  ;;  %v4211_v59 = vsub.s32 32, %v4210_v42  ;;  %v4215_v50 = vsub.s32 4294967266, %v4210_v42  ;;  %vm4620_vm10 = vcmp.lt.s32.totalorder %v7738_v43, 4 }
 0x69a   : > { %v4625_v35 = vsel %vm4617_vm8, %v7744_v34, %v7746_v51  ;;  %v4212_v0 = vshll.u32 %v4203_v4, %v4210_v42  ;;  %vm4619_vm11 = vcmp.lt.s32.totalorder %v7738_v43, 3  ;;  %v4626_v46 = vsel %vm4620_vm10, %v4613_v27, 920167782 }
 0x69b   : > { %v4629_v16 = vsel %vm4617_vm8, %v7746_v51, %v7752_v41  ;;  %v4213_v24 = vshrl.u32 %v4195_v37, %v4211_v59  ;;  %v4216_v7 = vadd.s32 127, %v4215_v50  ;;  %v4627_v15 = vsel %vm4619_vm11, %v7752_v41, %v4626_v46 }
 0x69c   : > { %v4630_v8 = vsel %vm4620_vm10, %v4616_v32, 1326507024  ;;  %v4076_v4 = vmul.f32 -0.001358992, %v7756_v17  ;;  %v4083_v62 = vmul.f32 -0.00019511016, %v7756_v17  ;;  %v4628_v49 = vsel %vm4618_vm9, %v4625_v35, %v4627_v15 }
 0x69d   : > { %v4631_v48 = vsel %vm4619_vm11, %v4613_v27, %v4630_v8  ;;  %v4214_v55 = vor.u32 %v4213_v24, %v4212_v0  ;;  %v4217_v2 = vshll.u32 %v4216_v7, 23  ;;  %v4634_v9 = vand.u32 65535, %v7760_v61  ;;  %v8431_v32 = vld [vmem:[#allocation22_spill] sm:$0xff] }
 0x69e   : > { %v5531_v57 = vadd.s32 4294967169, %v4743_v56  ;;  %v4632_v10 = vsel %vm4618_vm9, %v4629_v16, %v4631_v48  ;;  %v4635_v19 = vshrl.u32 %v7760_v61, 16  ;;  %v4658_v22 = vand.u32 65535, %v4628_v49 }
 0x69f   : > { %v4659_v5 = vshrl.u32 %v4628_v49, 16  ;;  %v7792_v38 = vsel %vm3949_vm14, %v4071_v14, %v8430_v29  ;;  %v4218_v20 = vor.u32 4788187, %v4217_v2  ;;  %v4636_v31 = vand.u32 65535, %v4632_v10 }
 0x6a0   : > { %v4739_v37 = vand.u32 2147483647, %v7701_v21  ;;  %v4077_v27 = vadd.f32 0.041655596, %v4076_v4  ;;  %vm4103_vm12 = vcmp.lt.s32.totalorder %v8431_v32, 0  ;;  %v4637_v56 = vshrl.u32 %v4632_v10, 16 }
 0x6a1   : > { %v4661_v42 = vmul.u32 %v4659_v5, %v4634_v9  ;;  %v4662_v59 = vmul.u32 %v4658_v22, %v4635_v19  ;;  %v4084_v50 = vadd.f32 0.008332121, %v4083_v62  ;;  %v4219_v35 = vand.u32 2147483647, %v4218_v20 }
 0x6a2   : > { %v4221_v0 = vcvt.s32.f32 %v4214_v55  ;;  %v4749_v46 = vadd.s32 1, %v5531_v57  ;;  %v4639_v16 = vmul.u32 %v4637_v56, %v4634_v9  ;;  %v4640_v24 = vmul.u32 %v4636_v31, %v4635_v19 }
 0x6a3   : > { %v4660_v7 = vmul.u32 %v4658_v22, %v4634_v9  ;;  %v4664_v15 = vshll.u32 %v4661_v42, 16  ;;  %v8432_v29 = vand.u32 2147483647, %v8431_v32  ;;  %v4601_v4 = vshrl.u32 %v8388_v53, %v7691_v52 }
 0x6a4   : > { %v4222_v8 = vmul.f32 %v4221_v0, %v4219_v35  ;;  %v4638_v49 = vmul.u32 %v4636_v31, %v4634_v9  ;;  %v4663_v48 = vmul.u32 %v4659_v5, %v4635_v19  ;;  %vm3924_vm1 = vcmp.eq.s32.totalorder %v7707_v54, 2 }
 0x6a5   : > { %vm7798_vm13 = vcmp.le.f32.partialorder %v8432_v29, 0.7853982  ;;  %v4641_v62 = vmul.u32 %v4637_v56, %v4635_v19  ;;  %v4642_v55 = vshll.u32 %v4639_v16, 16  ;;  %v4666_v2 = vshll.u32 %v4662_v59, 16 }
 0x6a6   : > { %vm4668_vm2 = vc.u32 %v4660_v7, %v4664_v15  ;;  %vm3609_vm3 = vcmp.eq.s32.totalorder %v7675_v23, 0  ;;  %vm3921_vm15 = vcmp.eq.s32.totalorder %v7707_v54, 0  ;;  %v4223_v57 = vxor.u32 2147483648, %v4222_v8 }
 0x6a7   : > { %v4669_v10 = vsel %vm4668_vm2, 1, %v8387_v26  ;;  %v4670_v22 = vadd.s32 %v4664_v15, %v4660_v7  ;;  %vm4750_vm4 = vcmp.gt.s32.totalorder %v4749_v46, 0  ;;  %v4644_v20 = vshll.u32 %v4640_v24, 16 }
 0x6a8   : > { %vm4646_vm14 = vc.u32 %v4638_v49, %v4642_v55  ;;  %v4648_v52 = vadd.s32 %v4642_v55, %v4638_v49  ;;  %v4671_v9 = vadd.s32 %v4669_v10, %v4663_v48  ;;  %v4622_v19 = vsel %vm4620_vm10, %v7752_v41, 2102212464 }
 0x6a9   : > { %v4647_v5 = vsel %vm4646_vm14, 1, %v8387_v26  ;;  %vm4672_vm0 = vc.u32 %v4670_v22, %v4666_v2  ;;  %v4751_v31 = vsel %vm4750_vm4, %v4749_v46, 0  ;;  %v4621_v56 = vsel %vm4617_vm8, %v4601_v4, %v7744_v34 }
 0x6aa   : > { %v4649_v35 = vadd.s32 %v4647_v5, %v4641_v62  ;;  %vm4650_vm6 = vc.u32 %v4648_v52, %v4644_v20  ;;  %v4673_v0 = vsel %vm4672_vm0, 1, %v8387_v26  ;;  %v4224_v7 = vsel %vm4103_vm12, %v4223_v57, %v4222_v8 }
 0x6ab   : > { %v4651_v15 = vsel %vm4650_vm6, 1, %v8387_v26  ;;  %v4665_v29 = vshrl.u32 %v4661_v42, 16  ;;  %v4675_v49 = vadd.s32 %v4673_v0, %v4671_v9  ;;  %v4623_v41 = vsel %vm4619_vm11, %v7746_v51, %v4622_v19 }
 0x6ac   : > { %v4643_v46 = vshrl.u32 %v4639_v16, 16  ;;  %v4653_v48 = vadd.s32 %v4651_v15, %v4649_v35  ;;  %v4753_v55 = vand.u32 31, %v4751_v31  ;;  %v4078_v34 = vmul.f32 %v4077_v27, %v7756_v17 }
 0x6ad   : > { %v4667_v4 = vshrl.u32 %v4662_v59, 16  ;;  %v4676_v62 = vadd.s32 %v4675_v49, %v4665_v29  ;;  %v7825_v10 = vand.u32 8388607, %v4739_v37  ;;  %v4085_v8 = vmul.f32 %v4084_v50, %v7756_v17 }
 0x6ae   : > { %v7831_v42 = vsel %vm7798_vm13, %v8431_v32, %v4224_v7  ;;  %v4645_v57 = vshrl.u32 %v4640_v24, 16  ;;  %v4654_v51 = vadd.s32 %v4653_v48, %v4643_v46  ;;  %v7838_v27 = vsel %vm3924_vm1, %v3613_v3, %v7682_v30 }
 0x6af   : > { %v4624_v59 = vsel %vm4618_vm9, %v4621_v56, %v4623_v41  ;;  %v4677_v16 = vadd.s32 %v4676_v62, %v4667_v4  ;;  %v7842_v20 = vsub.s32 32, %v4753_v55  ;;  %vm3608_vm7 = vcmp.lt.s32.totalorder %v7675_v23, 2 }
 0x6b0   : > { %v3611_v50 = vsel %vm3609_vm3, %v7666_v6, %v3610_v13  ;;  %v3923_v3 = vsel %vm3921_vm15, %v7666_v6, %v3610_v13  ;;  %v7855_v24 = vadd.s32 %v4654_v51, %v4645_v57  ;;  %v7857_v43 = vadd.s32 %v4670_v22, %v4666_v2 }
 0x6b1   : > { %v4074_v52 = vsel %vm7695_vm5, 0, %v7792_v38  ;;  %v7864_v9 = vmul.f32 %v7831_v42, %v7831_v42  ;;  %v4681_v19 = vadd.s32 1, %v4677_v16  ;;  %v4747_v5 = vor.u32 8388608, %v7825_v10 }
 0x6b2   : > { %v4079_v30 = vadd.f32 -0.4999988, %v4078_v34  ;;  %v4086_v56 = vadd.f32 -0.16666654, %v4085_v8  ;;  %v4678_v35 = vmul.u32 %v7760_v61, %v4624_v59  ;;  %vm4680_vm8 = vc.u32 %v7855_v24, %v7857_v43 }
 0x6b3   : > { %v4682_v6 = vsel %vm4680_vm8, %v4681_v19, %v4677_v16  ;;  %v7870_v13 = vshrl.u32 %v4751_v31, 5  ;;  %v4757_v18 = vshrl.u32 %v8389_v45, %v7842_v20  ;;  %v4760_v38 = vshrl.u32 %v8390_v40, %v7842_v20 }
 0x6b4   : > { %v4683_v2 = vadd.s32 %v4682_v6, %v4678_v35  ;;  %v4763_v22 = vshrl.u32 %v8391_v60, %v7842_v20  ;;  %v4765_v0 = vshll.u32 %v8391_v60, %v4753_v55  ;;  %v4766_v61 = vshrl.u32 %v8428_v33, %v7842_v20 }
 0x6b5   : > { %vm3920_vm5 = vcmp.lt.s32.totalorder %v7707_v54, 2  ;;  %v4237_v31 = vmul.f32 -0.00019511016, %v7864_v9  ;;  %v4756_v7 = vshll.u32 %v8388_v53, %v4753_v55  ;;  %v4759_v15 = vshll.u32 %v8389_v45, %v4753_v55 }
 0x6b6   : > { %v4769_v29 = vshrl.u32 %v8429_v39, %v7842_v20  ;;  %v4684_v49 = vadd.s32 536870912, %v4683_v2  ;;  %v4762_v41 = vshll.u32 %v8390_v40, %v4753_v55  ;;  %v4767_v46 = vor.u32 %v4766_v61, %v4765_v0 }
 0x6b7   : > { %v4768_v60 = vshll.u32 %v8428_v33, %v4753_v55  ;;  %v4087_v48 = vmul.f32 %v4086_v56, %v7756_v17  ;;  %v4225_v34 = vsub.s32 4, %v7671_v58  ;;  %v7891_v4 = vor.u32 %v4757_v18, %v4756_v7 }
 0x6b8   : > { %v7893_v62 = vor.u32 %v4760_v38, %v4759_v15  ;;  %v7895_v10 = vshrl.u32 %v4684_v49, 30  ;;  %v7897_v45 = vor.u32 %v4763_v22, %v4762_v41  ;;  %vm4774_vm9 = vcmp.lt.s32.totalorder %v7870_v13, 4 }
 0x6b9   : > { %v4770_v8 = vor.u32 %v4769_v29, %v4768_v60  ;;  %v7903_v40 = vsel %vm3608_vm7, %v3611_v50, %v7720_v1  ;;  %v4230_v33 = vmul.f32 -0.001358992, %v7864_v9  ;;  %v4238_v39 = vadd.f32 0.008332121, %v4237_v31 }
 0x6ba   : > { %v4780_v55 = vsel %vm4774_vm9, %v4767_v46, 920167782  ;;  %v4080_v57 = vmul.f32 %v4079_v30, %v7756_v17  ;;  %v4401_v51 = vadd.s32 3, %v4074_v52  ;;  %v4686_v59 = vshll.u32 %v7895_v10, 30 }
 0x6bb   : > { %vm4771_vm10 = vcmp.lt.s32.totalorder %v7870_v13, 1  ;;  %v4088_v16 = vadd.f32 1.0, %v4087_v48  ;;  %v4226_v23 = vsel %vm4103_vm12, %v4225_v34, %v7671_v58  ;;  %vm4773_vm11 = vcmp.lt.s32.totalorder %v7870_v13, 3 }
 0x6bc   : > { %v4779_v1 = vsel %vm4771_vm10, %v7891_v4, %v7893_v62  ;;  %v7919_v50 = vsub.s32 %v4683_v2, %v4686_v59  ;;  %v4781_v17 = vsel %vm4773_vm11, %v7897_v45, %v4780_v55  ;;  %v4783_v19 = vsel %vm4771_vm10, %v7893_v62, %v7897_v45 }
 0x6bd   : > { %v4784_v58 = vsel %vm4774_vm9, %v4770_v8, 1326507024  ;;  %v4231_v30 = vadd.f32 0.041655596, %v4230_v33  ;;  %v4239_v56 = vmul.f32 %v4238_v39, %v7864_v9  ;;  %v7933_v6 = vshll.u32 %v4747_v5, 8 }
 0x6be   : > { %v4785_v35 = vsel %vm4773_vm11, %v4767_v46, %v4784_v58  ;;  %v7938_v18 = vsel %vm3920_vm5, %v3923_v3, %v7838_v27  ;;  %vm4688_vm12 = vcmp.lt.s32.totalorder %v7919_v50, 0  ;;  %v4689_v38 = vsub.s32 0, %v7919_v50 }
 0x6bf   : > { %vm4772_vm1 = vcmp.lt.s32.totalorder %v7870_v13, 2  ;;  %v7943_v2 = vadd.f32 1.0, %v4080_v57  ;;  %v7945_v22 = vand.u32 3, %v4074_v52  ;;  %v7952_v54 = vmul.f32 %v4088_v16, %v7725_v28 }
 0x6c0   : > { %v4782_v0 = vsel %vm4772_vm1, %v4779_v1, %v4781_v17  ;;  %v4786_v5 = vsel %vm4772_vm1, %v4783_v19, %v4785_v35  ;;  %v7956_v27 = vsel %vm7798_vm13, 0, %v4226_v23  ;;  %v7958_v3 = vand.u32 3, %v4401_v51 }
 0x6c1   : > { %v4690_v61 = vsel %vm4688_vm12, %v4689_v38, %v7919_v50  ;;  %v4232_v52 = vmul.f32 %v4231_v30, %v7864_v9  ;;  %v4240_v31 = vadd.f32 -0.16666654, %v4239_v56  ;;  %v4788_v15 = vand.u32 65535, %v7933_v6 }
 0x6c2   : > { %v4691_v7 = vclz %v4690_v61  ;;  %v4789_v29 = vshrl.u32 %v7933_v6, 16  ;;  %v4790_v49 = vand.u32 65535, %v4786_v5  ;;  %v4791_v41 = vshrl.u32 %v4786_v5, 16 }
 0x6c3   : > { %v4813_v28 = vshrl.u32 %v4782_v0, 16  ;;  %v4097_v46 = vxor.u32 2147483648, %v7943_v2  ;;  %v7966_v14 = vand.u32 3, %v7956_v27  ;;  %v4812_v48 = vand.u32 65535, %v4782_v0 }
 0x6c4   : > { %v5529_v60 = vadd.s32 4294967294, %v4691_v7  ;;  %v4094_v34 = vxor.u32 2147483648, %v7952_v54  ;;  %v4679_v8 = vadd.s32 %v7857_v43, %v7855_v24  ;;  %v4793_v33 = vmul.u32 %v4791_v41, %v4788_v15 }
 0x6c5   : > { %v4794_v39 = vmul.u32 %v4790_v49, %v4789_v29  ;;  %v4233_v55 = vadd.f32 -0.4999988, %v4232_v52  ;;  %v4241_v57 = vmul.f32 %v4240_v31, %v7864_v9  ;;  %v4815_v51 = vmul.u32 %v4813_v28, %v4788_v15 }
 0x6c6   : > { %vm5530_vm13 = vcmp.lt.s32.totalorder %v5529_v60, 0  ;;  %v4792_v16 = vmul.u32 %v4790_v49, %v4788_v15  ;;  %v4795_v23 = vmul.u32 %v4791_v41, %v4789_v29  ;;  %v4796_v1 = vshll.u32 %v4793_v33, 16 }
 0x6c7   : > { %v4694_v59 = vsel %vm5530_vm13, 0, %v5529_v60  ;;  %v4814_v58 = vmul.u32 %v4812_v48, %v4788_v15  ;;  %v4816_v30 = vmul.u32 %v4812_v48, %v4789_v29  ;;  %v4798_v56 = vshll.u32 %v4794_v39, 16 }
 0x6c8   : > { %v4695_v17 = vsub.s32 32, %v4694_v59  ;;  %v4699_v19 = vsub.s32 4294967266, %v4694_v59  ;;  %vm4800_vm2 = vc.u32 %v4792_v16, %v4796_v1  ;;  %v4802_v35 = vadd.s32 %v4796_v1, %v4792_v16 }
 0x6c9   : > { %v4818_v38 = vshll.u32 %v4815_v51, 16  ;;  %vm4096_vm3 = vcmp.eq.s32.totalorder %v7945_v22, 2  ;;  %v4696_v24 = vshll.u32 %v7919_v50, %v4694_v59  ;;  %v4801_v5 = vsel %vm4800_vm2, 1, %v8387_v26 }
 0x6ca   : > { %v4697_v43 = vshrl.u32 %v4679_v8, %v4695_v17  ;;  %v4700_v0 = vadd.s32 127, %v4699_v19  ;;  %vm4093_vm15 = vcmp.eq.s32.totalorder %v7945_v22, 0  ;;  %v4797_v61 = vshrl.u32 %v4793_v33, 16 }
 0x6cb   : > { %v4803_v52 = vadd.s32 %v4801_v5, %v4795_v23  ;;  %vm4804_vm4 = vc.u32 %v4802_v35, %v4798_v56  ;;  %v4817_v31 = vmul.u32 %v4813_v28, %v4789_v29  ;;  %vm4822_vm14 = vc.u32 %v4814_v58, %v4818_v38 }
 0x6cc   : > { %v4698_v7 = vor.u32 %v4697_v43, %v4696_v24  ;;  %v4701_v15 = vshll.u32 %v4700_v0, 23  ;;  %v4805_v49 = vsel %vm4804_vm4, 1, %v8387_v26  ;;  %vm4587_vm0 = vcmp.lt.s32.totalorder %v7620_v36, 0 }
 0x6cd   : > { %v4807_v41 = vadd.s32 %v4805_v49, %v4803_v52  ;;  %v4820_v60 = vshll.u32 %v4816_v30, 16  ;;  %v4823_v50 = vsel %vm4822_vm14, 1, %v8387_v26  ;;  %v4824_v48 = vadd.s32 %v4818_v38, %v4814_v58 }
 0x6ce   : > { %v4242_v8 = vadd.f32 1.0, %v4241_v57  ;;  %v4702_v59 = vor.u32 4788187, %v4701_v15  ;;  %v4755_v33 = vshrl.u32 %v8388_v53, %v7842_v20  ;;  %v4825_v16 = vadd.s32 %v4823_v50, %v4817_v31 }
 0x6cf   : > { %vm4092_vm6 = vcmp.lt.s32.totalorder %v7945_v22, 2  ;;  %v4234_v29 = vmul.f32 %v4233_v55, %v7864_v9  ;;  %v4776_v28 = vsel %vm4774_vm9, %v7897_v45, 2102212464  ;;  %v4808_v23 = vadd.s32 %v4807_v41, %v4797_v61 }
 0x6d0   : > { %vm4826_vm7 = vc.u32 %v4824_v48, %v4820_v60  ;;  %vm4404_vm8 = vcmp.eq.s32.totalorder %v7958_v3, 0  ;;  %v4703_v1 = vand.u32 2147483647, %v4702_v59  ;;  %v4705_v17 = vcvt.s32.f32 %v4698_v7 }
 0x6d1   : > { %v4799_v57 = vshrl.u32 %v4794_v39, 16  ;;  %v4827_v19 = vsel %vm4826_vm7, 1, %v8387_v26  ;;  %v4556_v53 = vadd.s32 3, %v7956_v27  ;;  %v4775_v20 = vsel %vm4771_vm10, %v4755_v33, %v7891_v4 }
 0x6d2   : > { %v4819_v9 = vshrl.u32 %v4815_v51, 16  ;;  %v4829_v55 = vadd.s32 %v4827_v19, %v4825_v16  ;;  %v4243_v58 = vmul.f32 %v4242_v8, %v7831_v42  ;;  %vm4407_vm5 = vcmp.eq.s32.totalorder %v7958_v3, 2  ;;  %v8438_v19 = vld [vmem:[#allocation23_spill] sm:$0xff] }
 0x6d3   : > { %v4706_v45 = vmul.f32 %v4705_v17, %v4703_v1  ;;  %v4777_v56 = vsel %vm4773_vm11, %v7893_v62, %v4776_v28  ;;  %v7997_v39 = vadd.s32 %v4808_v23, %v4799_v57  ;;  %v4098_v26 = vsel %vm4096_vm3, %v4097_v46, %v7952_v54 }
 0x6d4   : > { %vm8006_vm9 = vcmp.le.f32.partialorder %v4585_v12, 0.7853982  ;;  %v4821_v42 = vshrl.u32 %v4816_v30, 16  ;;  %v4830_v27 = vadd.s32 %v4829_v55, %v4819_v9  ;;  %v4095_v62 = vsel %vm4093_vm15, %v7943_v2, %v4094_v34 }
 0x6d5   : > { %v4235_v51 = vadd.f32 1.0, %v4234_v29  ;;  %vm4403_vm10 = vcmp.lt.s32.totalorder %v7958_v3, 2  ;;  %v4707_v35 = vxor.u32 2147483648, %v4706_v45  ;;  %v8016_v38 = vadd.s32 %v4824_v48, %v4820_v60  ;;  %v8437_v3 = vld [vmem:[#allocation6_spill] sm:$0xff] }
 0x6d6   : > { %v4557_v24 = vand.u32 3, %v4556_v53  ;;  %v4709_v12 = vsub.s32 4, %v7895_v10  ;;  %v4778_v43 = vsel %vm4772_vm1, %v4775_v20, %v4777_v56  ;;  %v4831_v30 = vadd.s32 %v4830_v27, %v4821_v42  ;;  %v8440_v27 = vld [vmem:[#allocation25_spill] sm:$0xff] }
 0x6d7   : > { %vm3606_vm11 = vweird.f32 %v7179_v63  ;;  %vm4246_vm12 = vcmp.lt.s32.totalorder %v7966_v14, 2  ;;  %v4248_v0 = vxor.u32 2147483648, %v4243_v58  ;;  %v4708_v5 = vsel %vm4587_vm0, %v4707_v35, %v4706_v45  ;;  %v8441_v35 = vld [vmem:[#allocation26_spill] sm:$0xff] }
 0x6d8   : > { %vm4834_vm13 = vc.u32 %v7997_v39, %v8016_v38  ;;  %vm4090_vm2 = vweird.f32 %v8424_v47  ;;  %vm4247_vm3 = vcmp.eq.s32.totalorder %v7966_v14, 0  ;;  %vm4250_vm15 = vcmp.eq.s32.totalorder %v7966_v14, 2 }
 0x6d9   : > { %v4711_v13 = vsel %vm8006_vm9, %v7620_v36, %v4708_v5  ;;  %v4835_v61 = vadd.s32 1, %v4831_v30  ;;  %v4099_v52 = vsel %vm4092_vm6, %v4095_v62, %v4098_v26  ;;  %v4251_v31 = vxor.u32 2147483648, %v4235_v51 }
 0x6da   : > { %v4713_v7 = vmul.f32 %v4711_v13, %v4711_v13  ;;  %v4832_v15 = vmul.u32 %v7933_v6, %v4778_v43  ;;  %v4406_v49 = vsel %vm4404_vm8, %v7943_v2, %v4094_v34  ;;  %vm4559_vm1 = vcmp.eq.s32.totalorder %v4557_v24, 0 }
 0x6db   : > { %v4710_v41 = vsel %vm4587_vm0, %v4709_v12, %v7895_v10  ;;  %v4836_v60 = vsel %vm4834_vm13, %v4835_v61, %v4831_v30  ;;  %v4249_v50 = vsel %vm4247_vm3, %v4235_v51, %v4248_v0  ;;  %v4409_v6 = vsel %vm4407_vm5, %v4097_v46, %v7952_v54 }
 0x6dc   : > { %v4714_v48 = vmul.f32 -0.001358992, %v4713_v7  ;;  %v4721_v22 = vmul.f32 -0.00019511016, %v4713_v7  ;;  %v4837_v8 = vadd.s32 %v4836_v60, %v4832_v15  ;;  %vm4558_vm4 = vcmp.lt.s32.totalorder %v4557_v24, 2 }
 0x6dd   : > { %v4561_v59 = vsel %vm4559_vm1, %v4235_v51, %v4248_v0  ;;  %vm4562_vm14 = vcmp.eq.s32.totalorder %v4557_v24, 2  ;;  %v4252_v34 = vsel %vm4250_vm15, %v4251_v31, %v4243_v58  ;;  %v4410_v28 = vsel %vm4403_vm10, %v4406_v49, %v4409_v6  ;;  %v5766_v49 = vld [vmem:[%s5916_s17] sm:$0xff] }
 0x6de   : > { %v4715_v33 = vadd.f32 0.041655596, %v4714_v48  ;;  %v4722_v16 = vadd.f32 0.008332121, %v4721_v22  ;;  %v4838_v10 = vadd.s32 536870912, %v4837_v8  ;;  %v4253_v29 = vsel %vm4246_vm12, %v4249_v50, %v4252_v34  ;;  %v8107_v50 = vld [vmem:[%s5916_s17 + $0x8] sm:$0xff] }
 0x6df   : > { %v4564_v23 = vsel %vm4562_vm14, %v4251_v31, %v4243_v58  ;;  %v4712_v2 = vsel %vm8006_vm9, 0, %v4710_v41  ;;  %v3616_v57 = vsel %vm3606_vm11, nan, %v7903_v40  ;;  %v3928_v14 = vsel %vm3606_vm11, nan, %v7938_v18  ;;  %v8442_v41 = vld [vmem:[#allocation9_spill] sm:$0xff]  ;;  %v8443_v48 = vld [vmem:[#allocation18_spill] sm:$0xff]  ;;  %v8445_v34 = vld [vmem:[#allocation19_spill] sm:$0xff] }
 0x6e0   : > { %v4565_v54 = vsel %vm4558_vm4, %v4561_v59, %v4564_v23  ;;  %v4716_v46 = vmul.f32 %v4715_v33, %v4713_v7  ;;  %v4723_v1 = vmul.f32 %v4722_v16, %v4713_v7  ;;  %v8057_v17 = vshrl.u32 %v4838_v10, 30  ;;  %v8114_v59 = vld [vmem:[%s5907_s25 + $0x8] sm:$0xff] }
 0x6e1   : > { %vm4244_vm0 = vweird.f32 %v8431_v32  ;;  %v8439_v53 = vsub.f32 %v8437_v3, %v8438_v19  ;;  %v4100_v9 = vsel %vm4090_vm2, nan, %v4099_v52  ;;  %v4411_v40 = vsel %vm4090_vm2, nan, %v4410_v28 }
 0x6e2   : > { %v4717_v55 = vadd.f32 -0.4999988, %v4716_v46  ;;  %v4724_v58 = vadd.f32 -0.16666654, %v4723_v1  ;;  %v4840_v45 = vshll.u32 %v8057_v17, 30  ;;  %v4254_v56 = vsel %vm4244_vm0, nan, %v4253_v29 }
 0x6e3   : > { %v4581_v20 = vmul.f32 1.442695, %v8439_v53  ;;  %v4566_v26 = vsel %vm4244_vm0, nan, %v4565_v54  ;;  %v5039_v63 = vadd.s32 3, %v4712_v2  ;;  %v4729_v32 = vand.u32 3, %v4712_v2  ;;  %v8446_v29 = vld [vmem:[#allocation12_spill] sm:$0xff] }
 0x6e4   : > { %v4718_v18 = vmul.f32 %v4717_v55, %v4713_v7  ;;  %v4725_v4 = vmul.f32 %v4724_v58, %v4713_v7  ;;  %v8074_v42 = vsub.s32 %v4837_v8, %v4840_v45  ;;  %v8077_v62 = vmul.f32 %v8440_v27, %v3616_v57  ;;  %v8444_v8 = vld [vmem:[#allocation10_spill] sm:$0xff]  ;;  %v8449_v55 = vld [vmem:[#allocation15_spill] sm:$0xff] }
 0x6e5   : > { %v8080_v51 = vmul.f32 %v8440_v27, %v3928_v14  ;;  %v8083_v24 = vmul.f32 %v8441_v35, %v4100_v9  ;;  %5762 = vpow2.f32 %v4581_v20  ;;  %v8090_v30 = vmul.f32 %v7715_v44, %v4254_v56  ;;  %v8447_v54 = vld [vmem:[#allocation14_spill] sm:$0xff]  ;;  %v8448_v20 = vld [vmem:[#allocation13_spill] sm:$0xff] }
 0x6e6   : > { %v8085_v12 = vadd.f32 1.0, %v4718_v18  ;;  %v4726_v47 = vadd.f32 1.0, %v4725_v4  ;;  %vm4842_vm6 = vcmp.lt.s32.totalorder %v8074_v42, 0  ;;  %v4843_v43 = vsub.s32 0, %v8074_v42 }
 0x6e7   : > { %v8093_v0 = vmul.f32 %v8441_v35, %v4411_v40  ;;  %v8096_v5 = vmul.f32 %v7715_v44, %v4566_v26  ;;  %vm4728_vm7 = vweird.f32 %v7620_v36  ;;  %v8099_v61 = vand.u32 3, %v5039_v63 }
 0x6e8   : > { %v4727_v52 = vmul.f32 %v4726_v47, %v4711_v13  ;;  %vm4730_vm8 = vcmp.lt.s32.totalorder %v4729_v32, 2  ;;  %v4735_v31 = vxor.u32 2147483648, %v8085_v12  ;;  %v4844_v7 = vsel %vm4842_vm6, %v4843_v43, %v8074_v42  ;;  %v5768_v13 = vld [vmem:[%s5907_s25] sm:$0xff]  ;;  %s5544_s25 = sshll.u32 %s8456_s30, 6 }
 0x6e9   : > { %vm4731_vm5 = vcmp.eq.s32.totalorder %v4729_v32, 0  ;;  %vm4734_vm9 = vcmp.eq.s32.totalorder %v4729_v32, 2  ;;  %v4845_v15 = vclz %v4844_v7  ;;  %v5207_v60 = vadd.f32 %v5766_v49, %v8442_v41  ;;  %s8204_s24 = scalar_lea.vmem %s8312_s13, %s5544_s25  ;;  %s8216_s28 = scalar_lea.vmem %s8313_s14, %s5544_s25 }
 0x6ea   : > { %v4732_v44 = vxor.u32 2147483648, %v4727_v52  ;;  %vm4741_vm10 = vcmp.lt.s32.totalorder %v7701_v21, 0  ;;  %v5208_v22 = vadd.f32 %v8107_v50, %v8443_v48  ;;  %v5209_v6 = vadd.f32 %v5768_v13, %v8444_v8 }
 0x6eb   : > { %v5210_v33 = vadd.f32 %v8114_v59, %v8445_v34  ;;  %v5763_v16 = vpop.eup %5762  ;;  %v5532_v10 = vadd.s32 4294967294, %v4845_v15  ;;  %vm5042_vm11 = vcmp.eq.s32.totalorder %v8099_v61, 0  ;;  %vm5045_vm12 = vcmp.eq.s32.totalorder %v8099_v61, 2 }
 0x6ec   : > { %v8121_v28 = vadd.f32 %v5766_v49, %v8446_v29  ;;  %v4733_v23 = vsel %vm4731_vm5, %v8085_v12, %v4732_v44  ;;  %v4736_v2 = vsel %vm4734_vm9, %v4735_v31, %v4727_v52  ;;  %vm5041_vm13 = vcmp.lt.s32.totalorder %v8099_v61, 2 }
 0x6ed   : > { %v8129_v46 = vadd.f32 %v8107_v50, %v8447_v54  ;;  %v5255_v1 = vsub.f32 0.0, %v8442_v41  ;;  %v4737_v57 = vsel %vm4730_vm8, %v4733_v23, %v4736_v2  ;;  %vm5533_vm2 = vcmp.lt.s32.totalorder %v5532_v10, 0 }
 0x6ee   : > { %v5257_v14 = vsub.f32 0.0, %v8444_v8  ;;  %v5283_v3 = vsub.f32 0.0, %v8446_v29  ;;  %v4848_v19 = vsel %vm5533_vm2, 0, %v5532_v10  ;;  %v5284_v53 = vsub.f32 0.0, %v8447_v54 }
 0x6ef   : > { %v5285_v9 = vsub.f32 0.0, %v8448_v20  ;;  %v5286_v58 = vsub.f32 0.0, %v8449_v55  ;;  %v4833_v45 = vadd.s32 %v8016_v38, %v7997_v39  ;;  %v4849_v56 = vsub.s32 32, %v4848_v19 }
 0x6f0   : > { %v4853_v40 = vsub.s32 4294967266, %v4848_v19  ;;  %v4863_v26 = vsub.s32 4, %v8057_v17  ;;  %v4738_v63 = vsel %vm4728_vm7, nan, %v4737_v57  ;;  %v5233_v18 = vadd.f32 %v5768_v13, %v8448_v20 }
 0x6f1   : > { %v5234_v4 = vadd.f32 %v8114_v59, %v8449_v55  ;;  %v8148_v32 = vadd.f32 %v5766_v49, %v5255_v1  ;;  %v4850_v27 = vshll.u32 %v8074_v42, %v4848_v19  ;;  %v4851_v39 = vshrl.u32 %v4833_v45, %v4849_v56 }
 0x6f2   : > { %v4854_v38 = vadd.s32 127, %v4853_v40  ;;  %v8153_v35 = vadd.f32 %v5768_v13, %v5257_v14  ;;  %v8157_v47 = vadd.f32 %v5766_v49, %v5283_v3  ;;  %v8162_v43 = vadd.f32 %v8107_v50, %v5284_v53 }
 0x6f3   : > { %v8166_v7 = vadd.f32 %v5768_v13, %v5285_v9  ;;  %v8171_v42 = vadd.f32 %v8114_v59, %v5286_v58  ;;  %v4852_v15 = vor.u32 %v4851_v39, %v4850_v27  ;;  %v8176_v49 = vsel %vm4741_vm10, %v4863_v26, %v8057_v17 }
 0x6f4   : > { %v4855_v10 = vshll.u32 %v4854_v38, 23  ;;  %v4893_v23 = vmul.f32 %v5763_v16, %v4738_v63  ;;  %v5044_v2 = vsel %vm5042_vm11, %v8085_v12, %v4732_v44  ;;  %v5047_v13 = vsel %vm5045_vm12, %v4735_v31, %v4727_v52 }
 0x6f5   : > { %v5211_v57 = vmul.f32 %v5207_v60, %v7705_v11  ;;  %v5212_v19 = vmul.f32 %v5208_v22, %v8077_v62  ;;  %vm8188_vm3 = vcmp.le.f32.partialorder %v4739_v37, 0.7853982  ;;  %v4859_v56 = vcvt.s32.f32 %v4852_v15 }
 0x6f6   : > { %v4856_v17 = vor.u32 4788187, %v4855_v10  ;;  %v5048_v40 = vsel %vm5041_vm13, %v5044_v2, %v5047_v13  ;;  %v5213_v12 = vmul.f32 %v5209_v6, %v7713_v25  ;;  %v5214_v31 = vmul.f32 %v5210_v33, %v8080_v51 }
 0x6f7   : > { %v5049_v52 = vsel %vm4728_vm7, nan, %v5048_v40  ;;  %v5217_v44 = vmul.f32 %v5207_v60, %v7713_v25  ;;  %v5218_v26 = vmul.f32 %v5208_v22, %v8080_v51  ;;  %v5219_v39 = vmul.f32 %v5209_v6, %v7705_v11 }
 0x6f8   : > { %v4857_v37 = vand.u32 2147483647, %v4856_v17  ;;  %v5205_v63 = vmul.f32 %v5763_v16, %v5049_v52  ;;  %v5215_v27 = vsub.f32 %v5211_v57, %v5213_v12  ;;  %v5216_v61 = vsub.f32 %v5212_v19, %v5214_v31 }
 0x6f9   : > { %v5220_v36 = vmul.f32 %v5210_v33, %v8077_v62  ;;  %v5235_v38 = vmul.f32 %v8121_v28, %v8083_v24  ;;  %v5236_v25 = vmul.f32 %v8129_v46, %v8090_v30  ;;  %v5221_v60 = vadd.f32 %v5219_v39, %v5217_v44 }
 0x6fa   : > { %v4860_v51 = vmul.f32 %v4859_v56, %v4857_v37  ;;  %v5223_v11 = vsub.f32 %v5215_v27, %v8442_v41  ;;  %v5237_v22 = vmul.f32 %v5233_v18, %v8093_v0  ;;  %v5224_v6 = vsub.f32 %v5216_v61, %v8443_v48 }
 0x6fb   : > { %v5222_v62 = vadd.f32 %v5220_v36, %v5218_v26  ;;  %v5238_v33 = vmul.f32 %v5234_v4, %v8096_v5  ;;  %v5241_v16 = vmul.f32 %v8121_v28, %v8093_v0  ;;  %v5227_v10 = vsub.f32 %v5221_v60, %v8444_v8 }
 0x6fc   : > { %v4861_v15 = vxor.u32 2147483648, %v4860_v51  ;;  %5225 = vst [vmem:[%s8204_s24] sm:$0xff] %v5223_v11  ;;  %v5239_v2 = vsub.f32 %v5235_v38, %v5237_v22  ;;  %v5242_v13 = vmul.f32 %v8129_v46, %v8096_v5  ;;  %v5243_v17 = vmul.f32 %v5233_v18, %v8083_v24 }
 0x6fd   : > { %5226 = vst [vmem:[%s8204_s24 + $0x8] sm:$0xff] %v5224_v6  ;;  %v5228_v57 = vsub.f32 %v5222_v62, %v8445_v34  ;;  %v5240_v19 = vsub.f32 %v5236_v25, %v5238_v33  ;;  %v5244_v56 = vmul.f32 %v5234_v4, %v8090_v30  ;;  %v5263_v12 = vmul.f32 %v8148_v32, %v4893_v23 }
 0x6fe   : > { %v4862_v28 = vsel %vm4741_vm10, %v4861_v15, %v4860_v51  ;;  %5229 = vst [vmem:[%s8216_s28] sm:$0xff] %v5227_v10  ;;  %v5247_v40 = vsub.f32 %v5239_v2, %v8446_v29  ;;  %v5265_v46 = vmul.f32 %v8153_v35, %v5205_v63  ;;  %v5245_v31 = vadd.f32 %v5243_v17, %v5241_v16  ;;  %v8452_v15 = vld [vmem:[#allocation11_spill] sm:$0xff]  ;;  %v8453_v10 = vld [vmem:[#allocation8_spill] sm:$0xff] }
 0x6ff   : > { %v4865_v52 = vsel %vm8188_vm3, %v7701_v21, %v4862_v28  ;;  %5230 = vst [vmem:[%s8216_s28 + $0x8] sm:$0xff] %v5228_v57  ;;  %v5246_v18 = vadd.f32 %v5244_v56, %v5242_v13  ;;  %v5248_v4 = vsub.f32 %v5240_v19, %v8447_v54  ;;  %v5269_v37 = vmul.f32 %v8148_v32, %v5205_v63 }
 0x700   : > { %v4867_v44 = vmul.f32 %v4865_v52, %v4865_v52  ;;  %5249 = vst [vmem:[%s8204_s24 + $0x10] sm:$0xff] %v5247_v40  ;;  %v5267_v26 = vsub.f32 %v5263_v12, %v5265_v46  ;;  %v5271_v27 = vmul.f32 %v8153_v35, %v4893_v23  ;;  %v5251_v39 = vsub.f32 %v5245_v31, %v8448_v20 }
 0x701   : > { %5250 = vst [vmem:[%s8204_s24 + $0x18] sm:$0xff] %v5248_v4  ;;  %v5252_v61 = vsub.f32 %v5246_v18, %v8449_v55  ;;  %v5291_v36 = vmul.f32 %v8157_v47, %v8083_v24  ;;  %v5292_v38 = vmul.f32 %v8162_v43, %v8090_v30  ;;  %v5293_v35 = vmul.f32 %v8166_v7, %v8093_v0 }
 0x702   : > { %v4868_v25 = vmul.f32 -0.001358992, %v4867_v44  ;;  %v4875_v51 = vmul.f32 -0.00019511016, %v4867_v44  ;;  %v5273_v60 = vadd.f32 %v5271_v27, %v5269_v37  ;;  %v5275_v32 = vsub.f32 %v5267_v26, %v5255_v1  ;;  %5253 = vst [vmem:[%s8216_s28 + $0x10] sm:$0xff] %v5251_v39 }
 0x703   : > { %v5294_v23 = vmul.f32 %v8171_v42, %v8096_v5  ;;  %v5297_v63 = vmul.f32 %v8157_v47, %v8093_v0  ;;  %v5298_v11 = vmul.f32 %v8162_v43, %v8096_v5  ;;  %5254 = vst [vmem:[%s8216_s28 + $0x18] sm:$0xff] %v5252_v61  ;;  %v5299_v1 = vmul.f32 %v8166_v7, %v8083_v24 }
 0x704   : > { %v4869_v22 = vadd.f32 0.041655596, %v4868_v25  ;;  %v4876_v62 = vadd.f32 0.008332121, %v4875_v51  ;;  %v5279_v41 = vsub.f32 %v5273_v60, %v5257_v14  ;;  %5277 = vst [vmem:[%s8204_s24 + $0x20] sm:$0xff] %v5275_v32  ;;  %v5295_v6 = vsub.f32 %v5291_v36, %v5293_v35 }
 0x705   : > { %v5296_v33 = vsub.f32 %v5292_v38, %v5294_v23  ;;  %v5300_v16 = vmul.f32 %v8171_v42, %v8090_v30  ;;  %v4866_v0 = vsel %vm8188_vm3, 0, %v8176_v49  ;;  %v5301_v8 = vadd.f32 %v5299_v1, %v5297_v63 }
 0x706   : > { %v4870_v5 = vmul.f32 %v4869_v22, %v4867_v44  ;;  %v4877_v47 = vmul.f32 %v4876_v62, %v4867_v44  ;;  %5281 = vst [vmem:[%s8216_s28 + $0x20] sm:$0xff] %v5279_v41  ;;  %v5303_v24 = vsub.f32 %v5295_v6, %v5283_v3  ;;  %v5194_v49 = vadd.s32 3, %v4866_v0 }
 0x707   : > { %v5302_v14 = vadd.f32 %v5300_v16, %v5298_v11  ;;  %v5304_v43 = vsub.f32 %v5296_v33, %v5284_v53  ;;  %v5307_v42 = vsub.f32 %v5301_v8, %v5285_v9  ;;  %v8454_v2 = vsub.f32 %v8452_v15, %v8453_v10 }
 0x708   : > { %v4871_v7 = vadd.f32 -0.4999988, %v4870_v5  ;;  %v4878_v30 = vadd.f32 -0.16666654, %v4877_v47  ;;  %5305 = vst [vmem:[%s8204_s24 + $0x30] sm:$0xff] %v5303_v24  ;;  %v4883_v57 = vand.u32 3, %v4866_v0  ;;  %vm4882_vm7 = vweird.f32 %v7701_v21 }
 0x709   : > { %v5308_v45 = vsub.f32 %v5302_v14, %v5286_v58  ;;  %v4583_v13 = vmul.f32 1.442695, %v8454_v2  ;;  %5306 = vst [vmem:[%s8204_s24 + $0x38] sm:$0xff] %v5304_v43  ;;  %v5195_v19 = vand.u32 3, %v5194_v49  ;;  %v5256_v17 = vsub.f32 0.0, %v8443_v48 }
 0x70a   : > { %v4872_v29 = vmul.f32 %v4871_v7, %v4867_v44  ;;  %v4879_v3 = vmul.f32 %v4878_v30, %v4867_v44  ;;  %5309 = vst [vmem:[%s8216_s28 + $0x30] sm:$0xff] %v5307_v42  ;;  %vm4884_vm15 = vcmp.lt.s32.totalorder %v4883_v57, 2  ;;  %vm4885_vm1 = vcmp.eq.s32.totalorder %v4883_v57, 0 }
 0x70b   : > { %5310 = vst [vmem:[%s8216_s28 + $0x38] sm:$0xff] %v5308_v45  ;;  %5764 = vpow2.f32 %v4583_v13  ;;  %v5258_v58 = vsub.f32 0.0, %v8445_v34  ;;  %vm4888_vm4 = vcmp.eq.s32.totalorder %v4883_v57, 2  ;;  %vm5196_vm14 = vcmp.lt.s32.totalorder %v5195_v19, 2 }
 0x70c   : > { %v4873_v54 = vadd.f32 1.0, %v4872_v29  ;;  %v4880_v53 = vadd.f32 1.0, %v4879_v3  ;;  %vm5197_vm0 = vcmp.eq.s32.totalorder %v5195_v19, 0  ;;  %vm5200_vm6 = vcmp.eq.s32.totalorder %v5195_v19, 2 }
 0x70d   : > { %v5260_v34 = vadd.f32 %v8107_v50, %v5256_v17  ;;  %v5262_v26 = vadd.f32 %v8114_v59, %v5258_v58 }
 0x70e   : > { %v4881_v20 = vmul.f32 %v4880_v53, %v4865_v52  ;;  %v4889_v9 = vxor.u32 2147483648, %v4873_v54 }
 0x710   : > { %v4886_v55 = vxor.u32 2147483648, %v4881_v20  ;;  %v4890_v28 = vsel %vm4888_vm4, %v4889_v9, %v4881_v20  ;;  %v5202_v12 = vsel %vm5200_vm6, %v4889_v9, %v4881_v20 }
 0x711   : > { %v5765_v31 = vpop.eup %5764 }
 0x712   : > { %v4887_v56 = vsel %vm4885_vm1, %v4873_v54, %v4886_v55  ;;  %v5199_v40 = vsel %vm5197_vm0, %v4873_v54, %v4886_v55 }
 0x713   : > { %v4891_v46 = vsel %vm4884_vm15, %v4887_v56, %v4890_v28  ;;  %v5203_v52 = vsel %vm5196_vm14, %v5199_v40, %v5202_v12 }
 0x714   : > { %v4892_v48 = vsel %vm4882_vm7, nan, %v4891_v46  ;;  %v5204_v18 = vsel %vm4882_vm7, nan, %v5203_v52 }
 0x715   : > { %v4894_v4 = vmul.f32 %v5765_v31, %v4892_v48  ;;  %v5206_v44 = vmul.f32 %v5765_v31, %v5204_v18 }
 0x717   : > { %v5264_v37 = vmul.f32 %v5260_v34, %v4894_v4  ;;  %v5266_v27 = vmul.f32 %v5262_v26, %v5206_v44  ;;  %v5270_v39 = vmul.f32 %v5260_v34, %v5206_v44  ;;  %v5272_v61 = vmul.f32 %v5262_v26, %v4894_v4 }
 0x719   : > { %v5268_v36 = vsub.f32 %v5264_v37, %v5266_v27  ;;  %v5274_v38 = vadd.f32 %v5272_v61, %v5270_v39 }
 0x71b   : > { %v5276_v21 = vsub.f32 %v5268_v36, %v5256_v17  ;;  %v5280_v25 = vsub.f32 %v5274_v38, %v5258_v58 }
 0x71d   : > { %5278 = vst [vmem:[%s8204_s24 + $0x28] sm:$0xff] %v5276_v21 }
 0x71e   : > { %5282 = vst [vmem:[%s8216_s28 + $0x28] sm:$0xff] %v5280_v25 }
 0x71f PF: > { %s25_s29 = sadd.s32 1, %s5776_s29  }
 0x720   : > { %p22_p4 = scmp.ge.s32.totalorder %s25_s29, 4  }
 0x722   :  { %24 = sbr.rel (!%p22_p4) target bundleno = 1 (0x1), region = 117 }

</bundles_post_ra>
